<compile_context>
chip_gen: v5e
topology: v5e:2x2
jax: 0.10.0
libtpu: 0.0.40
codegen_flags: <defaults>
</compile_context>

<pallas_src>
import functools
import string

import numpy as np
import jax
import jax.numpy as jnp
from jax import lax
from jax.experimental import pallas as pl
from jax.experimental.pallas import tpu as pltpu

# ---- norse default neuron constants ----
DT = 1e-3
TAU_SYN_INV = 200.0       # 1 / 5e-3
TAU_MEM_INV = 100.0       # 1 / 1e-2
V_LEAK = 0.0
V_RESET = 0.0
ENC_V_TH = 1.0            # ConstantCurrentLIFEncoder default LIFParameters
V_TH_CONV = 0.7           # lif0 / lif1
V_TH_FC = 1.0             # lif2 (default)

ALPHABET = ''.join(c for c in (string.digits + string.ascii_uppercase)
                   if c not in {'0', 'l'})
NUM_CLASSES = len(ALPHABET)   # 35
NC_PAD = 128                  # readout/state/output padded to a full lane width


# ------------------------------ fused Pallas kernel ------------------------------

def _fused_kernel(patches_ref, w0_ref, b0_ref, g3_ref, w13_ref, b1_ref, wf_ref, bf_ref, wo_ref,
                  out_ref,
                  venc_ref, v0_ref, i0_ref, v1_ref, i1_ref, v2_ref, i2_ref,
                  vo_ref, io_ref, mx_ref,
                  *, timesteps, batch, bp0, m1, nsp):
    """Single invocation: init state, run all timesteps in a fori_loop, log_softmax."""
    # ---- init all neuron state (VMEM-resident for the whole call) ----
    for r in (venc_ref, v0_ref, i0_ref, v1_ref, i1_ref, v2_ref, i2_ref, vo_ref, io_ref):
        r[...] = jnp.zeros(r.shape, jnp.float32)
    mx_ref[...] = jnp.full(mx_ref.shape, -jnp.inf, jnp.float32)

    q = nsp * batch

    def step(t, carry):
        # --- ConstantCurrentLIFEncoder (pointwise on the im2col'd constant current) ---
        cur = patches_ref[...]
        v_enc = venc_ref[...]
        v_enc = v_enc + DT * TAU_MEM_INV * ((V_LEAK - v_enc) + cur)
        fire_in = v_enc > ENC_V_TH
        z_in = fire_in.astype(jnp.float32)
        venc_ref[...] = jnp.where(fire_in, V_RESET, v_enc)

        # TODO(synk): Dropout(0.2) treated as identity (inference mode).

        # --- conv0: ONE im2col dot over all 4 pool-window chunks, then LIF0 ---
        c0 = jnp.dot(z_in, w0_ref[...], preferred_element_type=jnp.float32) + b0_ref[...]
        v0 = v0_ref[...]
        i0 = i0_ref[...]
        v0d = v0 + DT * TAU_MEM_INV * ((V_LEAK - v0) + i0)
        i0d = i0 - DT * TAU_SYN_INV * i0
        fire0 = v0d > V_TH_CONV
        z0 = fire0.astype(jnp.float32)
        v0_ref[...] = jnp.where(fire0, V_RESET, v0d)
        i0_ref[...] = i0d + c0

        # --- 2x2 maxpool #0: rows ordered (window, b, ph0, pw0) -> max of 4 row chunks ---
        pooled0 = jnp.maximum(jnp.maximum(z0[0:bp0], z0[bp0:2 * bp0]),
                              jnp.maximum(z0[2 * bp0:3 * bp0], z0[3 * bp0:4 * bp0]))
        # (the reference's post-pool "*10" is folded into the gather tensor G)

        # --- conv1: batched gather einsum (bf16-exact {0,10} x {0,1}) + batched weight
        #     einsum over the 25 shifts, then sum over shifts ---
        p0b = jnp.broadcast_to(pooled0.astype(jnp.bfloat16)[None], (25, bp0, 32))
        dup = jnp.einsum('jrs,jsc->jrc', g3_ref[...], p0b,
                         preferred_element_type=jnp.float32)        # (25, m1, 32), exact
        c1p = jnp.einsum('jrc,jck->jrk', dup, w13_ref[...],
                         preferred_element_type=jnp.float32)        # (25, m1, 64)
        c1 = jnp.sum(c1p, axis=0) + b1_ref[...]                      # (m1, 64)

        # --- LIF1 ---
        v1 = v1_ref[...]
        i1 = i1_ref[...]
        v1d = v1 + DT * TAU_MEM_INV * ((V_LEAK - v1) + i1)
        i1d = i1 - DT * TAU_SYN_INV * i1
        fire1 = v1d > V_TH_CONV
        z1 = fire1.astype(jnp.float32)
        v1_ref[...] = jnp.where(fire1, V_RESET, v1d)
        i1_ref[...] = i1d + c1

        # --- 2x2 maxpool #1: rows ordered (window, s, b) -> max of 4 row chunks ---
        pooled1 = jnp.maximum(jnp.maximum(z1[0:q], z1[q:2 * q]),
                              jnp.maximum(z1[2 * q:3 * q], z1[3 * q:4 * q]))   # (nsp*B, 64)

        # --- fc0 (torch NCHW flatten folded into wf's K permutation) + LIF2 ---
        c2 = jnp.dot(pooled1[0:batch], wf_ref[0:64, :],
                     preferred_element_type=jnp.float32)
        for s in range(1, nsp):
            c2 = c2 + jnp.dot(pooled1[s * batch:(s + 1) * batch],
                              wf_ref[s * 64:(s + 1) * 64, :],
                              preferred_element_type=jnp.float32)
        c2 = c2 + bf_ref[...]

        v2 = v2_ref[...]
        i2 = i2_ref[...]
        v2d = v2 + DT * TAU_MEM_INV * ((V_LEAK - v2) + i2)
        i2d = i2 - DT * TAU_SYN_INV * i2
        fire2 = v2d > V_TH_FC
        z2 = fire2.astype(jnp.float32)
        v2_ref[...] = jnp.where(fire2, V_RESET, v2d)
        i2_ref[...] = i2d + c2

        # --- relu (identity on {0,1} spikes) + LILinearCell readout + running max ---
        x_out = jnp.maximum(z2, 0.0)
        i_jump = io_ref[...] + jnp.dot(x_out, wo_ref[...],
                                       preferred_element_type=jnp.float32)
        v_new = vo_ref[...] + DT * TAU_MEM_INV * ((V_LEAK - vo_ref[...]) + i_jump)
        io_ref[...] = i_jump - DT * TAU_SYN_INV * i_jump
        vo_ref[...] = v_new
        mx_ref[...] = jnp.maximum(mx_ref[...], v_new)
        return carry

    lax.fori_loop(0, timesteps, step, 0)

    # ---- log_softmax over the valid (un-padded) class lanes; padded lanes -> -inf ----
    m = mx_ref[...]
    lane = lax.broadcasted_iota(jnp.int32, m.shape, 1)
    m = jnp.where(lane < NUM_CLASSES, m, -jnp.inf)
    s = m - jnp.max(m, axis=-1, keepdims=True)
    out_ref[...] = s - jnp.log(jnp.sum(jnp.exp(s), axis=-1, keepdims=True))


# ------------------------------ one-time host/XLA glue ------------------------------

def _build_conv0_patches(images):
    """im2col of the (constant) input current, rows ordered (pool window, b, ph0, pw0),
    features ordered (ky, kx, c) to match the (2,3,1,0)-transposed conv0 weight."""
    B, C, H, W = images.shape
    OH0, OW0 = H - 4, W - 4
    PH0, PW0 = OH0 // 2, OW0 // 2
    x = jnp.transpose(images, (0, 2, 3, 1))                                   # NHWC
    cols = [x[:, ky:ky + OH0, kx:kx + OW0, :] for ky in range(5) for kx in range(5)]
    p = jnp.stack(cols, axis=3)                                               # (B,OH0,OW0,25,C)
    p = p.reshape(B, PH0, 2, PW0, 2, 25 * C)                                  # split pool windows
    p = jnp.transpose(p, (2, 4, 0, 1, 3, 5))                                  # (wy0,wx0,B,PH0,PW0,K)
    return p.reshape(4 * B * PH0 * PW0, 25 * C)


def _build_gather_tensor(B, PH0, PW0, PH1, PW1):
    """Constant bf16 {0,10} tensor implementing conv1's im2col row-gather from pooled0
    (the reference's "*10" post-pool scale is folded in).  Shape (25, M1, B*PH0*PW0)."""
    OH1, OW1 = 2 * PH1, 2 * PW1
    M1 = B * OH1 * OW1
    nsp = PH1 * PW1
    G = np.zeros((25, M1, B * PH0 * PW0), np.float32)
    for dy in range(5):
        for dx in range(5):
            j = dy * 5 + dx
            for wy1 in range(2):
                for wx1 in range(2):
                    for ph1 in range(PH1):
                        for pw1 in range(PW1):
                            for b in range(B):
                                oh1 = 2 * ph1 + wy1
                                ow1 = 2 * pw1 + wx1
                                r1 = ((wy1 * 2 + wx1) * nsp + ph1 * PW1 + pw1) * B + b
                                src = b * (PH0 * PW0) + (oh1 + dy) * PW0 + (ow1 + dx)
                                G[j, r1, src] = 10.0
    return jnp.asarray(G, dtype=jnp.bfloat16)   # 0/10 are bf16-exact


def init_params(key, channels, image_w, image_h):
    fc_in = 64 * (((image_w - 4) // 2 - 4) // 2) * (((image_h - 4) // 2 - 4) // 2)
    ks = jax.random.split(key, 7)
    params = dict(
        conv0_w=0.30 * jax.random.normal(ks[0], (32, channels, 5, 5), jnp.float32),
        conv0_b=0.20 * jax.random.normal(ks[1], (32,), jnp.float32),
        conv1_w=0.05 * jax.random.normal(ks[2], (64, 32, 5, 5), jnp.float32),
        conv1_b=0.05 * jax.random.normal(ks[3], (64,), jnp.float32),
        fc0_w=0.05 * jax.random.normal(ks[4], (1024, fc_in), jnp.float32),
        fc0_b=0.05 * jax.random.normal(ks[5], (1024,), jnp.float32),
        out_w=0.10 * jax.random.normal(ks[6], (NUM_CLASSES, 1024), jnp.float32),
    )
    return params, fc_in


def captcha_recognizer_forward(params, images, timesteps):
    """images: (B, C, H, W) float32 (NCHW, as in PyTorch)."""
    assert timesteps >= 1
    B, C, H, W = images.shape
    OH0, OW0 = H - 4, W - 4
    assert OH0 % 2 == 0 and OW0 % 2 == 0
    PH0, PW0 = OH0 // 2, OW0 // 2
    OH1, OW1 = PH0 - 4, PW0 - 4
    assert OH1 > 0 and OW1 > 0 and OH1 % 2 == 0 and OW1 % 2 == 0
    PH1, PW1 = OH1 // 2, OW1 // 2
    nsp = PH1 * PW1                    # fc spatial positions
    bp0 = B * PH0 * PW0                # pooled0 rows (and conv0 rows per pool window)
    m1 = B * OH1 * OW1                 # conv1 output rows

    # One-time layout work (outside the time loop): patches of the constant current,
    # the conv1 gather tensor, and torch-convention weights re-laid-out for the kernel.
    patches = _build_conv0_patches(images)                            # (4*bp0, 25*C)
    g3 = _build_gather_tensor(B, PH0, PW0, PH1, PW1)                  # (25, m1, bp0) bf16

    w0 = jnp.transpose(params['conv0_w'], (2, 3, 1, 0)).reshape(25 * C, 32)
    b0 = params['conv0_b'].reshape(1, 32)
    w13 = jnp.transpose(params['conv1_w'], (2, 3, 1, 0)).reshape(25, 32, 64)
    b1 = params['conv1_b'].reshape(1, 64)
    wf = params['fc0_w'].reshape(1024, 64, PH1, PW1)                  # torch (out, c, h, w)
    wf = jnp.transpose(wf, (2, 3, 1, 0)).reshape(nsp * 64, 1024)      # rows = (ph1, pw1, c)
    bf = params['fc0_b'].reshape(1, 1024)
    wo = jnp.pad(params['out_w'].T, ((0, 0), (0, NC_PAD - NUM_CLASSES)))   # (1024, 128)

    kernel = functools.partial(_fused_kernel, timesteps=timesteps,
                               batch=B, bp0=bp0, m1=m1, nsp=nsp)

    def _full(shape):
        nd = len(shape)
        return pl.BlockSpec(shape, lambda *_: (0,) * nd)

    out_padded = pl.pallas_call(
        kernel,
        out_shape=jax.ShapeDtypeStruct((B, NC_PAD), jnp.float32),
        in_specs=[_full(patches.shape), _full(w0.shape), _full(b0.shape), _full(g3.shape),
                  _full(w13.shape), _full(b1.shape), _full(wf.shape), _full(bf.shape),
                  _full(wo.shape)],
        out_specs=_full((B, NC_PAD)),
        scratch_shapes=[
            pltpu.VMEM(patches.shape, jnp.float32),         # encoder membrane
            pltpu.VMEM((4 * bp0, 32), jnp.float32),         # lif0 v
            pltpu.VMEM((4 * bp0, 32), jnp.float32),         # lif0 i
            pltpu.VMEM((m1, 64), jnp.float32),              # lif1 v
            pltpu.VMEM((m1, 64), jnp.float32),              # lif1 i
            pltpu.VMEM((B, 1024), jnp.float32),             # lif2 v
            pltpu.VMEM((B, 1024), jnp.float32),             # lif2 i
            pltpu.VMEM((B, NC_PAD), jnp.float32),           # readout (LI) v
            pltpu.VMEM((B, NC_PAD), jnp.float32),           # readout (LI) i
            pltpu.VMEM((B, NC_PAD), jnp.float32),           # running max over timesteps
        ],
    )(patches, w0, b0, g3, w13, b1, wf, bf, wo)

    return out_padded[:, :NUM_CLASSES]


if __name__ == "__main__":
    key = jax.random.PRNGKey(0)
    B, C, H, W, T = 2, 3, 20, 20, 6
    k_img, k_par = jax.random.split(key)
    # scale inputs so the constant-current LIF encoder actually emits spikes
    images = 8.0 * jax.random.uniform(k_img, (B, C, H, W), dtype=jnp.float32)
    params, fc_in = init_params(k_par, C, W, H)

    fwd = jax.jit(functools.partial(captcha_recognizer_forward, timesteps=T))
    out = jax.block_until_ready(fwd(params, images))

    assert out.shape == (B, NUM_CLASSES)
    assert bool(jnp.all(jnp.isfinite(out)))
    # rows of a log_softmax must log-sum-exp to ~0
    assert bool(jnp.allclose(jax.scipy.special.logsumexp(out, axis=1), 0.0, atol=1e-4))
    print("KERNEL_OK")
</pallas_src>

<mosaic_0001>
module attributes {stable_mosaic.version = 11 : i64} {
  func.func @_fused_kernel(%arg0: memref<512x75xf32, #tpu.memory_space<vmem>>, %arg1: memref<75x32xf32, #tpu.memory_space<vmem>>, %arg2: memref<1x32xf32, #tpu.memory_space<vmem>>, %arg3: memref<25x32x128xbf16, #tpu.memory_space<vmem>>, %arg4: memref<25x32x64xf32, #tpu.memory_space<vmem>>, %arg5: memref<1x64xf32, #tpu.memory_space<vmem>>, %arg6: memref<256x1024xf32, #tpu.memory_space<vmem>>, %arg7: memref<1x1024xf32, #tpu.memory_space<vmem>>, %arg8: memref<1024x128xf32, #tpu.memory_space<vmem>>, %arg9: memref<2x128xf32, #tpu.memory_space<vmem>>, %arg10: memref<512x75xf32, #tpu.memory_space<vmem>>, %arg11: memref<512x32xf32, #tpu.memory_space<vmem>>, %arg12: memref<512x32xf32, #tpu.memory_space<vmem>>, %arg13: memref<32x64xf32, #tpu.memory_space<vmem>>, %arg14: memref<32x64xf32, #tpu.memory_space<vmem>>, %arg15: memref<2x1024xf32, #tpu.memory_space<vmem>>, %arg16: memref<2x1024xf32, #tpu.memory_space<vmem>>, %arg17: memref<2x128xf32, #tpu.memory_space<vmem>>, %arg18: memref<2x128xf32, #tpu.memory_space<vmem>>, %arg19: memref<2x128xf32, #tpu.memory_space<vmem>>) attributes {dimension_semantics = [], scalar_prefetch = 0 : i64, scratch_operands = 10 : i64, tpu.core_type = #tpu.core_type<tc>} {
    %cst = arith.constant 0.000000e+00 : f32
    %0 = vector.broadcast %cst : f32 to vector<512x75xf32>
    %c0 = arith.constant 0 : index
    %c0_0 = arith.constant 0 : index
    %1 = vector.load %arg10[%c0, %c0_0] : memref<512x75xf32, #tpu.memory_space<vmem>>, vector<512x75xf32>
    tpu.vector_store %arg10[%c0, %c0_0], %0 {strides = array<i32>} : memref<512x75xf32, #tpu.memory_space<vmem>>, vector<512x75xf32>,
    %cst_1 = arith.constant 0.000000e+00 : f32
    %2 = vector.broadcast %cst_1 : f32 to vector<512x32xf32>
    %c0_2 = arith.constant 0 : index
    %c0_3 = arith.constant 0 : index
    %3 = vector.load %arg11[%c0_2, %c0_3] : memref<512x32xf32, #tpu.memory_space<vmem>>, vector<512x32xf32>
    tpu.vector_store %arg11[%c0_2, %c0_3], %2 {strides = array<i32>} : memref<512x32xf32, #tpu.memory_space<vmem>>, vector<512x32xf32>,
    %cst_4 = arith.constant 0.000000e+00 : f32
    %4 = vector.broadcast %cst_4 : f32 to vector<512x32xf32>
    %c0_5 = arith.constant 0 : index
    %c0_6 = arith.constant 0 : index
    %5 = vector.load %arg12[%c0_5, %c0_6] : memref<512x32xf32, #tpu.memory_space<vmem>>, vector<512x32xf32>
    tpu.vector_store %arg12[%c0_5, %c0_6], %4 {strides = array<i32>} : memref<512x32xf32, #tpu.memory_space<vmem>>, vector<512x32xf32>,
    %cst_7 = arith.constant 0.000000e+00 : f32
    %6 = vector.broadcast %cst_7 : f32 to vector<32x64xf32>
    %c0_8 = arith.constant 0 : index
    %c0_9 = arith.constant 0 : index
    %7 = vector.load %arg13[%c0_8, %c0_9] : memref<32x64xf32, #tpu.memory_space<vmem>>, vector<32x64xf32>
    tpu.vector_store %arg13[%c0_8, %c0_9], %6 {strides = array<i32>} : memref<32x64xf32, #tpu.memory_space<vmem>>, vector<32x64xf32>,
    %cst_10 = arith.constant 0.000000e+00 : f32
    %8 = vector.broadcast %cst_10 : f32 to vector<32x64xf32>
    %c0_11 = arith.constant 0 : index
    %c0_12 = arith.constant 0 : index
    %9 = vector.load %arg14[%c0_11, %c0_12] : memref<32x64xf32, #tpu.memory_space<vmem>>, vector<32x64xf32>
    tpu.vector_store %arg14[%c0_11, %c0_12], %8 {strides = array<i32>} : memref<32x64xf32, #tpu.memory_space<vmem>>, vector<32x64xf32>,
    %cst_13 = arith.constant 0.000000e+00 : f32
    %10 = vector.broadcast %cst_13 : f32 to vector<2x1024xf32>
    %c0_14 = arith.constant 0 : index
    %c0_15 = arith.constant 0 : index
    %11 = vector.load %arg15[%c0_14, %c0_15] : memref<2x1024xf32, #tpu.memory_space<vmem>>, vector<2x1024xf32>
    tpu.vector_store %arg15[%c0_14, %c0_15], %10 {strides = array<i32>} : memref<2x1024xf32, #tpu.memory_space<vmem>>, vector<2x1024xf32>,
    %cst_16 = arith.constant 0.000000e+00 : f32
    %12 = vector.broadcast %cst_16 : f32 to vector<2x1024xf32>
    %c0_17 = arith.constant 0 : index
    %c0_18 = arith.constant 0 : index
    %13 = vector.load %arg16[%c0_17, %c0_18] : memref<2x1024xf32, #tpu.memory_space<vmem>>, vector<2x1024xf32>
    tpu.vector_store %arg16[%c0_17, %c0_18], %12 {strides = array<i32>} : memref<2x1024xf32, #tpu.memory_space<vmem>>, vector<2x1024xf32>,
    %cst_19 = arith.constant 0.000000e+00 : f32
    %14 = vector.broadcast %cst_19 : f32 to vector<2x128xf32>
    %c0_20 = arith.constant 0 : index
    %c0_21 = arith.constant 0 : index
    %15 = vector.load %arg17[%c0_20, %c0_21] : memref<2x128xf32, #tpu.memory_space<vmem>>, vector<2x128xf32>
    tpu.vector_store %arg17[%c0_20, %c0_21], %14 {strides = array<i32>} : memref<2x128xf32, #tpu.memory_space<vmem>>, vector<2x128xf32>,
    %cst_22 = arith.constant 0.000000e+00 : f32
    %16 = vector.broadcast %cst_22 : f32 to vector<2x128xf32>
    %c0_23 = arith.constant 0 : index
    %c0_24 = arith.constant 0 : index
    %17 = vector.load %arg18[%c0_23, %c0_24] : memref<2x128xf32, #tpu.memory_space<vmem>>, vector<2x128xf32>
    tpu.vector_store %arg18[%c0_23, %c0_24], %16 {strides = array<i32>} : memref<2x128xf32, #tpu.memory_space<vmem>>, vector<2x128xf32>,
    %cst_25 = arith.constant 0xFF800000 : f32
    %18 = vector.broadcast %cst_25 : f32 to vector<2x128xf32>
    %c0_26 = arith.constant 0 : index
    %c0_27 = arith.constant 0 : index
    %19 = vector.load %arg19[%c0_26, %c0_27] : memref<2x128xf32, #tpu.memory_space<vmem>>, vector<2x128xf32>
    tpu.vector_store %arg19[%c0_26, %c0_27], %18 {strides = array<i32>} : memref<2x128xf32, #tpu.memory_space<vmem>>, vector<2x128xf32>,
    %c0_i32 = arith.constant 0 : i32
    %c6_i32 = arith.constant 6 : i32
    %20 = arith.addi %c0_i32, %c6_i32 : i32
    %c1_i32 = arith.constant 1 : i32
    scf.for %arg20 = %c0_i32 to %20 step %c1_i32  : i32 {
      %c0_35 = arith.constant 0 : index
      %c0_36 = arith.constant 0 : index
      %38 = vector.load %arg0[%c0_35, %c0_36] : memref<512x75xf32, #tpu.memory_space<vmem>>, vector<512x75xf32>
      %c0_37 = arith.constant 0 : index
      %c0_38 = arith.constant 0 : index
      %39 = vector.load %arg10[%c0_37, %c0_38] : memref<512x75xf32, #tpu.memory_space<vmem>>, vector<512x75xf32>
      %cst_39 = arith.constant 0.000000e+00 : f32
      %40 = vector.broadcast %cst_39 : f32 to vector<512x75xf32>
      %41 = arith.subf %40, %39 : vector<512x75xf32>
      %42 = arith.addf %41, %38 : vector<512x75xf32>
      %cst_40 = arith.constant 1.000000e-01 : f32
      %43 = vector.broadcast %cst_40 : f32 to vector<512x75xf32>
      %44 = arith.mulf %43, %42 : vector<512x75xf32>
      %45 = arith.addf %39, %44 : vector<512x75xf32>
      %cst_41 = arith.constant 1.000000e+00 : f32
      %46 = vector.broadcast %cst_41 : f32 to vector<512x75xf32>
      %47 = arith.cmpf ogt, %45, %46 : vector<512x75xf32>
      %48 = arith.extui %47 : vector<512x75xi1> to vector<512x75xi32>
      %49 = arith.sitofp %48 : vector<512x75xi32> to vector<512x75xf32>
      %cst_42 = arith.constant 0.000000e+00 : f32
      %50 = vector.broadcast %cst_42 : f32 to vector<512x75xf32>
      %51 = arith.select %47, %50, %45 : vector<512x75xi1>, vector<512x75xf32>
      %c0_43 = arith.constant 0 : index
      %c0_44 = arith.constant 0 : index
      %52 = vector.load %arg10[%c0_43, %c0_44] : memref<512x75xf32, #tpu.memory_space<vmem>>, vector<512x75xf32>
      tpu.vector_store %arg10[%c0_43, %c0_44], %51 {strides = array<i32>} : memref<512x75xf32, #tpu.memory_space<vmem>>, vector<512x75xf32>,
      %c0_45 = arith.constant 0 : index
      %c0_46 = arith.constant 0 : index
      %53 = vector.load %arg1[%c0_45, %c0_46] : memref<75x32xf32, #tpu.memory_space<vmem>>, vector<75x32xf32>
      %cst_47 = arith.constant dense<0.000000e+00> : vector<512x32xf32>
      %54 = tpu.matmul %49, %53, %cst_47 {dimension_numbers = #tpu.dot_dimension_numbers<[1], [0], [0], [1], [0, 0, 1, 1], [], []>} : vector<512x75xf32>, vector<75x32xf32>, vector<512x32xf32> -> vector<512x32xf32>
      %c0_48 = arith.constant 0 : index
      %c0_49 = arith.constant 0 : index
      %55 = vector.load %arg2[%c0_48, %c0_49] : memref<1x32xf32, #tpu.memory_space<vmem>>, vector<1x32xf32>
      %56 = vector.broadcast %55 : vector<1x32xf32> to vector<512x32xf32>
      %57 = arith.addf %54, %56 : vector<512x32xf32>
      %c0_50 = arith.constant 0 : index
      %c0_51 = arith.constant 0 : index
      %58 = vector.load %arg11[%c0_50, %c0_51] : memref<512x32xf32, #tpu.memory_space<vmem>>, vector<512x32xf32>
      %c0_52 = arith.constant 0 : index
      %c0_53 = arith.constant 0 : index
      %59 = vector.load %arg12[%c0_52, %c0_53] : memref<512x32xf32, #tpu.memory_space<vmem>>, vector<512x32xf32>
      %cst_54 = arith.constant 0.000000e+00 : f32
      %60 = vector.broadcast %cst_54 : f32 to vector<512x32xf32>
      %61 = arith.subf %60, %58 : vector<512x32xf32>
      %62 = arith.addf %61, %59 : vector<512x32xf32>
      %cst_55 = arith.constant 1.000000e-01 : f32
      %63 = vector.broadcast %cst_55 : f32 to vector<512x32xf32>
      %64 = arith.mulf %63, %62 : vector<512x32xf32>
      %65 = arith.addf %58, %64 : vector<512x32xf32>
      %cst_56 = arith.constant 2.000000e-01 : f32
      %66 = vector.broadcast %cst_56 : f32 to vector<512x32xf32>
      %67 = arith.mulf %66, %59 : vector<512x32xf32>
      %68 = arith.subf %59, %67 : vector<512x32xf32>
      %cst_57 = arith.constant 0.699999988 : f32
      %69 = vector.broadcast %cst_57 : f32 to vector<512x32xf32>
      %70 = arith.cmpf ogt, %65, %69 : vector<512x32xf32>
      %71 = arith.extui %70 : vector<512x32xi1> to vector<512x32xi32>
      %72 = arith.sitofp %71 : vector<512x32xi32> to vector<512x32xf32>
      %cst_58 = arith.constant 0.000000e+00 : f32
      %73 = vector.broadcast %cst_58 : f32 to vector<512x32xf32>
      %74 = arith.select %70, %73, %65 : vector<512x32xi1>, vector<512x32xf32>
      %c0_59 = arith.constant 0 : index
      %c0_60 = arith.constant 0 : index
      %75 = vector.load %arg11[%c0_59, %c0_60] : memref<512x32xf32, #tpu.memory_space<vmem>>, vector<512x32xf32>
      tpu.vector_store %arg11[%c0_59, %c0_60], %74 {strides = array<i32>} : memref<512x32xf32, #tpu.memory_space<vmem>>, vector<512x32xf32>,
      %76 = arith.addf %68, %57 : vector<512x32xf32>
      %c0_61 = arith.constant 0 : index
      %c0_62 = arith.constant 0 : index
      %77 = vector.load %arg12[%c0_61, %c0_62] : memref<512x32xf32, #tpu.memory_space<vmem>>, vector<512x32xf32>
      tpu.vector_store %arg12[%c0_61, %c0_62], %76 {strides = array<i32>} : memref<512x32xf32, #tpu.memory_space<vmem>>, vector<512x32xf32>,
      %78 = vector.extract_strided_slice %72 {offsets = [0, 0], sizes = [128, 32], strides = [1, 1]} : vector<512x32xf32> to vector<128x32xf32>
      %79 = vector.extract_strided_slice %72 {offsets = [128, 0], sizes = [128, 32], strides = [1, 1]} : vector<512x32xf32> to vector<128x32xf32>
      %80 = arith.maximumf %78, %79 : vector<128x32xf32>
      %81 = vector.extract_strided_slice %72 {offsets = [256, 0], sizes = [128, 32], strides = [1, 1]} : vector<512x32xf32> to vector<128x32xf32>
      %82 = vector.extract_strided_slice %72 {offsets = [384, 0], sizes = [128, 32], strides = [1, 1]} : vector<512x32xf32> to vector<128x32xf32>
      %83 = arith.maximumf %81, %82 : vector<128x32xf32>
      %84 = arith.maximumf %80, %83 : vector<128x32xf32>
      %85 = arith.truncf %84 : vector<128x32xf32> to vector<128x32xbf16>
      %86 = vector.shape_cast %85 : vector<128x32xbf16> to vector<1x128x32xbf16>
      %87 = vector.shape_cast %86 : vector<1x128x32xbf16> to vector<1x128x32xbf16>
      %88 = vector.broadcast %87 : vector<1x128x32xbf16> to vector<25x128x32xbf16>
      %c0_63 = arith.constant 0 : index
      %c0_64 = arith.constant 0 : index
      %c0_65 = arith.constant 0 : index
      %89 = vector.load %arg3[%c0_63, %c0_64, %c0_65] : memref<25x32x128xbf16, #tpu.memory_space<vmem>>, vector<25x32x128xbf16>
      "tpu.trace_start"() <{level = 10 : i32, message = "jrs,jsc->jrc"}> : () -> ()
      %cst_66 = arith.constant dense<0.000000e+00> : vector<25x32x32xf32>
      %90 = tpu.matmul %89, %88, %cst_66 {dimension_numbers = #tpu.dot_dimension_numbers<[2], [1], [1], [2], [0, 0, 0, 1, 1, 2], [0], [0]>} : vector<25x32x128xbf16>, vector<25x128x32xbf16>, vector<25x32x32xf32> -> vector<25x32x32xf32>
      "tpu.trace_stop"() : () -> ()
      %c0_67 = arith.constant 0 : index
      %c0_68 = arith.constant 0 : index
      %c0_69 = arith.constant 0 : index
      %91 = vector.load %arg4[%c0_67, %c0_68, %c0_69] : memref<25x32x64xf32, #tpu.memory_space<vmem>>, vector<25x32x64xf32>
      "tpu.trace_start"() <{level = 10 : i32, message = "jrc,jck->jrk"}> : () -> ()
      %cst_70 = arith.constant dense<0.000000e+00> : vector<25x32x64xf32>
      %92 = tpu.matmul %90, %91, %cst_70 {dimension_numbers = #tpu.dot_dimension_numbers<[2], [1], [1], [2], [0, 0, 0, 1, 1, 2], [0], [0]>} : vector<25x32x32xf32>, vector<25x32x64xf32>, vector<25x32x64xf32> -> vector<25x32x64xf32>
      "tpu.trace_stop"() : () -> ()
      %cst_71 = arith.constant dense<0.000000e+00> : vector<32x64xf32>
      %93 = vector.multi_reduction <add>, %92, %cst_71 [0] : vector<25x32x64xf32> to vector<32x64xf32>
      %c0_72 = arith.constant 0 : index
      %c0_73 = arith.constant 0 : index
      %94 = vector.load %arg5[%c0_72, %c0_73] : memref<1x64xf32, #tpu.memory_space<vmem>>, vector<1x64xf32>
      %95 = vector.broadcast %94 : vector<1x64xf32> to vector<32x64xf32>
      %96 = arith.addf %93, %95 : vector<32x64xf32>
      %c0_74 = arith.constant 0 : index
      %c0_75 = arith.constant 0 : index
      %97 = vector.load %arg13[%c0_74, %c0_75] : memref<32x64xf32, #tpu.memory_space<vmem>>, vector<32x64xf32>
      %c0_76 = arith.constant 0 : index
      %c0_77 = arith.constant 0 : index
      %98 = vector.load %arg14[%c0_76, %c0_77] : memref<32x64xf32, #tpu.memory_space<vmem>>, vector<32x64xf32>
      %cst_78 = arith.constant 0.000000e+00 : f32
      %99 = vector.broadcast %cst_78 : f32 to vector<32x64xf32>
      %100 = arith.subf %99, %97 : vector<32x64xf32>
      %101 = arith.addf %100, %98 : vector<32x64xf32>
      %cst_79 = arith.constant 1.000000e-01 : f32
      %102 = vector.broadcast %cst_79 : f32 to vector<32x64xf32>
      %103 = arith.mulf %102, %101 : vector<32x64xf32>
      %104 = arith.addf %97, %103 : vector<32x64xf32>
      %cst_80 = arith.constant 2.000000e-01 : f32
      %105 = vector.broadcast %cst_80 : f32 to vector<32x64xf32>
      %106 = arith.mulf %105, %98 : vector<32x64xf32>
      %107 = arith.subf %98, %106 : vector<32x64xf32>
      %cst_81 = arith.constant 0.699999988 : f32
      %108 = vector.broadcast %cst_81 : f32 to vector<32x64xf32>
      %109 = arith.cmpf ogt, %104, %108 : vector<32x64xf32>
      %110 = arith.extui %109 : vector<32x64xi1> to vector<32x64xi32>
      %111 = arith.sitofp %110 : vector<32x64xi32> to vector<32x64xf32>
      %cst_82 = arith.constant 0.000000e+00 : f32
      %112 = vector.broadcast %cst_82 : f32 to vector<32x64xf32>
      %113 = arith.select %109, %112, %104 : vector<32x64xi1>, vector<32x64xf32>
      %c0_83 = arith.constant 0 : index
      %c0_84 = arith.constant 0 : index
      %114 = vector.load %arg13[%c0_83, %c0_84] : memref<32x64xf32, #tpu.memory_space<vmem>>, vector<32x64xf32>
      tpu.vector_store %arg13[%c0_83, %c0_84], %113 {strides = array<i32>} : memref<32x64xf32, #tpu.memory_space<vmem>>, vector<32x64xf32>,
      %115 = arith.addf %107, %96 : vector<32x64xf32>
      %c0_85 = arith.constant 0 : index
      %c0_86 = arith.constant 0 : index
      %116 = vector.load %arg14[%c0_85, %c0_86] : memref<32x64xf32, #tpu.memory_space<vmem>>, vector<32x64xf32>
      tpu.vector_store %arg14[%c0_85, %c0_86], %115 {strides = array<i32>} : memref<32x64xf32, #tpu.memory_space<vmem>>, vector<32x64xf32>,
      %117 = vector.extract_strided_slice %111 {offsets = [0, 0], sizes = [8, 64], strides = [1, 1]} : vector<32x64xf32> to vector<8x64xf32>
      %118 = vector.extract_strided_slice %111 {offsets = [8, 0], sizes = [8, 64], strides = [1, 1]} : vector<32x64xf32> to vector<8x64xf32>
      %119 = arith.maximumf %117, %118 : vector<8x64xf32>
      %120 = vector.extract_strided_slice %111 {offsets = [16, 0], sizes = [8, 64], strides = [1, 1]} : vector<32x64xf32> to vector<8x64xf32>
      %121 = vector.extract_strided_slice %111 {offsets = [24, 0], sizes = [8, 64], strides = [1, 1]} : vector<32x64xf32> to vector<8x64xf32>
      %122 = arith.maximumf %120, %121 : vector<8x64xf32>
      %123 = arith.maximumf %119, %122 : vector<8x64xf32>
      %124 = vector.extract_strided_slice %123 {offsets = [0, 0], sizes = [2, 64], strides = [1, 1]} : vector<8x64xf32> to vector<2x64xf32>
      %c0_87 = arith.constant 0 : index
      %c0_88 = arith.constant 0 : index
      %125 = vector.load %arg6[%c0_87, %c0_88] : memref<256x1024xf32, #tpu.memory_space<vmem>>, vector<64x1024xf32>
      %cst_89 = arith.constant dense<0.000000e+00> : vector<2x1024xf32>
      %126 = tpu.matmul %124, %125, %cst_89 {dimension_numbers = #tpu.dot_dimension_numbers<[1], [0], [0], [1], [0, 0, 1, 1], [], []>} : vector<2x64xf32>, vector<64x1024xf32>, vector<2x1024xf32> -> vector<2x1024xf32>
      %127 = vector.extract_strided_slice %123 {offsets = [2, 0], sizes = [2, 64], strides = [1, 1]} : vector<8x64xf32> to vector<2x64xf32>
      %c64 = arith.constant 64 : index
      %c0_90 = arith.constant 0 : index
      %128 = vector.load %arg6[%c64, %c0_90] : memref<256x1024xf32, #tpu.memory_space<vmem>>, vector<64x1024xf32>
      %cst_91 = arith.constant dense<0.000000e+00> : vector<2x1024xf32>
      %129 = tpu.matmul %127, %128, %cst_91 {dimension_numbers = #tpu.dot_dimension_numbers<[1], [0], [0], [1], [0, 0, 1, 1], [], []>} : vector<2x64xf32>, vector<64x1024xf32>, vector<2x1024xf32> -> vector<2x1024xf32>
      %130 = arith.addf %126, %129 : vector<2x1024xf32>
      %131 = vector.extract_strided_slice %123 {offsets = [4, 0], sizes = [2, 64], strides = [1, 1]} : vector<8x64xf32> to vector<2x64xf32>
      %c128 = arith.constant 128 : index
      %c0_92 = arith.constant 0 : index
      %132 = vector.load %arg6[%c128, %c0_92] : memref<256x1024xf32, #tpu.memory_space<vmem>>, vector<64x1024xf32>
      %cst_93 = arith.constant dense<0.000000e+00> : vector<2x1024xf32>
      %133 = tpu.matmul %131, %132, %cst_93 {dimension_numbers = #tpu.dot_dimension_numbers<[1], [0], [0], [1], [0, 0, 1, 1], [], []>} : vector<2x64xf32>, vector<64x1024xf32>, vector<2x1024xf32> -> vector<2x1024xf32>
      %134 = arith.addf %130, %133 : vector<2x1024xf32>
      %135 = vector.extract_strided_slice %123 {offsets = [6, 0], sizes = [2, 64], strides = [1, 1]} : vector<8x64xf32> to vector<2x64xf32>
      %c192 = arith.constant 192 : index
      %c0_94 = arith.constant 0 : index
      %136 = vector.load %arg6[%c192, %c0_94] : memref<256x1024xf32, #tpu.memory_space<vmem>>, vector<64x1024xf32>
      %cst_95 = arith.constant dense<0.000000e+00> : vector<2x1024xf32>
      %137 = tpu.matmul %135, %136, %cst_95 {dimension_numbers = #tpu.dot_dimension_numbers<[1], [0], [0], [1], [0, 0, 1, 1], [], []>} : vector<2x64xf32>, vector<64x1024xf32>, vector<2x1024xf32> -> vector<2x1024xf32>
      %138 = arith.addf %134, %137 : vector<2x1024xf32>
      %c0_96 = arith.constant 0 : index
      %c0_97 = arith.constant 0 : index
      %139 = vector.load %arg7[%c0_96, %c0_97] : memref<1x1024xf32, #tpu.memory_space<vmem>>, vector<1x1024xf32>
      %140 = vector.broadcast %139 : vector<1x1024xf32> to vector<2x1024xf32>
      %141 = arith.addf %138, %140 : vector<2x1024xf32>
      %c0_98 = arith.constant 0 : index
      %c0_99 = arith.constant 0 : index
      %142 = vector.load %arg15[%c0_98, %c0_99] : memref<2x1024xf32, #tpu.memory_space<vmem>>, vector<2x1024xf32>
      %c0_100 = arith.constant 0 : index
      %c0_101 = arith.constant 0 : index
      %143 = vector.load %arg16[%c0_100, %c0_101] : memref<2x1024xf32, #tpu.memory_space<vmem>>, vector<2x1024xf32>
      %cst_102 = arith.constant 0.000000e+00 : f32
      %144 = vector.broadcast %cst_102 : f32 to vector<2x1024xf32>
      %145 = arith.subf %144, %142 : vector<2x1024xf32>
      %146 = arith.addf %145, %143 : vector<2x1024xf32>
      %cst_103 = arith.constant 1.000000e-01 : f32
      %147 = vector.broadcast %cst_103 : f32 to vector<2x1024xf32>
      %148 = arith.mulf %147, %146 : vector<2x1024xf32>
      %149 = arith.addf %142, %148 : vector<2x1024xf32>
      %cst_104 = arith.constant 2.000000e-01 : f32
      %150 = vector.broadcast %cst_104 : f32 to vector<2x1024xf32>
      %151 = arith.mulf %150, %143 : vector<2x1024xf32>
      %152 = arith.subf %143, %151 : vector<2x1024xf32>
      %cst_105 = arith.constant 1.000000e+00 : f32
      %153 = vector.broadcast %cst_105 : f32 to vector<2x1024xf32>
      %154 = arith.cmpf ogt, %149, %153 : vector<2x1024xf32>
      %155 = arith.extui %154 : vector<2x1024xi1> to vector<2x1024xi32>
      %156 = arith.sitofp %155 : vector<2x1024xi32> to vector<2x1024xf32>
      %cst_106 = arith.constant 0.000000e+00 : f32
      %157 = vector.broadcast %cst_106 : f32 to vector<2x1024xf32>
      %158 = arith.select %154, %157, %149 : vector<2x1024xi1>, vector<2x1024xf32>
      %c0_107 = arith.constant 0 : index
      %c0_108 = arith.constant 0 : index
      %159 = vector.load %arg15[%c0_107, %c0_108] : memref<2x1024xf32, #tpu.memory_space<vmem>>, vector<2x1024xf32>
      tpu.vector_store %arg15[%c0_107, %c0_108], %158 {strides = array<i32>} : memref<2x1024xf32, #tpu.memory_space<vmem>>, vector<2x1024xf32>,
      %160 = arith.addf %152, %141 : vector<2x1024xf32>
      %c0_109 = arith.constant 0 : index
      %c0_110 = arith.constant 0 : index
      %161 = vector.load %arg16[%c0_109, %c0_110] : memref<2x1024xf32, #tpu.memory_space<vmem>>, vector<2x1024xf32>
      tpu.vector_store %arg16[%c0_109, %c0_110], %160 {strides = array<i32>} : memref<2x1024xf32, #tpu.memory_space<vmem>>, vector<2x1024xf32>,
      %cst_111 = arith.constant 0.000000e+00 : f32
      %162 = vector.broadcast %cst_111 : f32 to vector<2x1024xf32>
      %163 = arith.maximumf %156, %162 : vector<2x1024xf32>
      %c0_112 = arith.constant 0 : index
      %c0_113 = arith.constant 0 : index
      %164 = vector.load %arg18[%c0_112, %c0_113] : memref<2x128xf32, #tpu.memory_space<vmem>>, vector<2x128xf32>
      %c0_114 = arith.constant 0 : index
      %c0_115 = arith.constant 0 : index
      %165 = vector.load %arg8[%c0_114, %c0_115] : memref<1024x128xf32, #tpu.memory_space<vmem>>, vector<1024x128xf32>
      %cst_116 = arith.constant dense<0.000000e+00> : vector<2x128xf32>
      %166 = tpu.matmul %163, %165, %cst_116 {dimension_numbers = #tpu.dot_dimension_numbers<[1], [0], [0], [1], [0, 0, 1, 1], [], []>} : vector<2x1024xf32>, vector<1024x128xf32>, vector<2x128xf32> -> vector<2x128xf32>
      %167 = arith.addf %164, %166 : vector<2x128xf32>
      %c0_117 = arith.constant 0 : index
      %c0_118 = arith.constant 0 : index
      %168 = vector.load %arg17[%c0_117, %c0_118] : memref<2x128xf32, #tpu.memory_space<vmem>>, vector<2x128xf32>
      %c0_119 = arith.constant 0 : index
      %c0_120 = arith.constant 0 : index
      %169 = vector.load %arg17[%c0_119, %c0_120] : memref<2x128xf32, #tpu.memory_space<vmem>>, vector<2x128xf32>
      %cst_121 = arith.constant 0.000000e+00 : f32
      %170 = vector.broadcast %cst_121 : f32 to vector<2x128xf32>
      %171 = arith.subf %170, %169 : vector<2x128xf32>
      %172 = arith.addf %171, %167 : vector<2x128xf32>
      %cst_122 = arith.constant 1.000000e-01 : f32
      %173 = vector.broadcast %cst_122 : f32 to vector<2x128xf32>
      %174 = arith.mulf %173, %172 : vector<2x128xf32>
      %175 = arith.addf %168, %174 : vector<2x128xf32>
      %cst_123 = arith.constant 2.000000e-01 : f32
      %176 = vector.broadcast %cst_123 : f32 to vector<2x128xf32>
      %177 = arith.mulf %176, %167 : vector<2x128xf32>
      %178 = arith.subf %167, %177 : vector<2x128xf32>
      %c0_124 = arith.constant 0 : index
      %c0_125 = arith.constant 0 : index
      %179 = vector.load %arg18[%c0_124, %c0_125] : memref<2x128xf32, #tpu.memory_space<vmem>>, vector<2x128xf32>
      tpu.vector_store %arg18[%c0_124, %c0_125], %178 {strides = array<i32>} : memref<2x128xf32, #tpu.memory_space<vmem>>, vector<2x128xf32>,
      %c0_126 = arith.constant 0 : index
      %c0_127 = arith.constant 0 : index
      %180 = vector.load %arg17[%c0_126, %c0_127] : memref<2x128xf32, #tpu.memory_space<vmem>>, vector<2x128xf32>
      tpu.vector_store %arg17[%c0_126, %c0_127], %175 {strides = array<i32>} : memref<2x128xf32, #tpu.memory_space<vmem>>, vector<2x128xf32>,
      %c0_128 = arith.constant 0 : index
      %c0_129 = arith.constant 0 : index
      %181 = vector.load %arg19[%c0_128, %c0_129] : memref<2x128xf32, #tpu.memory_space<vmem>>, vector<2x128xf32>
      %182 = arith.maximumf %181, %175 : vector<2x128xf32>
      %c0_130 = arith.constant 0 : index
      %c0_131 = arith.constant 0 : index
      %183 = vector.load %arg19[%c0_130, %c0_131] : memref<2x128xf32, #tpu.memory_space<vmem>>, vector<2x128xf32>
      tpu.vector_store %arg19[%c0_130, %c0_131], %182 {strides = array<i32>} : memref<2x128xf32, #tpu.memory_space<vmem>>, vector<2x128xf32>,
    }
    %c0_28 = arith.constant 0 : index
    %c0_29 = arith.constant 0 : index
    %21 = vector.load %arg19[%c0_28, %c0_29] : memref<2x128xf32, #tpu.memory_space<vmem>>, vector<2x128xf32>
    %22 = tpu.iota {dimensions = array<i32: 1>} : vector<2x128xi32>
    %c35_i32 = arith.constant 35 : i32
    %23 = vector.broadcast %c35_i32 : i32 to vector<2x128xi32>
    %24 = arith.cmpi slt, %22, %23 : vector<2x128xi32>
    %cst_30 = arith.constant 0xFF800000 : f32
    %25 = vector.broadcast %cst_30 : f32 to vector<2x128xf32>
    %26 = arith.select %24, %21, %25 : vector<2x128xi1>, vector<2x128xf32>
    %cst_31 = arith.constant dense<0xFF800000> : vector<2xf32>
    %27 = vector.multi_reduction <maximumf>, %26, %cst_31 [1] : vector<2x128xf32> to vector<2xf32>
    %28 = vector.shape_cast %27 : vector<2xf32> to vector<2x1xf32>
    %29 = vector.broadcast %28 : vector<2x1xf32> to vector<2x128xf32>
    %30 = arith.subf %26, %29 : vector<2x128xf32>
    %31 = math.exp %30 : vector<2x128xf32>
    %cst_32 = arith.constant dense<0.000000e+00> : vector<2xf32>
    %32 = vector.multi_reduction <add>, %31, %cst_32 [1] : vector<2x128xf32> to vector<2xf32>
    %33 = vector.shape_cast %32 : vector<2xf32> to vector<2x1xf32>
    %34 = math.log %33 : vector<2x1xf32>
    %35 = vector.broadcast %34 : vector<2x1xf32> to vector<2x128xf32>
    %36 = arith.subf %30, %35 : vector<2x128xf32>
    %c0_33 = arith.constant 0 : index
    %c0_34 = arith.constant 0 : index
    %37 = vector.load %arg9[%c0_33, %c0_34] : memref<2x128xf32, #tpu.memory_space<vmem>>, vector<2x128xf32>
    tpu.vector_store %arg9[%c0_33, %c0_34], %36 {strides = array<i32>} : memref<2x128xf32, #tpu.memory_space<vmem>>, vector<2x128xf32>,
    return
  }
}

</mosaic_0001>

<bundles_post_ra>
// kernel: captcha_recognizer_forward.1
= control target key start
LH: loop header
LB: loop body
LE: loop exit
PB: predicated region body
PF: predicated region fallthrough
CT: control target
= control target key end

     0   :  { %14 = vsyncpa [#allocation13], 0  ;;  %vm33_vm0 = vcmask 613376   ;;  %v6782_v0 = vmov 0.0   ;;  %vm98_vm1 = vcmask 261120   ;;  %vm227_vm2 = vcmask 523264   ;;  %s11464_s0 = inlined_call_operand.vmem [shape: f32[512,75], index: 0, kind: input, shape index: {}]   ;;  %s11465_s1 = inlined_call_operand.vmem [shape: f32[75,32], index: 1, kind: input, shape index: {}]   ;;  %s11466_s2 = inlined_call_operand.vmem [shape: f32[1,32], index: 2, kind: input, shape index: {}]   ;;  %s11467_s3 = inlined_call_operand.vmem [shape: bf16[25,32,128], index: 3, kind: input, shape index: {}]   ;;  %s11468_s4 = inlined_call_operand.vmem [shape: f32[25,32,64], index: 4, kind: input, shape index: {}]   ;;  %s11469_s5 = inlined_call_operand.vmem [shape: f32[1,64], index: 5, kind: input, shape index: {}]   ;;  %s11470_s6 = inlined_call_operand.vmem [shape: f32[256,1024], index: 6, kind: input, shape index: {}]   ;;  %s11471_s7 = inlined_call_operand.vmem [shape: f32[1,1024], index: 7, kind: input, shape index: {}]   ;;  %s11472_s8 = inlined_call_operand.vmem [shape: f32[1024,128], index: 8, kind: input, shape index: {}]   ;;  %s11473_s9 = inlined_call_operand.hbm [shape: f32[2,128], index: 9, kind: output, shape index: {}]  }
   0x1   :  { %34 = vst.msk [vmem:[#allocation2] sm:$0xff] %vm33_vm0, %v6782_v0  ;;  %v6783_v1 = vmov -inf   ;;  %s7242_s30 = smov 0  }
   0x2   :  { %35 = vst.msk [vmem:[#allocation2 + $0x8] sm:$0xff] %vm33_vm0, %v6782_v0 }
   0x3   :  { %36 = vst.msk [vmem:[#allocation2 + $0x10] sm:$0xff] %vm33_vm0, %v6782_v0 }
   0x4   :  { %37 = vst.msk [vmem:[#allocation2 + $0x18] sm:$0xff] %vm33_vm0, %v6782_v0 }
   0x5   :  { %38 = vst.msk [vmem:[#allocation2 + $0x20] sm:$0xff] %vm33_vm0, %v6782_v0 }
   0x6   :  { %39 = vst.msk [vmem:[#allocation2 + $0x28] sm:$0xff] %vm33_vm0, %v6782_v0 }
   0x7   :  { %40 = vst.msk [vmem:[#allocation2 + $0x30] sm:$0xff] %vm33_vm0, %v6782_v0 }
   0x8   :  { %41 = vst.msk [vmem:[#allocation2 + $0x38] sm:$0xff] %vm33_vm0, %v6782_v0 }
   0x9   :  { %42 = vst.msk [vmem:[#allocation2 + $0x40] sm:$0xff] %vm33_vm0, %v6782_v0 }
   0xa   :  { %43 = vst.msk [vmem:[#allocation2 + $0x48] sm:$0xff] %vm33_vm0, %v6782_v0 }
   0xb   :  { %44 = vst.msk [vmem:[#allocation2 + $0x50] sm:$0xff] %vm33_vm0, %v6782_v0 }
   0xc   :  { %45 = vst.msk [vmem:[#allocation2 + $0x58] sm:$0xff] %vm33_vm0, %v6782_v0 }
   0xd   :  { %46 = vst.msk [vmem:[#allocation2 + $0x60] sm:$0xff] %vm33_vm0, %v6782_v0 }
   0xe   :  { %47 = vst.msk [vmem:[#allocation2 + $0x68] sm:$0xff] %vm33_vm0, %v6782_v0 }
   0xf   :  { %48 = vst.msk [vmem:[#allocation2 + $0x70] sm:$0xff] %vm33_vm0, %v6782_v0 }
  0x10   :  { %49 = vst.msk [vmem:[#allocation2 + $0x78] sm:$0xff] %vm33_vm0, %v6782_v0 }
  0x11   :  { %50 = vst.msk [vmem:[#allocation2 + $0x80] sm:$0xff] %vm33_vm0, %v6782_v0 }
  0x12   :  { %51 = vst.msk [vmem:[#allocation2 + $0x88] sm:$0xff] %vm33_vm0, %v6782_v0 }
  0x13   :  { %52 = vst.msk [vmem:[#allocation2 + $0x90] sm:$0xff] %vm33_vm0, %v6782_v0 }
  0x14   :  { %53 = vst.msk [vmem:[#allocation2 + $0x98] sm:$0xff] %vm33_vm0, %v6782_v0 }
  0x15   :  { %54 = vst.msk [vmem:[#allocation2 + $0xa0] sm:$0xff] %vm33_vm0, %v6782_v0 }
  0x16   :  { %55 = vst.msk [vmem:[#allocation2 + $0xa8] sm:$0xff] %vm33_vm0, %v6782_v0 }
  0x17   :  { %56 = vst.msk [vmem:[#allocation2 + $0xb0] sm:$0xff] %vm33_vm0, %v6782_v0 }
  0x18   :  { %57 = vst.msk [vmem:[#allocation2 + $0xb8] sm:$0xff] %vm33_vm0, %v6782_v0 }
  0x19   :  { %58 = vst.msk [vmem:[#allocation2 + $0xc0] sm:$0xff] %vm33_vm0, %v6782_v0 }
  0x1a   :  { %59 = vst.msk [vmem:[#allocation2 + $0xc8] sm:$0xff] %vm33_vm0, %v6782_v0 }
  0x1b   :  { %60 = vst.msk [vmem:[#allocation2 + $0xd0] sm:$0xff] %vm33_vm0, %v6782_v0 }
  0x1c   :  { %61 = vst.msk [vmem:[#allocation2 + $0xd8] sm:$0xff] %vm33_vm0, %v6782_v0 }
  0x1d   :  { %62 = vst.msk [vmem:[#allocation2 + $0xe0] sm:$0xff] %vm33_vm0, %v6782_v0 }
  0x1e   :  { %63 = vst.msk [vmem:[#allocation2 + $0xe8] sm:$0xff] %vm33_vm0, %v6782_v0 }
  0x1f   :  { %64 = vst.msk [vmem:[#allocation2 + $0xf0] sm:$0xff] %vm33_vm0, %v6782_v0 }
  0x20   :  { %65 = vst.msk [vmem:[#allocation2 + $0xf8] sm:$0xff] %vm33_vm0, %v6782_v0 }
  0x21   :  { %66 = vst.msk [vmem:[#allocation2 + $0x100] sm:$0xff] %vm33_vm0, %v6782_v0 }
  0x22   :  { %67 = vst.msk [vmem:[#allocation2 + $0x108] sm:$0xff] %vm33_vm0, %v6782_v0 }
  0x23   :  { %68 = vst.msk [vmem:[#allocation2 + $0x110] sm:$0xff] %vm33_vm0, %v6782_v0 }
  0x24   :  { %69 = vst.msk [vmem:[#allocation2 + $0x118] sm:$0xff] %vm33_vm0, %v6782_v0 }
  0x25   :  { %70 = vst.msk [vmem:[#allocation2 + $0x120] sm:$0xff] %vm33_vm0, %v6782_v0 }
  0x26   :  { %71 = vst.msk [vmem:[#allocation2 + $0x128] sm:$0xff] %vm33_vm0, %v6782_v0 }
  0x27   :  { %72 = vst.msk [vmem:[#allocation2 + $0x130] sm:$0xff] %vm33_vm0, %v6782_v0 }
  0x28   :  { %73 = vst.msk [vmem:[#allocation2 + $0x138] sm:$0xff] %vm33_vm0, %v6782_v0 }
  0x29   :  { %74 = vst.msk [vmem:[#allocation2 + $0x140] sm:$0xff] %vm33_vm0, %v6782_v0 }
  0x2a   :  { %75 = vst.msk [vmem:[#allocation2 + $0x148] sm:$0xff] %vm33_vm0, %v6782_v0 }
  0x2b   :  { %76 = vst.msk [vmem:[#allocation2 + $0x150] sm:$0xff] %vm33_vm0, %v6782_v0 }
  0x2c   :  { %77 = vst.msk [vmem:[#allocation2 + $0x158] sm:$0xff] %vm33_vm0, %v6782_v0 }
  0x2d   :  { %78 = vst.msk [vmem:[#allocation2 + $0x160] sm:$0xff] %vm33_vm0, %v6782_v0 }
  0x2e   :  { %79 = vst.msk [vmem:[#allocation2 + $0x168] sm:$0xff] %vm33_vm0, %v6782_v0 }
  0x2f   :  { %80 = vst.msk [vmem:[#allocation2 + $0x170] sm:$0xff] %vm33_vm0, %v6782_v0 }
  0x30   :  { %81 = vst.msk [vmem:[#allocation2 + $0x178] sm:$0xff] %vm33_vm0, %v6782_v0 }
  0x31   :  { %82 = vst.msk [vmem:[#allocation2 + $0x180] sm:$0xff] %vm33_vm0, %v6782_v0 }
  0x32   :  { %83 = vst.msk [vmem:[#allocation2 + $0x188] sm:$0xff] %vm33_vm0, %v6782_v0 }
  0x33   :  { %84 = vst.msk [vmem:[#allocation2 + $0x190] sm:$0xff] %vm33_vm0, %v6782_v0 }
  0x34   :  { %85 = vst.msk [vmem:[#allocation2 + $0x198] sm:$0xff] %vm33_vm0, %v6782_v0 }
  0x35   :  { %86 = vst.msk [vmem:[#allocation2 + $0x1a0] sm:$0xff] %vm33_vm0, %v6782_v0 }
  0x36   :  { %87 = vst.msk [vmem:[#allocation2 + $0x1a8] sm:$0xff] %vm33_vm0, %v6782_v0 }
  0x37   :  { %88 = vst.msk [vmem:[#allocation2 + $0x1b0] sm:$0xff] %vm33_vm0, %v6782_v0 }
  0x38   :  { %89 = vst.msk [vmem:[#allocation2 + $0x1b8] sm:$0xff] %vm33_vm0, %v6782_v0 }
  0x39   :  { %90 = vst.msk [vmem:[#allocation2 + $0x1c0] sm:$0xff] %vm33_vm0, %v6782_v0 }
  0x3a   :  { %91 = vst.msk [vmem:[#allocation2 + $0x1c8] sm:$0xff] %vm33_vm0, %v6782_v0 }
  0x3b   :  { %92 = vst.msk [vmem:[#allocation2 + $0x1d0] sm:$0xff] %vm33_vm0, %v6782_v0 }
  0x3c   :  { %93 = vst.msk [vmem:[#allocation2 + $0x1d8] sm:$0xff] %vm33_vm0, %v6782_v0 }
  0x3d   :  { %94 = vst.msk [vmem:[#allocation2 + $0x1e0] sm:$0xff] %vm33_vm0, %v6782_v0 }
  0x3e   :  { %95 = vst.msk [vmem:[#allocation2 + $0x1e8] sm:$0xff] %vm33_vm0, %v6782_v0 }
  0x3f   :  { %96 = vst.msk [vmem:[#allocation2 + $0x1f0] sm:$0xff] %vm33_vm0, %v6782_v0 }
  0x40   :  { %97 = vst.msk [vmem:[#allocation2 + $0x1f8] sm:$0xff] %vm33_vm0, %v6782_v0 }
  0x41   :  { %236 = vst [vmem:[#allocation7] sm:$0xff] %v6782_v0 }
  0x42   :  { %237 = vst [vmem:[#allocation7 + $0x8] sm:$0xff] %v6782_v0 }
  0x43   :  { %238 = vst [vmem:[#allocation8 + $0x8] sm:$0xff] %v6782_v0 }
  0x44   :  { %239 = vst [vmem:[#allocation8] sm:$0xff] %v6782_v0 }
  0x45   :  { %240 = vst [vmem:[#allocation9] sm:$0x3] %v6782_v0 }
  0x46   :  { %241 = vst [vmem:[#allocation10] sm:$0x3] %v6782_v0 }
  0x47   :  { %99 = vst.msk [vmem:[#allocation3] sm:$0xff] %vm98_vm1, %v6782_v0 }
  0x48   :  { %100 = vst.msk [vmem:[#allocation3 + $0x8] sm:$0xff] %vm98_vm1, %v6782_v0 }
  0x49   :  { %101 = vst.msk [vmem:[#allocation3 + $0x10] sm:$0xff] %vm98_vm1, %v6782_v0 }
  0x4a   :  { %102 = vst.msk [vmem:[#allocation3 + $0x18] sm:$0xff] %vm98_vm1, %v6782_v0 }
  0x4b   :  { %103 = vst.msk [vmem:[#allocation3 + $0x20] sm:$0xff] %vm98_vm1, %v6782_v0 }
  0x4c   :  { %104 = vst.msk [vmem:[#allocation3 + $0x28] sm:$0xff] %vm98_vm1, %v6782_v0 }
  0x4d   :  { %105 = vst.msk [vmem:[#allocation3 + $0x30] sm:$0xff] %vm98_vm1, %v6782_v0 }
  0x4e   :  { %106 = vst.msk [vmem:[#allocation3 + $0x38] sm:$0xff] %vm98_vm1, %v6782_v0 }
  0x4f   :  { %107 = vst.msk [vmem:[#allocation3 + $0x40] sm:$0xff] %vm98_vm1, %v6782_v0 }
  0x50   :  { %108 = vst.msk [vmem:[#allocation3 + $0x48] sm:$0xff] %vm98_vm1, %v6782_v0 }
  0x51   :  { %109 = vst.msk [vmem:[#allocation3 + $0x50] sm:$0xff] %vm98_vm1, %v6782_v0 }
  0x52   :  { %110 = vst.msk [vmem:[#allocation3 + $0x58] sm:$0xff] %vm98_vm1, %v6782_v0 }
  0x53   :  { %111 = vst.msk [vmem:[#allocation3 + $0x60] sm:$0xff] %vm98_vm1, %v6782_v0 }
  0x54   :  { %112 = vst.msk [vmem:[#allocation3 + $0x68] sm:$0xff] %vm98_vm1, %v6782_v0 }
  0x55   :  { %113 = vst.msk [vmem:[#allocation3 + $0x70] sm:$0xff] %vm98_vm1, %v6782_v0 }
  0x56   :  { %114 = vst.msk [vmem:[#allocation3 + $0x78] sm:$0xff] %vm98_vm1, %v6782_v0 }
  0x57   :  { %115 = vst.msk [vmem:[#allocation3 + $0x80] sm:$0xff] %vm98_vm1, %v6782_v0 }
  0x58   :  { %116 = vst.msk [vmem:[#allocation3 + $0x88] sm:$0xff] %vm98_vm1, %v6782_v0 }
  0x59   :  { %117 = vst.msk [vmem:[#allocation3 + $0x90] sm:$0xff] %vm98_vm1, %v6782_v0 }
  0x5a   :  { %118 = vst.msk [vmem:[#allocation3 + $0x98] sm:$0xff] %vm98_vm1, %v6782_v0 }
  0x5b   :  { %119 = vst.msk [vmem:[#allocation3 + $0xa0] sm:$0xff] %vm98_vm1, %v6782_v0 }
  0x5c   :  { %120 = vst.msk [vmem:[#allocation3 + $0xa8] sm:$0xff] %vm98_vm1, %v6782_v0 }
  0x5d   :  { %121 = vst.msk [vmem:[#allocation3 + $0xb0] sm:$0xff] %vm98_vm1, %v6782_v0 }
  0x5e   :  { %122 = vst.msk [vmem:[#allocation3 + $0xb8] sm:$0xff] %vm98_vm1, %v6782_v0 }
  0x5f   :  { %123 = vst.msk [vmem:[#allocation3 + $0xc0] sm:$0xff] %vm98_vm1, %v6782_v0 }
  0x60   :  { %124 = vst.msk [vmem:[#allocation3 + $0xc8] sm:$0xff] %vm98_vm1, %v6782_v0 }
  0x61   :  { %125 = vst.msk [vmem:[#allocation3 + $0xd0] sm:$0xff] %vm98_vm1, %v6782_v0 }
  0x62   :  { %126 = vst.msk [vmem:[#allocation3 + $0xd8] sm:$0xff] %vm98_vm1, %v6782_v0 }
  0x63   :  { %127 = vst.msk [vmem:[#allocation3 + $0xe0] sm:$0xff] %vm98_vm1, %v6782_v0 }
  0x64   :  { %128 = vst.msk [vmem:[#allocation3 + $0xe8] sm:$0xff] %vm98_vm1, %v6782_v0 }
  0x65   :  { %129 = vst.msk [vmem:[#allocation3 + $0xf0] sm:$0xff] %vm98_vm1, %v6782_v0 }
  0x66   :  { %130 = vst.msk [vmem:[#allocation3 + $0xf8] sm:$0xff] %vm98_vm1, %v6782_v0 }
  0x67   :  { %131 = vst.msk [vmem:[#allocation3 + $0x100] sm:$0xff] %vm98_vm1, %v6782_v0 }
  0x68   :  { %132 = vst.msk [vmem:[#allocation3 + $0x108] sm:$0xff] %vm98_vm1, %v6782_v0 }
  0x69   :  { %133 = vst.msk [vmem:[#allocation3 + $0x110] sm:$0xff] %vm98_vm1, %v6782_v0 }
  0x6a   :  { %134 = vst.msk [vmem:[#allocation3 + $0x118] sm:$0xff] %vm98_vm1, %v6782_v0 }
  0x6b   :  { %135 = vst.msk [vmem:[#allocation3 + $0x120] sm:$0xff] %vm98_vm1, %v6782_v0 }
  0x6c   :  { %136 = vst.msk [vmem:[#allocation3 + $0x128] sm:$0xff] %vm98_vm1, %v6782_v0 }
  0x6d   :  { %137 = vst.msk [vmem:[#allocation3 + $0x130] sm:$0xff] %vm98_vm1, %v6782_v0 }
  0x6e   :  { %138 = vst.msk [vmem:[#allocation3 + $0x138] sm:$0xff] %vm98_vm1, %v6782_v0 }
  0x6f   :  { %139 = vst.msk [vmem:[#allocation3 + $0x140] sm:$0xff] %vm98_vm1, %v6782_v0 }
  0x70   :  { %140 = vst.msk [vmem:[#allocation3 + $0x148] sm:$0xff] %vm98_vm1, %v6782_v0 }
  0x71   :  { %141 = vst.msk [vmem:[#allocation3 + $0x150] sm:$0xff] %vm98_vm1, %v6782_v0 }
  0x72   :  { %142 = vst.msk [vmem:[#allocation3 + $0x158] sm:$0xff] %vm98_vm1, %v6782_v0 }
  0x73   :  { %143 = vst.msk [vmem:[#allocation3 + $0x160] sm:$0xff] %vm98_vm1, %v6782_v0 }
  0x74   :  { %144 = vst.msk [vmem:[#allocation3 + $0x168] sm:$0xff] %vm98_vm1, %v6782_v0 }
  0x75   :  { %145 = vst.msk [vmem:[#allocation3 + $0x170] sm:$0xff] %vm98_vm1, %v6782_v0 }
  0x76   :  { %146 = vst.msk [vmem:[#allocation3 + $0x178] sm:$0xff] %vm98_vm1, %v6782_v0 }
  0x77   :  { %147 = vst.msk [vmem:[#allocation3 + $0x180] sm:$0xff] %vm98_vm1, %v6782_v0 }
  0x78   :  { %148 = vst.msk [vmem:[#allocation3 + $0x188] sm:$0xff] %vm98_vm1, %v6782_v0 }
  0x79   :  { %149 = vst.msk [vmem:[#allocation3 + $0x190] sm:$0xff] %vm98_vm1, %v6782_v0 }
  0x7a   :  { %150 = vst.msk [vmem:[#allocation3 + $0x198] sm:$0xff] %vm98_vm1, %v6782_v0 }
  0x7b   :  { %151 = vst.msk [vmem:[#allocation3 + $0x1a0] sm:$0xff] %vm98_vm1, %v6782_v0 }
  0x7c   :  { %152 = vst.msk [vmem:[#allocation3 + $0x1a8] sm:$0xff] %vm98_vm1, %v6782_v0 }
  0x7d   :  { %153 = vst.msk [vmem:[#allocation3 + $0x1b0] sm:$0xff] %vm98_vm1, %v6782_v0 }
  0x7e   :  { %154 = vst.msk [vmem:[#allocation3 + $0x1b8] sm:$0xff] %vm98_vm1, %v6782_v0 }
  0x7f   :  { %155 = vst.msk [vmem:[#allocation3 + $0x1c0] sm:$0xff] %vm98_vm1, %v6782_v0 }
  0x80   :  { %156 = vst.msk [vmem:[#allocation3 + $0x1c8] sm:$0xff] %vm98_vm1, %v6782_v0 }
  0x81   :  { %157 = vst.msk [vmem:[#allocation3 + $0x1d0] sm:$0xff] %vm98_vm1, %v6782_v0 }
  0x82   :  { %158 = vst.msk [vmem:[#allocation3 + $0x1d8] sm:$0xff] %vm98_vm1, %v6782_v0 }
  0x83   :  { %159 = vst.msk [vmem:[#allocation3 + $0x1e0] sm:$0xff] %vm98_vm1, %v6782_v0 }
  0x84   :  { %160 = vst.msk [vmem:[#allocation3 + $0x1e8] sm:$0xff] %vm98_vm1, %v6782_v0 }
  0x85   :  { %161 = vst.msk [vmem:[#allocation3 + $0x1f0] sm:$0xff] %vm98_vm1, %v6782_v0 }
  0x86   :  { %162 = vst.msk [vmem:[#allocation3 + $0x1f8] sm:$0xff] %vm98_vm1, %v6782_v0 }
  0x87   :  { %163 = vst.msk [vmem:[#allocation4] sm:$0xff] %vm98_vm1, %v6782_v0 }
  0x88   :  { %164 = vst.msk [vmem:[#allocation4 + $0x8] sm:$0xff] %vm98_vm1, %v6782_v0 }
  0x89   :  { %165 = vst.msk [vmem:[#allocation4 + $0x10] sm:$0xff] %vm98_vm1, %v6782_v0 }
  0x8a   :  { %166 = vst.msk [vmem:[#allocation4 + $0x18] sm:$0xff] %vm98_vm1, %v6782_v0 }
  0x8b   :  { %167 = vst.msk [vmem:[#allocation4 + $0x20] sm:$0xff] %vm98_vm1, %v6782_v0 }
  0x8c   :  { %168 = vst.msk [vmem:[#allocation4 + $0x28] sm:$0xff] %vm98_vm1, %v6782_v0 }
  0x8d   :  { %169 = vst.msk [vmem:[#allocation4 + $0x30] sm:$0xff] %vm98_vm1, %v6782_v0 }
  0x8e   :  { %170 = vst.msk [vmem:[#allocation4 + $0x38] sm:$0xff] %vm98_vm1, %v6782_v0 }
  0x8f   :  { %171 = vst.msk [vmem:[#allocation4 + $0x40] sm:$0xff] %vm98_vm1, %v6782_v0 }
  0x90   :  { %172 = vst.msk [vmem:[#allocation4 + $0x48] sm:$0xff] %vm98_vm1, %v6782_v0 }
  0x91   :  { %173 = vst.msk [vmem:[#allocation4 + $0x50] sm:$0xff] %vm98_vm1, %v6782_v0 }
  0x92   :  { %174 = vst.msk [vmem:[#allocation4 + $0x58] sm:$0xff] %vm98_vm1, %v6782_v0 }
  0x93   :  { %175 = vst.msk [vmem:[#allocation4 + $0x60] sm:$0xff] %vm98_vm1, %v6782_v0 }
  0x94   :  { %176 = vst.msk [vmem:[#allocation4 + $0x68] sm:$0xff] %vm98_vm1, %v6782_v0 }
  0x95   :  { %177 = vst.msk [vmem:[#allocation4 + $0x70] sm:$0xff] %vm98_vm1, %v6782_v0 }
  0x96   :  { %178 = vst.msk [vmem:[#allocation4 + $0x78] sm:$0xff] %vm98_vm1, %v6782_v0 }
  0x97   :  { %179 = vst.msk [vmem:[#allocation4 + $0x80] sm:$0xff] %vm98_vm1, %v6782_v0 }
  0x98   :  { %180 = vst.msk [vmem:[#allocation4 + $0x88] sm:$0xff] %vm98_vm1, %v6782_v0 }
  0x99   :  { %181 = vst.msk [vmem:[#allocation4 + $0x90] sm:$0xff] %vm98_vm1, %v6782_v0 }
  0x9a   :  { %182 = vst.msk [vmem:[#allocation4 + $0x98] sm:$0xff] %vm98_vm1, %v6782_v0 }
  0x9b   :  { %183 = vst.msk [vmem:[#allocation4 + $0xa0] sm:$0xff] %vm98_vm1, %v6782_v0 }
  0x9c   :  { %184 = vst.msk [vmem:[#allocation4 + $0xa8] sm:$0xff] %vm98_vm1, %v6782_v0 }
  0x9d   :  { %185 = vst.msk [vmem:[#allocation4 + $0xb0] sm:$0xff] %vm98_vm1, %v6782_v0 }
  0x9e   :  { %186 = vst.msk [vmem:[#allocation4 + $0xb8] sm:$0xff] %vm98_vm1, %v6782_v0 }
  0x9f   :  { %187 = vst.msk [vmem:[#allocation4 + $0xc0] sm:$0xff] %vm98_vm1, %v6782_v0 }
  0xa0   :  { %188 = vst.msk [vmem:[#allocation4 + $0xc8] sm:$0xff] %vm98_vm1, %v6782_v0 }
  0xa1   :  { %189 = vst.msk [vmem:[#allocation4 + $0xd0] sm:$0xff] %vm98_vm1, %v6782_v0 }
  0xa2   :  { %190 = vst.msk [vmem:[#allocation4 + $0xd8] sm:$0xff] %vm98_vm1, %v6782_v0 }
  0xa3   :  { %191 = vst.msk [vmem:[#allocation4 + $0xe0] sm:$0xff] %vm98_vm1, %v6782_v0 }
  0xa4   :  { %192 = vst.msk [vmem:[#allocation4 + $0xe8] sm:$0xff] %vm98_vm1, %v6782_v0 }
  0xa5   :  { %193 = vst.msk [vmem:[#allocation4 + $0xf0] sm:$0xff] %vm98_vm1, %v6782_v0 }
  0xa6   :  { %194 = vst.msk [vmem:[#allocation4 + $0xf8] sm:$0xff] %vm98_vm1, %v6782_v0 }
  0xa7   :  { %195 = vst.msk [vmem:[#allocation4 + $0x100] sm:$0xff] %vm98_vm1, %v6782_v0 }
  0xa8   :  { %196 = vst.msk [vmem:[#allocation4 + $0x108] sm:$0xff] %vm98_vm1, %v6782_v0 }
  0xa9   :  { %197 = vst.msk [vmem:[#allocation4 + $0x110] sm:$0xff] %vm98_vm1, %v6782_v0 }
  0xaa   :  { %198 = vst.msk [vmem:[#allocation4 + $0x118] sm:$0xff] %vm98_vm1, %v6782_v0 }
  0xab   :  { %199 = vst.msk [vmem:[#allocation4 + $0x120] sm:$0xff] %vm98_vm1, %v6782_v0 }
  0xac   :  { %200 = vst.msk [vmem:[#allocation4 + $0x128] sm:$0xff] %vm98_vm1, %v6782_v0 }
  0xad   :  { %201 = vst.msk [vmem:[#allocation4 + $0x130] sm:$0xff] %vm98_vm1, %v6782_v0 }
  0xae   :  { %202 = vst.msk [vmem:[#allocation4 + $0x138] sm:$0xff] %vm98_vm1, %v6782_v0 }
  0xaf   :  { %203 = vst.msk [vmem:[#allocation4 + $0x140] sm:$0xff] %vm98_vm1, %v6782_v0 }
  0xb0   :  { %204 = vst.msk [vmem:[#allocation4 + $0x148] sm:$0xff] %vm98_vm1, %v6782_v0 }
  0xb1   :  { %205 = vst.msk [vmem:[#allocation4 + $0x150] sm:$0xff] %vm98_vm1, %v6782_v0 }
  0xb2   :  { %206 = vst.msk [vmem:[#allocation4 + $0x158] sm:$0xff] %vm98_vm1, %v6782_v0 }
  0xb3   :  { %207 = vst.msk [vmem:[#allocation4 + $0x160] sm:$0xff] %vm98_vm1, %v6782_v0 }
  0xb4   :  { %208 = vst.msk [vmem:[#allocation4 + $0x168] sm:$0xff] %vm98_vm1, %v6782_v0 }
  0xb5   :  { %209 = vst.msk [vmem:[#allocation4 + $0x170] sm:$0xff] %vm98_vm1, %v6782_v0 }
  0xb6   :  { %210 = vst.msk [vmem:[#allocation4 + $0x178] sm:$0xff] %vm98_vm1, %v6782_v0 }
  0xb7   :  { %211 = vst.msk [vmem:[#allocation4 + $0x180] sm:$0xff] %vm98_vm1, %v6782_v0 }
  0xb8   :  { %212 = vst.msk [vmem:[#allocation4 + $0x188] sm:$0xff] %vm98_vm1, %v6782_v0 }
  0xb9   :  { %213 = vst.msk [vmem:[#allocation4 + $0x190] sm:$0xff] %vm98_vm1, %v6782_v0 }
  0xba   :  { %214 = vst.msk [vmem:[#allocation4 + $0x198] sm:$0xff] %vm98_vm1, %v6782_v0 }
  0xbb   :  { %215 = vst.msk [vmem:[#allocation4 + $0x1a0] sm:$0xff] %vm98_vm1, %v6782_v0 }
  0xbc   :  { %216 = vst.msk [vmem:[#allocation4 + $0x1a8] sm:$0xff] %vm98_vm1, %v6782_v0 }
  0xbd   :  { %217 = vst.msk [vmem:[#allocation4 + $0x1b0] sm:$0xff] %vm98_vm1, %v6782_v0 }
  0xbe   :  { %218 = vst.msk [vmem:[#allocation4 + $0x1b8] sm:$0xff] %vm98_vm1, %v6782_v0 }
  0xbf   :  { %219 = vst.msk [vmem:[#allocation4 + $0x1c0] sm:$0xff] %vm98_vm1, %v6782_v0 }
  0xc0   :  { %220 = vst.msk [vmem:[#allocation4 + $0x1c8] sm:$0xff] %vm98_vm1, %v6782_v0 }
  0xc1   :  { %221 = vst.msk [vmem:[#allocation4 + $0x1d0] sm:$0xff] %vm98_vm1, %v6782_v0 }
  0xc2   :  { %222 = vst.msk [vmem:[#allocation4 + $0x1d8] sm:$0xff] %vm98_vm1, %v6782_v0 }
  0xc3   :  { %223 = vst.msk [vmem:[#allocation4 + $0x1e0] sm:$0xff] %vm98_vm1, %v6782_v0 }
  0xc4   :  { %224 = vst.msk [vmem:[#allocation4 + $0x1e8] sm:$0xff] %vm98_vm1, %v6782_v0 }
  0xc5   :  { %225 = vst.msk [vmem:[#allocation4 + $0x1f0] sm:$0xff] %vm98_vm1, %v6782_v0 }
  0xc6   :  { %226 = vst.msk [vmem:[#allocation4 + $0x1f8] sm:$0xff] %vm98_vm1, %v6782_v0 }
  0xc7   :  { %228 = vst.msk [vmem:[#allocation5] sm:$0xff] %vm227_vm2, %v6782_v0 }
  0xc8   :  { %229 = vst.msk [vmem:[#allocation5 + $0x8] sm:$0xff] %vm227_vm2, %v6782_v0 }
  0xc9   :  { %230 = vst.msk [vmem:[#allocation5 + $0x10] sm:$0xff] %vm227_vm2, %v6782_v0 }
  0xca   :  { %231 = vst.msk [vmem:[#allocation5 + $0x18] sm:$0xff] %vm227_vm2, %v6782_v0 }
  0xcb   :  { %232 = vst.msk [vmem:[#allocation6] sm:$0xff] %vm227_vm2, %v6782_v0 }
  0xcc   :  { %233 = vst.msk [vmem:[#allocation6 + $0x8] sm:$0xff] %vm227_vm2, %v6782_v0 }
  0xcd   :  { %234 = vst.msk [vmem:[#allocation6 + $0x10] sm:$0xff] %vm227_vm2, %v6782_v0 }
  0xce   :  { %235 = vst.msk [vmem:[#allocation6 + $0x18] sm:$0xff] %vm227_vm2, %v6782_v0 }
  0xcf   :  { %242 = vst [vmem:[#allocation11] sm:$0x3] %v6783_v1 }
  0xd0 LB: > { %v962_v2 = vld [vmem:[%s11465_s1 + $0x48] sm:$0x7]  ;;  %vm1159_vm3 = vcmask 1042432   ;;  %v961_v3 = vld [vmem:[%s11465_s1 + $0x40] sm:$0xff]  ;;  %v960_v4 = vld [vmem:[%s11465_s1 + $0x38] sm:$0xff]  ;;  %v11474_v58 = vmov 0.0   ;;  %s6780_s30 = sphi %s7242_s30, %s248_s30  }
  0xd1   : > { %6145 = vmatpush.msk.msra.mxu0 %vm1159_vm3, %v962_v2  ;;  %v959_v5 = vld [vmem:[%s11465_s1 + $0x30] sm:$0xff]  ;;  %v249_v6 = vld [vmem:[%s11464_s0] sm:$0xff]  ;;  %v313_v7 = vld [vmem:[#allocation2] sm:$0xff]  ;;  %s248_s30 = sadd.s32 1, %s6780_s30  }
  0xd2   : > { %v958_v8 = vld [vmem:[%s11465_s1 + $0x28] sm:$0xff]  ;;  %v377_v9 = vsub.f32 0.0, %v313_v7  ;;  %v1386_v10 = vld [vmem:[#allocation3 + $0x70] sm:$0xff]  ;;  %v1387_v11 = vld [vmem:[#allocation3 + $0x78] sm:$0xff]  ;;  %p245_p0 = scmp.ge.s32.totalorder %s248_s30, 6  }
  0xd3   : > { %1170 = vmatpush.msra.mxu0 %v961_v3  ;;  %v1402_v12 = vld [vmem:[#allocation3 + $0xf0] sm:$0xff]  ;;  %v1403_v13 = vld [vmem:[#allocation3 + $0xf8] sm:$0xff]  ;;  %v1514_v16 = vsub.f32 0.0, %v1386_v10  ;;  %v1515_v17 = vsub.f32 0.0, %v1387_v11  ;;  %v955_v54 = vld [vmem:[%s11465_s1 + $0x10] sm:$0xff]  ;;  %s6785_s30 = smov (%p245_p0), [#allocation12]  }
  0xd4   : > { %v1418_v14 = vld [vmem:[#allocation3 + $0x170] sm:$0xff]  ;;  %v1419_v15 = vld [vmem:[#allocation3 + $0x178] sm:$0xff]  ;;  %v1530_v18 = vsub.f32 0.0, %v1402_v12  ;;  %v441_v20 = vadd.f32 %v377_v9, %v249_v6  ;;  %v1531_v24 = vsub.f32 0.0, %v1403_v13  ;;  %v954_v63 = vld [vmem:[%s11465_s1 + $0x8] sm:$0xff] }
  0xd5   : > { %1171 = vmatpush.msra.mxu0 %v960_v4  ;;  %v957_v19 = vld [vmem:[%s11465_s1 + $0x20] sm:$0xff]  ;;  %v1434_v21 = vld [vmem:[#allocation3 + $0x1f0] sm:$0xff]  ;;  %v1546_v25 = vsub.f32 0.0, %v1418_v14  ;;  %v1547_v26 = vsub.f32 0.0, %v1419_v15 }
  0xd6   : > { %v1435_v22 = vld [vmem:[#allocation3 + $0x1f8] sm:$0xff]  ;;  %v1450_v23 = vld [vmem:[#allocation4 + $0x70] sm:$0xff]  ;;  %v1562_v30 = vsub.f32 0.0, %v1434_v21  ;;  %v505_v33 = vmul.f32 0.1, %v441_v20  ;;  %v7310_v20 = vld [vmem:[#allocation3 + $0x168] sm:$0xff] }
  0xd7   : > { %1172 = vmatpush.msra.mxu0 %v959_v5  ;;  %v1451_v27 = vld [vmem:[#allocation4 + $0x78] sm:$0xff]  ;;  %v1466_v28 = vld [vmem:[#allocation4 + $0xf0] sm:$0xff]  ;;  %v1563_v31 = vsub.f32 0.0, %v1435_v22  ;;  %v1578_v32 = vadd.f32 %v1514_v16, %v1450_v23 }
  0xd8   : > { %v1467_v29 = vld [vmem:[#allocation4 + $0xf8] sm:$0xff]  ;;  %v1482_v34 = vld [vmem:[#allocation4 + $0x170] sm:$0xff]  ;;  %v1579_v37 = vadd.f32 %v1515_v17, %v1451_v27  ;;  %v1594_v38 = vadd.f32 %v1530_v18, %v1466_v28  ;;  %v569_v46 = vadd.f32 %v505_v33, %v313_v7  ;;  %v7286_v7 = vld [vmem:[#allocation3 + $0x60] sm:$0xff] }
  0xd9   : > { %v1483_v35 = vld [vmem:[#allocation4 + $0x178] sm:$0xff]  ;;  %v1498_v36 = vld [vmem:[#allocation4 + $0x1f0] sm:$0xff]  ;;  %v1595_v39 = vadd.f32 %v1531_v24, %v1467_v29  ;;  %1173 = vmatpush.msra.mxu0 %v958_v8  ;;  %v1610_v41 = vadd.f32 %v1546_v25, %v1482_v34  ;;  %v1642_v44 = vmul.f32 0.1, %v1578_v32  ;;  %v7288_v8 = vld [vmem:[#allocation3 + $0x68] sm:$0xff] }
  0xda   : > { %v1499_v40 = vld [vmem:[#allocation4 + $0x1f8] sm:$0xff]  ;;  %v1611_v42 = vadd.f32 %v1547_v26, %v1483_v35  ;;  %v1626_v43 = vadd.f32 %v1562_v30, %v1498_v36  ;;  %v956_v45 = vld [vmem:[%s11465_s1 + $0x18] sm:$0xff]  ;;  %v1643_v48 = vmul.f32 0.1, %v1579_v37  ;;  %v1658_v49 = vmul.f32 0.1, %v1594_v38 }
  0xdb   : > { %v1627_v47 = vadd.f32 %v1563_v31, %v1499_v40  ;;  %1174 = vmatpush.msra.mxu0 %v957_v19  ;;  %v1659_v50 = vmul.f32 0.1, %v1595_v39  ;;  %v1674_v51 = vmul.f32 0.1, %v1610_v41  ;;  %v1706_v53 = vadd.f32 %v1642_v44, %v1386_v10  ;;  %v953_v0 = vld [vmem:[%s11465_s1] sm:$0xff]  ;;  %v7308_v19 = vld [vmem:[#allocation3 + $0x160] sm:$0xff] }
  0xdc   : > { %v1675_v52 = vmul.f32 0.1, %v1611_v42  ;;  %vm633_vm4 = vcmp.gt.f32.partialorder %v569_v46, 1.0  ;;  %v1690_v55 = vmul.f32 0.1, %v1626_v43  ;;  %v1707_v57 = vadd.f32 %v1643_v48, %v1387_v11  ;;  %v1432_v25 = vld [vmem:[#allocation3 + $0x1e0] sm:$0xff] }
  0xdd   : > { %v1691_v56 = vmul.f32 0.1, %v1627_v47  ;;  %1175 = vmatpush.msra.mxu0 %v956_v45  ;;  %v6081_v59 = vsel %vm633_vm4, 1.0, %v11474_v58  ;;  %v825_v60 = vsel %vm633_vm4, 0.0, %v569_v46  ;;  %v1722_v61 = vadd.f32 %v1658_v49, %v1402_v12  ;;  %v1433_v30 = vld [vmem:[#allocation3 + $0x1e8] sm:$0xff]  ;;  %v1448_v31 = vld [vmem:[#allocation4 + $0x60] sm:$0xff] }
  0xde   : > { %v1723_v62 = vadd.f32 %v1659_v50, %v1403_v13  ;;  %889 = vst.msk [vmem:[#allocation2] sm:$0xff] %vm33_vm0, %v825_v60  ;;  %v1738_v1 = vadd.f32 %v1674_v51, %v1418_v14  ;;  %v1739_v2 = vadd.f32 %v1675_v52, %v1419_v15  ;;  %v1754_v3 = vadd.f32 %v1690_v55, %v1434_v21  ;;  %v7298_v13 = vld [vmem:[#allocation3 + $0xe0] sm:$0xff]  ;;  %v7300_v14 = vld [vmem:[#allocation3 + $0xe8] sm:$0xff] }
  0xdf   : > { %v1755_v4 = vadd.f32 %v1691_v56, %v1435_v22  ;;  %1176 = vmatpush.msra.mxu0 %v955_v54  ;;  %vm1898_vm5 = vcmp.gt.f32.partialorder %v1706_v53, 0.7  ;;  %vm1899_vm6 = vcmp.gt.f32.partialorder %v1707_v57, 0.7  ;;  %vm1914_vm7 = vcmp.gt.f32.partialorder %v1722_v61, 0.7 }
  0xe0   : > { %vm1915_vm8 = vcmp.gt.f32.partialorder %v1723_v62, 0.7  ;;  %vm1930_vm9 = vcmp.gt.f32.partialorder %v1738_v1, 0.7  ;;  %vm1931_vm10 = vcmp.gt.f32.partialorder %v1739_v2, 0.7 }
  0xe1   : > { %1177 = vmatpush.msra.mxu0 %v954_v63  ;;  %vm1946_vm11 = vcmp.gt.f32.partialorder %v1754_v3, 0.7  ;;  %vm1947_vm12 = vcmp.gt.f32.partialorder %v1755_v4, 0.7  ;;  %v6224_v5 = vsel %vm1898_vm5, 1.0, %v11474_v58  ;;  %v6225_v6 = vsel %vm1899_vm6, 1.0, %v11474_v58 }
  0xe2   : > { %v6240_v9 = vsel %vm1914_vm7, 1.0, %v11474_v58  ;;  %v6241_v10 = vsel %vm1915_vm8, 1.0, %v11474_v58  ;;  %v6256_v11 = vsel %vm1930_vm9, 1.0, %v11474_v58  ;;  %v6257_v12 = vsel %vm1931_vm10, 1.0, %v11474_v58  ;;  %v1449_v32 = vld [vmem:[#allocation4 + $0x68] sm:$0xff]  ;;  %v1464_v35 = vld [vmem:[#allocation4 + $0xe0] sm:$0xff] }
  0xe3   : > { %1178 = vmatpush.msra.mxu0 %v953_v0  ;;  %v6272_v15 = vsel %vm1946_vm11, 1.0, %v11474_v58  ;;  %v6273_v16 = vsel %vm1947_vm12, 1.0, %v11474_v58  ;;  %v2090_v17 = vsel %vm1898_vm5, 0.0, %v1706_v53  ;;  %v2091_v18 = vsel %vm1899_vm6, 0.0, %v1707_v57  ;;  %v1465_v36 = vld [vmem:[#allocation4 + $0xe8] sm:$0xff]  ;;  %v1480_v37 = vld [vmem:[#allocation4 + $0x160] sm:$0xff] }
  0xe4   : > { %6146 = vmatmul.msk.f32.vlgmr.msra.gmra.mxu0 %vm33_vm0, %v6081_v59  ;;  %v2106_v21 = vsel %vm1914_vm7, 0.0, %v1722_v61  ;;  %v2107_v22 = vsel %vm1915_vm8, 0.0, %v1723_v62  ;;  %v2122_v23 = vsel %vm1930_vm9, 0.0, %v1738_v1  ;;  %v2123_v24 = vsel %vm1931_vm10, 0.0, %v1739_v2  ;;  %2154 = vst.msk [vmem:[#allocation3 + $0x70] sm:$0xff] %vm98_vm1, %v2090_v17  ;;  %v1481_v40 = vld [vmem:[#allocation4 + $0x168] sm:$0xff] }
  0xe5   : > { %v2138_v26 = vsel %vm1946_vm11, 0.0, %v1754_v3  ;;  %v2139_v27 = vsel %vm1947_vm12, 0.0, %v1755_v4  ;;  %2155 = vst.msk [vmem:[#allocation3 + $0x78] sm:$0xff] %vm98_vm1, %v2091_v18  ;;  %v2346_v28 = vmax.f32 %v6224_v5, %v6240_v9  ;;  %v2347_v29 = vmax.f32 %v6225_v6, %v6241_v10  ;;  %v1496_v47 = vld [vmem:[#allocation4 + $0x1e0] sm:$0xff]  ;;  %v1497_v48 = vld [vmem:[#allocation4 + $0x1e8] sm:$0xff] }
  0xe6   : > { %2170 = vst.msk [vmem:[#allocation3 + $0xf0] sm:$0xff] %vm98_vm1, %v2106_v21  ;;  %v2362_v33 = vmax.f32 %v6256_v11, %v6272_v15  ;;  %v2363_v34 = vmax.f32 %v6257_v12, %v6273_v16  ;;  %v1512_v38 = vsub.f32 0.0, %v7286_v7  ;;  %v1513_v39 = vsub.f32 0.0, %v7288_v8 }
  0xe7   : > { %2171 = vst.msk [vmem:[#allocation3 + $0xf8] sm:$0xff] %vm98_vm1, %v2107_v22  ;;  %v1528_v41 = vsub.f32 0.0, %v7298_v13  ;;  %v1529_v42 = vsub.f32 0.0, %v7300_v14  ;;  %v1544_v43 = vsub.f32 0.0, %v7308_v19  ;;  %v1545_v44 = vsub.f32 0.0, %v7310_v20 }
  0xe8   : > { %2186 = vst.msk [vmem:[#allocation3 + $0x170] sm:$0xff] %vm98_vm1, %v2122_v23  ;;  %v2378_v45 = vmax.f32 %v2346_v28, %v2362_v33  ;;  %v2379_v46 = vmax.f32 %v2347_v29, %v2363_v34  ;;  %v1560_v49 = vsub.f32 0.0, %v1432_v25  ;;  %v1561_v50 = vsub.f32 0.0, %v1433_v30 }
  0xe9   : > { %2187 = vst.msk [vmem:[#allocation3 + $0x178] sm:$0xff] %vm98_vm1, %v2123_v24  ;;  %v1576_v51 = vadd.f32 %v1512_v38, %v1448_v31  ;;  %v1577_v52 = vadd.f32 %v1513_v39, %v1449_v32  ;;  %v1592_v53 = vadd.f32 %v1528_v41, %v1464_v35  ;;  %v1593_v54 = vadd.f32 %v1529_v42, %v1465_v36  ;;  %v7358_v24 = vld [vmem:[#allocation3 + $0x50] sm:$0xff]  ;;  %v7373_v32 = vld [vmem:[#allocation3 + $0xd8] sm:$0xff] }
  0xea   : > { %2202 = vst.msk [vmem:[#allocation3 + $0x1f0] sm:$0xff] %vm98_vm1, %v2138_v26  ;;  %v2394_v55 = vpack.c.bf16 %v2378_v45, %v2378_v45  ;;  %v2395_v56 = vpack.c.bf16 %v2379_v46, %v2379_v46  ;;  %v1608_v57 = vadd.f32 %v1544_v43, %v1480_v37  ;;  %v1609_v59 = vadd.f32 %v1545_v44, %v1481_v40  ;;  %v7371_v31 = vld [vmem:[#allocation3 + $0xd0] sm:$0xff]  ;;  %v7385_v42 = vld [vmem:[#allocation3 + $0x158] sm:$0xff] }
  0xeb   : > { %2203 = vst.msk [vmem:[#allocation3 + $0x1f8] sm:$0xff] %vm98_vm1, %v2139_v27  ;;  %v1624_v60 = vadd.f32 %v1560_v49, %v1496_v47  ;;  %v1625_v61 = vadd.f32 %v1561_v50, %v1497_v48  ;;  %v1640_v62 = vmul.f32 0.1, %v1576_v51  ;;  %v1641_v63 = vmul.f32 0.1, %v1577_v52  ;;  %v7380_v37 = vld [vmem:[#allocation3 + $0x150] sm:$0xff] }
  0xec   : > { %v2538_v0 = vunpack.c.l.b16 %v2394_v55  ;;  %v2539_v1 = vunpack.c.l.b16 %v2395_v56  ;;  %v1656_v2 = vmul.f32 0.1, %v1592_v53  ;;  %v1657_v3 = vmul.f32 0.1, %v1593_v54  ;;  %v7387_v43 = vld [vmem:[#allocation3 + $0x1d0] sm:$0xff]  ;;  %v7389_v44 = vld [vmem:[#allocation3 + $0x1d8] sm:$0xff] }
  0xed   : > { %v1672_v4 = vmul.f32 0.1, %v1608_v57  ;;  %v1673_v5 = vmul.f32 0.1, %v1609_v59  ;;  %v1688_v6 = vmul.f32 0.1, %v1624_v60  ;;  %v1704_v9 = vadd.f32 %v1640_v62, %v7286_v7 }
  0xee   : > { %v7334_v10 = vpack.c.b16 %v2539_v1, %v2538_v0  ;;  %v1689_v11 = vmul.f32 0.1, %v1625_v61  ;;  %v1705_v12 = vadd.f32 %v1641_v63, %v7288_v8  ;;  %v1720_v15 = vadd.f32 %v1656_v2, %v7298_v13  ;;  %v7348_v13 = vld [vmem:[#allocation2 + $0x8] sm:$0xff]  ;;  %v1446_v48 = vld [vmem:[#allocation4 + $0x50] sm:$0xff]  ;;  %v1447_v49 = vld [vmem:[#allocation4 + $0x58] sm:$0xff] }
  0xef   : > { %v1721_v16 = vadd.f32 %v1657_v3, %v7300_v14  ;;  %v1736_v17 = vadd.f32 %v1672_v4, %v7308_v19  ;;  %v1737_v18 = vadd.f32 %v1673_v5, %v7310_v20  ;;  %v1752_v21 = vadd.f32 %v1688_v6, %v1432_v25  ;;  %v7360_v25 = vld [vmem:[#allocation3 + $0x58] sm:$0xff]  ;;  %v1462_v50 = vld [vmem:[#allocation4 + $0xd0] sm:$0xff] }
  0xf0   : > { %2556 = vmatpush.bf16.msra.mxu1 %v7334_v10  ;;  %2587 = vmatpush.bf16.msra.mxu2 %v7334_v10  ;;  %v1753_v22 = vadd.f32 %v1689_v11, %v1433_v30  ;;  %vm1896_vm13 = vcmp.gt.f32.partialorder %v1704_v9, 0.7  ;;  %vm1897_vm14 = vcmp.gt.f32.partialorder %v1705_v12, 0.7  ;;  %vm1912_vm15 = vcmp.gt.f32.partialorder %v1720_v15, 0.7 }
  0xf1   : > { %2618 = vmatpush.bf16.msra.mxu3 %v7334_v10  ;;  %vm1913_vm3 = vcmp.gt.f32.partialorder %v1721_v16, 0.7  ;;  %vm1928_vm4 = vcmp.gt.f32.partialorder %v1736_v17, 0.7  ;;  %vm1929_vm5 = vcmp.gt.f32.partialorder %v1737_v18, 0.7 }
  0xf2   : > { %vm1944_vm6 = vcmp.gt.f32.partialorder %v1752_v21, 0.7  ;;  %vm1945_vm7 = vcmp.gt.f32.partialorder %v1753_v22, 0.7  ;;  %v6222_v7 = vsel %vm1896_vm13, 1.0, %v11474_v58  ;;  %v6223_v8 = vsel %vm1897_vm14, 1.0, %v11474_v58 }
  0xf3   : > { %v6238_v14 = vsel %vm1912_vm15, 1.0, %v11474_v58  ;;  %v6239_v19 = vsel %vm1913_vm3, 1.0, %v11474_v58  ;;  %v6254_v20 = vsel %vm1928_vm4, 1.0, %v11474_v58  ;;  %v6255_v23 = vsel %vm1929_vm5, 1.0, %v11474_v58  ;;  %v250_v30 = vld [vmem:[%s11464_s0 + $0x8] sm:$0xff]  ;;  %v1463_v52 = vld [vmem:[#allocation4 + $0xd8] sm:$0xff] }
  0xf4   : > { %v6270_v26 = vsel %vm1944_vm6, 1.0, %v11474_v58  ;;  %v6271_v27 = vsel %vm1945_vm7, 1.0, %v11474_v58  ;;  %v2088_v28 = vsel %vm1896_vm13, 0.0, %v1704_v9  ;;  %v2089_v29 = vsel %vm1897_vm14, 0.0, %v1705_v12  ;;  %v1478_v61 = vld [vmem:[#allocation4 + $0x150] sm:$0xff]  ;;  %v1479_v62 = vld [vmem:[#allocation4 + $0x158] sm:$0xff] }
  0xf5   : > { %v2104_v33 = vsel %vm1912_vm15, 0.0, %v1720_v15  ;;  %v2105_v34 = vsel %vm1913_vm3, 0.0, %v1721_v16  ;;  %v2120_v35 = vsel %vm1928_vm4, 0.0, %v1736_v17  ;;  %v2121_v36 = vsel %vm1929_vm5, 0.0, %v1737_v18  ;;  %2152 = vst.msk [vmem:[#allocation3 + $0x60] sm:$0xff] %vm98_vm1, %v2088_v28  ;;  %v1494_v63 = vld [vmem:[#allocation4 + $0x1d0] sm:$0xff] }
  0xf6   : > { %v2136_v38 = vsel %vm1944_vm6, 0.0, %v1752_v21  ;;  %v2137_v39 = vsel %vm1945_vm7, 0.0, %v1753_v22  ;;  %2153 = vst.msk [vmem:[#allocation3 + $0x68] sm:$0xff] %vm98_vm1, %v2089_v29  ;;  %v2344_v40 = vmax.f32 %v6222_v7, %v6238_v14  ;;  %v2345_v41 = vmax.f32 %v6223_v8, %v6239_v19  ;;  %v1495_v1 = vld [vmem:[#allocation4 + $0x1d8] sm:$0xff]  ;;  %v7407_v14 = vld [vmem:[#allocation3 + $0x40] sm:$0xff]  ;;  %v7411_v29 = vld [vmem:[#allocation3 + $0x48] sm:$0xff] }
  0xf7   : > { %2168 = vst.msk [vmem:[#allocation3 + $0xe0] sm:$0xff] %vm98_vm1, %v2104_v33  ;;  %v2360_v45 = vmax.f32 %v6254_v20, %v6270_v26  ;;  %v2361_v46 = vmax.f32 %v6255_v23, %v6271_v27  ;;  %v378_v47 = vsub.f32 0.0, %v7348_v13  ;;  %v1510_v51 = vsub.f32 0.0, %v7358_v24 }
  0xf8   : > { %2169 = vst.msk [vmem:[#allocation3 + $0xe8] sm:$0xff] %vm98_vm1, %v2105_v34  ;;  %v1511_v53 = vsub.f32 0.0, %v7360_v25  ;;  %v1526_v54 = vsub.f32 0.0, %v7371_v31  ;;  %v1527_v55 = vsub.f32 0.0, %v7373_v32  ;;  %v1542_v56 = vsub.f32 0.0, %v7380_v37 }
  0xf9   : > { %2184 = vst.msk [vmem:[#allocation3 + $0x160] sm:$0xff] %vm98_vm1, %v2120_v35  ;;  %v2376_v57 = vmax.f32 %v2344_v40, %v2360_v45  ;;  %v2377_v59 = vmax.f32 %v2345_v41, %v2361_v46  ;;  %v442_v60 = vadd.f32 %v378_v47, %v250_v30  ;;  %v1543_v0 = vsub.f32 0.0, %v7385_v42  ;;  %v1445_v47 = vld [vmem:[#allocation4 + $0x48] sm:$0xff] }
  0xfa   : > { %2185 = vst.msk [vmem:[#allocation3 + $0x168] sm:$0xff] %vm98_vm1, %v2121_v36  ;;  %v1558_v2 = vsub.f32 0.0, %v7387_v43  ;;  %v1559_v3 = vsub.f32 0.0, %v7389_v44  ;;  %v1574_v4 = vadd.f32 %v1510_v51, %v1446_v48  ;;  %v1575_v5 = vadd.f32 %v1511_v53, %v1447_v49 }
  0xfb   : > { %2200 = vst.msk [vmem:[#allocation3 + $0x1e0] sm:$0xff] %vm98_vm1, %v2136_v38  ;;  %v2392_v6 = vpack.c.bf16 %v2376_v57, %v2376_v57  ;;  %v2393_v9 = vpack.c.bf16 %v2377_v59, %v2377_v59  ;;  %v506_v11 = vmul.f32 0.1, %v442_v60  ;;  %v1590_v12 = vadd.f32 %v1526_v54, %v1462_v50 }
  0xfc   : > { %2201 = vst.msk [vmem:[#allocation3 + $0x1e8] sm:$0xff] %vm98_vm1, %v2137_v39  ;;  %v1591_v15 = vadd.f32 %v1527_v55, %v1463_v52  ;;  %v1606_v16 = vadd.f32 %v1542_v56, %v1478_v61  ;;  %v1607_v17 = vadd.f32 %v1543_v0, %v1479_v62  ;;  %v1622_v18 = vadd.f32 %v1558_v2, %v1494_v63  ;;  %v1444_v39 = vld [vmem:[#allocation4 + $0x40] sm:$0xff]  ;;  %v7451_v56 = vld [vmem:[#allocation3 + $0x148] sm:$0xff] }
  0xfd   : > { %v2536_v21 = vunpack.c.l.b16 %v2392_v6  ;;  %v2537_v22 = vunpack.c.l.b16 %v2393_v9  ;;  %v570_v7 = vadd.f32 %v506_v11, %v7348_v13  ;;  %v1623_v8 = vadd.f32 %v1559_v3, %v1495_v1  ;;  %v7449_v55 = vld [vmem:[#allocation3 + $0x140] sm:$0xff]  ;;  %v7460_v63 = vld [vmem:[#allocation3 + $0x1c8] sm:$0xff] }
  0xfe   : > { %v1638_v19 = vmul.f32 0.1, %v1574_v4  ;;  %v1639_v20 = vmul.f32 0.1, %v1575_v5  ;;  %v1654_v23 = vmul.f32 0.1, %v1590_v12 }
  0xff   : > { %v7409_v26 = vpack.c.b16 %v2537_v22, %v2536_v21  ;;  %vm634_vm8 = vcmp.gt.f32.partialorder %v570_v7, 1.0  ;;  %v1655_v27 = vmul.f32 0.1, %v1591_v15  ;;  %v1670_v28 = vmul.f32 0.1, %v1606_v16  ;;  %v7458_v62 = vld [vmem:[#allocation3 + $0x1c0] sm:$0xff] }
 0x100   : > { %v6082_v30 = vsel %vm634_vm8, 1.0, %v11474_v58  ;;  %v826_v33 = vsel %vm634_vm8, 0.0, %v570_v7  ;;  %v1671_v34 = vmul.f32 0.1, %v1607_v17  ;;  %v1686_v35 = vmul.f32 0.1, %v1622_v18 }
 0x101   : > { %2557 = vmatpush.bf16.msra.mxu1 %v7409_v26  ;;  %2588 = vmatpush.bf16.msra.mxu2 %v7409_v26  ;;  %890 = vst.msk [vmem:[#allocation2 + $0x8] sm:$0xff] %vm33_vm0, %v826_v33  ;;  %v1687_v13 = vmul.f32 0.1, %v1623_v8  ;;  %v1702_v36 = vadd.f32 %v1638_v19, %v7358_v24  ;;  %v1703_v38 = vadd.f32 %v1639_v20, %v7360_v25  ;;  %v1508_v40 = vsub.f32 0.0, %v7407_v14  ;;  %v1460_v4 = vld [vmem:[#allocation4 + $0xc0] sm:$0xff]  ;;  %v1461_v12 = vld [vmem:[#allocation4 + $0xc8] sm:$0xff] }
 0x102   : > { %2619 = vmatpush.bf16.msra.mxu3 %v7409_v26  ;;  %6147 = vmatmul.msk.f32.gmra.mxu0 %vm33_vm0, %v6082_v30  ;;  %v1718_v41 = vadd.f32 %v1654_v23, %v7371_v31  ;;  %v1719_v45 = vadd.f32 %v1655_v27, %v7373_v32  ;;  %v1734_v46 = vadd.f32 %v1670_v28, %v7380_v37  ;;  %v1509_v48 = vsub.f32 0.0, %v7411_v29  ;;  %v1476_v15 = vld [vmem:[#allocation4 + $0x140] sm:$0xff]  ;;  %v1477_v16 = vld [vmem:[#allocation4 + $0x148] sm:$0xff]  ;;  %v7477_v28 = vld [vmem:[#allocation2 + $0x10] sm:$0xff] }
 0x103   : > { %v1735_v24 = vadd.f32 %v1671_v34, %v7385_v42  ;;  %v1750_v25 = vadd.f32 %v1686_v35, %v7387_v43  ;;  %v1751_v49 = vadd.f32 %v1687_v13, %v7389_v44  ;;  %vm1894_vm9 = vcmp.gt.f32.partialorder %v1702_v36, 0.7  ;;  %v7437_v43 = vld [vmem:[#allocation3 + $0xc0] sm:$0xff]  ;;  %v7439_v44 = vld [vmem:[#allocation3 + $0xc8] sm:$0xff]  ;;  %v7480_v13 = vld [vmem:[#allocation3 + $0x30] sm:$0xff] }
 0x104   : > { %vm1895_vm10 = vcmp.gt.f32.partialorder %v1703_v38, 0.7  ;;  %vm1910_vm11 = vcmp.gt.f32.partialorder %v1718_v41, 0.7  ;;  %vm1911_vm12 = vcmp.gt.f32.partialorder %v1719_v45, 0.7  ;;  %v7429_v50 = vadd.f32 %v1508_v40, %v1444_v39 }
 0x105   : > { %vm1926_vm13 = vcmp.gt.f32.partialorder %v1734_v46, 0.7  ;;  %vm1927_vm14 = vcmp.gt.f32.partialorder %v1735_v24, 0.7  ;;  %vm1942_vm15 = vcmp.gt.f32.partialorder %v1750_v25, 0.7  ;;  %v1573_v31 = vadd.f32 %v1509_v48, %v1445_v47 }
 0x106   : > { %vm1943_vm3 = vcmp.gt.f32.partialorder %v1751_v49, 0.7  ;;  %v6220_v32 = vsel %vm1894_vm9, 1.0, %v11474_v58  ;;  %v6221_v37 = vsel %vm1895_vm10, 1.0, %v11474_v58  ;;  %v6236_v42 = vsel %vm1910_vm11, 1.0, %v11474_v58  ;;  %v1492_v18 = vld [vmem:[#allocation4 + $0x1c0] sm:$0xff] }
 0x107   : > { %v6237_v51 = vsel %vm1911_vm12, 1.0, %v11474_v58  ;;  %v6252_v52 = vsel %vm1926_vm13, 1.0, %v11474_v58  ;;  %v6253_v53 = vsel %vm1927_vm14, 1.0, %v11474_v58  ;;  %v6268_v54 = vsel %vm1942_vm15, 1.0, %v11474_v58  ;;  %v1493_v21 = vld [vmem:[#allocation4 + $0x1c8] sm:$0xff] }
 0x108   : > { %v6269_v57 = vsel %vm1943_vm3, 1.0, %v11474_v58  ;;  %v2086_v59 = vsel %vm1894_vm9, 0.0, %v1702_v36  ;;  %v2087_v60 = vsel %vm1895_vm10, 0.0, %v1703_v38  ;;  %v2102_v61 = vsel %vm1910_vm11, 0.0, %v1718_v41 }
 0x109   : > { %v2103_v0 = vsel %vm1911_vm12, 0.0, %v1719_v45  ;;  %v2118_v1 = vsel %vm1926_vm13, 0.0, %v1734_v46  ;;  %v2119_v2 = vsel %vm1927_vm14, 0.0, %v1735_v24  ;;  %v2134_v3 = vsel %vm1942_vm15, 0.0, %v1750_v25  ;;  %2150 = vst.msk [vmem:[#allocation3 + $0x50] sm:$0xff] %vm98_vm1, %v2086_v59 }
 0x10a   : > { %v2135_v5 = vsel %vm1943_vm3, 0.0, %v1751_v49  ;;  %2151 = vst.msk [vmem:[#allocation3 + $0x58] sm:$0xff] %vm98_vm1, %v2087_v60  ;;  %v2342_v6 = vmax.f32 %v6220_v32, %v6236_v42  ;;  %v2343_v9 = vmax.f32 %v6221_v37, %v6237_v51  ;;  %v2358_v11 = vmax.f32 %v6252_v52, %v6268_v54 }
 0x10b   : > { %2166 = vst.msk [vmem:[#allocation3 + $0xd0] sm:$0xff] %vm98_vm1, %v2102_v61  ;;  %v2359_v17 = vmax.f32 %v6253_v53, %v6269_v57  ;;  %v1524_v22 = vsub.f32 0.0, %v7437_v43  ;;  %v1525_v7 = vsub.f32 0.0, %v7439_v44  ;;  %v1540_v8 = vsub.f32 0.0, %v7449_v55 }
 0x10c   : > { %2167 = vst.msk [vmem:[#allocation3 + $0xd8] sm:$0xff] %vm98_vm1, %v2103_v0  ;;  %v2374_v19 = vmax.f32 %v2342_v6, %v2358_v11  ;;  %v1541_v20 = vsub.f32 0.0, %v7451_v56  ;;  %v1556_v23 = vsub.f32 0.0, %v7458_v62  ;;  %v1557_v27 = vsub.f32 0.0, %v7460_v63  ;;  %v1442_v0 = vld [vmem:[#allocation4 + $0x30] sm:$0xff] }
 0x10d   : > { %2182 = vst.msk [vmem:[#allocation3 + $0x150] sm:$0xff] %vm98_vm1, %v2118_v1  ;;  %v2375_v30 = vmax.f32 %v2343_v9, %v2359_v17  ;;  %v1588_v33 = vadd.f32 %v1524_v22, %v1460_v4  ;;  %v1589_v34 = vadd.f32 %v1525_v7, %v1461_v12  ;;  %v1604_v35 = vadd.f32 %v1540_v8, %v1476_v15  ;;  %v7526_v9 = vld [vmem:[#allocation3 + $0xb8] sm:$0xff]  ;;  %v7528_v11 = vld [vmem:[#allocation3 + $0x130] sm:$0xff] }
 0x10e   : > { %2183 = vst.msk [vmem:[#allocation3 + $0x158] sm:$0xff] %vm98_vm1, %v2119_v2  ;;  %v2390_v36 = vpack.c.bf16 %v2374_v19, %v2374_v19  ;;  %v1605_v38 = vadd.f32 %v1541_v20, %v1477_v16  ;;  %v1620_v39 = vadd.f32 %v1556_v23, %v1492_v18  ;;  %v1621_v40 = vadd.f32 %v1557_v27, %v1493_v21  ;;  %v7516_v2 = vld [vmem:[#allocation3 + $0xb0] sm:$0xff]  ;;  %v7534_v18 = vld [vmem:[#allocation3 + $0x138] sm:$0xff] }
 0x10f   : > { %2198 = vst.msk [vmem:[#allocation3 + $0x1d0] sm:$0xff] %vm98_vm1, %v2134_v3  ;;  %v2391_v41 = vpack.c.bf16 %v2375_v30, %v2375_v30  ;;  %v1636_v45 = vmul.f32 0.1, %v7429_v50  ;;  %v1637_v46 = vmul.f32 0.1, %v1573_v31  ;;  %v379_v47 = vsub.f32 0.0, %v7477_v28 }
 0x110   : > { %2199 = vst.msk [vmem:[#allocation3 + $0x1d8] sm:$0xff] %vm98_vm1, %v2135_v5  ;;  %v2534_v48 = vunpack.c.l.b16 %v2390_v36  ;;  %v1652_v24 = vmul.f32 0.1, %v1588_v33  ;;  %v1653_v25 = vmul.f32 0.1, %v1589_v34  ;;  %v1506_v49 = vsub.f32 0.0, %v7480_v13 }
 0x111   : > { %v2535_v32 = vunpack.c.l.b16 %v2391_v41  ;;  %v1668_v37 = vmul.f32 0.1, %v1604_v35  ;;  %v1669_v42 = vmul.f32 0.1, %v1605_v38  ;;  %v1684_v51 = vmul.f32 0.1, %v1620_v39 }
 0x112   : > { %v1685_v52 = vmul.f32 0.1, %v1621_v40  ;;  %v1700_v53 = vadd.f32 %v1636_v45, %v7407_v14  ;;  %v1701_v54 = vadd.f32 %v1637_v46, %v7411_v29  ;;  %v1716_v50 = vadd.f32 %v1652_v24, %v7437_v43  ;;  %v251_v31 = vld [vmem:[%s11464_s0 + $0x10] sm:$0xff]  ;;  %v7536_v21 = vld [vmem:[#allocation3 + $0x1b0] sm:$0xff]  ;;  %v7543_v20 = vld [vmem:[#allocation3 + $0x1b8] sm:$0xff] }
 0x113   : > { %v7494_v57 = vpack.c.b16 %v2535_v32, %v2534_v48  ;;  %v1717_v59 = vadd.f32 %v1653_v25, %v7439_v44  ;;  %v1732_v60 = vadd.f32 %v1668_v37, %v7449_v55  ;;  %v1733_v61 = vadd.f32 %v1669_v42, %v7451_v56  ;;  %v1443_v34 = vld [vmem:[#allocation4 + $0x38] sm:$0xff]  ;;  %v1458_v35 = vld [vmem:[#allocation4 + $0xb0] sm:$0xff] }
 0x114   : > { %v1748_v1 = vadd.f32 %v1684_v51, %v7458_v62  ;;  %v1749_v14 = vadd.f32 %v1685_v52, %v7460_v63  ;;  %vm1892_vm4 = vcmp.gt.f32.partialorder %v1700_v53, 0.7  ;;  %vm1893_vm5 = vcmp.gt.f32.partialorder %v1701_v54, 0.7  ;;  %v7514_v63 = vld [vmem:[#allocation3 + $0x38] sm:$0xff]  ;;  %v1490_v24 = vld [vmem:[#allocation4 + $0x1b0] sm:$0xff] }
 0x115   : > { %2558 = vmatpush.bf16.msra.mxu1 %v7494_v57  ;;  %2589 = vmatpush.bf16.msra.mxu2 %v7494_v57  ;;  %vm1908_vm6 = vcmp.gt.f32.partialorder %v1716_v50, 0.7  ;;  %vm1909_vm7 = vcmp.gt.f32.partialorder %v1717_v59, 0.7  ;;  %vm1924_vm8 = vcmp.gt.f32.partialorder %v1732_v60, 0.7  ;;  %v443_v29 = vadd.f32 %v379_v47, %v251_v31 }
 0x116   : > { %2620 = vmatpush.bf16.msra.mxu3 %v7494_v57  ;;  %vm1925_vm9 = vcmp.gt.f32.partialorder %v1733_v61, 0.7  ;;  %vm1940_vm10 = vcmp.gt.f32.partialorder %v1748_v1, 0.7  ;;  %vm1941_vm11 = vcmp.gt.f32.partialorder %v1749_v14, 0.7  ;;  %v7504_v43 = vadd.f32 %v1506_v49, %v1442_v0 }
 0x117   : > { %v6218_v44 = vsel %vm1892_vm4, 1.0, %v11474_v58  ;;  %v6219_v55 = vsel %vm1893_vm5, 1.0, %v11474_v58  ;;  %v6234_v56 = vsel %vm1908_vm6, 1.0, %v11474_v58  ;;  %v6235_v62 = vsel %vm1909_vm7, 1.0, %v11474_v58  ;;  %v1459_v36 = vld [vmem:[#allocation4 + $0xb8] sm:$0xff]  ;;  %v1474_v47 = vld [vmem:[#allocation4 + $0x130] sm:$0xff] }
 0x118   : > { %v6250_v3 = vsel %vm1924_vm8, 1.0, %v11474_v58  ;;  %v6251_v4 = vsel %vm1925_vm9, 1.0, %v11474_v58  ;;  %v6266_v5 = vsel %vm1940_vm10, 1.0, %v11474_v58  ;;  %v6267_v6 = vsel %vm1941_vm11, 1.0, %v11474_v58  ;;  %v1475_v48 = vld [vmem:[#allocation4 + $0x138] sm:$0xff] }
 0x119   : > { %v2084_v12 = vsel %vm1892_vm4, 0.0, %v1700_v53  ;;  %v2085_v15 = vsel %vm1893_vm5, 0.0, %v1701_v54  ;;  %v2100_v16 = vsel %vm1908_vm6, 0.0, %v1716_v50  ;;  %v2101_v17 = vsel %vm1909_vm7, 0.0, %v1717_v59  ;;  %v1491_v54 = vld [vmem:[#allocation4 + $0x1b8] sm:$0xff]  ;;  %v7558_v59 = vld [vmem:[#allocation3 + $0x20] sm:$0xff] }
 0x11a   : > { %v2116_v22 = vsel %vm1924_vm8, 0.0, %v1732_v60  ;;  %v2117_v7 = vsel %vm1925_vm9, 0.0, %v1733_v61  ;;  %v2132_v8 = vsel %vm1940_vm10, 0.0, %v1748_v1  ;;  %v2133_v19 = vsel %vm1941_vm11, 0.0, %v1749_v14  ;;  %2148 = vst.msk [vmem:[#allocation3 + $0x40] sm:$0xff] %vm98_vm1, %v2084_v12 }
 0x11b   : > { %2149 = vst.msk [vmem:[#allocation3 + $0x48] sm:$0xff] %vm98_vm1, %v2085_v15  ;;  %v2340_v23 = vmax.f32 %v6218_v44, %v6234_v56  ;;  %v2341_v27 = vmax.f32 %v6219_v55, %v6235_v62  ;;  %v2356_v30 = vmax.f32 %v6250_v3, %v6266_v5  ;;  %v2357_v33 = vmax.f32 %v6251_v4, %v6267_v6  ;;  %v7563_v44 = vld [vmem:[#allocation3 + $0x28] sm:$0xff]  ;;  %v1440_v3 = vld [vmem:[#allocation4 + $0x20] sm:$0xff] }
 0x11c   : > { %2164 = vst.msk [vmem:[#allocation3 + $0xc0] sm:$0xff] %vm98_vm1, %v2100_v16  ;;  %v507_v38 = vmul.f32 0.1, %v443_v29  ;;  %v1507_v39 = vsub.f32 0.0, %v7514_v63  ;;  %v1522_v40 = vsub.f32 0.0, %v7516_v2  ;;  %v1523_v41 = vsub.f32 0.0, %v7526_v9 }
 0x11d   : > { %2165 = vst.msk [vmem:[#allocation3 + $0xc8] sm:$0xff] %vm98_vm1, %v2101_v17  ;;  %v2372_v45 = vmax.f32 %v2340_v23, %v2356_v30  ;;  %v2373_v46 = vmax.f32 %v2341_v27, %v2357_v33  ;;  %v1538_v25 = vsub.f32 0.0, %v7528_v11  ;;  %v1539_v49 = vsub.f32 0.0, %v7534_v18  ;;  %v1441_v23 = vld [vmem:[#allocation4 + $0x28] sm:$0xff] }
 0x11e   : > { %2180 = vst.msk [vmem:[#allocation3 + $0x140] sm:$0xff] %vm98_vm1, %v2116_v22  ;;  %v571_v32 = vadd.f32 %v507_v38, %v7477_v28  ;;  %v1554_v37 = vsub.f32 0.0, %v7536_v21  ;;  %v1555_v42 = vsub.f32 0.0, %v7543_v20  ;;  %v1571_v51 = vadd.f32 %v1507_v39, %v1443_v34  ;;  %v7599_v38 = vld [vmem:[#allocation3 + $0xa8] sm:$0xff]  ;;  %v7601_v39 = vld [vmem:[#allocation3 + $0x120] sm:$0xff] }
 0x11f   : > { %2181 = vst.msk [vmem:[#allocation3 + $0x148] sm:$0xff] %vm98_vm1, %v2117_v7  ;;  %v2388_v52 = vpack.c.bf16 %v2372_v45, %v2372_v45  ;;  %v2389_v53 = vpack.c.bf16 %v2373_v46, %v2373_v46  ;;  %v1586_v50 = vadd.f32 %v1522_v40, %v1458_v35  ;;  %v1587_v31 = vadd.f32 %v1523_v41, %v1459_v36 }
 0x120   : > { %2196 = vst.msk [vmem:[#allocation3 + $0x1c0] sm:$0xff] %vm98_vm1, %v2132_v8  ;;  %vm635_vm12 = vcmp.gt.f32.partialorder %v571_v32, 1.0  ;;  %v1602_v60 = vadd.f32 %v1538_v25, %v1474_v47  ;;  %v1603_v61 = vadd.f32 %v1539_v49, %v1475_v48  ;;  %v1618_v28 = vadd.f32 %v1554_v37, %v1490_v24  ;;  %v1409_v47 = vld [vmem:[#allocation3 + $0x128] sm:$0xff]  ;;  %v1424_v48 = vld [vmem:[#allocation3 + $0x1a0] sm:$0xff] }
 0x121   : > { %2197 = vst.msk [vmem:[#allocation3 + $0x1c8] sm:$0xff] %vm98_vm1, %v2133_v19  ;;  %v2532_v0 = vunpack.c.l.b16 %v2388_v52  ;;  %v2533_v1 = vunpack.c.l.b16 %v2389_v53  ;;  %v6083_v14 = vsel %vm635_vm12, 1.0, %v11474_v58  ;;  %v827_v29 = vsel %vm635_vm12, 0.0, %v571_v32  ;;  %v1425_v37 = vld [vmem:[#allocation3 + $0x1a8] sm:$0xff] }
 0x122   : > { %891 = vst.msk [vmem:[#allocation2 + $0x10] sm:$0xff] %vm33_vm0, %v827_v29  ;;  %6148 = vmatmul.msk.f32.gmra.mxu0 %vm33_vm0, %v6083_v14  ;;  %v1619_v55 = vadd.f32 %v1555_v42, %v1491_v54  ;;  %v1634_v56 = vmul.f32 0.1, %v7504_v43  ;;  %v1635_v62 = vmul.f32 0.1, %v1571_v51  ;;  %v1504_v4 = vsub.f32 0.0, %v7558_v59 }
 0x123   : > { %v7569_v5 = vpack.c.b16 %v2533_v1, %v2532_v0  ;;  %v1650_v6 = vmul.f32 0.1, %v1586_v50  ;;  %v1651_v12 = vmul.f32 0.1, %v1587_v31  ;;  %v1666_v15 = vmul.f32 0.1, %v1602_v60 }
 0x124   : > { %v1667_v16 = vmul.f32 0.1, %v1603_v61  ;;  %v1682_v17 = vmul.f32 0.1, %v1618_v28  ;;  %v1683_v22 = vmul.f32 0.1, %v1619_v55  ;;  %v1698_v7 = vadd.f32 %v1634_v56, %v7480_v13 }
 0x125   : > { %2559 = vmatpush.bf16.msra.mxu1 %v7569_v5  ;;  %2590 = vmatpush.bf16.msra.mxu2 %v7569_v5  ;;  %v1699_v43 = vadd.f32 %v1635_v62, %v7514_v63  ;;  %v1714_v8 = vadd.f32 %v1650_v6, %v7516_v2  ;;  %v1715_v19 = vadd.f32 %v1651_v12, %v7526_v9  ;;  %v1505_v27 = vsub.f32 0.0, %v7563_v44  ;;  %v1456_v54 = vld [vmem:[#allocation4 + $0xa0] sm:$0xff]  ;;  %v1457_v50 = vld [vmem:[#allocation4 + $0xa8] sm:$0xff] }
 0x126   : > { %2621 = vmatpush.bf16.msra.mxu3 %v7569_v5  ;;  %v1730_v30 = vadd.f32 %v1666_v15, %v7528_v11  ;;  %v1731_v33 = vadd.f32 %v1667_v16, %v7534_v18  ;;  %v1746_v13 = vadd.f32 %v1682_v17, %v7536_v21  ;;  %v1747_v34 = vadd.f32 %v1683_v22, %v7543_v20  ;;  %v7589_v18 = vld [vmem:[#allocation3 + $0xa0] sm:$0xff]  ;;  %v1473_v28 = vld [vmem:[#allocation4 + $0x128] sm:$0xff]  ;;  %v7623_v16 = vld [vmem:[#allocation2 + $0x18] sm:$0xff] }
 0x127   : > { %vm1890_vm13 = vcmp.gt.f32.partialorder %v1698_v7, 0.7  ;;  %vm1891_vm14 = vcmp.gt.f32.partialorder %v1699_v43, 0.7  ;;  %vm1906_vm15 = vcmp.gt.f32.partialorder %v1714_v8, 0.7  ;;  %v7583_v63 = vadd.f32 %v1504_v4, %v1440_v3 }
 0x128   : > { %vm1907_vm3 = vcmp.gt.f32.partialorder %v1715_v19, 0.7  ;;  %vm1922_vm4 = vcmp.gt.f32.partialorder %v1730_v30, 0.7  ;;  %vm1923_vm5 = vcmp.gt.f32.partialorder %v1731_v33, 0.7  ;;  %v1569_v2 = vadd.f32 %v1505_v27, %v1441_v23 }
 0x129   : > { %vm1938_vm6 = vcmp.gt.f32.partialorder %v1746_v13, 0.7  ;;  %vm1939_vm7 = vcmp.gt.f32.partialorder %v1747_v34, 0.7  ;;  %v6216_v9 = vsel %vm1890_vm13, 1.0, %v11474_v58  ;;  %v6217_v11 = vsel %vm1891_vm14, 1.0, %v11474_v58 }
 0x12a   : > { %v6232_v21 = vsel %vm1906_vm15, 1.0, %v11474_v58  ;;  %v6233_v20 = vsel %vm1907_vm3, 1.0, %v11474_v58  ;;  %v6248_v35 = vsel %vm1922_vm4, 1.0, %v11474_v58  ;;  %v6249_v36 = vsel %vm1923_vm5, 1.0, %v11474_v58  ;;  %v1472_v31 = vld [vmem:[#allocation4 + $0x120] sm:$0xff]  ;;  %v1489_v1 = vld [vmem:[#allocation4 + $0x1a8] sm:$0xff] }
 0x12b   : > { %v6264_v40 = vsel %vm1938_vm6, 1.0, %v11474_v58  ;;  %v6265_v41 = vsel %vm1939_vm7, 1.0, %v11474_v58  ;;  %v2082_v45 = vsel %vm1890_vm13, 0.0, %v1698_v7  ;;  %v2083_v46 = vsel %vm1891_vm14, 0.0, %v1699_v43  ;;  %v1488_v0 = vld [vmem:[#allocation4 + $0x1a0] sm:$0xff] }
 0x12c   : > { %v2098_v24 = vsel %vm1906_vm15, 0.0, %v1714_v8  ;;  %v2099_v25 = vsel %vm1907_vm3, 0.0, %v1715_v19  ;;  %v2114_v49 = vsel %vm1922_vm4, 0.0, %v1730_v30  ;;  %v2115_v32 = vsel %vm1923_vm5, 0.0, %v1731_v33  ;;  %2146 = vst.msk [vmem:[#allocation3 + $0x30] sm:$0xff] %vm98_vm1, %v2082_v45 }
 0x12d   : > { %v2130_v42 = vsel %vm1938_vm6, 0.0, %v1746_v13  ;;  %v2131_v51 = vsel %vm1939_vm7, 0.0, %v1747_v34  ;;  %2147 = vst.msk [vmem:[#allocation3 + $0x38] sm:$0xff] %vm98_vm1, %v2083_v46  ;;  %v2338_v52 = vmax.f32 %v6216_v9, %v6232_v21  ;;  %v2339_v53 = vmax.f32 %v6217_v11, %v6233_v20  ;;  %v252_v46 = vld [vmem:[%s11464_s0 + $0x18] sm:$0xff] }
 0x12e   : > { %2162 = vst.msk [vmem:[#allocation3 + $0xb0] sm:$0xff] %vm98_vm1, %v2098_v24  ;;  %v2354_v60 = vmax.f32 %v6248_v35, %v6264_v40  ;;  %v2355_v61 = vmax.f32 %v6249_v36, %v6265_v41  ;;  %v1520_v14 = vsub.f32 0.0, %v7589_v18  ;;  %v1521_v29 = vsub.f32 0.0, %v7599_v38 }
 0x12f   : > { %2163 = vst.msk [vmem:[#allocation3 + $0xb8] sm:$0xff] %vm98_vm1, %v2099_v25  ;;  %v1536_v55 = vsub.f32 0.0, %v7601_v39  ;;  %v1537_v56 = vsub.f32 0.0, %v1409_v47  ;;  %v1552_v62 = vsub.f32 0.0, %v1424_v48  ;;  %v1553_v3 = vsub.f32 0.0, %v1425_v37 }
 0x130   : > { %2178 = vst.msk [vmem:[#allocation3 + $0x130] sm:$0xff] %vm98_vm1, %v2114_v49  ;;  %v2370_v4 = vmax.f32 %v2338_v52, %v2354_v60  ;;  %v2371_v6 = vmax.f32 %v2339_v53, %v2355_v61  ;;  %v1584_v12 = vadd.f32 %v1520_v14, %v1456_v54  ;;  %v1585_v15 = vadd.f32 %v1521_v29, %v1457_v50  ;;  %v7670_v60 = vld [vmem:[#allocation3 + $0x110] sm:$0xff]  ;;  %v7677_v14 = vld [vmem:[#allocation3 + $0x118] sm:$0xff] }
 0x131   : > { %2179 = vst.msk [vmem:[#allocation3 + $0x138] sm:$0xff] %vm98_vm1, %v2115_v32  ;;  %v1600_v17 = vadd.f32 %v1536_v55, %v1472_v31  ;;  %v1601_v22 = vadd.f32 %v1537_v56, %v1473_v28  ;;  %v1616_v7 = vadd.f32 %v1552_v62, %v1488_v0  ;;  %v1617_v43 = vadd.f32 %v1553_v3, %v1489_v1  ;;  %v7668_v31 = vld [vmem:[#allocation3 + $0x98] sm:$0xff]  ;;  %v7681_v3 = vld [vmem:[#allocation3 + $0x190] sm:$0xff] }
 0x132   : > { %2194 = vst.msk [vmem:[#allocation3 + $0x1b0] sm:$0xff] %vm98_vm1, %v2130_v42  ;;  %v2386_v8 = vpack.c.bf16 %v2370_v4, %v2370_v4  ;;  %v2387_v19 = vpack.c.bf16 %v2371_v6, %v2371_v6  ;;  %v1632_v23 = vmul.f32 0.1, %v7583_v63  ;;  %v1633_v27 = vmul.f32 0.1, %v1569_v2  ;;  %v7659_v42 = vld [vmem:[#allocation3 + $0x18] sm:$0xff] }
 0x133   : > { %2195 = vst.msk [vmem:[#allocation3 + $0x1b8] sm:$0xff] %vm98_vm1, %v2131_v51  ;;  %v1648_v30 = vmul.f32 0.1, %v1584_v12  ;;  %v1649_v33 = vmul.f32 0.1, %v1585_v15  ;;  %v380_v13 = vsub.f32 0.0, %v7623_v16 }
 0x134   : > { %v2530_v34 = vunpack.c.l.b16 %v2386_v8  ;;  %v2531_v9 = vunpack.c.l.b16 %v2387_v19  ;;  %v1664_v11 = vmul.f32 0.1, %v1600_v17  ;;  %v1665_v21 = vmul.f32 0.1, %v1601_v22  ;;  %v7661_v51 = vld [vmem:[#allocation3 + $0x90] sm:$0xff]  ;;  %v7683_v4 = vld [vmem:[#allocation3 + $0x198] sm:$0xff] }
 0x135   : > { %v1680_v20 = vmul.f32 0.1, %v1616_v7  ;;  %v1681_v35 = vmul.f32 0.1, %v1617_v43  ;;  %v1696_v36 = vadd.f32 %v1632_v23, %v7558_v59  ;;  %v1697_v40 = vadd.f32 %v1633_v27, %v7563_v44  ;;  %v7685_v6 = vld [vmem:[#allocation4 + $0x10] sm:$0xff]  ;;  %v7688_v17 = vld [vmem:[#allocation4 + $0x18] sm:$0xff] }
 0x136   : > { %v7632_v41 = vpack.c.b16 %v2531_v9, %v2530_v34  ;;  %v1712_v63 = vadd.f32 %v1648_v30, %v7589_v18  ;;  %v1713_v2 = vadd.f32 %v1649_v33, %v7599_v38  ;;  %v1728_v45 = vadd.f32 %v1664_v11, %v7601_v39  ;;  %v7649_v39 = vld [vmem:[#allocation3 + $0x10] sm:$0xff]  ;;  %v1455_v19 = vld [vmem:[#allocation4 + $0x98] sm:$0xff] }
 0x137   : > { %v1729_v24 = vadd.f32 %v1665_v21, %v1409_v47  ;;  %v1744_v25 = vadd.f32 %v1680_v20, %v1424_v48  ;;  %v1745_v49 = vadd.f32 %v1681_v35, %v1425_v37  ;;  %vm1888_vm8 = vcmp.gt.f32.partialorder %v1696_v36, 0.7  ;;  %v1454_v8 = vld [vmem:[#allocation4 + $0x90] sm:$0xff]  ;;  %v1471_v20 = vld [vmem:[#allocation4 + $0x118] sm:$0xff] }
 0x138   : > { %2560 = vmatpush.bf16.msra.mxu1 %v7632_v41  ;;  %2591 = vmatpush.bf16.msra.mxu2 %v7632_v41  ;;  %vm1889_vm9 = vcmp.gt.f32.partialorder %v1697_v40, 0.7  ;;  %vm1904_vm10 = vcmp.gt.f32.partialorder %v1712_v63, 0.7  ;;  %vm1905_vm11 = vcmp.gt.f32.partialorder %v1713_v2, 0.7  ;;  %v444_v59 = vadd.f32 %v380_v13, %v252_v46 }
 0x139   : > { %2622 = vmatpush.bf16.msra.mxu3 %v7632_v41  ;;  %vm1920_vm12 = vcmp.gt.f32.partialorder %v1728_v45, 0.7  ;;  %vm1921_vm13 = vcmp.gt.f32.partialorder %v1729_v24, 0.7  ;;  %vm1936_vm14 = vcmp.gt.f32.partialorder %v1744_v25, 0.7 }
 0x13a   : > { %vm1937_vm15 = vcmp.gt.f32.partialorder %v1745_v49, 0.7  ;;  %v6214_v44 = vsel %vm1888_vm8, 1.0, %v11474_v58  ;;  %v6215_v18 = vsel %vm1889_vm9, 1.0, %v11474_v58  ;;  %v6230_v38 = vsel %vm1904_vm10, 1.0, %v11474_v58  ;;  %v1470_v34 = vld [vmem:[#allocation4 + $0x110] sm:$0xff] }
 0x13b   : > { %v6231_v47 = vsel %vm1905_vm11, 1.0, %v11474_v58  ;;  %v6246_v48 = vsel %vm1920_vm12, 1.0, %v11474_v58  ;;  %v6247_v32 = vsel %vm1921_vm13, 1.0, %v11474_v58  ;;  %v6262_v37 = vsel %vm1936_vm14, 1.0, %v11474_v58  ;;  %v1486_v35 = vld [vmem:[#allocation4 + $0x190] sm:$0xff] }
 0x13c   : > { %v6263_v52 = vsel %vm1937_vm15, 1.0, %v11474_v58  ;;  %v2080_v53 = vsel %vm1888_vm8, 0.0, %v1696_v36  ;;  %v2081_v54 = vsel %vm1889_vm9, 0.0, %v1697_v40  ;;  %v2096_v50 = vsel %vm1904_vm10, 0.0, %v1712_v63  ;;  %v1487_v36 = vld [vmem:[#allocation4 + $0x198] sm:$0xff] }
 0x13d   : > { %v2097_v61 = vsel %vm1905_vm11, 0.0, %v1713_v2  ;;  %v2112_v28 = vsel %vm1920_vm12, 0.0, %v1728_v45  ;;  %v2113_v0 = vsel %vm1921_vm13, 0.0, %v1729_v24  ;;  %v2128_v1 = vsel %vm1936_vm14, 0.0, %v1744_v25  ;;  %2144 = vst.msk [vmem:[#allocation3 + $0x20] sm:$0xff] %vm98_vm1, %v2080_v53 }
 0x13e   : > { %v2129_v29 = vsel %vm1937_vm15, 0.0, %v1745_v49  ;;  %2145 = vst.msk [vmem:[#allocation3 + $0x28] sm:$0xff] %vm98_vm1, %v2081_v54  ;;  %v2336_v55 = vmax.f32 %v6214_v44, %v6230_v38  ;;  %v2337_v56 = vmax.f32 %v6215_v18, %v6231_v47  ;;  %v2352_v62 = vmax.f32 %v6246_v48, %v6262_v37  ;;  %v7709_v48 = vld [vmem:[#allocation3] sm:$0xff] }
 0x13f   : > { %2160 = vst.msk [vmem:[#allocation3 + $0xa0] sm:$0xff] %vm98_vm1, %v2096_v50  ;;  %v2353_v12 = vmax.f32 %v6247_v32, %v6263_v52  ;;  %v508_v15 = vmul.f32 0.1, %v444_v59  ;;  %v1502_v22 = vsub.f32 0.0, %v7649_v39  ;;  %v1503_v7 = vsub.f32 0.0, %v7659_v42 }
 0x140   : > { %2161 = vst.msk [vmem:[#allocation3 + $0xa8] sm:$0xff] %vm98_vm1, %v2097_v61  ;;  %v2368_v43 = vmax.f32 %v2336_v55, %v2352_v62  ;;  %v1518_v23 = vsub.f32 0.0, %v7661_v51  ;;  %v1519_v27 = vsub.f32 0.0, %v7668_v31  ;;  %v1534_v30 = vsub.f32 0.0, %v7670_v60 }
 0x141   : > { %2176 = vst.msk [vmem:[#allocation3 + $0x120] sm:$0xff] %vm98_vm1, %v2112_v28  ;;  %v2369_v33 = vmax.f32 %v2337_v56, %v2353_v12  ;;  %v572_v13 = vadd.f32 %v508_v15, %v7623_v16  ;;  %v1535_v9 = vsub.f32 0.0, %v7677_v14  ;;  %v1550_v11 = vsub.f32 0.0, %v7681_v3  ;;  %v7720_v12 = vld [vmem:[#allocation4] sm:$0xff] }
 0x142   : > { %2177 = vst.msk [vmem:[#allocation3 + $0x128] sm:$0xff] %vm98_vm1, %v2113_v0  ;;  %v2384_v21 = vpack.c.bf16 %v2368_v43, %v2368_v43  ;;  %v1551_v40 = vsub.f32 0.0, %v7683_v4  ;;  %v1566_v63 = vadd.f32 %v1502_v22, %v7685_v6  ;;  %v1567_v2 = vadd.f32 %v1503_v7, %v7688_v17 }
 0x143   : > { %2192 = vst.msk [vmem:[#allocation3 + $0x1a0] sm:$0xff] %vm98_vm1, %v2128_v1  ;;  %v2385_v16 = vpack.c.bf16 %v2369_v33, %v2369_v33  ;;  %vm636_vm3 = vcmp.gt.f32.partialorder %v572_v13, 1.0  ;;  %v1582_v45 = vadd.f32 %v1518_v23, %v1454_v8  ;;  %v1583_v46 = vadd.f32 %v1519_v27, %v1455_v19  ;;  %v7746_v23 = vld [vmem:[#allocation3 + $0x88] sm:$0xff]  ;;  %v7748_v27 = vld [vmem:[#allocation3 + $0x100] sm:$0xff] }
 0x144   : > { %2193 = vst.msk [vmem:[#allocation3 + $0x1a8] sm:$0xff] %vm98_vm1, %v2129_v29  ;;  %v2528_v24 = vunpack.c.l.b16 %v2384_v21  ;;  %v6084_v25 = vsel %vm636_vm3, 1.0, %v11474_v58  ;;  %v828_v49 = vsel %vm636_vm3, 0.0, %v572_v13  ;;  %v1598_v59 = vadd.f32 %v1534_v30, %v1470_v34 }
 0x145   : > { %v2529_v44 = vunpack.c.l.b16 %v2385_v16  ;;  %892 = vst.msk [vmem:[#allocation2 + $0x18] sm:$0xff] %vm33_vm0, %v828_v49  ;;  %6149 = vmatmul.msk.f32.gmra.mxu0 %vm33_vm0, %v6084_v25  ;;  %v1599_v18 = vadd.f32 %v1535_v9, %v1471_v20  ;;  %v1614_v38 = vadd.f32 %v1550_v11, %v1486_v35  ;;  %v1615_v47 = vadd.f32 %v1551_v40, %v1487_v36  ;;  %v7755_v9 = vld [vmem:[#allocation3 + $0x108] sm:$0xff]  ;;  %v7757_v11 = vld [vmem:[#allocation3 + $0x180] sm:$0xff] }
 0x146   : > { %v1630_v32 = vmul.f32 0.1, %v1566_v63  ;;  %v1631_v37 = vmul.f32 0.1, %v1567_v2  ;;  %v1646_v52 = vmul.f32 0.1, %v1582_v45 }
 0x147   : > { %v7711_v53 = vpack.c.b16 %v2529_v44, %v2528_v24  ;;  %v1647_v54 = vmul.f32 0.1, %v1583_v46  ;;  %v1662_v50 = vmul.f32 0.1, %v1598_v59  ;;  %v1663_v61 = vmul.f32 0.1, %v1599_v18 }
 0x148   : > { %v1678_v28 = vmul.f32 0.1, %v1614_v38  ;;  %v1679_v0 = vmul.f32 0.1, %v1615_v47  ;;  %v1694_v1 = vadd.f32 %v1630_v32, %v7649_v39  ;;  %v1695_v29 = vadd.f32 %v1631_v37, %v7659_v42  ;;  %v1421_v40 = vld [vmem:[#allocation3 + $0x188] sm:$0xff]  ;;  %v1452_v24 = vld [vmem:[#allocation4 + $0x80] sm:$0xff] }
 0x149   : > { %2561 = vmatpush.bf16.msra.mxu1 %v7711_v53  ;;  %2592 = vmatpush.bf16.msra.mxu2 %v7711_v53  ;;  %v1710_v55 = vadd.f32 %v1646_v52, %v7661_v51  ;;  %v1711_v56 = vadd.f32 %v1647_v54, %v7668_v31  ;;  %v1726_v62 = vadd.f32 %v1662_v50, %v7670_v60  ;;  %v1500_v15 = vsub.f32 0.0, %v7709_v48  ;;  %v7766_v46 = vld [vmem:[#allocation4 + $0x8] sm:$0xff]  ;;  %v1468_v59 = vld [vmem:[#allocation4 + $0x100] sm:$0xff] }
 0x14a   : > { %2623 = vmatpush.bf16.msra.mxu3 %v7711_v53  ;;  %v1727_v39 = vadd.f32 %v1663_v61, %v7677_v14  ;;  %v1742_v42 = vadd.f32 %v1678_v28, %v7681_v3  ;;  %v1743_v22 = vadd.f32 %v1679_v0, %v7683_v4  ;;  %vm1886_vm4 = vcmp.gt.f32.partialorder %v1694_v1, 0.7  ;;  %v7734_v3 = vld [vmem:[#allocation3 + $0x8] sm:$0xff]  ;;  %v7736_v4 = vld [vmem:[#allocation3 + $0x80] sm:$0xff] }
 0x14b   : > { %vm1887_vm5 = vcmp.gt.f32.partialorder %v1695_v29, 0.7  ;;  %vm1902_vm6 = vcmp.gt.f32.partialorder %v1710_v55, 0.7  ;;  %vm1903_vm7 = vcmp.gt.f32.partialorder %v1711_v56, 0.7  ;;  %v1564_v51 = vadd.f32 %v1500_v15, %v7720_v12 }
 0x14c   : > { %vm1918_vm8 = vcmp.gt.f32.partialorder %v1726_v62, 0.7  ;;  %vm1919_vm9 = vcmp.gt.f32.partialorder %v1727_v39, 0.7  ;;  %vm1934_vm10 = vcmp.gt.f32.partialorder %v1742_v42, 0.7 }
 0x14d   : > { %vm1935_vm11 = vcmp.gt.f32.partialorder %v1743_v22, 0.7  ;;  %v6212_v31 = vsel %vm1886_vm4, 1.0, %v11474_v58  ;;  %v6213_v60 = vsel %vm1887_vm5, 1.0, %v11474_v58  ;;  %v6228_v14 = vsel %vm1902_vm6, 1.0, %v11474_v58  ;;  %v1453_v25 = vld [vmem:[#allocation4 + $0x88] sm:$0xff] }
 0x14e   : > { %v6229_v7 = vsel %vm1903_vm7, 1.0, %v11474_v58  ;;  %v6244_v43 = vsel %vm1918_vm8, 1.0, %v11474_v58  ;;  %v6245_v8 = vsel %vm1919_vm9, 1.0, %v11474_v58  ;;  %v6260_v19 = vsel %vm1934_vm10, 1.0, %v11474_v58  ;;  %v1469_v44 = vld [vmem:[#allocation4 + $0x108] sm:$0xff]  ;;  %v1484_v37 = vld [vmem:[#allocation4 + $0x180] sm:$0xff] }
 0x14f   : > { %v6261_v30 = vsel %vm1935_vm11, 1.0, %v11474_v58  ;;  %v2078_v33 = vsel %vm1886_vm4, 0.0, %v1694_v1  ;;  %v2079_v13 = vsel %vm1887_vm5, 0.0, %v1695_v29  ;;  %v2094_v34 = vsel %vm1902_vm6, 0.0, %v1710_v55  ;;  %v1485_v52 = vld [vmem:[#allocation4 + $0x188] sm:$0xff]  ;;  %v7778_v55 = vld [vmem:[#allocation2 + $0x20] sm:$0xff] }
 0x150   : > { %v2095_v21 = vsel %vm1903_vm7, 0.0, %v1711_v56  ;;  %v2110_v20 = vsel %vm1918_vm8, 0.0, %v1726_v62  ;;  %v2111_v35 = vsel %vm1919_vm9, 0.0, %v1727_v39  ;;  %v2126_v36 = vsel %vm1934_vm10, 0.0, %v1742_v42  ;;  %2142 = vst.msk [vmem:[#allocation3 + $0x10] sm:$0xff] %vm98_vm1, %v2078_v33 }
 0x151   : > { %v2127_v63 = vsel %vm1935_vm11, 0.0, %v1743_v22  ;;  %2143 = vst.msk [vmem:[#allocation3 + $0x18] sm:$0xff] %vm98_vm1, %v2079_v13  ;;  %v2334_v2 = vmax.f32 %v6212_v31, %v6228_v14  ;;  %v2335_v16 = vmax.f32 %v6213_v60, %v6229_v7  ;;  %v2350_v45 = vmax.f32 %v6244_v43, %v6260_v19 }
 0x152   : > { %2158 = vst.msk [vmem:[#allocation3 + $0x90] sm:$0xff] %vm98_vm1, %v2094_v34  ;;  %v2351_v49 = vmax.f32 %v6245_v8, %v6261_v30  ;;  %v1501_v18 = vsub.f32 0.0, %v7734_v3  ;;  %v1516_v38 = vsub.f32 0.0, %v7736_v4  ;;  %v1517_v47 = vsub.f32 0.0, %v7746_v23 }
 0x153   : > { %2159 = vst.msk [vmem:[#allocation3 + $0x98] sm:$0xff] %vm98_vm1, %v2095_v21  ;;  %v2366_v32 = vmax.f32 %v2334_v2, %v2350_v45  ;;  %v1532_v54 = vsub.f32 0.0, %v7748_v27  ;;  %v1533_v50 = vsub.f32 0.0, %v7755_v9  ;;  %v1548_v61 = vsub.f32 0.0, %v7757_v11 }
 0x154   : > { %2174 = vst.msk [vmem:[#allocation3 + $0x110] sm:$0xff] %vm98_vm1, %v2110_v20  ;;  %v2367_v28 = vmax.f32 %v2335_v16, %v2351_v49  ;;  %v1549_v0 = vsub.f32 0.0, %v1421_v40  ;;  %v1565_v1 = vadd.f32 %v1501_v18, %v7766_v46  ;;  %v1580_v29 = vadd.f32 %v1516_v38, %v1452_v24  ;;  %v253_v16 = vld [vmem:[%s11464_s0 + $0x20] sm:$0xff]  ;;  %v318_v38 = vld [vmem:[#allocation2 + $0x28] sm:$0xff] }
 0x155   : > { %2175 = vst.msk [vmem:[#allocation3 + $0x118] sm:$0xff] %vm98_vm1, %v2111_v35  ;;  %v2382_v56 = vpack.c.bf16 %v2366_v32, %v2366_v32  ;;  %v1581_v62 = vadd.f32 %v1517_v47, %v1453_v25  ;;  %v1596_v15 = vadd.f32 %v1532_v54, %v1468_v59  ;;  %v1597_v39 = vadd.f32 %v1533_v50, %v1469_v44  ;;  %v319_v47 = vld [vmem:[#allocation2 + $0x30] sm:$0xff] }
 0x156   : > { %2190 = vst.msk [vmem:[#allocation3 + $0x190] sm:$0xff] %vm98_vm1, %v2126_v36  ;;  %v2383_v42 = vpack.c.bf16 %v2367_v28, %v2367_v28  ;;  %v1612_v22 = vadd.f32 %v1548_v61, %v1484_v37  ;;  %v1613_v31 = vadd.f32 %v1549_v0, %v1485_v52  ;;  %v1628_v60 = vmul.f32 0.1, %v1564_v51  ;;  %v320_v52 = vld [vmem:[#allocation2 + $0x38] sm:$0xff]  ;;  %v254_v0 = vld [vmem:[%s11464_s0 + $0x28] sm:$0xff] }
 0x157   : > { %2191 = vst.msk [vmem:[#allocation3 + $0x198] sm:$0xff] %vm98_vm1, %v2127_v63  ;;  %v2526_v14 = vunpack.c.l.b16 %v2382_v56  ;;  %v1629_v7 = vmul.f32 0.1, %v1565_v1  ;;  %v1644_v43 = vmul.f32 0.1, %v1580_v29  ;;  %v381_v8 = vsub.f32 0.0, %v7778_v55 }
 0x158   : > { %v2527_v19 = vunpack.c.l.b16 %v2383_v42  ;;  %v1645_v30 = vmul.f32 0.1, %v1581_v62  ;;  %v1660_v33 = vmul.f32 0.1, %v1596_v15  ;;  %v1661_v13 = vmul.f32 0.1, %v1597_v39 }
 0x159   : > { %v1676_v34 = vmul.f32 0.1, %v1612_v22  ;;  %v1677_v21 = vmul.f32 0.1, %v1613_v31  ;;  %v1692_v20 = vadd.f32 %v1628_v60, %v7709_v48  ;;  %v1693_v35 = vadd.f32 %v1629_v7, %v7734_v3  ;;  %v255_v1 = vld [vmem:[%s11464_s0 + $0x30] sm:$0xff]  ;;  %v256_v39 = vld [vmem:[%s11464_s0 + $0x38] sm:$0xff] }
 0x15a   : > { %v7786_v36 = vpack.c.b16 %v2527_v19, %v2526_v14  ;;  %v1708_v51 = vadd.f32 %v1644_v43, %v7736_v4  ;;  %v1709_v63 = vadd.f32 %v1645_v30, %v7746_v23  ;;  %v1724_v2 = vadd.f32 %v1660_v33, %v7748_v27  ;;  %v321_v33 = vld [vmem:[#allocation2 + $0x40] sm:$0xff] }
 0x15b   : > { %v1725_v45 = vadd.f32 %v1661_v13, %v7755_v9  ;;  %v1740_v24 = vadd.f32 %v1676_v34, %v7757_v11  ;;  %v1741_v25 = vadd.f32 %v1677_v21, %v1421_v40  ;;  %vm1884_vm12 = vcmp.gt.f32.partialorder %v1692_v20, 0.7 }
 0x15c   : > { %2562 = vmatpush.bf16.msra.mxu1 %v7786_v36  ;;  %2593 = vmatpush.bf16.msra.mxu2 %v7786_v36  ;;  %vm1885_vm13 = vcmp.gt.f32.partialorder %v1693_v35, 0.7  ;;  %vm1900_vm14 = vcmp.gt.f32.partialorder %v1708_v51, 0.7  ;;  %vm1901_vm15 = vcmp.gt.f32.partialorder %v1709_v63, 0.7  ;;  %v445_v48 = vadd.f32 %v381_v8, %v253_v16 }
 0x15d   : > { %2624 = vmatpush.bf16.msra.mxu3 %v7786_v36  ;;  %vm1916_vm3 = vcmp.gt.f32.partialorder %v1724_v2, 0.7  ;;  %vm1917_vm4 = vcmp.gt.f32.partialorder %v1725_v45, 0.7  ;;  %vm1932_vm5 = vcmp.gt.f32.partialorder %v1740_v24, 0.7 }
 0x15e   : > { %vm1933_vm6 = vcmp.gt.f32.partialorder %v1741_v25, 0.7  ;;  %v6210_v3 = vsel %vm1884_vm12, 1.0, %v11474_v58  ;;  %v6211_v4 = vsel %vm1885_vm13, 1.0, %v11474_v58  ;;  %v6226_v23 = vsel %vm1900_vm14, 1.0, %v11474_v58 }
 0x15f   : > { %v6227_v27 = vsel %vm1901_vm15, 1.0, %v11474_v58  ;;  %v6242_v9 = vsel %vm1916_vm3, 1.0, %v11474_v58  ;;  %v6243_v11 = vsel %vm1917_vm4, 1.0, %v11474_v58  ;;  %v6258_v40 = vsel %vm1932_vm5, 1.0, %v11474_v58 }
 0x160   : > { %v6259_v49 = vsel %vm1933_vm6, 1.0, %v11474_v58  ;;  %v2076_v59 = vsel %vm1884_vm12, 0.0, %v1692_v20  ;;  %v2077_v44 = vsel %vm1885_vm13, 0.0, %v1693_v35  ;;  %v2092_v18 = vsel %vm1900_vm14, 0.0, %v1708_v51 }
 0x161   : > { %v2093_v32 = vsel %vm1901_vm15, 0.0, %v1709_v63  ;;  %v2108_v37 = vsel %vm1916_vm3, 0.0, %v1724_v2  ;;  %2140 = vst.msk [vmem:[#allocation3] sm:$0xff] %vm98_vm1, %v2076_v59  ;;  %v2109_v54 = vsel %vm1917_vm4, 0.0, %v1725_v45  ;;  %v2332_v50 = vmax.f32 %v6210_v3, %v6226_v23  ;;  %v257_v63 = vld [vmem:[%s11464_s0 + $0x40] sm:$0xff]  ;;  %v6614_v23 = vld [vmem:[%s11467_s3 + $0x10] sm:$0xff] }
 0x162   : > { %2141 = vst.msk [vmem:[#allocation3 + $0x8] sm:$0xff] %vm98_vm1, %v2077_v44  ;;  %v2333_v61 = vmax.f32 %v6211_v4, %v6227_v27  ;;  %v2348_v28 = vmax.f32 %v6242_v9, %v6258_v40  ;;  %v2349_v29 = vmax.f32 %v6243_v11, %v6259_v49  ;;  %v509_v56 = vmul.f32 0.1, %v445_v48  ;;  %v6612_v4 = vld [vmem:[%s11467_s3] sm:$0xff]  ;;  %v322_v44 = vld [vmem:[#allocation2 + $0x48] sm:$0xff] }
 0x163   : > { %2156 = vst.msk [vmem:[#allocation3 + $0x80] sm:$0xff] %vm98_vm1, %v2092_v18  ;;  %v382_v62 = vsub.f32 0.0, %v318_v38  ;;  %v383_v15 = vsub.f32 0.0, %v319_v47  ;;  %v2124_v42 = vsel %vm1932_vm5, 0.0, %v1740_v24  ;;  %v2125_v22 = vsel %vm1933_vm6, 0.0, %v1741_v25  ;;  %v6616_v11 = vld [vmem:[%s11467_s3 + $0x20] sm:$0xff] }
 0x164   : > { %2157 = vst.msk [vmem:[#allocation3 + $0x88] sm:$0xff] %vm98_vm1, %v2093_v32  ;;  %v2364_v31 = vmax.f32 %v2332_v50, %v2348_v28  ;;  %v384_v60 = vsub.f32 0.0, %v320_v52  ;;  %v2365_v14 = vmax.f32 %v2333_v61, %v2349_v29  ;;  %v573_v7 = vadd.f32 %v509_v56, %v7778_v55  ;;  %v323_v61 = vld [vmem:[#allocation2 + $0x50] sm:$0xff] }
 0x165   : > { %2172 = vst.msk [vmem:[#allocation3 + $0x100] sm:$0xff] %vm98_vm1, %v2108_v37  ;;  %v446_v43 = vadd.f32 %v382_v62, %v254_v0  ;;  %v447_v8 = vadd.f32 %v383_v15, %v255_v1  ;;  %v385_v24 = vsub.f32 0.0, %v321_v33  ;;  %v387_v28 = vsub.f32 0.0, %v323_v61  ;;  %v259_v1 = vld [vmem:[%s11464_s0 + $0x50] sm:$0xff]  ;;  %v6613_v62 = vld [vmem:[%s11467_s3 + $0x8] sm:$0xff]  ;;  %v6615_v15 = vld [vmem:[%s11467_s3 + $0x18] sm:$0xff] }
 0x166   : > { %2173 = vst.msk [vmem:[#allocation3 + $0x108] sm:$0xff] %vm98_vm1, %v2109_v54  ;;  %v2380_v19 = vpack.c.bf16 %v2364_v31, %v2364_v31  ;;  %v448_v30 = vadd.f32 %v384_v60, %v256_v39  ;;  %v2381_v13 = vpack.c.bf16 %v2365_v14, %v2365_v14  ;;  %vm637_vm7 = vcmp.gt.f32.partialorder %v573_v7, 1.0  ;;  %v6617_v39 = vld [vmem:[%s11467_s3 + $0x28] sm:$0xff]  ;;  %v324_v31 = vld [vmem:[#allocation2 + $0x58] sm:$0xff] }
 0x167   : > { %2188 = vst.msk [vmem:[#allocation3 + $0x180] sm:$0xff] %vm98_vm1, %v2124_v42  ;;  %v510_v34 = vmul.f32 0.1, %v446_v43  ;;  %v511_v21 = vmul.f32 0.1, %v447_v8  ;;  %v6085_v35 = vsel %vm637_vm7, 1.0, %v11474_v58  ;;  %v449_v3 = vadd.f32 %v385_v24, %v257_v63 }
 0x168   : > { %2189 = vst.msk [vmem:[#allocation3 + $0x188] sm:$0xff] %vm98_vm1, %v2125_v22  ;;  %v2524_v20 = vunpack.c.l.b16 %v2380_v19  ;;  %v829_v51 = vsel %vm637_vm7, 0.0, %v573_v7  ;;  %v512_v55 = vmul.f32 0.1, %v448_v30  ;;  %v2525_v2 = vunpack.c.l.b16 %v2381_v13  ;;  %6150 = vmatmul.msk.f32.gmra.mxu0 %vm33_vm0, %v6085_v35  ;;  %v260_v7 = vld [vmem:[%s11464_s0 + $0x58] sm:$0xff]  ;;  %v325_v13 = vld [vmem:[#allocation2 + $0x60] sm:$0xff] }
 0x169   : > { %893 = vst.msk [vmem:[#allocation2 + $0x20] sm:$0xff] %vm33_vm0, %v829_v51  ;;  %v574_v16 = vadd.f32 %v510_v34, %v318_v38  ;;  %v575_v45 = vadd.f32 %v511_v21, %v319_v47  ;;  %v513_v40 = vmul.f32 0.1, %v449_v3  ;;  %v386_v38 = vsub.f32 0.0, %v322_v44  ;;  %v258_v47 = vld [vmem:[%s11464_s0 + $0x48] sm:$0xff]  ;;  %v6620_v63 = vld [vmem:[%s11467_s3 + $0x40] sm:$0xff] }
 0x16a   : > { %v576_v25 = vadd.f32 %v512_v55, %v320_v52  ;;  %v7847_v48 = vpack.c.b16 %v2525_v2, %v2524_v20  ;;  %v451_v29 = vadd.f32 %v387_v28, %v259_v1  ;;  %v388_v60 = vsub.f32 0.0, %v324_v31  ;;  %v261_v20 = vld [vmem:[%s11464_s0 + $0x60] sm:$0xff]  ;;  %v6618_v55 = vld [vmem:[%s11467_s3 + $0x30] sm:$0xff] }
 0x16b   : > { %vm638_vm8 = vcmp.gt.f32.partialorder %v574_v16, 1.0  ;;  %vm639_vm9 = vcmp.gt.f32.partialorder %v575_v45, 1.0  ;;  %v577_v18 = vadd.f32 %v513_v40, %v321_v33  ;;  %v450_v32 = vadd.f32 %v386_v38, %v258_v47  ;;  %v3414_v33 = vld [vmem:[%s11468_s4 + $0x2f8] sm:$0xff]  ;;  %v6622_v2 = vld [vmem:[%s11467_s3 + $0x50] sm:$0xff] }
 0x16c   : > { %v830_v27 = vsel %vm638_vm8, 0.0, %v574_v16  ;;  %v831_v9 = vsel %vm639_vm9, 0.0, %v575_v45  ;;  %2563 = vmatpush.bf16.msra.mxu1 %v7847_v48  ;;  %2594 = vmatpush.bf16.msra.mxu2 %v7847_v48  ;;  %vm640_vm10 = vcmp.gt.f32.partialorder %v576_v25, 1.0  ;;  %v6086_v49 = vsel %vm638_vm8, 1.0, %v11474_v58  ;;  %v326_v45 = vld [vmem:[#allocation2 + $0x68] sm:$0xff]  ;;  %v6619_v47 = vld [vmem:[%s11467_s3 + $0x38] sm:$0xff] }
 0x16d   : > { %894 = vst.msk [vmem:[#allocation2 + $0x28] sm:$0xff] %vm33_vm0, %v830_v27  ;;  %2625 = vmatpush.bf16.msra.mxu3 %v7847_v48  ;;  %v832_v59 = vsel %vm640_vm10, 0.0, %v576_v25  ;;  %vm641_vm11 = vcmp.gt.f32.partialorder %v577_v18, 1.0  ;;  %v514_v52 = vmul.f32 0.1, %v450_v32  ;;  %v6087_v50 = vsel %vm639_vm9, 1.0, %v11474_v58  ;;  %4386 = vmatpush.msrb.mxu0 %v3414_v33 }
 0x16e   : > { %895 = vst.msk [vmem:[#allocation2 + $0x30] sm:$0xff] %vm33_vm0, %v831_v9  ;;  %v833_v37 = vsel %vm641_vm11, 0.0, %v577_v18  ;;  %v515_v56 = vmul.f32 0.1, %v451_v29  ;;  %v6088_v22 = vsel %vm640_vm10, 1.0, %v11474_v58  ;;  %v452_v43 = vadd.f32 %v388_v60, %v260_v7  ;;  %v6621_v32 = vld [vmem:[%s11467_s3 + $0x48] sm:$0xff] }
 0x16f   : > { %896 = vst.msk [vmem:[#allocation2 + $0x38] sm:$0xff] %vm33_vm0, %v832_v59  ;;  %2564 = vmatmul.bf16.vlgmr.msra.gmra.mxu1 %v6612_v4  ;;  %2595 = vmatmul.bf16.vlgmr.msra.gmra.mxu2 %v6614_v23  ;;  %v7879_v54 = vadd.f32 %v514_v52, %v322_v44  ;;  %v6089_v30 = vsel %vm641_vm11, 1.0, %v11474_v58  ;;  %v389_v34 = vsub.f32 0.0, %v325_v13  ;;  %v390_v24 = vsub.f32 0.0, %v326_v45  ;;  %v262_v4 = vld [vmem:[%s11464_s0 + $0x68] sm:$0xff]  ;;  %v263_v44 = vld [vmem:[%s11464_s0 + $0x70] sm:$0xff] }
 0x170   : > { %2649 = vmatpush.bf16.msrb.mxu1 %v7334_v10  ;;  %2680 = vmatpush.bf16.msrb.mxu2 %v7334_v10  ;;  %897 = vst.msk [vmem:[#allocation2 + $0x40] sm:$0xff] %vm33_vm0, %v833_v37  ;;  %v7907_v42 = vadd.f32 %v515_v56, %v323_v61  ;;  %v516_v8 = vmul.f32 0.1, %v452_v43  ;;  %v6623_v37 = vld [vmem:[%s11467_s3 + $0x58] sm:$0xff]  ;;  %v265_v43 = vld [vmem:[%s11464_s0 + $0x80] sm:$0xff]  ;;  %v6626_v33 = vld [vmem:[%s11467_s3 + $0x70] sm:$0xff] }
 0x171   : > { %2711 = vmatpush.bf16.msrb.mxu3 %v7334_v10  ;;  %6151 = vmatmul.msk.f32.gmra.mxu0 %vm33_vm0, %v6086_v49  ;;  %vm642_vm12 = vcmp.gt.f32.partialorder %v7879_v54, 1.0  ;;  %v453_v35 = vadd.f32 %v389_v34, %v261_v20  ;;  %v454_v23 = vadd.f32 %v390_v24, %v262_v4 }
 0x172   : > { %2626 = vmatmul.bf16.vlgmr.msra.gmra.mxu3 %v6616_v11  ;;  %v834_v0 = vsel %vm642_vm12, 0.0, %v7879_v54  ;;  %vm643_vm13 = vcmp.gt.f32.partialorder %v7907_v42, 1.0  ;;  %v7926_v19 = vadd.f32 %v516_v8, %v324_v31  ;;  %v6090_v25 = vsel %vm642_vm12, 1.0, %v11474_v58  ;;  %v327_v11 = vld [vmem:[#allocation2 + $0x70] sm:$0xff]  ;;  %v328_v54 = vld [vmem:[#allocation2 + $0x78] sm:$0xff] }
 0x173   : > { %898 = vst.msk [vmem:[#allocation2 + $0x48] sm:$0xff] %vm33_vm0, %v834_v0  ;;  %v835_v14 = vsel %vm643_vm13, 0.0, %v7907_v42  ;;  %v517_v51 = vmul.f32 0.1, %v453_v35  ;;  %v518_v27 = vmul.f32 0.1, %v454_v23  ;;  %v1180_v42 = vpop.f32.mrf.mxu0 }
 0x174   : > { %2650 = vmatpush.bf16.msrb.mxu1 %v7409_v26  ;;  %2681 = vmatpush.bf16.msrb.mxu2 %v7409_v26  ;;  %899 = vst.msk [vmem:[#allocation2 + $0x50] sm:$0xff] %vm33_vm0, %v835_v14  ;;  %vm644_vm14 = vcmp.gt.f32.partialorder %v7926_v19, 1.0  ;;  %v391_v40 = vsub.f32 0.0, %v327_v11  ;;  %v6091_v49 = vsel %vm643_vm13, 1.0, %v11474_v58  ;;  %v264_v0 = vld [vmem:[%s11464_s0 + $0x78] sm:$0xff] }
 0x175   : > { %2712 = vmatpush.bf16.msrb.mxu3 %v7409_v26  ;;  %v836_v21 = vsel %vm644_vm14, 0.0, %v7926_v19  ;;  %v7960_v16 = vadd.f32 %v517_v51, %v325_v13  ;;  %v7978_v9 = vadd.f32 %v518_v27, %v326_v45  ;;  %v6092_v61 = vsel %vm644_vm14, 1.0, %v11474_v58  ;;  %v6628_v13 = vld [vmem:[%s11467_s3 + $0x80] sm:$0xff]  ;;  %v331_v27 = vld [vmem:[#allocation2 + $0x90] sm:$0xff] }
 0x176   : > { %900 = vst.msk [vmem:[#allocation2 + $0x58] sm:$0xff] %vm33_vm0, %v836_v21  ;;  %v455_v18 = vadd.f32 %v391_v40, %v263_v44  ;;  %v330_v21 = vld [vmem:[#allocation2 + $0x88] sm:$0xff] }
 0x177   : > { %vm645_vm15 = vcmp.gt.f32.partialorder %v7960_v16, 1.0  ;;  %vm646_vm3 = vcmp.gt.f32.partialorder %v7978_v9, 1.0  ;;  %v394_v20 = vsub.f32 0.0, %v330_v21 }
 0x178   : > { %2651 = vmatpush.bf16.msrb.mxu1 %v7494_v57  ;;  %2682 = vmatpush.bf16.msrb.mxu2 %v7494_v57  ;;  %v837_v3 = vsel %vm645_vm15, 0.0, %v7960_v16  ;;  %v838_v59 = vsel %vm646_vm3, 0.0, %v7978_v9  ;;  %v519_v38 = vmul.f32 0.1, %v455_v18  ;;  %v6093_v31 = vsel %vm645_vm15, 1.0, %v11474_v58 }
 0x179   : > { %2713 = vmatpush.bf16.msrb.mxu3 %v7494_v57  ;;  %6152 = vmatmul.msk.f32.gmra.mxu0 %vm33_vm0, %v6087_v50  ;;  %901 = vst.msk [vmem:[#allocation2 + $0x60] sm:$0xff] %vm33_vm0, %v837_v3  ;;  %v392_v50 = vsub.f32 0.0, %v328_v54  ;;  %v6094_v35 = vsel %vm646_vm3, 1.0, %v11474_v58  ;;  %v1758_v3 = vmul.f32 0.2, %v7685_v6  ;;  %v395_v9 = vsub.f32 0.0, %v331_v27 }
 0x17a   : > { %902 = vst.msk [vmem:[#allocation2 + $0x68] sm:$0xff] %vm33_vm0, %v838_v59  ;;  %v8007_v52 = vadd.f32 %v519_v38, %v327_v11 }
 0x17b   : > { %v456_v1 = vadd.f32 %v392_v50, %v264_v0  ;;  %v268_v0 = vld [vmem:[%s11464_s0 + $0x98] sm:$0xff] }
 0x17c   : > { %2652 = vmatpush.bf16.msrb.mxu1 %v7569_v5  ;;  %2683 = vmatpush.bf16.msrb.mxu2 %v7569_v5  ;;  %vm647_vm4 = vcmp.gt.f32.partialorder %v8007_v52, 1.0 }
 0x17d   : > { %2714 = vmatpush.bf16.msrb.mxu3 %v7569_v5  ;;  %v839_v28 = vsel %vm647_vm4, 0.0, %v8007_v52  ;;  %v520_v29 = vmul.f32 0.1, %v456_v1  ;;  %v6095_v11 = vsel %vm647_vm4, 1.0, %v11474_v58  ;;  %v1759_v1 = vmul.f32 0.2, %v7688_v17 }
 0x17e   : > { %903 = vst.msk [vmem:[#allocation2 + $0x70] sm:$0xff] %vm33_vm0, %v839_v28 }
 0x17f   : > { %2569 = vmatmul.bf16.gmra.mxu1 %v6613_v62  ;;  %2600 = vmatmul.bf16.gmra.mxu2 %v6615_v15  ;;  %v8027_v56 = vadd.f32 %v520_v29, %v328_v54  ;;  %v8034_v62 = vld [vmem:[%s11466_s2] ss:$0 sm:$0xff]  ;;  %v1756_v15 = vmul.f32 0.2, %v7720_v12 }
 0x180   : > { %2653 = vmatpush.bf16.msrb.mxu1 %v7632_v41  ;;  %2684 = vmatpush.bf16.msrb.mxu2 %v7632_v41  ;;  %v1181_v14 = vadd.f32 %v8034_v62, %v1180_v42  ;;  %v332_v54 = vld [vmem:[#allocation2 + $0x98] sm:$0xff] }
 0x181   : > { %2715 = vmatpush.bf16.msrb.mxu3 %v7632_v41  ;;  %6153 = vmatmul.msk.f32.gmra.mxu0 %vm33_vm0, %v6088_v22  ;;  %vm648_vm5 = vcmp.gt.f32.partialorder %v8027_v56, 1.0  ;;  %v1820_v7 = vsub.f32 %v7720_v12, %v1756_v15  ;;  %v6624_v12 = vld [vmem:[%s11467_s3 + $0x60] sm:$0xff]  ;;  %v396_v50 = vsub.f32 0.0, %v332_v54 }
 0x182   : > { %2631 = vmatmul.bf16.gmra.mxu3 %v6617_v39  ;;  %v329_v39 = vld [vmem:[#allocation2 + $0x80] sm:$0xff]  ;;  %v840_v60 = vsel %vm648_vm5, 0.0, %v8027_v56 }
 0x183   : > { %v393_v22 = vsub.f32 0.0, %v329_v39  ;;  %904 = vst.msk [vmem:[#allocation2 + $0x78] sm:$0xff] %vm33_vm0, %v840_v60  ;;  %v2204_v19 = vadd.f32 %v1820_v7, %v1181_v14  ;;  %v460_v29 = vadd.f32 %v396_v50, %v268_v0  ;;  %v333_v60 = vld [vmem:[#allocation2 + $0xa0] sm:$0xff] }
 0x184   : > { %2654 = vmatpush.bf16.msrb.mxu1 %v7711_v53  ;;  %2685 = vmatpush.bf16.msrb.mxu2 %v7711_v53  ;;  %v397_v14 = vsub.f32 0.0, %v333_v60  ;;  %v337_v50 = vld [vmem:[#allocation2 + $0xc0] sm:$0xff] }
 0x185   : > { %2716 = vmatpush.bf16.msrb.mxu3 %v7711_v53  ;;  %v457_v8 = vadd.f32 %v393_v22, %v265_v43  ;;  %2268 = vst.msk [vmem:[#allocation4] sm:$0xff] %vm98_vm1, %v2204_v19  ;;  %v524_v42 = vmul.f32 0.1, %v460_v29  ;;  %v269_v43 = vld [vmem:[%s11464_s0 + $0xa0] sm:$0xff] }
 0x186   : > { %v273_v29 = vld [vmem:[%s11464_s0 + $0xc0] sm:$0xff] }
 0x188   : > { %2655 = vmatpush.bf16.msrb.mxu1 %v7786_v36  ;;  %2686 = vmatpush.bf16.msrb.mxu2 %v7786_v36 }
 0x189   : > { %2717 = vmatpush.bf16.msrb.mxu3 %v7786_v36  ;;  %6154 = vmatmul.msk.f32.gmra.mxu0 %vm33_vm0, %v6089_v30  ;;  %v521_v30 = vmul.f32 0.1, %v457_v8  ;;  %v461_v8 = vadd.f32 %v397_v14, %v269_v43 }
 0x18b   : > { %v8067_v34 = vadd.f32 %v521_v30, %v329_v39  ;;  %v1823_v39 = vsub.f32 %v7688_v17, %v1759_v1  ;;  %v525_v19 = vmul.f32 0.1, %v461_v8  ;;  %v6630_v30 = vld [vmem:[%s11467_s3 + $0x90] sm:$0xff] }
 0x18c   : > { %2656 = vmatpush.bf16.msrb.mxu1 %v7847_v48  ;;  %2687 = vmatpush.bf16.msrb.mxu2 %v7847_v48 }
 0x18d   : > { %2718 = vmatpush.bf16.msrb.mxu3 %v7847_v48  ;;  %vm649_vm6 = vcmp.gt.f32.partialorder %v8067_v34, 1.0 }
 0x18e   : > { %v841_v51 = vsel %vm649_vm6, 0.0, %v8067_v34  ;;  %v6097_v17 = vsel %vm649_vm6, 1.0, %v11474_v58  ;;  %v334_v34 = vld [vmem:[#allocation2 + $0xa8] sm:$0xff] }
 0x18f   : > { %2657 = vmatmul.bf16.vlgmr.msrb.gmra.mxu1 %v6618_v55  ;;  %2688 = vmatmul.bf16.vlgmr.msrb.gmra.mxu2 %v6620_v63  ;;  %v266_v55 = vld [vmem:[%s11464_s0 + $0x88] sm:$0xff]  ;;  %905 = vst.msk [vmem:[#allocation2 + $0x80] sm:$0xff] %vm33_vm0, %v841_v51  ;;  %v1183_v63 = vpop.f32.mrf.mxu0 }
 0x190   : > { %2742 = vmatpush.bf16.msra.mxu1 %v7334_v10  ;;  %2773 = vmatpush.bf16.msra.mxu2 %v7334_v10  ;;  %v458_v16 = vadd.f32 %v394_v20, %v266_v55  ;;  %v1184_v45 = vadd.f32 %v8034_v62, %v1183_v63  ;;  %v270_v51 = vld [vmem:[%s11464_s0 + $0xa8] sm:$0xff] }
 0x191   : > { %2804 = vmatpush.bf16.msra.mxu3 %v7334_v10  ;;  %6155 = vmatmul.msk.f32.gmra.mxu0 %vm33_vm0, %v6090_v25 }
 0x192   : > { %2719 = vmatmul.bf16.vlgmr.msrb.gmra.mxu3 %v6622_v2  ;;  %v1757_v2 = vmul.f32 0.2, %v7766_v46  ;;  %v522_v25 = vmul.f32 0.1, %v458_v16  ;;  %v335_v16 = vld [vmem:[#allocation2 + $0xb0] sm:$0xff] }
 0x194   : > { %2743 = vmatpush.bf16.msra.mxu1 %v7409_v26  ;;  %2774 = vmatpush.bf16.msra.mxu2 %v7409_v26  ;;  %v1821_v24 = vsub.f32 %v7766_v46, %v1757_v2  ;;  %v8090_v23 = vadd.f32 %v522_v25, %v330_v21  ;;  %v267_v46 = vld [vmem:[%s11464_s0 + $0x90] sm:$0xff]  ;;  %v398_v21 = vsub.f32 0.0, %v334_v34 }
 0x195   : > { %2805 = vmatpush.bf16.msra.mxu3 %v7409_v26  ;;  %v459_v44 = vadd.f32 %v395_v9, %v267_v46  ;;  %v6633_v46 = vld [vmem:[%s11467_s3 + $0xa8] sm:$0xff]  ;;  %v6635_v9 = vld [vmem:[%s11467_s3 + $0xb8] sm:$0xff] }
 0x196   : > { %v2205_v4 = vadd.f32 %v1821_v24, %v1184_v45  ;;  %vm650_vm7 = vcmp.gt.f32.partialorder %v8090_v23, 1.0  ;;  %v462_v55 = vadd.f32 %v398_v21, %v270_v51  ;;  %v399_v45 = vsub.f32 0.0, %v335_v16 }
 0x197   : > { %v842_v40 = vsel %vm650_vm7, 0.0, %v8090_v23  ;;  %v523_v38 = vmul.f32 0.1, %v459_v44  ;;  %v6098_v20 = vsel %vm650_vm7, 1.0, %v11474_v58 }
 0x198   : > { %2744 = vmatpush.bf16.msra.mxu1 %v7494_v57  ;;  %2775 = vmatpush.bf16.msra.mxu2 %v7494_v57  ;;  %2269 = vst.msk [vmem:[#allocation4 + $0x8] sm:$0xff] %vm98_vm1, %v2205_v4  ;;  %v526_v63 = vmul.f32 0.1, %v462_v55 }
 0x199   : > { %2806 = vmatpush.bf16.msra.mxu3 %v7494_v57  ;;  %6156 = vmatmul.msk.f32.gmra.mxu0 %vm33_vm0, %v6091_v49  ;;  %v1822_v49 = vsub.f32 %v7685_v6, %v1758_v3  ;;  %906 = vst.msk [vmem:[#allocation2 + $0x88] sm:$0xff] %vm33_vm0, %v842_v40  ;;  %v6627_v6 = vld [vmem:[%s11467_s3 + $0x78] sm:$0xff]  ;;  %v8122_v52 = vadd.f32 %v523_v38, %v331_v27  ;;  %v271_v3 = vld [vmem:[%s11464_s0 + $0xb0] sm:$0xff]  ;;  %v336_v40 = vld [vmem:[#allocation2 + $0xb8] sm:$0xff] }
 0x19a   : > { %v8198_v2 = vadd.f32 %v526_v63, %v334_v34  ;;  %v463_v4 = vadd.f32 %v399_v45, %v271_v3  ;;  %v6631_v27 = vld [vmem:[%s11467_s3 + $0x98] sm:$0xff]  ;;  %v6676_v38 = vld [vmem:[#allocation4 + $0x20] sm:$0xff] }
 0x19b   : > { %vm651_vm8 = vcmp.gt.f32.partialorder %v8122_v52, 1.0  ;;  %v274_v34 = vld [vmem:[%s11464_s0 + $0xc8] sm:$0xff]  ;;  %v339_v3 = vld [vmem:[#allocation2 + $0xd0] sm:$0xff] }
 0x19c   : > { %2745 = vmatpush.bf16.msra.mxu1 %v7569_v5  ;;  %2776 = vmatpush.bf16.msra.mxu2 %v7569_v5  ;;  %v843_v28 = vsel %vm651_vm8, 0.0, %v8122_v52  ;;  %vm654_vm11 = vcmp.gt.f32.partialorder %v8198_v2, 1.0  ;;  %v6099_v24 = vsel %vm651_vm8, 1.0, %v11474_v58  ;;  %v527_v23 = vmul.f32 0.1, %v463_v4 }
 0x19d   : > { %2807 = vmatpush.bf16.msra.mxu3 %v7569_v5  ;;  %907 = vst.msk [vmem:[#allocation2 + $0x90] sm:$0xff] %vm33_vm0, %v843_v28  ;;  %v846_v25 = vsel %vm654_vm11, 0.0, %v8198_v2  ;;  %v401_v28 = vsub.f32 0.0, %v337_v50 }
 0x19e   : > { %910 = vst.msk [vmem:[#allocation2 + $0xa8] sm:$0xff] %vm33_vm0, %v846_v25 }
 0x19f   : > { %2662 = vmatmul.bf16.gmra.mxu1 %v6619_v47  ;;  %2693 = vmatmul.bf16.gmra.mxu2 %v6621_v32  ;;  %v1186_v59 = vpop.f32.mrf.mxu0  ;;  %v6625_v47 = vld [vmem:[%s11467_s3 + $0x68] sm:$0xff] }
 0x1a0   : > { %2746 = vmatpush.bf16.msra.mxu1 %v7632_v41  ;;  %2777 = vmatpush.bf16.msra.mxu2 %v7632_v41  ;;  %v1187_v18 = vadd.f32 %v8034_v62, %v1186_v59 }
 0x1a1   : > { %2808 = vmatpush.bf16.msra.mxu3 %v7632_v41  ;;  %6157 = vmatmul.msk.f32.gmra.mxu0 %vm33_vm0, %v6092_v61  ;;  %v6096_v61 = vsel %vm648_vm5, 1.0, %v11474_v58 }
 0x1a2   : > { %2724 = vmatmul.bf16.gmra.mxu3 %v6623_v37  ;;  %v2206_v32 = vadd.f32 %v1822_v49, %v1187_v18  ;;  %v6629_v37 = vld [vmem:[%s11467_s3 + $0x88] sm:$0xff]  ;;  %v400_v49 = vsub.f32 0.0, %v336_v40  ;;  %v272_v18 = vld [vmem:[%s11464_s0 + $0xb8] sm:$0xff] }
 0x1a4   : > { %2747 = vmatpush.bf16.msra.mxu1 %v7711_v53  ;;  %2778 = vmatpush.bf16.msra.mxu2 %v7711_v53  ;;  %2270 = vst.msk [vmem:[#allocation4 + $0x10] sm:$0xff] %vm98_vm1, %v2206_v32 }
 0x1a5   : > { %2809 = vmatpush.bf16.msra.mxu3 %v7711_v53 }
 0x1a8   : > { %2748 = vmatpush.bf16.msra.mxu1 %v7786_v36  ;;  %2779 = vmatpush.bf16.msra.mxu2 %v7786_v36 }
 0x1a9   : > { %2810 = vmatpush.bf16.msra.mxu3 %v7786_v36  ;;  %6158 = vmatmul.msk.f32.gmra.mxu0 %vm33_vm0, %v6093_v31  ;;  %v8146_v31 = vadd.f32 %v524_v42, %v332_v54  ;;  %v465_v42 = vadd.f32 %v401_v28, %v273_v29  ;;  %v340_v28 = vld [vmem:[#allocation2 + $0xd8] sm:$0xff] }
 0x1ab   : > { %vm652_vm9 = vcmp.gt.f32.partialorder %v8146_v31, 1.0 }
 0x1ac   : > { %2749 = vmatpush.bf16.msra.mxu1 %v7847_v48  ;;  %2780 = vmatpush.bf16.msra.mxu2 %v7847_v48  ;;  %v844_v7 = vsel %vm652_vm9, 0.0, %v8146_v31  ;;  %v6100_v59 = vsel %vm652_vm9, 1.0, %v11474_v58  ;;  %v6636_v31 = vld [vmem:[%s11467_s3 + $0xc0] sm:$0xff] }
 0x1ad   : > { %2811 = vmatpush.bf16.msra.mxu3 %v7847_v48  ;;  %908 = vst.msk [vmem:[#allocation2 + $0x98] sm:$0xff] %vm33_vm0, %v844_v7 }
 0x1af   : > { %2750 = vmatmul.bf16.vlgmr.msra.gmra.mxu1 %v6624_v12  ;;  %2781 = vmatmul.bf16.vlgmr.msra.gmra.mxu2 %v6626_v33  ;;  %v6632_v12 = vld [vmem:[%s11467_s3 + $0xa0] sm:$0xff]  ;;  %v6634_v33 = vld [vmem:[%s11467_s3 + $0xb0] sm:$0xff] }
 0x1b0   : > { %2835 = vmatpush.bf16.msrb.mxu1 %v7334_v10  ;;  %2866 = vmatpush.bf16.msrb.mxu2 %v7334_v10 }
 0x1b1   : > { %2897 = vmatpush.bf16.msrb.mxu3 %v7334_v10  ;;  %6159 = vmatmul.msk.f32.gmra.mxu0 %vm33_vm0, %v6094_v35 }
 0x1b2   : > { %2812 = vmatmul.bf16.vlgmr.msra.gmra.mxu3 %v6628_v13  ;;  %v8178_v13 = vadd.f32 %v525_v19, %v333_v60  ;;  %v6638_v60 = vld [vmem:[%s11467_s3 + $0xd0] sm:$0xff] }
 0x1b3   : > { %v338_v19 = vld [vmem:[#allocation2 + $0xc8] sm:$0xff] }
 0x1b4   : > { %2836 = vmatpush.bf16.msrb.mxu1 %v7409_v26  ;;  %2867 = vmatpush.bf16.msrb.mxu2 %v7409_v26  ;;  %vm653_vm10 = vcmp.gt.f32.partialorder %v8178_v13, 1.0 }
 0x1b5   : > { %2898 = vmatpush.bf16.msrb.mxu3 %v7409_v26  ;;  %v845_v35 = vsel %vm653_vm10, 0.0, %v8178_v13  ;;  %v6101_v0 = vsel %vm653_vm10, 1.0, %v11474_v58 }
 0x1b6   : > { %909 = vst.msk [vmem:[#allocation2 + $0xa0] sm:$0xff] %vm33_vm0, %v845_v35 }
 0x1b8   : > { %2837 = vmatpush.bf16.msrb.mxu1 %v7494_v57  ;;  %2868 = vmatpush.bf16.msrb.mxu2 %v7494_v57 }
 0x1b9   : > { %2899 = vmatpush.bf16.msrb.mxu3 %v7494_v57  ;;  %6160 = vmatmul.msk.f32.gmra.mxu0 %vm33_vm0, %v6095_v11  ;;  %v8227_v11 = vadd.f32 %v527_v23, %v335_v16  ;;  %v403_v23 = vsub.f32 0.0, %v339_v3 }
 0x1bb   : > { %vm655_vm12 = vcmp.gt.f32.partialorder %v8227_v11, 1.0 }
 0x1bc   : > { %2838 = vmatpush.bf16.msrb.mxu1 %v7569_v5  ;;  %2869 = vmatpush.bf16.msrb.mxu2 %v7569_v5  ;;  %v847_v44 = vsel %vm655_vm12, 0.0, %v8227_v11 }
 0x1bd   : > { %2900 = vmatpush.bf16.msrb.mxu3 %v7569_v5  ;;  %911 = vst.msk [vmem:[#allocation2 + $0xb0] sm:$0xff] %vm33_vm0, %v847_v44 }
 0x1bf   : > { %2755 = vmatmul.bf16.gmra.mxu1 %v6625_v47  ;;  %2786 = vmatmul.bf16.gmra.mxu2 %v6627_v6  ;;  %v1760_v47 = vmul.f32 0.2, %v6676_v38  ;;  %v464_v6 = vadd.f32 %v400_v49, %v272_v18  ;;  %v6679_v49 = vld [vmem:[#allocation4 + $0x38] sm:$0xff] }
 0x1c0   : > { %2839 = vmatpush.bf16.msrb.mxu1 %v7632_v41  ;;  %2870 = vmatpush.bf16.msrb.mxu2 %v7632_v41 }
 0x1c1   : > { %2901 = vmatpush.bf16.msrb.mxu3 %v7632_v41  ;;  %6161 = vmatmul.msk.f32.gmra.mxu0 %vm33_vm0, %v6096_v61  ;;  %v528_v32 = vmul.f32 0.1, %v464_v6  ;;  %v6639_v6 = vld [vmem:[%s11467_s3 + $0xd8] sm:$0xff] }
 0x1c2   : > { %2817 = vmatmul.bf16.gmra.mxu3 %v6629_v37  ;;  %v1189_v56 = vpop.f32.mrf.mxu0  ;;  %v1824_v37 = vsub.f32 %v6676_v38, %v1760_v47  ;;  %v6637_v47 = vld [vmem:[%s11467_s3 + $0xc8] sm:$0xff] }
 0x1c3   : > { %v1190_v15 = vadd.f32 %v8034_v62, %v1189_v56  ;;  %v8247_v52 = vadd.f32 %v528_v32, %v336_v40 }
 0x1c4   : > { %2840 = vmatpush.bf16.msrb.mxu1 %v7711_v53  ;;  %2871 = vmatpush.bf16.msrb.mxu2 %v7711_v53 }
 0x1c5   : > { %2902 = vmatpush.bf16.msrb.mxu3 %v7711_v53  ;;  %v2207_v22 = vadd.f32 %v1823_v39, %v1190_v15  ;;  %vm656_vm13 = vcmp.gt.f32.partialorder %v8247_v52, 1.0  ;;  %v6677_v15 = vld [vmem:[#allocation4 + $0x28] sm:$0xff] }
 0x1c6   : > { %v848_v1 = vsel %vm656_vm13, 0.0, %v8247_v52  ;;  %v1761_v39 = vmul.f32 0.2, %v6677_v15  ;;  %v6104_v29 = vsel %vm656_vm13, 1.0, %v11474_v58 }
 0x1c7   : > { %2271 = vst.msk [vmem:[#allocation4 + $0x18] sm:$0xff] %vm98_vm1, %v2207_v22  ;;  %v529_v22 = vmul.f32 0.1, %v465_v42  ;;  %v6680_v42 = vld [vmem:[#allocation4 + $0x40] sm:$0xff] }
 0x1c8   : > { %2841 = vmatpush.bf16.msrb.mxu1 %v7786_v36  ;;  %2872 = vmatpush.bf16.msrb.mxu2 %v7786_v36  ;;  %912 = vst.msk [vmem:[#allocation2 + $0xb8] sm:$0xff] %vm33_vm0, %v848_v1  ;;  %v1825_v7 = vsub.f32 %v6677_v15, %v1761_v39  ;;  %v404_v1 = vsub.f32 0.0, %v340_v28  ;;  %v276_v15 = vld [vmem:[%s11464_s0 + $0xd8] sm:$0xff] }
 0x1c9   : > { %2903 = vmatpush.bf16.msrb.mxu3 %v7786_v36  ;;  %6162 = vmatmul.msk.f32.gmra.mxu0 %vm33_vm0, %v6097_v17  ;;  %v6640_v17 = vld [vmem:[%s11467_s3 + $0xe0] sm:$0xff]  ;;  %v8282_v43 = vadd.f32 %v529_v22, %v337_v50  ;;  %v1764_v22 = vmul.f32 0.2, %v6680_v42 }
 0x1cb   : > { %vm657_vm14 = vcmp.gt.f32.partialorder %v8282_v43, 1.0 }
 0x1cc   : > { %2842 = vmatpush.bf16.msrb.mxu1 %v7847_v48  ;;  %2873 = vmatpush.bf16.msrb.mxu2 %v7847_v48  ;;  %v849_v13 = vsel %vm657_vm14, 0.0, %v8282_v43  ;;  %v6681_v43 = vld [vmem:[#allocation4 + $0x48] sm:$0xff] }
 0x1cd   : > { %2904 = vmatpush.bf16.msrb.mxu3 %v7847_v48  ;;  %913 = vst.msk [vmem:[#allocation2 + $0xc0] sm:$0xff] %vm33_vm0, %v849_v13 }
 0x1cf   : > { %2843 = vmatmul.bf16.vlgmr.msrb.gmra.mxu1 %v6630_v30  ;;  %2874 = vmatmul.bf16.vlgmr.msrb.gmra.mxu2 %v6632_v12  ;;  %v402_v12 = vsub.f32 0.0, %v338_v19 }
 0x1d0   : > { %2928 = vmatpush.bf16.msra.mxu1 %v7334_v10  ;;  %2959 = vmatpush.bf16.msra.mxu2 %v7334_v10 }
 0x1d1   : > { %2990 = vmatpush.bf16.msra.mxu3 %v7334_v10  ;;  %6163 = vmatmul.msk.f32.gmra.mxu0 %vm33_vm0, %v6098_v20  ;;  %v6678_v20 = vld [vmem:[#allocation4 + $0x30] sm:$0xff]  ;;  %v466_v51 = vadd.f32 %v402_v12, %v274_v34 }
 0x1d2   : > { %2905 = vmatmul.bf16.vlgmr.msrb.gmra.mxu3 %v6634_v33  ;;  %v6102_v33 = vsel %vm654_vm11, 1.0, %v11474_v58  ;;  %v1762_v35 = vmul.f32 0.2, %v6678_v20 }
 0x1d3   : > { %v530_v63 = vmul.f32 0.1, %v466_v51 }
 0x1d4   : > { %2929 = vmatpush.bf16.msra.mxu1 %v7409_v26  ;;  %2960 = vmatpush.bf16.msra.mxu2 %v7409_v26  ;;  %v1826_v45 = vsub.f32 %v6678_v20, %v1762_v35  ;;  %v277_v35 = vld [vmem:[%s11464_s0 + $0xe0] sm:$0xff] }
 0x1d5   : > { %2991 = vmatpush.bf16.msra.mxu3 %v7409_v26 }
 0x1d8   : > { %2930 = vmatpush.bf16.msra.mxu1 %v7494_v57  ;;  %2961 = vmatpush.bf16.msra.mxu2 %v7494_v57 }
 0x1d9   : > { %2992 = vmatpush.bf16.msra.mxu3 %v7494_v57  ;;  %6164 = vmatmul.msk.f32.gmra.mxu0 %vm33_vm0, %v6099_v24  ;;  %v8309_v24 = vadd.f32 %v530_v63, %v338_v19 }
 0x1db   : > { %vm658_vm15 = vcmp.gt.f32.partialorder %v8309_v24, 1.0 }
 0x1dc   : > { %2931 = vmatpush.bf16.msra.mxu1 %v7569_v5  ;;  %2962 = vmatpush.bf16.msra.mxu2 %v7569_v5 }
 0x1dd   : > { %2993 = vmatpush.bf16.msra.mxu3 %v7569_v5 }
 0x1df   : > { %2848 = vmatmul.bf16.gmra.mxu1 %v6631_v27  ;;  %2879 = vmatmul.bf16.gmra.mxu2 %v6633_v46  ;;  %v6103_v27 = vsel %vm655_vm12, 1.0, %v11474_v58  ;;  %v850_v46 = vsel %vm658_vm15, 0.0, %v8309_v24 }
 0x1e0   : > { %2932 = vmatpush.bf16.msra.mxu1 %v7632_v41  ;;  %2963 = vmatpush.bf16.msra.mxu2 %v7632_v41  ;;  %914 = vst.msk [vmem:[#allocation2 + $0xc8] sm:$0xff] %vm33_vm0, %v850_v46 }
 0x1e1   : > { %2994 = vmatpush.bf16.msra.mxu3 %v7632_v41  ;;  %6165 = vmatmul.msk.f32.gmra.mxu0 %vm33_vm0, %v6100_v59  ;;  %v1763_v59 = vmul.f32 0.2, %v6679_v49 }
 0x1e2   : > { %2910 = vmatmul.bf16.gmra.mxu3 %v6635_v9  ;;  %v275_v9 = vld [vmem:[%s11464_s0 + $0xd0] sm:$0xff] }
 0x1e3   : > { %v467_v44 = vadd.f32 %v403_v23, %v275_v9  ;;  %v6642_v23 = vld [vmem:[%s11467_s3 + $0xf0] sm:$0xff] }
 0x1e4   : > { %2933 = vmatpush.bf16.msra.mxu1 %v7711_v53  ;;  %2964 = vmatpush.bf16.msra.mxu2 %v7711_v53  ;;  %v6646_v9 = vld [vmem:[%s11467_s3 + $0x110] sm:$0xff] }
 0x1e5   : > { %2995 = vmatpush.bf16.msra.mxu3 %v7711_v53  ;;  %v1192_v54 = vpop.f32.mrf.mxu0  ;;  %v531_v18 = vmul.f32 0.1, %v467_v44 }
 0x1e6   : > { %v1193_v61 = vadd.f32 %v8034_v62, %v1192_v54  ;;  %v1827_v54 = vsub.f32 %v6679_v49, %v1763_v59  ;;  %v342_v49 = vld [vmem:[#allocation2 + $0xe8] sm:$0xff] }
 0x1e7   : > { %v8346_v50 = vadd.f32 %v531_v18, %v339_v3  ;;  %v406_v44 = vsub.f32 0.0, %v342_v49 }
 0x1e8   : > { %2934 = vmatpush.bf16.msra.mxu1 %v7786_v36  ;;  %2965 = vmatpush.bf16.msra.mxu2 %v7786_v36  ;;  %v2208_v56 = vadd.f32 %v1824_v37, %v1193_v61  ;;  %v6641_v37 = vld [vmem:[%s11467_s3 + $0xe8] sm:$0xff] }
 0x1e9   : > { %2996 = vmatpush.bf16.msra.mxu3 %v7786_v36  ;;  %6166 = vmatmul.msk.f32.gmra.mxu0 %vm33_vm0, %v6101_v0  ;;  %vm659_vm3 = vcmp.gt.f32.partialorder %v8346_v50, 1.0 }
 0x1ea   : > { %2272 = vst.msk [vmem:[#allocation4 + $0x20] sm:$0xff] %vm98_vm1, %v2208_v56  ;;  %v851_v56 = vsel %vm659_vm3, 0.0, %v8346_v50 }
 0x1eb   : > { %915 = vst.msk [vmem:[#allocation2 + $0xd0] sm:$0xff] %vm33_vm0, %v851_v56 }
 0x1ec   : > { %2935 = vmatpush.bf16.msra.mxu1 %v7847_v48  ;;  %2966 = vmatpush.bf16.msra.mxu2 %v7847_v48  ;;  %v8277_v14 = vpop.f32.mrf.mxu1 }
 0x1ed   : > { %2997 = vmatpush.bf16.msra.mxu3 %v7847_v48 }
 0x1ee   : > { %v1195_v8 = vpop.f32.mrf.mxu0 }
 0x1ef   : > { %v1196_v30 = vadd.f32 %v8034_v62, %v1195_v8  ;;  %2936 = vmatmul.bf16.vlgmr.msra.gmra.mxu1 %v6636_v31  ;;  %2967 = vmatmul.bf16.vlgmr.msra.gmra.mxu2 %v6638_v60  ;;  %v468_v31 = vadd.f32 %v404_v1, %v276_v15  ;;  %v1828_v8 = vsub.f32 %v6680_v42, %v1764_v22  ;;  %v343_v42 = vld [vmem:[#allocation2 + $0xf0] sm:$0xff] }
 0x1f0   : > { %3021 = vmatpush.bf16.msrb.mxu1 %v7334_v10  ;;  %3052 = vmatpush.bf16.msrb.mxu2 %v7334_v10 }
 0x1f1   : > { %3083 = vmatpush.bf16.msrb.mxu3 %v7334_v10  ;;  %v2209_v21 = vadd.f32 %v1825_v7, %v1196_v30  ;;  %6167 = vmatmul.msk.f32.gmra.mxu0 %vm33_vm0, %v6102_v33  ;;  %v532_v60 = vmul.f32 0.1, %v468_v31  ;;  %v3413_v30 = vld [vmem:[%s11468_s4 + $0x2f0] sm:$0xff]  ;;  %v341_v33 = vld [vmem:[#allocation2 + $0xe0] sm:$0xff]  ;;  %v407_v31 = vsub.f32 0.0, %v343_v42 }
 0x1f2   : > { %2998 = vmatmul.bf16.vlgmr.msra.gmra.mxu3 %v6640_v17  ;;  %v8300_v55 = vpop.f32.mrf.mxu2  ;;  %4387 = vmatpush.msrb.mxu0 %v3413_v30  ;;  %v405_v34 = vsub.f32 0.0, %v341_v33 }
 0x1f3   : > { %2273 = vst.msk [vmem:[#allocation4 + $0x28] sm:$0xff] %vm98_vm1, %v2209_v21  ;;  %v8376_v19 = vadd.f32 %v532_v60, %v340_v28  ;;  %v6105_v21 = vsel %vm657_vm14, 1.0, %v11474_v58 }
 0x1f4   : > { %3022 = vmatpush.bf16.msrb.mxu1 %v7409_v26  ;;  %3053 = vmatpush.bf16.msrb.mxu2 %v7409_v26  ;;  %v8307_v16 = vpop.f32.mrf.mxu1  ;;  %v469_v63 = vadd.f32 %v405_v34, %v277_v35 }
 0x1f5   : > { %3084 = vmatpush.bf16.msrb.mxu3 %v7409_v26  ;;  %v8305_v2 = vpop.f32.mrf.mxu3  ;;  %vm660_vm4 = vcmp.gt.f32.partialorder %v8376_v19, 1.0 }
 0x1f6   : > { %v1198_v25 = vpop.f32.mrf.mxu0  ;;  %v852_v20 = vsel %vm660_vm4, 0.0, %v8376_v19  ;;  %v533_v3 = vmul.f32 0.1, %v469_v63  ;;  %v6643_v63 = vld [vmem:[%s11467_s3 + $0xf8] sm:$0xff] }
 0x1f7   : > { %v1199_v4 = vadd.f32 %v8034_v62, %v1198_v25  ;;  %916 = vst.msk [vmem:[#allocation2 + $0xd8] sm:$0xff] %vm33_vm0, %v852_v20  ;;  %v1765_v25 = vmul.f32 0.2, %v6681_v43 }
 0x1f8   : > { %3023 = vmatpush.bf16.msrb.mxu1 %v7494_v57  ;;  %3054 = vmatpush.bf16.msrb.mxu2 %v7494_v57 }
 0x1f9   : > { %3085 = vmatpush.bf16.msrb.mxu3 %v7494_v57  ;;  %v2210_v40 = vadd.f32 %v1826_v45, %v1199_v4  ;;  %6168 = vmatmul.msk.f32.gmra.mxu0 %vm33_vm0, %v6103_v27  ;;  %v6644_v27 = vld [vmem:[%s11467_s3 + $0x100] sm:$0xff]  ;;  %v1829_v59 = vsub.f32 %v6681_v43, %v1765_v25  ;;  %v6645_v43 = vld [vmem:[%s11467_s3 + $0x108] sm:$0xff] }
 0x1fa   : > { %v8328_v11 = vpop.f32.mrf.mxu2 }
 0x1fb   : > { %2274 = vst.msk [vmem:[#allocation4 + $0x30] sm:$0xff] %vm98_vm1, %v2210_v40  ;;  %v8417_v40 = vadd.f32 %v533_v3, %v341_v33  ;;  %v6647_v3 = vld [vmem:[%s11467_s3 + $0x118] sm:$0xff] }
 0x1fc   : > { %3024 = vmatpush.bf16.msrb.mxu1 %v7569_v5  ;;  %3055 = vmatpush.bf16.msrb.mxu2 %v7569_v5  ;;  %v8341_v32 = vpop.f32.mrf.mxu1 }
 0x1fd   : > { %3086 = vmatpush.bf16.msrb.mxu3 %v7569_v5  ;;  %v8333_v38 = vpop.f32.mrf.mxu3  ;;  %vm661_vm5 = vcmp.gt.f32.partialorder %v8417_v40, 1.0 }
 0x1fe   : > { %v1201_v61 = vpop.f32.mrf.mxu0 }
 0x1ff   : > { %v1202_v0 = vadd.f32 %v8034_v62, %v1201_v61  ;;  %2941 = vmatmul.bf16.gmra.mxu1 %v6637_v47  ;;  %2972 = vmatmul.bf16.gmra.mxu2 %v6639_v6  ;;  %v6106_v47 = vsel %vm658_vm15, 1.0, %v11474_v58  ;;  %v853_v6 = vsel %vm661_vm5, 0.0, %v8417_v40 }
 0x200   : > { %3025 = vmatpush.bf16.msrb.mxu1 %v7632_v41  ;;  %3056 = vmatpush.bf16.msrb.mxu2 %v7632_v41  ;;  %917 = vst.msk [vmem:[#allocation2 + $0xe0] sm:$0xff] %vm33_vm0, %v853_v6 }
 0x201   : > { %3087 = vmatpush.bf16.msrb.mxu3 %v7632_v41  ;;  %v2211_v39 = vadd.f32 %v1827_v54, %v1202_v0  ;;  %6169 = vmatmul.msk.f32.gmra.mxu0 %vm33_vm0, %v6104_v29  ;;  %v6682_v0 = vld [vmem:[#allocation4 + $0x50] sm:$0xff] }
 0x202   : > { %3003 = vmatmul.bf16.gmra.mxu3 %v6641_v37  ;;  %v8365_v52 = vpop.f32.mrf.mxu2  ;;  %v278_v37 = vld [vmem:[%s11464_s0 + $0xe8] sm:$0xff]  ;;  %v1766_v1 = vmul.f32 0.2, %v6682_v0 }
 0x203   : > { %2275 = vst.msk [vmem:[#allocation4 + $0x38] sm:$0xff] %vm98_vm1, %v2211_v39  ;;  %v470_v61 = vadd.f32 %v406_v44, %v278_v37  ;;  %v6108_v44 = vsel %vm660_vm4, 1.0, %v11474_v58 }
 0x204   : > { %3026 = vmatpush.bf16.msrb.mxu1 %v7711_v53  ;;  %3057 = vmatpush.bf16.msrb.mxu2 %v7711_v53  ;;  %v8374_v7 = vpop.f32.mrf.mxu1  ;;  %v1830_v22 = vsub.f32 %v6682_v0, %v1766_v1 }
 0x205   : > { %3088 = vmatpush.bf16.msrb.mxu3 %v7711_v53  ;;  %v8370_v17 = vpop.f32.mrf.mxu3  ;;  %v534_v29 = vmul.f32 0.1, %v470_v61  ;;  %v6684_v61 = vld [vmem:[#allocation4 + $0x60] sm:$0xff] }
 0x206   : > { %v1204_v12 = vpop.f32.mrf.mxu0 }
 0x207   : > { %v1205_v13 = vadd.f32 %v8034_v62, %v1204_v12  ;;  %v8444_v39 = vadd.f32 %v534_v29, %v342_v49  ;;  %v279_v12 = vld [vmem:[%s11464_s0 + $0xf0] sm:$0xff] }
 0x208   : > { %3027 = vmatpush.bf16.msrb.mxu1 %v7786_v36  ;;  %3058 = vmatpush.bf16.msrb.mxu2 %v7786_v36 }
 0x209   : > { %3089 = vmatpush.bf16.msrb.mxu3 %v7786_v36  ;;  %v2212_v51 = vadd.f32 %v1828_v8, %v1205_v13  ;;  %6170 = vmatmul.msk.f32.gmra.mxu0 %vm33_vm0, %v6105_v21  ;;  %vm662_vm6 = vcmp.gt.f32.partialorder %v8444_v39, 1.0  ;;  %v6107_v8 = vsel %vm659_vm3, 1.0, %v11474_v58  ;;  %v471_v13 = vadd.f32 %v407_v31, %v279_v12  ;;  %v6683_v21 = vld [vmem:[#allocation4 + $0x58] sm:$0xff] }
 0x20a   : > { %v8397_v45 = vpop.f32.mrf.mxu2  ;;  %v854_v30 = vsel %vm662_vm6, 0.0, %v8444_v39  ;;  %v1767_v20 = vmul.f32 0.2, %v6683_v21 }
 0x20b   : > { %2276 = vst.msk [vmem:[#allocation4 + $0x40] sm:$0xff] %vm98_vm1, %v2212_v51  ;;  %v535_v35 = vmul.f32 0.1, %v471_v13 }
 0x20c   : > { %3028 = vmatpush.bf16.msrb.mxu1 %v7847_v48  ;;  %3059 = vmatpush.bf16.msrb.mxu2 %v7847_v48  ;;  %v8412_v46 = vpop.f32.mrf.mxu1  ;;  %918 = vst.msk [vmem:[#allocation2 + $0xe8] sm:$0xff] %vm33_vm0, %v854_v30  ;;  %v6109_v30 = vsel %vm661_vm5, 1.0, %v11474_v58 }
 0x20d   : > { %3090 = vmatpush.bf16.msrb.mxu3 %v7847_v48  ;;  %v8402_v4 = vpop.f32.mrf.mxu3 }
 0x20e   : > { %v1207_v18 = vpop.f32.mrf.mxu0 }
 0x20f   : > { %3029 = vmatmul.bf16.vlgmr.msrb.gmra.mxu1 %v6642_v23  ;;  %3060 = vmatmul.bf16.vlgmr.msrb.gmra.mxu2 %v6644_v27  ;;  %v1208_v54 = vadd.f32 %v8034_v62, %v1207_v18  ;;  %v8481_v23 = vadd.f32 %v535_v35, %v343_v42  ;;  %v344_v27 = vld [vmem:[#allocation2 + $0xf8] sm:$0xff] }
 0x210   : > { %3114 = vmatpush.bf16.msra.mxu1 %v7334_v10  ;;  %3145 = vmatpush.bf16.msra.mxu2 %v7334_v10  ;;  %v408_v49 = vsub.f32 0.0, %v344_v27 }
 0x211   : > { %3176 = vmatpush.bf16.msra.mxu3 %v7334_v10  ;;  %v2213_v28 = vadd.f32 %v1829_v59, %v1208_v54  ;;  %6171 = vmatmul.msk.f32.gmra.mxu0 %vm33_vm0, %v6106_v47  ;;  %vm663_vm7 = vcmp.gt.f32.partialorder %v8481_v23, 1.0  ;;  %v280_v47 = vld [vmem:[%s11464_s0 + $0xf8] sm:$0xff] }
 0x212   : > { %3091 = vmatmul.bf16.vlgmr.msrb.gmra.mxu3 %v6646_v9  ;;  %v8434_v24 = vpop.f32.mrf.mxu2  ;;  %v1831_v9 = vsub.f32 %v6683_v21, %v1767_v20  ;;  %v855_v18 = vsel %vm663_vm7, 0.0, %v8481_v23  ;;  %v472_v37 = vadd.f32 %v408_v49, %v280_v47  ;;  %v6685_v20 = vld [vmem:[#allocation4 + $0x68] sm:$0xff]  ;;  %v6652_v49 = vld [vmem:[%s11467_s3 + $0x140] sm:$0xff] }
 0x213   : > { %2277 = vst.msk [vmem:[#allocation4 + $0x48] sm:$0xff] %vm98_vm1, %v2213_v28  ;;  %v1768_v28 = vmul.f32 0.2, %v6684_v61  ;;  %v1769_v35 = vmul.f32 0.2, %v6685_v20 }
 0x214   : > { %3115 = vmatpush.bf16.msra.mxu1 %v7409_v26  ;;  %3146 = vmatpush.bf16.msra.mxu2 %v7409_v26  ;;  %v8441_v15 = vpop.f32.mrf.mxu1  ;;  %919 = vst.msk [vmem:[#allocation2 + $0xf0] sm:$0xff] %vm33_vm0, %v855_v18  ;;  %v536_v0 = vmul.f32 0.1, %v472_v37  ;;  %v6110_v37 = vsel %vm662_vm6, 1.0, %v11474_v58 }
 0x215   : > { %3177 = vmatpush.bf16.msra.mxu3 %v7409_v26  ;;  %v8438_v56 = vpop.f32.mrf.mxu3  ;;  %v1832_v31 = vsub.f32 %v6684_v61, %v1768_v28  ;;  %v1833_v18 = vsub.f32 %v6685_v20, %v1769_v35  ;;  %v282_v61 = vld [vmem:[%s11464_s0 + $0x108] sm:$0xff]  ;;  %v6111_v35 = vsel %vm663_vm7, 1.0, %v11474_v58 }
 0x216   : > { %v1210_v60 = vpop.f32.mrf.mxu0  ;;  %v8511_v42 = vadd.f32 %v536_v0, %v344_v27  ;;  %v6650_v27 = vld [vmem:[%s11467_s3 + $0x130] sm:$0xff] }
 0x217   : > { %v1211_v33 = vadd.f32 %v8034_v62, %v1210_v60 }
 0x218   : > { %3116 = vmatpush.bf16.msra.mxu1 %v7494_v57  ;;  %3147 = vmatpush.bf16.msra.mxu2 %v7494_v57  ;;  %vm664_vm8 = vcmp.gt.f32.partialorder %v8511_v42, 1.0 }
 0x219   : > { %3178 = vmatpush.bf16.msra.mxu3 %v7494_v57  ;;  %v2214_v50 = vadd.f32 %v1830_v22, %v1211_v33  ;;  %6172 = vmatmul.msk.f32.gmra.mxu0 %vm33_vm0, %v6107_v8  ;;  %v345_v22 = vld [vmem:[#allocation2 + $0x100] sm:$0xff]  ;;  %v856_v12 = vsel %vm664_vm8, 0.0, %v8511_v42  ;;  %v281_v33 = vld [vmem:[%s11464_s0 + $0x100] sm:$0xff] }
 0x21a   : > { %v8462_v34 = vpop.f32.mrf.mxu2  ;;  %v409_v60 = vsub.f32 0.0, %v345_v22  ;;  %920 = vst.msk [vmem:[#allocation2 + $0xf8] sm:$0xff] %vm33_vm0, %v856_v12 }
 0x21b   : > { %2278 = vst.msk [vmem:[#allocation4 + $0x50] sm:$0xff] %vm98_vm1, %v2214_v50 }
 0x21c   : > { %3117 = vmatpush.bf16.msra.mxu1 %v7569_v5  ;;  %3148 = vmatpush.bf16.msra.mxu2 %v7569_v5  ;;  %v8475_v25 = vpop.f32.mrf.mxu1  ;;  %v473_v50 = vadd.f32 %v409_v60, %v281_v33 }
 0x21d   : > { %3179 = vmatpush.bf16.msra.mxu3 %v7569_v5  ;;  %v8466_v51 = vpop.f32.mrf.mxu3 }
 0x21e   : > { %v1213_v59 = vpop.f32.mrf.mxu0 }
 0x21f   : > { %3034 = vmatmul.bf16.gmra.mxu1 %v6643_v63  ;;  %3065 = vmatmul.bf16.gmra.mxu2 %v6645_v43  ;;  %v1214_v6 = vadd.f32 %v8034_v62, %v1213_v59  ;;  %v537_v63 = vmul.f32 0.1, %v473_v50 }
 0x220   : > { %3118 = vmatpush.bf16.msra.mxu1 %v7632_v41  ;;  %3149 = vmatpush.bf16.msra.mxu2 %v7632_v41 }
 0x221   : > { %3180 = vmatpush.bf16.msra.mxu3 %v7632_v41  ;;  %v2215_v54 = vadd.f32 %v1831_v9, %v1214_v6  ;;  %6173 = vmatmul.msk.f32.gmra.mxu0 %vm33_vm0, %v6108_v44  ;;  %v8548_v59 = vadd.f32 %v537_v63, %v345_v22  ;;  %v346_v44 = vld [vmem:[#allocation2 + $0x108] sm:$0xff] }
 0x222   : > { %3096 = vmatmul.bf16.gmra.mxu3 %v6647_v3  ;;  %v8500_v19 = vpop.f32.mrf.mxu2  ;;  %v6648_v3 = vld [vmem:[%s11467_s3 + $0x120] sm:$0xff]  ;;  %v410_v47 = vsub.f32 0.0, %v346_v44 }
 0x223   : > { %2279 = vst.msk [vmem:[#allocation4 + $0x58] sm:$0xff] %vm98_vm1, %v2215_v54  ;;  %vm665_vm9 = vcmp.gt.f32.partialorder %v8548_v59, 1.0 }
 0x224   : > { %3119 = vmatpush.bf16.msra.mxu1 %v7711_v53  ;;  %3150 = vmatpush.bf16.msra.mxu2 %v7711_v53  ;;  %v8509_v29 = vpop.f32.mrf.mxu1  ;;  %v857_v54 = vsel %vm665_vm9, 0.0, %v8548_v59  ;;  %v474_v0 = vadd.f32 %v410_v47, %v282_v61  ;;  %v6690_v59 = vld [vmem:[#allocation4 + $0x88] sm:$0xff] }
 0x225   : > { %3181 = vmatpush.bf16.msra.mxu3 %v7711_v53  ;;  %v8504_v1 = vpop.f32.mrf.mxu3  ;;  %921 = vst.msk [vmem:[#allocation2 + $0x100] sm:$0xff] %vm33_vm0, %v857_v54  ;;  %v6651_v54 = vld [vmem:[%s11467_s3 + $0x138] sm:$0xff] }
 0x226   : > { %v1216_v8 = vpop.f32.mrf.mxu0 }
 0x227   : > { %v1217_v13 = vadd.f32 %v8034_v62, %v1216_v8  ;;  %v538_v8 = vmul.f32 0.1, %v474_v0 }
 0x228   : > { %3120 = vmatpush.bf16.msra.mxu1 %v7786_v36  ;;  %3151 = vmatpush.bf16.msra.mxu2 %v7786_v36 }
 0x229   : > { %3182 = vmatpush.bf16.msra.mxu3 %v7786_v36  ;;  %v2216_v21 = vadd.f32 %v1832_v31, %v1217_v13  ;;  %6174 = vmatmul.msk.f32.gmra.mxu0 %vm33_vm0, %v6109_v30  ;;  %v6686_v31 = vld [vmem:[#allocation4 + $0x70] sm:$0xff]  ;;  %v8575_v33 = vadd.f32 %v538_v8, %v346_v44 }
 0x22a   : > { %v8529_v40 = vpop.f32.mrf.mxu2  ;;  %v1770_v60 = vmul.f32 0.2, %v6686_v31  ;;  %v347_v13 = vld [vmem:[#allocation2 + $0x110] sm:$0xff] }
 0x22b   : > { %2280 = vst.msk [vmem:[#allocation4 + $0x60] sm:$0xff] %vm98_vm1, %v2216_v21  ;;  %vm666_vm10 = vcmp.gt.f32.partialorder %v8575_v33, 1.0  ;;  %v411_v21 = vsub.f32 0.0, %v347_v13 }
 0x22c   : > { %3121 = vmatpush.bf16.msra.mxu1 %v7847_v48  ;;  %3152 = vmatpush.bf16.msra.mxu2 %v7847_v48  ;;  %v8543_v9 = vpop.f32.mrf.mxu1  ;;  %v1834_v50 = vsub.f32 %v6686_v31, %v1770_v60  ;;  %v858_v63 = vsel %vm666_vm10, 0.0, %v8575_v33 }
 0x22d   : > { %3183 = vmatpush.bf16.msra.mxu3 %v7847_v48  ;;  %v8532_v43 = vpop.f32.mrf.mxu3  ;;  %922 = vst.msk [vmem:[#allocation2 + $0x108] sm:$0xff] %vm33_vm0, %v858_v63 }
 0x22e   : > { %v1219_v6 = vpop.f32.mrf.mxu0 }
 0x22f   : > { %3122 = vmatmul.bf16.vlgmr.msra.gmra.mxu1 %v6648_v3  ;;  %3153 = vmatmul.bf16.vlgmr.msra.gmra.mxu2 %v6650_v27  ;;  %v1220_v28 = vadd.f32 %v8034_v62, %v1219_v6  ;;  %v283_v3 = vld [vmem:[%s11464_s0 + $0x110] sm:$0xff] }
 0x230   : > { %3207 = vmatpush.bf16.msrb.mxu1 %v7334_v10  ;;  %3238 = vmatpush.bf16.msrb.mxu2 %v7334_v10 }
 0x231   : > { %3269 = vmatpush.bf16.msrb.mxu3 %v7334_v10  ;;  %v2217_v22 = vadd.f32 %v1833_v18, %v1220_v28  ;;  %6175 = vmatmul.msk.f32.gmra.mxu0 %vm33_vm0, %v6110_v37  ;;  %v6687_v18 = vld [vmem:[#allocation4 + $0x78] sm:$0xff]  ;;  %v6653_v28 = vld [vmem:[%s11467_s3 + $0x148] sm:$0xff] }
 0x232   : > { %3184 = vmatmul.bf16.vlgmr.msra.gmra.mxu3 %v6652_v49  ;;  %v8566_v39 = vpop.f32.mrf.mxu2  ;;  %v475_v49 = vadd.f32 %v411_v21, %v283_v3  ;;  %v1771_v47 = vmul.f32 0.2, %v6687_v18  ;;  %v284_v21 = vld [vmem:[%s11464_s0 + $0x118] sm:$0xff]  ;;  %v6689_v3 = vld [vmem:[#allocation4 + $0x80] sm:$0xff] }
 0x233   : > { %2281 = vst.msk [vmem:[#allocation4 + $0x68] sm:$0xff] %vm98_vm1, %v2217_v22  ;;  %v348_v22 = vld [vmem:[#allocation2 + $0x118] sm:$0xff] }
 0x234   : > { %3208 = vmatpush.bf16.msrb.mxu1 %v7409_v26  ;;  %3239 = vmatpush.bf16.msrb.mxu2 %v7409_v26  ;;  %v8572_v12 = vpop.f32.mrf.mxu1  ;;  %v539_v6 = vmul.f32 0.1, %v475_v49  ;;  %v1835_v31 = vsub.f32 %v6687_v18, %v1771_v47  ;;  %v412_v60 = vsub.f32 0.0, %v348_v22 }
 0x235   : > { %3270 = vmatpush.bf16.msrb.mxu3 %v7409_v26  ;;  %v8569_v30 = vpop.f32.mrf.mxu3 }
 0x236   : > { %v1222_v20 = vpop.f32.mrf.mxu0  ;;  %v8612_v0 = vadd.f32 %v539_v6, %v347_v13  ;;  %v476_v42 = vadd.f32 %v412_v60, %v284_v21  ;;  %v3322_v6 = vld [vmem:[%s11468_s4 + $0x18] sm:$0xff] }
 0x237   : > { %v1223_v27 = vadd.f32 %v8034_v62, %v1222_v20  ;;  %v6649_v62 = vld [vmem:[%s11467_s3 + $0x128] sm:$0xff] }
 0x238   : > { %3209 = vmatpush.bf16.msrb.mxu1 %v7494_v57  ;;  %3240 = vmatpush.bf16.msrb.mxu2 %v7494_v57  ;;  %vm667_vm11 = vcmp.gt.f32.partialorder %v8612_v0, 1.0  ;;  %v540_v49 = vmul.f32 0.1, %v476_v42  ;;  %v3321_v42 = vld [vmem:[%s11468_s4 + $0x10] sm:$0xff] }
 0x239   : > { %3271 = vmatpush.bf16.msrb.mxu3 %v7494_v57  ;;  %v2218_v44 = vadd.f32 %v1834_v50, %v1223_v27  ;;  %6176 = vmatmul.msk.f32.gmra.mxu0 %vm33_vm0, %v6111_v35  ;;  %v6112_v50 = vsel %vm664_vm8, 1.0, %v11474_v58  ;;  %v859_v13 = vsel %vm667_vm11, 0.0, %v8612_v0  ;;  %v1772_v27 = vmul.f32 0.2, %v6689_v3  ;;  %v6692_v0 = vld [vmem:[#allocation4 + $0x98] sm:$0xff] }
 0x23a   : > { %v8594_v23 = vpop.f32.mrf.mxu2  ;;  %923 = vst.msk [vmem:[#allocation2 + $0x110] sm:$0xff] %vm33_vm0, %v859_v13  ;;  %v8645_v47 = vadd.f32 %v540_v49, %v348_v22  ;;  %v6113_v22 = vsel %vm665_vm9, 1.0, %v11474_v58  ;;  %v6654_v49 = vld [vmem:[%s11467_s3 + $0x150] sm:$0xff] }
 0x23b   : > { %2282 = vst.msk [vmem:[#allocation4 + $0x70] sm:$0xff] %vm98_vm1, %v2218_v44 }
 0x23c   : > { %3210 = vmatpush.bf16.msrb.mxu1 %v7569_v5  ;;  %3241 = vmatpush.bf16.msrb.mxu2 %v7569_v5  ;;  %v8606_v61 = vpop.f32.mrf.mxu1  ;;  %vm668_vm12 = vcmp.gt.f32.partialorder %v8645_v47, 1.0 }
 0x23d   : > { %3272 = vmatpush.bf16.msrb.mxu3 %v7569_v5  ;;  %v8597_v37 = vpop.f32.mrf.mxu3  ;;  %v860_v60 = vsel %vm668_vm12, 0.0, %v8645_v47  ;;  %v6693_v47 = vld [vmem:[#allocation4 + $0xa0] sm:$0xff] }
 0x23e   : > { %v1225_v8 = vpop.f32.mrf.mxu0  ;;  %924 = vst.msk [vmem:[#allocation2 + $0x118] sm:$0xff] %vm33_vm0, %v860_v60  ;;  %v350_v60 = vld [vmem:[#allocation2 + $0x128] sm:$0xff] }
 0x23f   : > { %3127 = vmatmul.bf16.gmra.mxu1 %v6649_v62  ;;  %3158 = vmatmul.bf16.gmra.mxu2 %v6651_v54  ;;  %v3326_v62 = vld [vmem:[%s11468_s4 + $0x38] sm:$0xff]  ;;  %v1836_v54 = vsub.f32 %v6689_v3, %v1772_v27 }
 0x240   : > { %3211 = vmatpush.bf16.msrb.mxu1 %v7632_v41  ;;  %3242 = vmatpush.bf16.msrb.mxu2 %v7632_v41 }
 0x241   : > { %3273 = vmatpush.bf16.msrb.mxu3 %v7632_v41  ;;  %6177 = vmatmul.msk.f32.gmra.mxu0 %vm33_vm0, %v6112_v50 }
 0x242   : > { %3189 = vmatmul.bf16.gmra.mxu3 %v6653_v28  ;;  %v8636_v35 = vpop.f32.mrf.mxu2 }
 0x244   : > { %3212 = vmatpush.bf16.msrb.mxu1 %v7711_v53  ;;  %3243 = vmatpush.bf16.msrb.mxu2 %v7711_v53  ;;  %v8643_v18 = vpop.f32.mrf.mxu1 }
 0x245   : > { %3274 = vmatpush.bf16.msrb.mxu3 %v7711_v53  ;;  %v8640_v44 = vpop.f32.mrf.mxu3 }
 0x248   : > { %3213 = vmatpush.bf16.msrb.mxu1 %v7786_v36  ;;  %3244 = vmatpush.bf16.msrb.mxu2 %v7786_v36 }
 0x249   : > { %3275 = vmatpush.bf16.msrb.mxu3 %v7786_v36  ;;  %6178 = vmatmul.msk.f32.gmra.mxu0 %vm33_vm0, %v6113_v22  ;;  %v3319_v22 = vld [vmem:[%s11468_s4] sm:$0xff] }
 0x24a   : > { %v8666_v13 = vpop.f32.mrf.mxu2 }
 0x24c   : > { %3214 = vmatpush.bf16.msrb.mxu1 %v7847_v48  ;;  %3245 = vmatpush.bf16.msrb.mxu2 %v7847_v48 }
 0x24d   : > { %3276 = vmatpush.bf16.msrb.mxu3 %v7847_v48  ;;  %v8676_v27 = vpop.f32.mrf.mxu3 }
 0x24f   : > { %3215 = vmatmul.bf16.vlgmr.msrb.gmra.mxu1 %v6654_v49 }
 0x250   : > { %3300 = vmatpush.bf16.msra.mxu1 %v7334_v10  ;;  %v8630_v10 = vld [vmem:[%s11466_s2] ss:$0 sm:$0xff]  ;;  %3443 = vmatpush.msra.mxu2 %v3322_v6 }
 0x251   : > { %v1226_v20 = vadd.f32 %v8630_v10, %v1225_v8  ;;  %3484 = vmatpush.msra.mxu3 %v3326_v62  ;;  %v285_v8 = vld [vmem:[%s11464_s0 + $0x120] sm:$0xff]  ;;  %v6658_v62 = vld [vmem:[%s11467_s3 + $0x170] sm:$0xff] }
 0x252   : > { %v6656_v6 = vld [vmem:[%s11467_s3 + $0x160] sm:$0xff]  ;;  %3444 = vmatpush.msra.mxu2 %v3321_v42  ;;  %3277 = vmatmul.bf16.vlgmr.msrb.gmra.mxu3 %v6658_v62 }
 0x253   : > { %v2219_v63 = vadd.f32 %v1835_v31, %v1226_v20  ;;  %v1228_v31 = vpop.f32.mrf.mxu0  ;;  %v1773_v20 = vmul.f32 0.2, %v6690_v59  ;;  %3246 = vmatmul.bf16.vlgmr.msrb.gmra.mxu2 %v6656_v6 }
 0x254   : > { %3301 = vmatpush.bf16.msra.mxu1 %v7409_v26  ;;  %v349_v26 = vld [vmem:[#allocation2 + $0x120] sm:$0xff]  ;;  %v1229_v50 = vadd.f32 %v8630_v10, %v1228_v31 }
 0x255   : > { %2283 = vst.msk [vmem:[#allocation4 + $0x78] sm:$0xff] %vm98_vm1, %v2219_v63  ;;  %v413_v28 = vsub.f32 0.0, %v349_v26  ;;  %v3325_v63 = vld [vmem:[%s11468_s4 + $0x30] sm:$0xff] }
 0x256   : > { %v2220_v21 = vadd.f32 %v1836_v54, %v1229_v50  ;;  %3485 = vmatpush.msra.mxu3 %v3325_v63  ;;  %v3320_v54 = vld [vmem:[%s11468_s4 + $0x8] sm:$0xff]  ;;  %v3323_v50 = vld [vmem:[%s11468_s4 + $0x20] sm:$0xff]  ;;  %v8717_v63 = vpop.f32.mrf.mxu2 }
 0x257   : > { %3445 = vmatpush.msra.mxu2 %v3320_v54  ;;  %v8721_v54 = vpop.f32.mrf.mxu3 }
 0x258   : > { %3302 = vmatpush.bf16.msra.mxu1 %v7494_v57  ;;  %v477_v57 = vadd.f32 %v413_v28, %v285_v8  ;;  %2284 = vst.msk [vmem:[#allocation4 + $0x80] sm:$0xff] %vm98_vm1, %v2220_v21  ;;  %v3324_v28 = vld [vmem:[%s11468_s4 + $0x28] sm:$0xff]  ;;  %v1837_v8 = vsub.f32 %v6690_v59, %v1773_v20  ;;  %v6114_v21 = vsel %vm666_vm10, 1.0, %v11474_v58 }
 0x259   : > { %3486 = vmatpush.msra.mxu3 %v3324_v28  ;;  %3446 = vmatpush.msra.mxu2 %v3319_v22  ;;  %11476 = vst [vmem:[#allocation15_spill] sm:$0xff] %v8721_v54  ;;  %v351_v22 = vld [vmem:[#allocation2 + $0x130] sm:$0xff]  ;;  %v3333_v54 = vld [vmem:[%s11468_s4 + $0x70] sm:$0xff] }
 0x25a   : > { %v541_v3 = vmul.f32 0.1, %v477_v57  ;;  %v414_v57 = vsub.f32 0.0, %v350_v60  ;;  %6179 = vmatmul.msk.f32.gmra.mxu0 %vm33_vm0, %v6114_v21 }
 0x25b   : > { %3487 = vmatpush.msra.mxu3 %v3323_v50 }
 0x25c   : > { %3303 = vmatpush.bf16.msra.mxu1 %v7569_v5  ;;  %v8685_v5 = vpop.f32.mrf.mxu1  ;;  %v8696_v31 = vadd.f32 %v541_v3, %v349_v26  ;;  %v1231_v26 = vpop.f32.mrf.mxu0  ;;  %v6691_v3 = vld [vmem:[#allocation4 + $0x90] sm:$0xff] }
 0x25d   : > { %v1232_v20 = vadd.f32 %v8630_v10, %v1231_v26  ;;  %v1774_v49 = vmul.f32 0.2, %v6691_v3 }
 0x25e   : > { %vm669_vm13 = vcmp.gt.f32.partialorder %v8696_v31, 1.0 }
 0x25f   : > { %v861_v59 = vsel %vm669_vm13, 0.0, %v8696_v31  ;;  %v2221_v33 = vadd.f32 %v1837_v8, %v1232_v20  ;;  %v1838_v50 = vsub.f32 %v6691_v3, %v1774_v49  ;;  %v415_v8 = vsub.f32 0.0, %v351_v22  ;;  %v6655_v3 = vld [vmem:[%s11467_s3 + $0x158] sm:$0xff]  ;;  %v6657_v49 = vld [vmem:[%s11467_s3 + $0x168] sm:$0xff] }
 0x260   : > { %3304 = vmatpush.bf16.msra.mxu1 %v7632_v41  ;;  %v286_v41 = vld [vmem:[%s11464_s0 + $0x128] sm:$0xff]  ;;  %925 = vst.msk [vmem:[#allocation2 + $0x120] sm:$0xff] %vm33_vm0, %v861_v59  ;;  %v8741_v59 = vpop.f32.mrf.mxu2  ;;  %v1775_v20 = vmul.f32 0.2, %v6692_v0  ;;  %v3334_v31 = vld [vmem:[%s11468_s4 + $0x78] sm:$0xff] }
 0x261   : > { %v478_v42 = vadd.f32 %v414_v57, %v286_v41  ;;  %2285 = vst.msk [vmem:[#allocation4 + $0x88] sm:$0xff] %vm98_vm1, %v2221_v33  ;;  %v8745_v33 = vpop.f32.mrf.mxu3  ;;  %3220 = vmatmul.bf16.gmra.mxu1 %v6655_v3  ;;  %3566 = vmatpush.msrb.mxu2 %v3334_v31  ;;  %v3332_v31 = vld [vmem:[%s11468_s4 + $0x68] sm:$0xff] }
 0x262   : > { %11477 = vst [vmem:[#allocation16_spill] sm:$0xff] %v8745_v33 }
 0x263   : > { %v542_v6 = vmul.f32 0.1, %v478_v42  ;;  %3251 = vmatmul.bf16.gmra.mxu2 %v6657_v49 }
 0x264   : > { %3305 = vmatpush.bf16.msra.mxu1 %v7711_v53  ;;  %v8724_v62 = vpop.f32.mrf.mxu1  ;;  %v1234_v57 = vpop.f32.mrf.mxu0  ;;  %v6115_v53 = vsel %vm667_vm11, 1.0, %v11474_v58  ;;  %3567 = vmatpush.msrb.mxu2 %v3333_v54  ;;  %v3327_v54 = vld [vmem:[%s11468_s4 + $0x40] sm:$0xff] }
 0x265   : > { %v8726_v28 = vadd.f32 %v542_v6, %v350_v60  ;;  %v287_v60 = vld [vmem:[%s11464_s0 + $0x130] sm:$0xff]  ;;  %v1235_v21 = vadd.f32 %v8630_v10, %v1234_v57  ;;  %6180 = vmatmul.msk.f32.gmra.mxu0 %vm33_vm0, %v6115_v53  ;;  %v1839_v57 = vsub.f32 %v6692_v0, %v1775_v20 }
 0x266   : > { %3568 = vmatpush.msrb.mxu2 %v3332_v31 }
 0x267   : > { %vm670_vm14 = vcmp.gt.f32.partialorder %v8726_v28, 1.0  ;;  %v2222_v41 = vadd.f32 %v1838_v50, %v1235_v21  ;;  %v6659_v50 = vld [vmem:[%s11467_s3 + $0x178] sm:$0xff] }
 0x268   : > { %3306 = vmatpush.bf16.msra.mxu1 %v7786_v36  ;;  %v862_v26 = vsel %vm670_vm14, 0.0, %v8726_v28  ;;  %v479_v36 = vadd.f32 %v415_v8, %v287_v60  ;;  %v352_v8 = vld [vmem:[#allocation2 + $0x138] sm:$0xff]  ;;  %v6116_v60 = vsel %vm668_vm12, 1.0, %v11474_v58  ;;  %3282 = vmatmul.bf16.gmra.mxu3 %v6659_v50  ;;  %v8773_v0 = vpop.f32.mrf.mxu2 }
 0x269   : > { %926 = vst.msk [vmem:[#allocation2 + $0x128] sm:$0xff] %vm33_vm0, %v862_v26  ;;  %v416_v53 = vsub.f32 0.0, %v352_v8  ;;  %v8776_v49 = vpop.f32.mrf.mxu3 }
 0x26a   : > { %v543_v42 = vmul.f32 0.1, %v479_v36  ;;  %2286 = vst.msk [vmem:[#allocation4 + $0x90] sm:$0xff] %vm98_vm1, %v2222_v41 }
 0x26b   : > { %11478 = vst [vmem:[#allocation17_spill] sm:$0xff] %v8776_v49  ;;  %v3329_v49 = vld [vmem:[%s11468_s4 + $0x50] sm:$0xff] }
 0x26c   : > { %3307 = vmatpush.bf16.msra.mxu1 %v7847_v48  ;;  %v8754_v6 = vpop.f32.mrf.mxu1  ;;  %v8759_v48 = vadd.f32 %v543_v42, %v351_v22  ;;  %v1237_v26 = vpop.f32.mrf.mxu0  ;;  %v288_v22 = vld [vmem:[%s11464_s0 + $0x138] sm:$0xff]  ;;  %v1776_v42 = vmul.f32 0.2, %v6693_v47 }
 0x26d   : > { %v1238_v36 = vadd.f32 %v8630_v10, %v1237_v26  ;;  %v480_v41 = vadd.f32 %v416_v53, %v288_v22  ;;  %6181 = vmatmul.msk.f32.gmra.mxu0 %vm33_vm0, %v6116_v60  ;;  %v353_v26 = vld [vmem:[#allocation2 + $0x140] sm:$0xff] }
 0x26e   : > { %vm671_vm15 = vcmp.gt.f32.partialorder %v8759_v48, 1.0  ;;  %v1840_v33 = vsub.f32 %v6693_v47, %v1776_v42  ;;  %v417_v53 = vsub.f32 0.0, %v353_v26  ;;  %v6694_v42 = vld [vmem:[#allocation4 + $0xa8] sm:$0xff] }
 0x26f   : > { %v863_v21 = vsel %vm671_vm15, 0.0, %v8759_v48  ;;  %v2223_v20 = vadd.f32 %v1839_v57, %v1238_v36  ;;  %v544_v3 = vmul.f32 0.1, %v480_v41  ;;  %v11480_v57 = vmov 0.0   ;;  %v289_v36 = vld [vmem:[%s11464_s0 + $0x140] sm:$0xff]  ;;  %v3330_v41 = vld [vmem:[%s11468_s4 + $0x58] sm:$0xff] }
 0x270   : > { %927 = vst.msk [vmem:[#allocation2 + $0x130] sm:$0xff] %vm33_vm0, %v863_v21  ;;  %v6117_v60 = vsel %vm669_vm13, 1.0, %v11480_v57  ;;  %v481_v47 = vadd.f32 %v417_v53, %v289_v36  ;;  %3525 = vmatpush.msrb.mxu1 %v3330_v41  ;;  %v3337_v53 = vld [vmem:[%s11468_s4 + $0x90] sm:$0xff] }
 0x271   : > { %2287 = vst.msk [vmem:[#allocation4 + $0x98] sm:$0xff] %vm98_vm1, %v2223_v20  ;;  %v8781_v50 = vadd.f32 %v544_v3, %v352_v8  ;;  %v3338_v20 = vld [vmem:[%s11468_s4 + $0x98] sm:$0xff]  ;;  %v1777_v3 = vmul.f32 0.2, %v6694_v42  ;;  %v8816_v41 = vpop.f32.mrf.mxu3 }
 0x272   : > { %3607 = vmatpush.msrb.mxu3 %v3338_v20  ;;  %v545_v36 = vmul.f32 0.1, %v481_v47  ;;  %11482 = vst [vmem:[#allocation20_spill] sm:$0xff] %v8816_v41  ;;  %3526 = vmatpush.msrb.mxu1 %v3329_v49  ;;  %v3336_v20 = vld [vmem:[%s11468_s4 + $0x88] sm:$0xff]  ;;  %v6695_v41 = vld [vmem:[#allocation4 + $0xb0] sm:$0xff] }
 0x273   : > { %vm672_vm3 = vcmp.gt.f32.partialorder %v8781_v50, 1.0  ;;  %v1841_v49 = vsub.f32 %v6694_v42, %v1777_v3  ;;  %6474 = vmatmul.msk.f32.vlgmr.msra.gmra.mxu2 %vm98_vm1, %v8277_v14  ;;  %v6118_v42 = vsel %vm670_vm14, 1.0, %v11480_v57 }
 0x274   : > { %v8779_v58 = vpop.f32.mrf.mxu1  ;;  %v1240_v21 = vpop.f32.mrf.mxu0  ;;  %v864_v22 = vsel %vm672_vm3, 0.0, %v8781_v50  ;;  %3608 = vmatpush.msrb.mxu3 %v3337_v53  ;;  %v8833_v47 = vadd.f32 %v545_v36, %v353_v26  ;;  %v3335_v53 = vld [vmem:[%s11468_s4 + $0x80] sm:$0xff]  ;;  %v354_v26 = vld [vmem:[#allocation2 + $0x148] sm:$0xff] }
 0x275   : > { %11479 = vst [vmem:[#allocation18_spill] sm:$0xff] %v8779_v58  ;;  %v1241_v8 = vadd.f32 %v8630_v10, %v1240_v21  ;;  %v8804_v21 = vpop.f32.mrf.mxu2  ;;  %6182 = vmatmul.msk.f32.gmra.mxu0 %vm33_vm0, %v6117_v60  ;;  %v418_v31 = vsub.f32 0.0, %v354_v26 }
 0x276   : > { %928 = vst.msk [vmem:[#allocation2 + $0x138] sm:$0xff] %vm33_vm0, %v864_v22  ;;  %3609 = vmatpush.msrb.mxu3 %v3336_v20  ;;  %vm673_vm4 = vcmp.gt.f32.partialorder %v8833_v47, 1.0 }
 0x277   : > { %11481 = vst [vmem:[#allocation19_spill] sm:$0xff] %v8804_v21  ;;  %v2224_v22 = vadd.f32 %v1840_v33, %v1241_v8  ;;  %v6660_v33 = vld [vmem:[%s11467_s3 + $0x180] sm:$0xff]  ;;  %v3328_v8 = vld [vmem:[%s11468_s4 + $0x48] sm:$0xff]  ;;  %v865_v3 = vsel %vm673_vm4, 0.0, %v8833_v47  ;;  %v3346_v47 = vld [vmem:[%s11468_s4 + $0xd8] sm:$0xff] }
 0x278   : > { %3527 = vmatpush.msrb.mxu1 %v3328_v8  ;;  %v290_v8 = vld [vmem:[%s11464_s0 + $0x148] sm:$0xff]  ;;  %6478 = vmatmul.msk.f32.vlgmr.msra.gmra.mxu3 %vm98_vm1, %v8300_v55  ;;  %929 = vst.msk [vmem:[#allocation2 + $0x140] sm:$0xff] %vm33_vm0, %v865_v3  ;;  %v291_v3 = vld [vmem:[%s11464_s0 + $0x150] sm:$0xff] }
 0x279   : > { %2288 = vst.msk [vmem:[#allocation4 + $0xa0] sm:$0xff] %vm98_vm1, %v2224_v22  ;;  %v3331_v22 = vld [vmem:[%s11468_s4 + $0x60] sm:$0xff]  ;;  %3308 = vmatmul.bf16.vlgmr.msra.gmra.mxu1 %v6660_v33  ;;  %3610 = vmatpush.msrb.mxu3 %v3335_v53  ;;  %v482_v14 = vadd.f32 %v418_v31, %v290_v8  ;;  %v8863_v21 = vpop.f32.mrf.mxu3 }
 0x27a   : > { %3528 = vmatpush.msrb.mxu1 %v3327_v54  ;;  %3569 = vmatpush.msrb.mxu2 %v3331_v22 }
 0x27b   : > { %v546_v58 = vmul.f32 0.1, %v482_v14  ;;  %6475 = vmatmul.msk.f32.gmra.mxu2 %vm98_vm1, %v8307_v16 }
 0x27c   : > { %v8822_v60 = vpop.f32.mrf.mxu1  ;;  %v1243_v36 = vpop.f32.mrf.mxu0  ;;  %3689 = vmatpush.msra.mxu2 %v3346_v47  ;;  %v3348_v47 = vld [vmem:[%s11468_s4 + $0xe8] sm:$0xff] }
 0x27d   : > { %11483 = vst [vmem:[#allocation21_spill] sm:$0xff] %v8822_v60  ;;  %v1244_v33 = vadd.f32 %v8630_v10, %v1243_v36  ;;  %v8860_v28 = vpop.f32.mrf.mxu2  ;;  %6183 = vmatmul.msk.f32.gmra.mxu0 %vm33_vm0, %v6118_v42  ;;  %v1778_v60 = vmul.f32 0.2, %v6695_v41  ;;  %v8868_v54 = vadd.f32 %v546_v58, %v354_v26  ;;  %v355_v36 = vld [vmem:[#allocation2 + $0x150] sm:$0xff]  ;;  %v6119_v42 = vsel %vm671_vm15, 1.0, %v11480_v57  ;;  %v6696_v26 = vld [vmem:[#allocation4 + $0xb8] sm:$0xff] }
 0x27e   : > { %v419_v53 = vsub.f32 0.0, %v355_v36  ;;  %v1779_v8 = vmul.f32 0.2, %v6696_v26 }
 0x27f   : > { %v2225_v20 = vadd.f32 %v1841_v49, %v1244_v33  ;;  %v1842_v22 = vsub.f32 %v6695_v41, %v1778_v60  ;;  %vm674_vm5 = vcmp.gt.f32.partialorder %v8868_v54, 1.0 }
 0x280   : > { %6479 = vmatmul.msk.f32.gmra.mxu3 %vm98_vm1, %v8328_v11  ;;  %v866_v16 = vsel %vm674_vm5, 0.0, %v8868_v54  ;;  %v483_v41 = vadd.f32 %v419_v53, %v291_v3  ;;  %v6661_v11 = vld [vmem:[%s11467_s3 + $0x188] sm:$0xff]  ;;  %v356_v53 = vld [vmem:[#allocation2 + $0x158] sm:$0xff]  ;;  %v6120_v3 = vsel %vm672_vm3, 1.0, %v11480_v57  ;;  %s6067_s3 = sshll.u32 (%p245_p0), %s11473_s9, 4  ;;  %s6068_s3 = int_to_ptr.hbm [resolvable:$true] %s6067_s3 }
 0x281   : > { %2289 = vst.msk [vmem:[#allocation4 + $0xa8] sm:$0xff] %vm98_vm1, %v2225_v20  ;;  %v8889_v33 = vpop.f32.mrf.mxu3 }
 0x282   : > { %930 = vst.msk [vmem:[#allocation2 + $0x148] sm:$0xff] %vm33_vm0, %v866_v16  ;;  %v547_v31 = vmul.f32 0.1, %v483_v41 }
 0x283   : > { %11484 = vst [vmem:[#allocation22_spill] sm:$0xff] %v8889_v33  ;;  %6476 = vmatmul.msk.f32.gmra.mxu2 %vm98_vm1, %v8341_v32 }
 0x284   : > { %v8866_v55 = vpop.f32.mrf.mxu1  ;;  %v1246_v49 = vpop.f32.mrf.mxu0  ;;  %v8897_v20 = vadd.f32 %v547_v31, %v355_v36  ;;  %v292_v36 = vld [vmem:[%s11464_s0 + $0x158] sm:$0xff] }
 0x285   : > { %v1247_v58 = vadd.f32 %v8630_v10, %v1246_v49  ;;  %v8886_v48 = vpop.f32.mrf.mxu2  ;;  %6184 = vmatmul.msk.f32.gmra.mxu0 %vm33_vm0, %v6119_v42  ;;  %v1843_v49 = vsub.f32 %v6696_v26, %v1779_v8 }
 0x286   : > { %vm675_vm6 = vcmp.gt.f32.partialorder %v8897_v20, 1.0 }
 0x287   : > { %v2226_v60 = vadd.f32 %v1842_v22, %v1247_v58  ;;  %v420_v22 = vsub.f32 0.0, %v356_v53  ;;  %v867_v58 = vsel %vm675_vm6, 0.0, %v8897_v20 }
 0x288   : > { %6480 = vmatmul.msk.f32.gmra.mxu3 %vm98_vm1, %v8365_v52  ;;  %931 = vst.msk [vmem:[#allocation2 + $0x150] sm:$0xff] %vm33_vm0, %v867_v58 }
 0x289   : > { %2290 = vst.msk [vmem:[#allocation4 + $0xb0] sm:$0xff] %vm98_vm1, %v2226_v60  ;;  %3313 = vmatmul.bf16.gmra.mxu1 %v6661_v11  ;;  %v484_v32 = vadd.f32 %v420_v22, %v292_v36  ;;  %v6697_v60 = vld [vmem:[#allocation4 + $0xc0] sm:$0xff]  ;;  %v8918_v31 = vpop.f32.mrf.mxu3 }
 0x28a   : > { %v1780_v26 = vmul.f32 0.2, %v6697_v60  ;;  %11485 = vst [vmem:[#allocation23_spill] sm:$0xff] %v8918_v31 }
 0x28b   : > { %v548_v8 = vmul.f32 0.1, %v484_v32  ;;  %6477 = vmatmul.msk.f32.gmra.mxu2 %vm98_vm1, %v8374_v7  ;;  %v3342_v7 = vld [vmem:[%s11468_s4 + $0xb8] sm:$0xff] }
 0x28c   : > { %v8895_v14 = vpop.f32.mrf.mxu1  ;;  %v1249_v42 = vpop.f32.mrf.mxu0  ;;  %v1844_v33 = vsub.f32 %v6697_v60, %v1780_v26  ;;  %3648 = vmatpush.msra.mxu1 %v3342_v7 }
 0x28d   : > { %v1250_v16 = vadd.f32 %v8630_v10, %v1249_v42  ;;  %v8915_v41 = vpop.f32.mrf.mxu2  ;;  %6185 = vmatmul.msk.f32.gmra.mxu0 %vm33_vm0, %v6120_v3  ;;  %v8923_v52 = vadd.f32 %v548_v8, %v356_v53  ;;  %v357_v42 = vld [vmem:[#allocation2 + $0x160] sm:$0xff]  ;;  %v6121_v3 = vsel %vm673_vm4, 1.0, %v11480_v57  ;;  %v293_v53 = vld [vmem:[%s11464_s0 + $0x160] sm:$0xff] }
 0x28e   : > { %v421_v22 = vsub.f32 0.0, %v357_v42 }
 0x28f   : > { %v2227_v50 = vadd.f32 %v1843_v49, %v1250_v16  ;;  %vm676_vm7 = vcmp.gt.f32.partialorder %v8923_v52, 1.0  ;;  %v3350_v16 = vld [vmem:[%s11468_s4 + $0xf8] sm:$0xff] }
 0x290   : > { %v868_v58 = vsel %vm676_vm7, 0.0, %v8923_v52  ;;  %6481 = vmatmul.msk.f32.gmra.mxu3 %vm98_vm1, %v8397_v45  ;;  %v485_v32 = vadd.f32 %v421_v22, %v293_v53  ;;  %v3412_v45 = vld [vmem:[%s11468_s4 + $0x2e8] sm:$0xff]  ;;  %v3345_v22 = vld [vmem:[%s11468_s4 + $0xd0] sm:$0xff] }
 0x291   : > { %2291 = vst.msk [vmem:[#allocation4 + $0xb8] sm:$0xff] %vm98_vm1, %v2227_v50  ;;  %v6698_v50 = vld [vmem:[#allocation4 + $0xc8] sm:$0xff]  ;;  %3730 = vmatpush.msra.mxu3 %v3350_v16  ;;  %v8965_v7 = vpop.f32.mrf.mxu3  ;;  %4388 = vmatpush.msrb.mxu0 %v3412_v45 }
 0x292   : > { %932 = vst.msk [vmem:[#allocation2 + $0x158] sm:$0xff] %vm33_vm0, %v868_v58  ;;  %v1781_v60 = vmul.f32 0.2, %v6698_v50  ;;  %v3349_v58 = vld [vmem:[%s11468_s4 + $0xf0] sm:$0xff]  ;;  %v549_v53 = vmul.f32 0.1, %v485_v32  ;;  %3690 = vmatpush.msra.mxu2 %v3345_v22 }
 0x293   : > { %11486 = vst [vmem:[#allocation24_spill] sm:$0xff] %v8965_v7  ;;  %3731 = vmatpush.msra.mxu3 %v3349_v58  ;;  %v3339_v32 = vld [vmem:[%s11468_s4 + $0xa0] sm:$0xff]  ;;  %6486 = vmatmul.msk.f32.vlgmr.msrb.gmra.mxu2 %vm98_vm1, %v8412_v46  ;;  %v294_v58 = vld [vmem:[%s11464_s0 + $0x168] sm:$0xff] }
 0x294   : > { %v8921_v11 = vpop.f32.mrf.mxu1  ;;  %v1252_v49 = vpop.f32.mrf.mxu0  ;;  %v8979_v16 = vadd.f32 %v549_v53, %v357_v42  ;;  %v1845_v45 = vsub.f32 %v6698_v50, %v1781_v60  ;;  %v358_v42 = vld [vmem:[#allocation2 + $0x168] sm:$0xff]  ;;  %v6122_v60 = vsel %vm674_vm5, 1.0, %v11480_v57 }
 0x295   : > { %v1253_v36 = vadd.f32 %v8630_v10, %v1252_v49  ;;  %v8953_v26 = vpop.f32.mrf.mxu2  ;;  %6186 = vmatmul.msk.f32.gmra.mxu0 %vm33_vm0, %v6121_v3  ;;  %v3341_v49 = vld [vmem:[%s11468_s4 + $0xb0] sm:$0xff]  ;;  %v3340_v3 = vld [vmem:[%s11468_s4 + $0xa8] sm:$0xff]  ;;  %3732 = vmatpush.msra.mxu3 %v3348_v47  ;;  %v422_v53 = vsub.f32 0.0, %v358_v42 }
 0x296   : > { %3649 = vmatpush.msra.mxu1 %v3341_v49  ;;  %v3347_v49 = vld [vmem:[%s11468_s4 + $0xe0] sm:$0xff]  ;;  %vm677_vm8 = vcmp.gt.f32.partialorder %v8979_v16, 1.0 }
 0x297   : > { %v2228_v8 = vadd.f32 %v1844_v33, %v1253_v36  ;;  %v3344_v36 = vld [vmem:[%s11468_s4 + $0xc8] sm:$0xff]  ;;  %v869_v22 = vsel %vm677_vm8, 0.0, %v8979_v16  ;;  %3733 = vmatpush.msra.mxu3 %v3347_v49  ;;  %v486_v46 = vadd.f32 %v422_v53, %v294_v58  ;;  %v6700_v58 = vld [vmem:[#allocation4 + $0xd8] sm:$0xff]  ;;  %v3358_v16 = vld [vmem:[%s11468_s4 + $0x138] sm:$0xff] }
 0x298   : > { %3650 = vmatpush.msra.mxu1 %v3340_v3  ;;  %3691 = vmatpush.msra.mxu2 %v3344_v36  ;;  %933 = vst.msk [vmem:[#allocation2 + $0x160] sm:$0xff] %vm33_vm0, %v869_v22  ;;  %v6699_v36 = vld [vmem:[#allocation4 + $0xd0] sm:$0xff]  ;;  %v1783_v53 = vmul.f32 0.2, %v6700_v58 }
 0x299   : > { %2292 = vst.msk [vmem:[#allocation4 + $0xc0] sm:$0xff] %vm98_vm1, %v2228_v8  ;;  %v3343_v8 = vld [vmem:[%s11468_s4 + $0xc0] sm:$0xff]  ;;  %6482 = vmatmul.msk.f32.vlgmr.msrb.gmra.mxu1 %vm98_vm1, %v8305_v2  ;;  %6490 = vmatmul.msk.f32.vlgmr.msrb.gmra.mxu3 %vm98_vm1, %v8434_v24  ;;  %v1782_v47 = vmul.f32 0.2, %v6699_v36  ;;  %v9011_v7 = vpop.f32.mrf.mxu3  ;;  %v550_v31 = vmul.f32 0.1, %v486_v46 }
 0x29a   : > { %3651 = vmatpush.msra.mxu1 %v3339_v32  ;;  %3692 = vmatpush.msra.mxu2 %v3343_v8 }
 0x29b   : > { %v9016_v32 = vadd.f32 %v550_v31, %v358_v42  ;;  %v1846_v8 = vsub.f32 %v6699_v36, %v1782_v47  ;;  %6487 = vmatmul.msk.f32.gmra.mxu2 %vm98_vm1, %v8441_v15  ;;  %v295_v31 = vld [vmem:[%s11464_s0 + $0x170] sm:$0xff]  ;;  %v360_v36 = vld [vmem:[#allocation2 + $0x178] sm:$0xff]  ;;  %v1847_v47 = vsub.f32 %v6700_v58, %v1783_v53  ;;  %v361_v53 = vld [vmem:[#allocation2 + $0x180] sm:$0xff] }
 0x29c   : > { %v8968_v33 = vpop.f32.mrf.mxu1  ;;  %v1255_v50 = vpop.f32.mrf.mxu0  ;;  %3812 = vmatpush.msrb.mxu2 %v3358_v16 }
 0x29d   : > { %v1256_v2 = vadd.f32 %v8630_v10, %v1255_v50  ;;  %v9008_v54 = vpop.f32.mrf.mxu2  ;;  %6187 = vmatmul.msk.f32.gmra.mxu0 %vm33_vm0, %v6122_v60  ;;  %v359_v50 = vld [vmem:[#allocation2 + $0x170] sm:$0xff]  ;;  %v6123_v60 = vsel %vm675_vm6, 1.0, %v11480_v57  ;;  %vm678_vm9 = vcmp.gt.f32.partialorder %v9016_v32, 1.0 }
 0x29e   : > { %v423_v49 = vsub.f32 0.0, %v359_v50 }
 0x29f   : > { %v2229_v3 = vadd.f32 %v1845_v45, %v1256_v2 }
 0x2a0   : > { %v487_v15 = vadd.f32 %v423_v49, %v295_v31  ;;  %v424_v49 = vsub.f32 0.0, %v360_v36 }
 0x2a1   : > { %2293 = vst.msk [vmem:[#allocation4 + $0xc8] sm:$0xff] %vm98_vm1, %v2229_v3  ;;  %6483 = vmatmul.msk.f32.gmra.mxu1 %vm98_vm1, %v8333_v38  ;;  %6491 = vmatmul.msk.f32.gmra.mxu3 %vm98_vm1, %v8462_v34  ;;  %v870_v38 = vsel %vm678_vm9, 0.0, %v9016_v32  ;;  %v9039_v46 = vpop.f32.mrf.mxu3 }
 0x2a2   : > { %934 = vst.msk [vmem:[#allocation2 + $0x168] sm:$0xff] %vm33_vm0, %v870_v38  ;;  %v551_v2 = vmul.f32 0.1, %v487_v15 }
 0x2a3   : > { %6488 = vmatmul.msk.f32.gmra.mxu2 %vm98_vm1, %v8475_v25 }
 0x2a4   : > { %v9014_v24 = vpop.f32.mrf.mxu1  ;;  %v1258_v45 = vpop.f32.mrf.mxu0  ;;  %v9044_v3 = vadd.f32 %v551_v2, %v359_v50 }
 0x2a5   : > { %v1259_v42 = vadd.f32 %v8630_v10, %v1258_v45  ;;  %v9036_v20 = vpop.f32.mrf.mxu2  ;;  %6188 = vmatmul.msk.f32.gmra.mxu0 %vm33_vm0, %v6123_v60  ;;  %v6124_v45 = vsel %vm676_vm7, 1.0, %v11480_v57  ;;  %v296_v60 = vld [vmem:[%s11464_s0 + $0x178] sm:$0xff] }
 0x2a6   : > { %vm679_vm10 = vcmp.gt.f32.partialorder %v9044_v3, 1.0  ;;  %v488_v25 = vadd.f32 %v424_v49, %v296_v60  ;;  %v425_v49 = vsub.f32 0.0, %v361_v53 }
 0x2a7   : > { %v2230_v22 = vadd.f32 %v1846_v8, %v1259_v42  ;;  %v871_v50 = vsel %vm679_vm10, 0.0, %v9044_v3  ;;  %v6701_v42 = vld [vmem:[#allocation4 + $0xe0] sm:$0xff] }
 0x2a8   : > { %935 = vst.msk [vmem:[#allocation2 + $0x170] sm:$0xff] %vm33_vm0, %v871_v50  ;;  %v1784_v38 = vmul.f32 0.2, %v6701_v42  ;;  %v552_v15 = vmul.f32 0.1, %v488_v25  ;;  %v3362_v50 = vld [vmem:[%s11468_s4 + $0x158] sm:$0xff] }
 0x2a9   : > { %2294 = vst.msk [vmem:[#allocation4 + $0xd0] sm:$0xff] %vm98_vm1, %v2230_v22  ;;  %6484 = vmatmul.msk.f32.gmra.mxu1 %vm98_vm1, %v8370_v17  ;;  %6492 = vmatmul.msk.f32.gmra.mxu3 %vm98_vm1, %v8500_v19  ;;  %v9067_v22 = vpop.f32.mrf.mxu3 }
 0x2aa   : > { %v9072_v19 = vadd.f32 %v552_v15, %v360_v36  ;;  %v1848_v2 = vsub.f32 %v6701_v42, %v1784_v38  ;;  %3853 = vmatpush.msrb.mxu3 %v3362_v50  ;;  %v3353_v42 = vld [vmem:[%s11468_s4 + $0x110] sm:$0xff]  ;;  %v3355_v50 = vld [vmem:[%s11468_s4 + $0x120] sm:$0xff] }
 0x2ab   : > { %6489 = vmatmul.msk.f32.gmra.mxu2 %vm98_vm1, %v8509_v29  ;;  %v3354_v29 = vld [vmem:[%s11468_s4 + $0x118] sm:$0xff]  ;;  %v3357_v38 = vld [vmem:[%s11468_s4 + $0x130] sm:$0xff] }
 0x2ac   : > { %v9042_v34 = vpop.f32.mrf.mxu1  ;;  %v1261_v8 = vpop.f32.mrf.mxu0  ;;  %vm680_vm11 = vcmp.gt.f32.partialorder %v9072_v19, 1.0  ;;  %3771 = vmatpush.msrb.mxu1 %v3354_v29  ;;  %v3361_v15 = vld [vmem:[%s11468_s4 + $0x150] sm:$0xff]  ;;  %3813 = vmatpush.msrb.mxu2 %v3357_v38  ;;  %v3351_v29 = vld [vmem:[%s11468_s4 + $0x100] sm:$0xff] }
 0x2ad   : > { %v1262_v17 = vadd.f32 %v8630_v10, %v1261_v8  ;;  %v9064_v31 = vpop.f32.mrf.mxu2  ;;  %6189 = vmatmul.msk.f32.gmra.mxu0 %vm33_vm0, %v6124_v45  ;;  %v6125_v8 = vsel %vm677_vm8, 1.0, %v11480_v57  ;;  %v872_v36 = vsel %vm680_vm11, 0.0, %v9072_v19  ;;  %v297_v45 = vld [vmem:[%s11464_s0 + $0x180] sm:$0xff]  ;;  %3854 = vmatpush.msrb.mxu3 %v3361_v15 }
 0x2ae   : > { %936 = vst.msk [vmem:[#allocation2 + $0x178] sm:$0xff] %vm33_vm0, %v872_v36  ;;  %v489_v60 = vadd.f32 %v425_v49, %v297_v45  ;;  %3772 = vmatpush.msrb.mxu1 %v3353_v42  ;;  %v3356_v36 = vld [vmem:[%s11468_s4 + $0x128] sm:$0xff] }
 0x2af   : > { %v2231_v52 = vadd.f32 %v1847_v47, %v1262_v17  ;;  %v6702_v17 = vld [vmem:[#allocation4 + $0xe8] sm:$0xff]  ;;  %v3360_v45 = vld [vmem:[%s11468_s4 + $0x148] sm:$0xff]  ;;  %3814 = vmatpush.msrb.mxu2 %v3356_v36 }
 0x2b0   : > { %v1785_v25 = vmul.f32 0.2, %v6702_v17  ;;  %v553_v49 = vmul.f32 0.1, %v489_v60  ;;  %3855 = vmatpush.msrb.mxu3 %v3360_v45  ;;  %v3359_v60 = vld [vmem:[%s11468_s4 + $0x140] sm:$0xff]  ;;  %v298_v42 = vld [vmem:[%s11464_s0 + $0x188] sm:$0xff] }
 0x2b1   : > { %2295 = vst.msk [vmem:[#allocation4 + $0xd8] sm:$0xff] %vm98_vm1, %v2231_v52  ;;  %6485 = vmatmul.msk.f32.gmra.mxu1 %vm98_vm1, %v8402_v4  ;;  %6493 = vmatmul.msk.f32.gmra.mxu3 %vm98_vm1, %v8529_v40 }
 0x2b2   : > { %v1849_v16 = vsub.f32 %v6702_v17, %v1785_v25  ;;  %v6126_v17 = vsel %vm678_vm9, 1.0, %v11480_v57  ;;  %3815 = vmatpush.msrb.mxu2 %v3355_v50  ;;  %3856 = vmatpush.msrb.mxu3 %v3359_v60 }
 0x2b3   : > { %6498 = vmatmul.msk.f32.vlgmr.msra.gmra.mxu2 %vm98_vm1, %v8543_v9 }
 0x2b4   : > { %v9070_v58 = vpop.f32.mrf.mxu1  ;;  %v1264_v47 = vpop.f32.mrf.mxu0 }
 0x2b5   : > { %v1265_v4 = vadd.f32 %v8630_v10, %v1264_v47  ;;  %v9101_v40 = vpop.f32.mrf.mxu2  ;;  %6190 = vmatmul.msk.f32.gmra.mxu0 %vm33_vm0, %v6125_v8  ;;  %v9113_v47 = vpop.f32.mrf.mxu3  ;;  %v3352_v8 = vld [vmem:[%s11468_s4 + $0x108] sm:$0xff] }
 0x2b6   : > { %3773 = vmatpush.msrb.mxu1 %v3352_v8 }
 0x2b7   : > { %v2232_v52 = vadd.f32 %v1848_v2, %v1265_v4  ;;  %v9127_v4 = vadd.f32 %v553_v49, %v361_v53  ;;  %v362_v53 = vld [vmem:[#allocation2 + $0x188] sm:$0xff]  ;;  %v6703_v49 = vld [vmem:[#allocation4 + $0xf0] sm:$0xff] }
 0x2b8   : > { %v426_v38 = vsub.f32 0.0, %v362_v53  ;;  %3774 = vmatpush.msrb.mxu1 %v3351_v29  ;;  %v1786_v8 = vmul.f32 0.2, %v6703_v49 }
 0x2b9   : > { %2296 = vst.msk [vmem:[#allocation4 + $0xe0] sm:$0xff] %vm98_vm1, %v2232_v52  ;;  %vm681_vm12 = vcmp.gt.f32.partialorder %v9127_v4, 1.0  ;;  %6494 = vmatmul.msk.f32.vlgmr.msra.gmra.mxu1 %vm98_vm1, %v8438_v56  ;;  %6502 = vmatmul.msk.f32.vlgmr.msra.gmra.mxu3 %vm98_vm1, %v8566_v39 }
 0x2ba   : > { %v873_v25 = vsel %vm681_vm12, 0.0, %v9127_v4  ;;  %v490_v9 = vadd.f32 %v426_v38, %v298_v42  ;;  %v1850_v50 = vsub.f32 %v6703_v49, %v1786_v8  ;;  %v6704_v38 = vld [vmem:[#allocation4 + $0xf8] sm:$0xff]  ;;  %v3370_v4 = vld [vmem:[%s11468_s4 + $0x198] sm:$0xff] }
 0x2bb   : > { %937 = vst.msk [vmem:[#allocation2 + $0x180] sm:$0xff] %vm33_vm0, %v873_v25  ;;  %6499 = vmatmul.msk.f32.gmra.mxu2 %vm98_vm1, %v8572_v12  ;;  %v364_v8 = vld [vmem:[#allocation2 + $0x198] sm:$0xff] }
 0x2bc   : > { %v9116_v2 = vpop.f32.mrf.mxu1  ;;  %v1267_v52 = vpop.f32.mrf.mxu0  ;;  %v554_v45 = vmul.f32 0.1, %v490_v9  ;;  %3935 = vmatpush.msra.mxu2 %v3370_v4  ;;  %v3367_v4 = vld [vmem:[%s11468_s4 + $0x180] sm:$0xff] }
 0x2bd   : > { %v1268_v56 = vadd.f32 %v8630_v10, %v1267_v52  ;;  %v9156_v32 = vpop.f32.mrf.mxu2  ;;  %6191 = vmatmul.msk.f32.gmra.mxu0 %vm33_vm0, %v6126_v17  ;;  %v9159_v36 = vpop.f32.mrf.mxu3  ;;  %v363_v52 = vld [vmem:[#allocation2 + $0x190] sm:$0xff]  ;;  %v6127_v17 = vsel %vm679_vm10, 1.0, %v11480_v57 }
 0x2be   : > { %v9164_v29 = vadd.f32 %v554_v45, %v362_v53  ;;  %v427_v60 = vsub.f32 0.0, %v363_v52  ;;  %v299_v53 = vld [vmem:[%s11464_s0 + $0x190] sm:$0xff] }
 0x2bf   : > { %v2233_v15 = vadd.f32 %v1849_v16, %v1268_v56  ;;  %v1787_v56 = vmul.f32 0.2, %v6704_v38 }
 0x2c0   : > { %vm682_vm13 = vcmp.gt.f32.partialorder %v9164_v29, 1.0  ;;  %v491_v12 = vadd.f32 %v427_v60, %v299_v53  ;;  %v428_v60 = vsub.f32 0.0, %v364_v8 }
 0x2c1   : > { %2297 = vst.msk [vmem:[#allocation4 + $0xe8] sm:$0xff] %vm98_vm1, %v2233_v15  ;;  %6495 = vmatmul.msk.f32.gmra.mxu1 %vm98_vm1, %v8466_v51  ;;  %6503 = vmatmul.msk.f32.gmra.mxu3 %vm98_vm1, %v8594_v23  ;;  %v874_v51 = vsel %vm682_vm13, 0.0, %v9164_v29  ;;  %v1851_v45 = vsub.f32 %v6704_v38, %v1787_v56  ;;  %v365_v56 = vld [vmem:[#allocation2 + $0x1a0] sm:$0xff] }
 0x2c2   : > { %938 = vst.msk [vmem:[#allocation2 + $0x188] sm:$0xff] %vm33_vm0, %v874_v51  ;;  %v555_v9 = vmul.f32 0.1, %v491_v12 }
 0x2c3   : > { %6500 = vmatmul.msk.f32.gmra.mxu2 %vm98_vm1, %v8606_v61 }
 0x2c4   : > { %v9162_v39 = vpop.f32.mrf.mxu1  ;;  %v1270_v16 = vpop.f32.mrf.mxu0  ;;  %v9192_v49 = vadd.f32 %v555_v9, %v363_v52 }
 0x2c5   : > { %v1271_v25 = vadd.f32 %v8630_v10, %v1270_v16  ;;  %v9184_v3 = vpop.f32.mrf.mxu2  ;;  %6192 = vmatmul.msk.f32.gmra.mxu0 %vm33_vm0, %v6127_v17  ;;  %v9187_v15 = vpop.f32.mrf.mxu3  ;;  %v6128_v16 = vsel %vm680_vm11, 1.0, %v11480_v57  ;;  %v300_v17 = vld [vmem:[%s11464_s0 + $0x198] sm:$0xff] }
 0x2c6   : > { %vm683_vm14 = vcmp.gt.f32.partialorder %v9192_v49, 1.0  ;;  %v492_v61 = vadd.f32 %v428_v60, %v300_v17  ;;  %v429_v60 = vsub.f32 0.0, %v365_v56 }
 0x2c7   : > { %v2234_v42 = vadd.f32 %v1850_v50, %v1271_v25  ;;  %v875_v52 = vsel %vm683_vm14, 0.0, %v9192_v49  ;;  %v6705_v25 = vld [vmem:[#allocation4 + $0x100] sm:$0xff] }
 0x2c8   : > { %939 = vst.msk [vmem:[#allocation2 + $0x190] sm:$0xff] %vm33_vm0, %v875_v52  ;;  %v1788_v51 = vmul.f32 0.2, %v6705_v25  ;;  %v556_v12 = vmul.f32 0.1, %v492_v61  ;;  %v3374_v52 = vld [vmem:[%s11468_s4 + $0x1b8] sm:$0xff] }
 0x2c9   : > { %2298 = vst.msk [vmem:[#allocation4 + $0xf0] sm:$0xff] %vm98_vm1, %v2234_v42  ;;  %6496 = vmatmul.msk.f32.gmra.mxu1 %vm98_vm1, %v8504_v1  ;;  %6504 = vmatmul.msk.f32.gmra.mxu3 %vm98_vm1, %v8636_v35 }
 0x2ca   : > { %v9220_v35 = vadd.f32 %v556_v12, %v364_v8  ;;  %v1852_v9 = vsub.f32 %v6705_v25, %v1788_v51  ;;  %3976 = vmatpush.msra.mxu3 %v3374_v52  ;;  %v3369_v25 = vld [vmem:[%s11468_s4 + $0x190] sm:$0xff]  ;;  %v3371_v52 = vld [vmem:[%s11468_s4 + $0x1a0] sm:$0xff] }
 0x2cb   : > { %6501 = vmatmul.msk.f32.gmra.mxu2 %vm98_vm1, %v8643_v18  ;;  %v3366_v18 = vld [vmem:[%s11468_s4 + $0x178] sm:$0xff]  ;;  %v3373_v51 = vld [vmem:[%s11468_s4 + $0x1b0] sm:$0xff] }
 0x2cc   : > { %v9190_v23 = vpop.f32.mrf.mxu1  ;;  %v1273_v50 = vpop.f32.mrf.mxu0  ;;  %vm684_vm15 = vcmp.gt.f32.partialorder %v9220_v35, 1.0  ;;  %3894 = vmatpush.msra.mxu1 %v3366_v18  ;;  %3936 = vmatpush.msra.mxu2 %v3369_v25 }
 0x2cd   : > { %v1274_v1 = vadd.f32 %v8630_v10, %v1273_v50  ;;  %v9212_v53 = vpop.f32.mrf.mxu2  ;;  %6193 = vmatmul.msk.f32.gmra.mxu0 %vm33_vm0, %v6128_v16  ;;  %v9215_v42 = vpop.f32.mrf.mxu3  ;;  %v6129_v50 = vsel %vm681_vm12, 1.0, %v11480_v57  ;;  %v876_v8 = vsel %vm684_vm15, 0.0, %v9220_v35  ;;  %v301_v16 = vld [vmem:[%s11464_s0 + $0x1a0] sm:$0xff]  ;;  %3977 = vmatpush.msra.mxu3 %v3373_v51 }
 0x2ce   : > { %940 = vst.msk [vmem:[#allocation2 + $0x198] sm:$0xff] %vm33_vm0, %v876_v8  ;;  %v493_v17 = vadd.f32 %v429_v60, %v301_v16  ;;  %v3372_v8 = vld [vmem:[%s11468_s4 + $0x1a8] sm:$0xff] }
 0x2cf   : > { %v2235_v19 = vadd.f32 %v1851_v45, %v1274_v1  ;;  %v6706_v1 = vld [vmem:[#allocation4 + $0x108] sm:$0xff]  ;;  %3978 = vmatpush.msra.mxu3 %v3372_v8 }
 0x2d0   : > { %v1789_v61 = vmul.f32 0.2, %v6706_v1  ;;  %v557_v12 = vmul.f32 0.1, %v493_v17 }
 0x2d1   : > { %2299 = vst.msk [vmem:[#allocation4 + $0xf8] sm:$0xff] %vm98_vm1, %v2235_v19  ;;  %6497 = vmatmul.msk.f32.gmra.mxu1 %vm98_vm1, %v8532_v43  ;;  %6505 = vmatmul.msk.f32.gmra.mxu3 %vm98_vm1, %v8666_v13  ;;  %v3365_v19 = vld [vmem:[%s11468_s4 + $0x170] sm:$0xff] }
 0x2d2   : > { %3895 = vmatpush.msra.mxu1 %v3365_v19  ;;  %v9275_v16 = vadd.f32 %v557_v12, %v365_v56  ;;  %v1853_v18 = vsub.f32 %v6706_v1, %v1789_v61  ;;  %v366_v56 = vld [vmem:[#allocation2 + $0x1a8] sm:$0xff]  ;;  %v6130_v1 = vsel %vm682_vm13, 1.0, %v11480_v57  ;;  %3979 = vmatpush.msra.mxu3 %v3371_v52  ;;  %v6708_v12 = vld [vmem:[#allocation4 + $0x110] sm:$0xff] }
 0x2d3   : > { %6510 = vmatmul.msk.f32.vlgmr.msrb.gmra.mxu2 %vm98_vm1, %v8685_v5  ;;  %v430_v19 = vsub.f32 0.0, %v366_v56 }
 0x2d4   : > { %v9218_v38 = vpop.f32.mrf.mxu1  ;;  %v1276_v45 = vpop.f32.mrf.mxu0  ;;  %vm685_vm3 = vcmp.gt.f32.partialorder %v9275_v16, 1.0 }
 0x2d5   : > { %v1277_v43 = vadd.f32 %v8630_v10, %v1276_v45  ;;  %v9249_v10 = vpop.f32.mrf.mxu2  ;;  %6194 = vmatmul.msk.f32.gmra.mxu0 %vm33_vm0, %v6129_v50  ;;  %v9261_v60 = vpop.f32.mrf.mxu3  ;;  %v3364_v45 = vld [vmem:[%s11468_s4 + $0x168] sm:$0xff]  ;;  %v877_v61 = vsel %vm685_vm3, 0.0, %v9275_v16  ;;  %v3378_v16 = vld [vmem:[%s11468_s4 + $0x1d8] sm:$0xff] }
 0x2d6   : > { %11487 = vst [vmem:[#allocation25_spill] sm:$0xff] %v9261_v60  ;;  %v3368_v50 = vld [vmem:[%s11468_s4 + $0x188] sm:$0xff]  ;;  %3896 = vmatpush.msra.mxu1 %v3364_v45 }
 0x2d7   : > { %v2236_v13 = vadd.f32 %v1852_v9, %v1277_v43  ;;  %3937 = vmatpush.msra.mxu2 %v3368_v50  ;;  %v3363_v43 = vld [vmem:[%s11468_s4 + $0x160] sm:$0xff]  ;;  %941 = vst.msk [vmem:[#allocation2 + $0x1a0] sm:$0xff] %vm33_vm0, %v877_v61 }
 0x2d8   : > { %3897 = vmatpush.msra.mxu1 %v3363_v43 }
 0x2d9   : > { %2300 = vst.msk [vmem:[#allocation4 + $0x100] sm:$0xff] %vm98_vm1, %v2236_v13  ;;  %6506 = vmatmul.msk.f32.vlgmr.msrb.gmra.mxu1 %vm98_vm1, %v8569_v30  ;;  %v302_v13 = vld [vmem:[%s11464_s0 + $0x1a8] sm:$0xff]  ;;  %6514 = vmatmul.msk.f32.vlgmr.msrb.gmra.mxu3 %vm98_vm1, %v8717_v63  ;;  %v9305_v30 = vld [vmem:[%s11466_s2] ss:$0 sm:$0xff]  ;;  %v1790_v63 = vmul.f32 0.2, %v6708_v12 }
 0x2da   : > { %3938 = vmatpush.msra.mxu2 %v3367_v4  ;;  %v494_v29 = vadd.f32 %v430_v19, %v302_v13  ;;  %v6709_v19 = vld [vmem:[#allocation4 + $0x118] sm:$0xff]  ;;  %4017 = vmatpush.msrb.mxu1 %v3378_v16  ;;  %v3384_v16 = vld [vmem:[%s11468_s4 + $0x208] sm:$0xff] }
 0x2db   : > { %v1854_v4 = vsub.f32 %v6708_v12, %v1790_v63  ;;  %6511 = vmatmul.msk.f32.gmra.mxu2 %vm98_vm1, %v8724_v62  ;;  %v368_v63 = vld [vmem:[#allocation2 + $0x1b8] sm:$0xff] }
 0x2dc   : > { %v9264_v9 = vpop.f32.mrf.mxu1  ;;  %v1279_v17 = vpop.f32.mrf.mxu0  ;;  %v558_v50 = vmul.f32 0.1, %v494_v29 }
 0x2dd   : > { %v1280_v5 = vadd.f32 %v9305_v30, %v1279_v17  ;;  %v9309_v25 = vpop.f32.mrf.mxu2  ;;  %6195 = vmatmul.msk.f32.gmra.mxu0 %vm33_vm0, %v6130_v1  ;;  %v9312_v45 = vpop.f32.mrf.mxu3  ;;  %v367_v17 = vld [vmem:[#allocation2 + $0x1b0] sm:$0xff]  ;;  %v6131_v1 = vsel %vm683_vm14, 1.0, %v11480_v57 }
 0x2de   : > { %v9317_v43 = vadd.f32 %v558_v50, %v366_v56  ;;  %v431_v52 = vsub.f32 0.0, %v367_v17  ;;  %v303_v56 = vld [vmem:[%s11464_s0 + $0x1b0] sm:$0xff] }
 0x2df   : > { %v2237_v51 = vadd.f32 %v1853_v18, %v1280_v5  ;;  %v1791_v5 = vmul.f32 0.2, %v6709_v19 }
 0x2e0   : > { %vm686_vm4 = vcmp.gt.f32.partialorder %v9317_v43, 1.0  ;;  %v495_v62 = vadd.f32 %v431_v52, %v303_v56  ;;  %v432_v52 = vsub.f32 0.0, %v368_v63 }
 0x2e1   : > { %2301 = vst.msk [vmem:[#allocation4 + $0x108] sm:$0xff] %vm98_vm1, %v2237_v51  ;;  %6507 = vmatmul.msk.f32.gmra.mxu1 %vm98_vm1, %v8597_v37  ;;  %6515 = vmatmul.msk.f32.gmra.mxu3 %vm98_vm1, %v8741_v59  ;;  %v878_v37 = vsel %vm686_vm4, 0.0, %v9317_v43  ;;  %v1855_v50 = vsub.f32 %v6709_v19, %v1791_v5  ;;  %v369_v5 = vld [vmem:[#allocation2 + $0x1c0] sm:$0xff] }
 0x2e2   : > { %942 = vst.msk [vmem:[#allocation2 + $0x1a8] sm:$0xff] %vm33_vm0, %v878_v37  ;;  %v559_v29 = vmul.f32 0.1, %v495_v62 }
 0x2e3   : > { %6512 = vmatmul.msk.f32.gmra.mxu2 %vm98_vm1, %v8754_v6 }
 0x2e4   : > { %v9315_v8 = vpop.f32.mrf.mxu1  ;;  %v1282_v18 = vpop.f32.mrf.mxu0  ;;  %v9345_v12 = vadd.f32 %v559_v29, %v367_v17 }
 0x2e5   : > { %v1283_v61 = vadd.f32 %v9305_v30, %v1282_v18  ;;  %v9337_v49 = vpop.f32.mrf.mxu2  ;;  %6196 = vmatmul.msk.f32.gmra.mxu0 %vm33_vm0, %v6131_v1  ;;  %v9340_v51 = vpop.f32.mrf.mxu3  ;;  %v6132_v18 = vsel %vm684_vm15, 1.0, %v11480_v57  ;;  %v304_v1 = vld [vmem:[%s11464_s0 + $0x1b8] sm:$0xff] }
 0x2e6   : > { %vm687_vm5 = vcmp.gt.f32.partialorder %v9345_v12, 1.0  ;;  %v496_v6 = vadd.f32 %v432_v52, %v304_v1  ;;  %v433_v52 = vsub.f32 0.0, %v369_v5  ;;  %v11490_v1 = vld [vmem:[#allocation19_spill] sm:$0xff] }
 0x2e7   : > { %v2238_v13 = vadd.f32 %v1854_v4, %v1283_v61  ;;  %v879_v17 = vsel %vm687_vm5, 0.0, %v9345_v12  ;;  %v6710_v61 = vld [vmem:[#allocation4 + $0x120] sm:$0xff]  ;;  %v6713_v12 = vld [vmem:[#allocation4 + $0x138] sm:$0xff] }
 0x2e8   : > { %943 = vst.msk [vmem:[#allocation2 + $0x1b0] sm:$0xff] %vm33_vm0, %v879_v17  ;;  %v1792_v37 = vmul.f32 0.2, %v6710_v61  ;;  %v560_v62 = vmul.f32 0.1, %v496_v6  ;;  %v305_v17 = vld [vmem:[%s11464_s0 + $0x1c0] sm:$0xff] }
 0x2e9   : > { %2302 = vst.msk [vmem:[#allocation4 + $0x110] sm:$0xff] %vm98_vm1, %v2238_v13  ;;  %6508 = vmatmul.msk.f32.gmra.mxu1 %vm98_vm1, %v8640_v44  ;;  %6516 = vmatmul.msk.f32.gmra.mxu3 %vm98_vm1, %v8773_v0  ;;  %v3386_v6 = vld [vmem:[%s11468_s4 + $0x218] sm:$0xff] }
 0x2ea   : > { %v9373_v0 = vadd.f32 %v560_v62, %v368_v63  ;;  %v1856_v29 = vsub.f32 %v6710_v61, %v1792_v37  ;;  %v6711_v61 = vld [vmem:[#allocation4 + $0x128] sm:$0xff]  ;;  %4099 = vmatpush.msrb.mxu3 %v3386_v6 }
 0x2eb   : > { %v1793_v37 = vmul.f32 0.2, %v6711_v61  ;;  %v370_v6 = vld [vmem:[#allocation2 + $0x1c8] sm:$0xff] }
 0x2ec   : > { %v9343_v59 = vpop.f32.mrf.mxu1  ;;  %v1285_v4 = vpop.f32.mrf.mxu0  ;;  %vm688_vm6 = vcmp.gt.f32.partialorder %v9373_v0, 1.0 }
 0x2ed   : > { %v1286_v44 = vadd.f32 %v9305_v30, %v1285_v4  ;;  %v9365_v56 = vpop.f32.mrf.mxu2  ;;  %6197 = vmatmul.msk.f32.gmra.mxu0 %vm33_vm0, %v6132_v18  ;;  %v9368_v13 = vpop.f32.mrf.mxu3  ;;  %v6133_v18 = vsel %vm685_vm3, 1.0, %v11480_v57  ;;  %v880_v63 = vsel %vm688_vm6, 0.0, %v9373_v0  ;;  %v6714_v0 = vld [vmem:[#allocation4 + $0x140] sm:$0xff] }
 0x2ee   : > { %944 = vst.msk [vmem:[#allocation2 + $0x1b8] sm:$0xff] %vm33_vm0, %v880_v63  ;;  %v3381_v63 = vld [vmem:[%s11468_s4 + $0x1f0] sm:$0xff] }
 0x2ef   : > { %v2239_v35 = vadd.f32 %v1855_v50, %v1286_v44  ;;  %v11489_v50 = vld [vmem:[#allocation18_spill] sm:$0xff]  ;;  %v3382_v44 = vld [vmem:[%s11468_s4 + $0x1f8] sm:$0xff] }
 0x2f0   : > { %6513 = vmatmul.msk.f32.gmra.mxu2 %vm98_vm1, %v11489_v50 }
 0x2f1   : > { %2303 = vst.msk [vmem:[#allocation4 + $0x118] sm:$0xff] %vm98_vm1, %v2239_v35  ;;  %6509 = vmatmul.msk.f32.gmra.mxu1 %vm98_vm1, %v8676_v27  ;;  %6517 = vmatmul.msk.f32.gmra.mxu3 %vm98_vm1, %v11490_v1  ;;  %v497_v35 = vadd.f32 %v433_v52, %v305_v17  ;;  %v3385_v52 = vld [vmem:[%s11468_s4 + $0x210] sm:$0xff] }
 0x2f2   : > { %4058 = vmatpush.msrb.mxu2 %v3382_v44  ;;  %4100 = vmatpush.msrb.mxu3 %v3385_v52  ;;  %v11494_v52 = vld [vmem:[#allocation15_spill] sm:$0xff] }
 0x2f3   : > { %v561_v17 = vmul.f32 0.1, %v497_v35  ;;  %v1857_v35 = vsub.f32 %v6711_v61, %v1793_v37  ;;  %v11495_v61 = vld [vmem:[#allocation21_spill] sm:$0xff] }
 0x2f4   : > { %v9371_v19 = vpop.f32.mrf.mxu1  ;;  %v1288_v4 = vpop.f32.mrf.mxu0  ;;  %4059 = vmatpush.msrb.mxu2 %v3381_v63  ;;  %4101 = vmatpush.msrb.mxu3 %v3384_v16  ;;  %v3383_v63 = vld [vmem:[%s11468_s4 + $0x200] sm:$0xff] }
 0x2f5   : > { %11488 = vst [vmem:[#allocation26_spill] sm:$0xff] %v9371_v19  ;;  %v1289_v27 = vadd.f32 %v9305_v30, %v1288_v4  ;;  %v9402_v62 = vpop.f32.mrf.mxu2  ;;  %6198 = vmatmul.msk.f32.gmra.mxu0 %vm33_vm0, %v6133_v18  ;;  %v3377_v4 = vld [vmem:[%s11468_s4 + $0x1d0] sm:$0xff]  ;;  %v9414_v1 = vpop.f32.mrf.mxu3  ;;  %v3376_v18 = vld [vmem:[%s11468_s4 + $0x1c8] sm:$0xff]  ;;  %v9428_v44 = vadd.f32 %v561_v17, %v369_v5  ;;  %v434_v5 = vsub.f32 0.0, %v370_v6  ;;  %v6134_v17 = vsel %vm686_vm4, 1.0, %v11480_v57 }
 0x2f6   : > { %11491 = vst [vmem:[#allocation18_spill] sm:$0xff] %v9402_v62  ;;  %4018 = vmatpush.msrb.mxu1 %v3377_v4  ;;  %v3379_v4 = vld [vmem:[%s11468_s4 + $0x1e0] sm:$0xff]  ;;  %4102 = vmatpush.msrb.mxu3 %v3383_v63  ;;  %v371_v63 = vld [vmem:[#allocation2 + $0x1d0] sm:$0xff] }
 0x2f7   : > { %v2240_v50 = vadd.f32 %v1856_v29, %v1289_v27  ;;  %11492 = vst [vmem:[#allocation19_spill] sm:$0xff] %v9414_v1  ;;  %v3380_v27 = vld [vmem:[%s11468_s4 + $0x1e8] sm:$0xff]  ;;  %vm689_vm7 = vcmp.gt.f32.partialorder %v9428_v44, 1.0 }
 0x2f8   : > { %4019 = vmatpush.msrb.mxu1 %v3376_v18  ;;  %4060 = vmatpush.msrb.mxu2 %v3380_v27  ;;  %v881_v18 = vsel %vm689_vm7, 0.0, %v9428_v44  ;;  %v306_v27 = vld [vmem:[%s11464_s0 + $0x1c8] sm:$0xff]  ;;  %v3394_v44 = vld [vmem:[%s11468_s4 + $0x258] sm:$0xff] }
 0x2f9   : > { %2304 = vst.msk [vmem:[#allocation4 + $0x120] sm:$0xff] %vm98_vm1, %v2240_v50  ;;  %v3375_v50 = vld [vmem:[%s11468_s4 + $0x1c0] sm:$0xff]  ;;  %6518 = vmatmul.msk.f32.vlgmr.msra.gmra.mxu1 %vm98_vm1, %v11494_v52  ;;  %6522 = vmatmul.msk.f32.vlgmr.msra.gmra.mxu2 %vm98_vm1, %v11495_v61  ;;  %v498_v52 = vadd.f32 %v434_v5, %v306_v27  ;;  %v435_v5 = vsub.f32 0.0, %v371_v63  ;;  %v1795_v27 = vmul.f32 0.2, %v6713_v12 }
 0x2fa   : > { %6526 = vmatmul.msk.f32.vlgmr.msra.gmra.mxu3 %vm98_vm1, %v8860_v28  ;;  %4020 = vmatpush.msrb.mxu1 %v3375_v50  ;;  %945 = vst.msk [vmem:[#allocation2 + $0x1c0] sm:$0xff] %vm33_vm0, %v881_v18  ;;  %v6135_v18 = vsel %vm687_vm5, 1.0, %v11480_v57 }
 0x2fb   : > { %4061 = vmatpush.msrb.mxu2 %v3379_v4  ;;  %v562_v19 = vmul.f32 0.1, %v498_v52 }
 0x2fc   : > { %v9417_v29 = vpop.f32.mrf.mxu1  ;;  %v1291_v37 = vpop.f32.mrf.mxu0 }
 0x2fd   : > { %11493 = vst [vmem:[#allocation27_spill] sm:$0xff] %v9417_v29  ;;  %v1292_v16 = vadd.f32 %v9305_v30, %v1291_v37  ;;  %v3448_v43 = vpop.f32.mrf.mxu2  ;;  %6199 = vmatmul.msk.f32.gmra.mxu0 %vm33_vm0, %v6134_v17  ;;  %v6712_v29 = vld [vmem:[#allocation4 + $0x130] sm:$0xff]  ;;  %v3489_v1 = vpop.f32.mrf.mxu3  ;;  %v9463_v37 = vadd.f32 %v562_v19, %v370_v6  ;;  %v307_v19 = vld [vmem:[%s11464_s0 + $0x1d0] sm:$0xff]  ;;  %4181 = vmatpush.msra.mxu2 %v3394_v44 }
 0x2fe   : > { %v1794_v62 = vmul.f32 0.2, %v6712_v29  ;;  %v4444_v60 = vsel %vm227_vm2, %v3448_v43, 0.0  ;;  %v4445_v28 = vsel %vm227_vm2, %v3489_v1, 0.0  ;;  %v11496_v17 = vld [vmem:[#allocation16_spill] sm:$0xff] }
 0x2ff   : > { %v2241_v61 = vadd.f32 %v1857_v35, %v1292_v16  ;;  %v9465_v4 = vadd.f32 %v4445_v28, %v4444_v60  ;;  %vm690_vm8 = vcmp.gt.f32.partialorder %v9463_v37, 1.0 }
 0x300   : > { %v1858_v35 = vsub.f32 %v6712_v29, %v1794_v62  ;;  %v882_v60 = vsel %vm690_vm8, 0.0, %v9463_v37 }
 0x301   : > { %2305 = vst.msk [vmem:[#allocation4 + $0x128] sm:$0xff] %vm98_vm1, %v2241_v61  ;;  %6519 = vmatmul.msk.f32.gmra.mxu1 %vm98_vm1, %v11496_v17  ;;  %6523 = vmatmul.msk.f32.gmra.mxu2 %vm98_vm1, %v8866_v55  ;;  %v499_v55 = vadd.f32 %v435_v5, %v307_v19  ;;  %v372_v5 = vld [vmem:[#allocation2 + $0x1d8] sm:$0xff]  ;;  %v6136_v19 = vsel %vm688_vm6, 1.0, %v11480_v57 }
 0x302   : > { %6527 = vmatmul.msk.f32.gmra.mxu3 %vm98_vm1, %v8886_v48  ;;  %946 = vst.msk [vmem:[#allocation2 + $0x1c8] sm:$0xff] %vm33_vm0, %v882_v60 }
 0x303   : > { %v563_v16 = vmul.f32 0.1, %v499_v55 }
 0x304   : > { %v9461_v50 = vpop.f32.mrf.mxu1  ;;  %v1294_v1 = vpop.f32.mrf.mxu0 }
 0x305   : > { %v1295_v62 = vadd.f32 %v9305_v30, %v1294_v1  ;;  %v3451_v29 = vpop.f32.mrf.mxu2  ;;  %6200 = vmatmul.msk.f32.gmra.mxu0 %vm33_vm0, %v6135_v18  ;;  %v3492_v43 = vpop.f32.mrf.mxu3  ;;  %v9491_v28 = vadd.f32 %v563_v16, %v371_v63  ;;  %v436_v1 = vsub.f32 0.0, %v372_v5  ;;  %v11497_v18 = vld [vmem:[#allocation17_spill] sm:$0xff] }
 0x306   : > { %v4493_v52 = vsel %vm227_vm2, %v3451_v29, 0.0  ;;  %v4494_v61 = vsel %vm227_vm2, %v3492_v43, 0.0 }
 0x307   : > { %v2242_v6 = vadd.f32 %v1858_v35, %v1295_v62  ;;  %v9493_v17 = vadd.f32 %v4494_v61, %v4493_v52  ;;  %v1859_v35 = vsub.f32 %v6713_v12, %v1795_v27  ;;  %vm691_vm9 = vcmp.gt.f32.partialorder %v9491_v28, 1.0  ;;  %v308_v62 = vld [vmem:[%s11464_s0 + $0x1d8] sm:$0xff] }
 0x308   : > { %v883_v63 = vsel %vm691_vm9, 0.0, %v9491_v28  ;;  %v1796_v12 = vmul.f32 0.2, %v6714_v0 }
 0x309   : > { %2306 = vst.msk [vmem:[#allocation4 + $0x130] sm:$0xff] %vm98_vm1, %v2242_v6  ;;  %6520 = vmatmul.msk.f32.gmra.mxu1 %vm98_vm1, %v11497_v18  ;;  %6524 = vmatmul.msk.f32.gmra.mxu2 %vm98_vm1, %v8895_v14  ;;  %v500_v14 = vadd.f32 %v436_v1, %v308_v62  ;;  %v373_v1 = vld [vmem:[#allocation2 + $0x1e0] sm:$0xff]  ;;  %v6137_v62 = vsel %vm689_vm7, 1.0, %v11480_v57 }
 0x30a   : > { %6528 = vmatmul.msk.f32.gmra.mxu3 %vm98_vm1, %v8915_v41  ;;  %947 = vst.msk [vmem:[#allocation2 + $0x1d0] sm:$0xff] %vm33_vm0, %v883_v63 }
 0x30b   : > { %v564_v27 = vmul.f32 0.1, %v500_v14 }
 0x30c   : > { %v9489_v48 = vpop.f32.mrf.mxu1  ;;  %v1297_v60 = vpop.f32.mrf.mxu0 }
 0x30d   : > { %v1298_v55 = vadd.f32 %v9305_v30, %v1297_v60  ;;  %v3454_v29 = vpop.f32.mrf.mxu2  ;;  %6201 = vmatmul.msk.f32.gmra.mxu0 %vm33_vm0, %v6136_v19  ;;  %v3495_v52 = vpop.f32.mrf.mxu3  ;;  %v9519_v61 = vadd.f32 %v564_v27, %v372_v5  ;;  %v437_v60 = vsub.f32 0.0, %v373_v1  ;;  %v11498_v19 = vld [vmem:[#allocation20_spill] sm:$0xff] }
 0x30e   : > { %v4542_v16 = vsel %vm227_vm2, %v3454_v29, 0.0  ;;  %v4543_v43 = vsel %vm227_vm2, %v3495_v52, 0.0  ;;  %v3398_v29 = vld [vmem:[%s11468_s4 + $0x278] sm:$0xff]  ;;  %v3389_v52 = vld [vmem:[%s11468_s4 + $0x230] sm:$0xff] }
 0x30f   : > { %v2243_v6 = vadd.f32 %v1859_v35, %v1298_v55  ;;  %v9521_v18 = vadd.f32 %v4543_v43, %v4542_v16  ;;  %v1860_v35 = vsub.f32 %v6714_v0, %v1796_v12  ;;  %vm692_vm10 = vcmp.gt.f32.partialorder %v9519_v61, 1.0  ;;  %v309_v55 = vld [vmem:[%s11464_s0 + $0x1e0] sm:$0xff]  ;;  %v6715_v0 = vld [vmem:[#allocation4 + $0x148] sm:$0xff]  ;;  %4222 = vmatpush.msra.mxu3 %v3398_v29 }
 0x310   : > { %v884_v5 = vsel %vm692_vm10, 0.0, %v9519_v61  ;;  %v1797_v12 = vmul.f32 0.2, %v6715_v0  ;;  %v3393_v43 = vld [vmem:[%s11468_s4 + $0x250] sm:$0xff] }
 0x311   : > { %2307 = vst.msk [vmem:[#allocation4 + $0x138] sm:$0xff] %vm98_vm1, %v2243_v6  ;;  %6521 = vmatmul.msk.f32.gmra.mxu1 %vm98_vm1, %v11498_v19  ;;  %6525 = vmatmul.msk.f32.gmra.mxu2 %vm98_vm1, %v8921_v11  ;;  %v3390_v11 = vld [vmem:[%s11468_s4 + $0x238] sm:$0xff]  ;;  %v501_v6 = vadd.f32 %v437_v60, %v309_v55  ;;  %v3397_v60 = vld [vmem:[%s11468_s4 + $0x270] sm:$0xff]  ;;  %v3388_v55 = vld [vmem:[%s11468_s4 + $0x228] sm:$0xff] }
 0x312   : > { %6529 = vmatmul.msk.f32.gmra.mxu3 %vm98_vm1, %v8953_v26  ;;  %948 = vst.msk [vmem:[#allocation2 + $0x1d8] sm:$0xff] %vm33_vm0, %v884_v5  ;;  %4140 = vmatpush.msra.mxu1 %v3390_v11  ;;  %v3411_v26 = vld [vmem:[%s11468_s4 + $0x2e0] sm:$0xff]  ;;  %v3396_v11 = vld [vmem:[%s11468_s4 + $0x268] sm:$0xff] }
 0x313   : > { %v565_v19 = vmul.f32 0.1, %v501_v6  ;;  %4389 = vmatpush.msrb.mxu0 %v3411_v26  ;;  %4182 = vmatpush.msra.mxu2 %v3393_v43  ;;  %v374_v6 = vld [vmem:[#allocation2 + $0x1e8] sm:$0xff]  ;;  %v1861_v26 = vsub.f32 %v6715_v0, %v1797_v12  ;;  %v6138_v12 = vsel %vm690_vm8, 1.0, %v11480_v57  ;;  %vm5701_vm8 = vcmask 1041408  }
 0x314   : > { %v9517_v41 = vpop.f32.mrf.mxu1  ;;  %v1300_v63 = vpop.f32.mrf.mxu0  ;;  %4141 = vmatpush.msra.mxu1 %v3389_v52  ;;  %4223 = vmatpush.msra.mxu3 %v3397_v60  ;;  %v310_v60 = vld [vmem:[%s11464_s0 + $0x1e8] sm:$0xff] }
 0x315   : > { %v1301_v14 = vadd.f32 %v9305_v30, %v1300_v63  ;;  %v3457_v27 = vpop.f32.mrf.mxu2  ;;  %6202 = vmatmul.msk.f32.gmra.mxu0 %vm33_vm0, %v6137_v62  ;;  %v3498_v5 = vpop.f32.mrf.mxu3  ;;  %v9575_v44 = vadd.f32 %v565_v19, %v373_v1  ;;  %v3395_v1 = vld [vmem:[%s11468_s4 + $0x260] sm:$0xff]  ;;  %v438_v19 = vsub.f32 0.0, %v374_v6 }
 0x316   : > { %v4591_v63 = vsel %vm227_vm2, %v3457_v27, 0.0  ;;  %4142 = vmatpush.msra.mxu1 %v3388_v55  ;;  %4224 = vmatpush.msra.mxu3 %v3396_v11  ;;  %v3387_v27 = vld [vmem:[%s11468_s4 + $0x220] sm:$0xff] }
 0x317   : > { %v2244_v16 = vadd.f32 %v1860_v35, %v1301_v14  ;;  %v4592_v35 = vsel %vm227_vm2, %v3498_v5, 0.0  ;;  %v3392_v14 = vld [vmem:[%s11468_s4 + $0x248] sm:$0xff]  ;;  %vm693_vm11 = vcmp.gt.f32.partialorder %v9575_v44, 1.0 }
 0x318   : > { %v9577_v29 = vadd.f32 %v4592_v35, %v4591_v63  ;;  %4183 = vmatpush.msra.mxu2 %v3392_v14  ;;  %v885_v43 = vsel %vm693_vm11, 0.0, %v9575_v44  ;;  %4143 = vmatpush.msra.mxu1 %v3387_v27  ;;  %v6716_v35 = vld [vmem:[#allocation4 + $0x150] sm:$0xff] }
 0x319   : > { %2308 = vst.msk [vmem:[#allocation4 + $0x140] sm:$0xff] %vm98_vm1, %v2244_v16  ;;  %v3391_v16 = vld [vmem:[%s11468_s4 + $0x240] sm:$0xff]  ;;  %6530 = vmatmul.msk.f32.vlgmr.msrb.gmra.mxu1 %vm98_vm1, %v8863_v21  ;;  %6534 = vmatmul.msk.f32.vlgmr.msrb.gmra.mxu2 %vm98_vm1, %v8968_v33  ;;  %v502_v33 = vadd.f32 %v438_v19, %v310_v60  ;;  %v6139_v19 = vsel %vm691_vm9, 1.0, %v11480_v57  ;;  %v3406_v44 = vld [vmem:[%s11468_s4 + $0x2b8] sm:$0xff]  ;;  %vm5703_vm9 = vcmask 1045508  }
 0x31a   : > { %6538 = vmatmul.msk.f32.vlgmr.msrb.gmra.mxu3 %vm98_vm1, %v9008_v54  ;;  %949 = vst.msk [vmem:[#allocation2 + $0x1e0] sm:$0xff] %vm33_vm0, %v885_v43  ;;  %4184 = vmatpush.msra.mxu2 %v3391_v16  ;;  %v11499_v43 = vld [vmem:[#allocation22_spill] sm:$0xff] }
 0x31b   : > { %4225 = vmatpush.msra.mxu3 %v3395_v1  ;;  %v566_v54 = vmul.f32 0.1, %v502_v33 }
 0x31c   : > { %v3530_v62 = vpop.f32.mrf.mxu1  ;;  %v1303_v0 = vpop.f32.mrf.mxu0  ;;  %4304 = vmatpush.msrb.mxu2 %v3406_v44  ;;  %v6720_v44 = vld [vmem:[#allocation4 + $0x170] sm:$0xff] }
 0x31d   : > { %v4447_v52 = vsel %vm227_vm2, %v3530_v62, 0.0  ;;  %v1304_v21 = vadd.f32 %v9305_v30, %v1303_v0  ;;  %v3571_v63 = vpop.f32.mrf.mxu2  ;;  %6203 = vmatmul.msk.f32.gmra.mxu0 %vm33_vm0, %v6138_v12  ;;  %v1798_v62 = vmul.f32 0.2, %v6716_v35  ;;  %v3612_v14 = vpop.f32.mrf.mxu3  ;;  %v9612_v1 = vadd.f32 %v566_v54, %v374_v6  ;;  %v375_v0 = vld [vmem:[#allocation2 + $0x1f0] sm:$0xff]  ;;  %v311_v6 = vld [vmem:[%s11464_s0 + $0x1f0] sm:$0xff] }
 0x31e   : > { %v4448_v37 = vadd.f32 %v4447_v52, %v9465_v4  ;;  %v4449_v55 = vsel %vm227_vm2, %v3571_v63, 0.0  ;;  %v4451_v16 = vsel %vm227_vm2, %v3612_v14, 0.0  ;;  %v439_v52 = vsub.f32 0.0, %v375_v0 }
 0x31f   : > { %v2245_v5 = vadd.f32 %v1861_v26, %v1304_v21  ;;  %v1862_v26 = vsub.f32 %v6716_v35, %v1798_v62  ;;  %vm694_vm12 = vcmp.gt.f32.partialorder %v9612_v1, 1.0 }
 0x320   : > { %v4450_v11 = vadd.f32 %v4449_v55, %v4448_v37  ;;  %v503_v33 = vadd.f32 %v439_v52, %v311_v6 }
 0x321   : > { %2309 = vst.msk [vmem:[#allocation4 + $0x148] sm:$0xff] %vm98_vm1, %v2245_v5  ;;  %6531 = vmatmul.msk.f32.gmra.mxu1 %vm98_vm1, %v11499_v43  ;;  %6535 = vmatmul.msk.f32.gmra.mxu2 %vm98_vm1, %v9014_v24  ;;  %v886_v24 = vsel %vm694_vm12, 0.0, %v9612_v1  ;;  %v6717_v5 = vld [vmem:[#allocation4 + $0x158] sm:$0xff]  ;;  %v11500_v43 = vld [vmem:[#allocation23_spill] sm:$0xff] }
 0x322   : > { %v9614_v4 = vadd.f32 %v4451_v16, %v4450_v11  ;;  %6539 = vmatmul.msk.f32.gmra.mxu3 %vm98_vm1, %v9036_v20  ;;  %950 = vst.msk [vmem:[#allocation2 + $0x1e8] sm:$0xff] %vm33_vm0, %v886_v24  ;;  %v1799_v35 = vmul.f32 0.2, %v6717_v5  ;;  %v567_v55 = vmul.f32 0.1, %v503_v33  ;;  %v376_v16 = vld [vmem:[#allocation2 + $0x1f8] sm:$0xff] }
 0x323   : > { %v440_v52 = vsub.f32 0.0, %v376_v16 }
 0x324   : > { %v3533_v27 = vpop.f32.mrf.mxu1  ;;  %v1306_v60 = vpop.f32.mrf.mxu0 }
 0x325   : > { %v4496_v12 = vsel %vm227_vm2, %v3533_v27, 0.0  ;;  %v1307_v21 = vadd.f32 %v9305_v30, %v1306_v60  ;;  %v3574_v37 = vpop.f32.mrf.mxu2  ;;  %6204 = vmatmul.msk.f32.gmra.mxu0 %vm33_vm0, %v6139_v19  ;;  %v3615_v20 = vpop.f32.mrf.mxu3  ;;  %v9640_v27 = vadd.f32 %v567_v55, %v375_v0  ;;  %v6140_v19 = vsel %vm692_vm10, 1.0, %v11480_v57  ;;  %v312_v0 = vld [vmem:[%s11464_s0 + $0x1f8] sm:$0xff]  ;;  %s6065_s0 = sshll.u32 (%p245_p0), %s6785_s30, 4  ;;  %s6066_s0 = int_to_ptr.vmem [resolvable:$true] %s6065_s0 }
 0x326   : > { %v4497_v28 = vadd.f32 %v4496_v12, %v9493_v17  ;;  %v4498_v62 = vsel %vm227_vm2, %v3574_v37, 0.0  ;;  %v4500_v11 = vsel %vm227_vm2, %v3615_v20, 0.0  ;;  %vm5705_vm10 = vcmask 1043456  }
 0x327   : > { %v2246_v63 = vadd.f32 %v1862_v26, %v1307_v21  ;;  %v1863_v26 = vsub.f32 %v6717_v5, %v1799_v35  ;;  %vm695_vm13 = vcmp.gt.f32.partialorder %v9640_v27, 1.0  ;;  %v504_v21 = vadd.f32 %v440_v52, %v312_v0  ;;  %v6719_v0 = vld [vmem:[#allocation4 + $0x168] sm:$0xff] }
 0x328   : > { %v4499_v14 = vadd.f32 %v4498_v62, %v4497_v28  ;;  %v6718_v28 = vld [vmem:[#allocation4 + $0x160] sm:$0xff]  ;;  %v6141_v52 = vsel %vm693_vm11, 1.0, %v11480_v57 }
 0x329   : > { %2310 = vst.msk [vmem:[#allocation4 + $0x150] sm:$0xff] %vm98_vm1, %v2246_v63  ;;  %6532 = vmatmul.msk.f32.gmra.mxu1 %vm98_vm1, %v11500_v43  ;;  %6536 = vmatmul.msk.f32.gmra.mxu2 %vm98_vm1, %v9042_v34  ;;  %v887_v34 = vsel %vm695_vm13, 0.0, %v9640_v27  ;;  %v1800_v37 = vmul.f32 0.2, %v6718_v28  ;;  %v568_v5 = vmul.f32 0.1, %v504_v21 }
 0x32a   : > { %v9642_v17 = vadd.f32 %v4500_v11, %v4499_v14  ;;  %6540 = vmatmul.msk.f32.gmra.mxu3 %vm98_vm1, %v9064_v31  ;;  %951 = vst.msk [vmem:[#allocation2 + $0x1f0] sm:$0xff] %vm33_vm0, %v887_v34  ;;  %v11501_v11 = vld [vmem:[#allocation24_spill] sm:$0xff]  ;;  %v3401_v34 = vld [vmem:[%s11468_s4 + $0x290] sm:$0xff]  ;;  %v4799_v27 = vld [vmem:[%s11470_s6 + $0x2c0] sm:$0xff] }
 0x32b   : > { %v9668_v55 = vadd.f32 %v568_v5, %v376_v16  ;;  %v3410_v43 = vld [vmem:[%s11468_s4 + $0x2d8] sm:$0xff]  ;;  %v3405_v21 = vld [vmem:[%s11468_s4 + $0x2b0] sm:$0xff] }
 0x32c   : > { %v3536_v54 = vpop.f32.mrf.mxu1  ;;  %v1309_v60 = vpop.f32.mrf.mxu0  ;;  %4345 = vmatpush.msrb.mxu3 %v3410_v43  ;;  %4305 = vmatpush.msrb.mxu2 %v3405_v21  ;;  %v1802_v43 = vmul.f32 0.2, %v6720_v44 }
 0x32d   : > { %v4545_v12 = vsel %vm227_vm2, %v3536_v54, 0.0  ;;  %v1310_v6 = vadd.f32 %v9305_v30, %v1309_v60  ;;  %v3577_v24 = vpop.f32.mrf.mxu2  ;;  %6205 = vmatmul.msk.f32.gmra.mxu0 %vm33_vm0, %v6140_v19  ;;  %v3618_v31 = vpop.f32.mrf.mxu3  ;;  %vm696_vm14 = vcmp.gt.f32.partialorder %v9668_v55, 1.0 }
 0x32e   : > { %v4546_v61 = vadd.f32 %v4545_v12, %v9521_v18  ;;  %v4547_v63 = vsel %vm227_vm2, %v3577_v24, 0.0  ;;  %v4549_v20 = vsel %vm227_vm2, %v3618_v31, 0.0  ;;  %v1864_v18 = vsub.f32 %v6718_v28, %v1800_v37  ;;  %v3400_v37 = vld [vmem:[%s11468_s4 + $0x288] sm:$0xff] }
 0x32f   : > { %v2247_v33 = vadd.f32 %v1863_v26, %v1310_v6  ;;  %v888_v12 = vsel %vm696_vm14, 0.0, %v9668_v55  ;;  %v1801_v6 = vmul.f32 0.2, %v6719_v0  ;;  %v3408_v31 = vld [vmem:[%s11468_s4 + $0x2c8] sm:$0xff] }
 0x330   : > { %v4548_v35 = vadd.f32 %v4547_v63, %v4546_v61  ;;  %952 = vst.msk [vmem:[#allocation2 + $0x1f8] sm:$0xff] %vm33_vm0, %v888_v12  ;;  %v3409_v61 = vld [vmem:[%s11468_s4 + $0x2d0] sm:$0xff]  ;;  %v3404_v63 = vld [vmem:[%s11468_s4 + $0x2a8] sm:$0xff]  ;;  %v4831_v12 = vld [vmem:[%s11470_s6 + $0x3c0] sm:$0xff] }
 0x331   : > { %2311 = vst.msk [vmem:[#allocation4 + $0x158] sm:$0xff] %vm98_vm1, %v2247_v33  ;;  %6533 = vmatmul.msk.f32.gmra.mxu1 %vm98_vm1, %v11501_v11  ;;  %6537 = vmatmul.msk.f32.gmra.mxu2 %vm98_vm1, %v9070_v58  ;;  %v3402_v58 = vld [vmem:[%s11468_s4 + $0x298] sm:$0xff] }
 0x332   : > { %v9670_v14 = vadd.f32 %v4549_v20, %v4548_v35  ;;  %6541 = vmatmul.msk.f32.gmra.mxu3 %vm98_vm1, %v9101_v40  ;;  %4263 = vmatpush.msrb.mxu1 %v3402_v58  ;;  %v3399_v20 = vld [vmem:[%s11468_s4 + $0x280] sm:$0xff] }
 0x333   : > { %4346 = vmatpush.msrb.mxu3 %v3409_v61  ;;  %4306 = vmatpush.msrb.mxu2 %v3404_v63  ;;  %v4815_v61 = vld [vmem:[%s11470_s6 + $0x340] sm:$0xff] }
 0x334   : > { %v3539_v62 = vpop.f32.mrf.mxu1  ;;  %v1312_v26 = vpop.f32.mrf.mxu0  ;;  %4264 = vmatpush.msrb.mxu1 %v3401_v34 }
 0x335   : > { %v4594_v54 = vsel %vm227_vm2, %v3539_v62, 0.0  ;;  %v1313_v16 = vadd.f32 %v9305_v30, %v1312_v26  ;;  %v3580_v60 = vpop.f32.mrf.mxu2  ;;  %6206 = vmatmul.msk.f32.gmra.mxu0 %vm33_vm0, %v6141_v52  ;;  %v3621_v24 = vpop.f32.mrf.mxu3  ;;  %v1865_v62 = vsub.f32 %v6719_v0, %v1801_v6  ;;  %4347 = vmatpush.msrb.mxu3 %v3408_v31  ;;  %v6142_v52 = vsel %vm694_vm12, 1.0, %v11480_v57  ;;  %v4827_v0 = vld [vmem:[%s11470_s6 + $0x3a0] sm:$0xff] }
 0x336   : > { %v4595_v40 = vadd.f32 %v4594_v54, %v9577_v29  ;;  %v4596_v29 = vsel %vm227_vm2, %v3580_v60, 0.0  ;;  %v4598_v5 = vsel %vm227_vm2, %v3621_v24, 0.0  ;;  %4265 = vmatpush.msrb.mxu1 %v3400_v37  ;;  %v3407_v54 = vld [vmem:[%s11468_s4 + $0x2c0] sm:$0xff]  ;;  %v6143_v31 = vsel %vm695_vm13, 1.0, %v11480_v57 }
 0x337   : > { %v2248_v19 = vadd.f32 %v1864_v18, %v1313_v16  ;;  %v3403_v18 = vld [vmem:[%s11468_s4 + $0x2a0] sm:$0xff]  ;;  %4348 = vmatpush.msrb.mxu3 %v3407_v54 }
 0x338   : > { %v4597_v33 = vadd.f32 %v4596_v29, %v4595_v40  ;;  %4266 = vmatpush.msrb.mxu1 %v3399_v20  ;;  %4307 = vmatpush.msrb.mxu2 %v3403_v18  ;;  %v4819_v29 = vld [vmem:[%s11470_s6 + $0x360] sm:$0xff] }
 0x339   : > { %2312 = vst.msk [vmem:[#allocation4 + $0x160] sm:$0xff] %vm98_vm1, %v2248_v19  ;;  %6542 = vmatmul.msk.f32.vlgmr.msra.gmra.mxu1 %vm98_vm1, %v9011_v7  ;;  %6546 = vmatmul.msk.f32.vlgmr.msra.gmra.mxu2 %vm98_vm1, %v9116_v2  ;;  %v4832_v7 = vld [vmem:[%s11470_s6 + $0x3c8] sm:$0xff]  ;;  %v4835_v2 = vld [vmem:[%s11470_s6 + $0x3e0] sm:$0xff] }
 0x33a   : > { %v9720_v35 = vadd.f32 %v4598_v5, %v4597_v33  ;;  %6550 = vmatmul.msk.f32.vlgmr.msra.gmra.mxu3 %vm98_vm1, %v9156_v32  ;;  %4851 = vmatpush.msra.mxu2 %v4831_v12  ;;  %v4823_v19 = vld [vmem:[%s11470_s6 + $0x380] sm:$0xff]  ;;  %v1866_v33 = vsub.f32 %v6720_v44, %v1802_v43 }
 0x33b   : > { %4871 = vmatpush.msra.mxu3 %v4832_v7  ;;  %4931 = vmatpush.msra.mxu0 %v4835_v2  ;;  %v4807_v5 = vld [vmem:[%s11470_s6 + $0x300] sm:$0xff] }
 0x33c   : > { %v3653_v28 = vpop.f32.mrf.mxu1  ;;  %v1315_v26 = vpop.f32.mrf.mxu0  ;;  %4852 = vmatpush.msra.mxu2 %v4823_v19  ;;  %v6721_v54 = vld [vmem:[#allocation4 + $0x178] sm:$0xff] }
 0x33d   : > { %v4453_v11 = vsel %vm227_vm2, %v3653_v28, 0.0  ;;  %v1316_v16 = vadd.f32 %v9305_v30, %v1315_v26  ;;  %v3694_v32 = vpop.f32.mrf.mxu2  ;;  %6207 = vmatmul.msk.f32.gmra.mxu0 %vm33_vm0, %v6142_v52  ;;  %v3735_v60 = vpop.f32.mrf.mxu3  ;;  %v4816_v28 = vld [vmem:[%s11470_s6 + $0x348] sm:$0xff]  ;;  %v4803_v52 = vld [vmem:[%s11470_s6 + $0x2e0] sm:$0xff] }
 0x33e   : > { %v4454_v1 = vadd.f32 %v4453_v11, %v9614_v4  ;;  %v4455_v40 = vsel %vm227_vm2, %v3694_v32, 0.0  ;;  %v4824_v4 = vld [vmem:[%s11470_s6 + $0x388] sm:$0xff]  ;;  %v4457_v21 = vsel %vm227_vm2, %v3735_v60, 0.0  ;;  %4932 = vmatpush.msra.mxu0 %v4827_v0  ;;  %4853 = vmatpush.msra.mxu2 %v4815_v61  ;;  %v1803_v11 = vmul.f32 0.2, %v6721_v54  ;;  %v4795_v32 = vld [vmem:[%s11470_s6 + $0x2a0] sm:$0xff] }
 0x33f   : > { %v2249_v58 = vadd.f32 %v1865_v62, %v1316_v16  ;;  %4872 = vmatpush.msra.mxu3 %v4824_v4  ;;  %v4800_v26 = vld [vmem:[%s11470_s6 + $0x2c8] sm:$0xff]  ;;  %v4783_v60 = vld [vmem:[%s11470_s6 + $0x240] sm:$0xff]  ;;  %v6144_v4 = vsel %vm696_vm14, 1.0, %v11480_v57  ;;  %v4649_v61 = vld [vmem:[#allocation5 + $0x8] sm:$0xff] }
 0x340   : > { %v4456_v6 = vadd.f32 %v4455_v40, %v4454_v1  ;;  %4933 = vmatpush.msra.mxu0 %v4819_v29  ;;  %4854 = vmatpush.msra.mxu2 %v4807_v5  ;;  %v1867_v43 = vsub.f32 %v6721_v54, %v1803_v11  ;;  %v4792_v40 = vld [vmem:[%s11470_s6 + $0x288] sm:$0xff]  ;;  %v4650_v29 = vld [vmem:[#allocation5 + $0x10] sm:$0xff] }
 0x341   : > { %2313 = vst.msk [vmem:[#allocation4 + $0x168] sm:$0xff] %vm98_vm1, %v2249_v58  ;;  %6543 = vmatmul.msk.f32.gmra.mxu1 %vm98_vm1, %v9039_v46  ;;  %6547 = vmatmul.msk.f32.gmra.mxu2 %vm98_vm1, %v9162_v39  ;;  %v4808_v46 = vld [vmem:[%s11470_s6 + $0x308] sm:$0xff]  ;;  %v4811_v39 = vld [vmem:[%s11470_s6 + $0x320] sm:$0xff]  ;;  %v4658_v5 = vsub.f32 0.0, %v4650_v29 }
 0x342   : > { %v9771_v24 = vadd.f32 %v4457_v21, %v4456_v6  ;;  %6551 = vmatmul.msk.f32.gmra.mxu3 %vm98_vm1, %v9184_v3  ;;  %4934 = vmatpush.msra.mxu0 %v4811_v39  ;;  %v4784_v6 = vld [vmem:[%s11470_s6 + $0x248] sm:$0xff]  ;;  %v4651_v39 = vld [vmem:[#allocation5 + $0x18] sm:$0xff] }
 0x343   : > { %4873 = vmatpush.msra.mxu3 %v4816_v28  ;;  %4855 = vmatpush.msra.mxu2 %v4799_v27  ;;  %v4652_v27 = vld [vmem:[#allocation6] sm:$0xff]  ;;  %v4659_v54 = vsub.f32 0.0, %v4651_v39 }
 0x344   : > { %v3656_v34 = vpop.f32.mrf.mxu1  ;;  %v1318_v63 = vpop.f32.mrf.mxu0  ;;  %4935 = vmatpush.msra.mxu0 %v4803_v52  ;;  %v4655_v52 = vld [vmem:[#allocation6 + $0x18] sm:$0xff] }
 0x345   : > { %v4502_v37 = vsel %vm227_vm2, %v3656_v34, 0.0  ;;  %v1319_v62 = vadd.f32 %v9305_v30, %v1318_v63  ;;  %v3697_v3 = vpop.f32.mrf.mxu2  ;;  %6208 = vmatmul.msk.f32.gmra.mxu0 %vm33_vm0, %v6143_v31  ;;  %v3738_v12 = vpop.f32.mrf.mxu3  ;;  %4874 = vmatpush.msra.mxu3 %v4808_v46  ;;  %v6722_v34 = vld [vmem:[#allocation4 + $0x180] sm:$0xff]  ;;  %v4779_v63 = vld [vmem:[%s11470_s6 + $0x220] sm:$0xff]  ;;  %v4657_v31 = vsub.f32 0.0, %v4649_v61 }
 0x346   : > { %v4503_v20 = vadd.f32 %v4502_v37, %v9642_v17  ;;  %v4504_v16 = vsel %vm227_vm2, %v3697_v3, 0.0  ;;  %v4791_v17 = vld [vmem:[%s11470_s6 + $0x280] sm:$0xff]  ;;  %v4506_v1 = vsel %vm227_vm2, %v3738_v12, 0.0  ;;  %4936 = vmatpush.msra.mxu0 %v4795_v32  ;;  %v1804_v21 = vmul.f32 0.2, %v6722_v34  ;;  %v4776_v37 = vld [vmem:[%s11470_s6 + $0x208] sm:$0xff] }
 0x347   : > { %v2250_v18 = vadd.f32 %v1866_v33, %v1319_v62  ;;  %4875 = vmatpush.msra.mxu3 %v4800_v26  ;;  %4856 = vmatpush.msra.mxu2 %v4791_v17  ;;  %v4654_v26 = vld [vmem:[#allocation6 + $0x10] sm:$0xff] }
 0x348   : > { %v4505_v7 = vadd.f32 %v4504_v16, %v4503_v20  ;;  %v4653_v20 = vld [vmem:[#allocation6 + $0x8] sm:$0xff]  ;;  %v1868_v12 = vsub.f32 %v6722_v34, %v1804_v21  ;;  %v4662_v17 = vadd.f32 %v4658_v5, %v4654_v26  ;;  %v3416_v21 = vld [vmem:[%s11468_s4 + $0x308] sm:$0xff]  ;;  %v4743_v5 = vld [vmem:[%s11470_s6 + $0x100] sm:$0xff] }
 0x349   : > { %2314 = vst.msk [vmem:[#allocation4 + $0x170] sm:$0xff] %vm98_vm1, %v2250_v18  ;;  %6544 = vmatmul.msk.f32.gmra.mxu1 %vm98_vm1, %v9067_v22  ;;  %6548 = vmatmul.msk.f32.gmra.mxu2 %vm98_vm1, %v9190_v23  ;;  %v4787_v22 = vld [vmem:[%s11470_s6 + $0x260] sm:$0xff]  ;;  %v4661_v16 = vadd.f32 %v4657_v31, %v4653_v20  ;;  %v4826_v31 = vld [vmem:[%s11470_s6 + $0x398] sm:$0xff] }
 0x34a   : > { %v9816_v58 = vadd.f32 %v4506_v1, %v4505_v7  ;;  %6552 = vmatmul.msk.f32.gmra.mxu3 %vm98_vm1, %v9212_v53  ;;  %v4775_v23 = vld [vmem:[%s11470_s6 + $0x200] sm:$0xff]  ;;  %4857 = vmatpush.msra.mxu2 %v4783_v60  ;;  %v4648_v53 = vld [vmem:[#allocation5] sm:$0xff] }
 0x34b   : > { %4876 = vmatpush.msra.mxu3 %v4792_v40  ;;  %4937 = vmatpush.msra.mxu0 %v4787_v22  ;;  %v4665_v32 = vmul.f32 0.1, %v4661_v16  ;;  %v4666_v40 = vmul.f32 0.1, %v4662_v17  ;;  %v4735_v16 = vld [vmem:[%s11470_s6 + $0xc0] sm:$0xff]  ;;  %v4836_v17 = vld [vmem:[%s11470_s6 + $0x3e8] sm:$0xff] }
 0x34c   : > { %v3659_v2 = vpop.f32.mrf.mxu1  ;;  %v1321_v19 = vpop.f32.mrf.mxu0  ;;  %4858 = vmatpush.msra.mxu2 %v4775_v23 }
 0x34d   : > { %v4551_v44 = vsel %vm227_vm2, %v3659_v2, 0.0  ;;  %v1322_v0 = vadd.f32 %v9305_v30, %v1321_v19  ;;  %v3700_v33 = vpop.f32.mrf.mxu2  ;;  %6209 = vmatmul.msk.f32.gmra.mxu0 %vm33_vm0, %v6144_v4  ;;  %v9853_v46 = vpop.f32.mrf.mxu3  ;;  %4877 = vmatpush.msra.mxu3 %v4784_v6  ;;  %v4663_v2 = vadd.f32 %v4659_v54, %v4655_v52  ;;  %v9885_v22 = vadd.f32 %v4665_v32, %v4649_v61  ;;  %v4834_v61 = vld [vmem:[%s11470_s6 + $0x3d8] sm:$0xff] }
 0x34e   : > { %v4552_v55 = vadd.f32 %v4551_v44, %v9670_v14  ;;  %v4656_v14 = vsub.f32 0.0, %v4648_v53  ;;  %v4553_v62 = vsel %vm227_vm2, %v3700_v33, 0.0  ;;  %4938 = vmatpush.msra.mxu0 %v4779_v63  ;;  %v4825_v33 = vld [vmem:[%s11470_s6 + $0x390] sm:$0xff]  ;;  %v4818_v52 = vld [vmem:[%s11470_s6 + $0x358] sm:$0xff] }
 0x34f   : > { %v2251_v28 = vadd.f32 %v1867_v43, %v1322_v0  ;;  %4878 = vmatpush.msra.mxu3 %v4776_v37  ;;  %v4767_v43 = vld [vmem:[%s11470_s6 + $0x1c0] sm:$0xff]  ;;  %v3417_v0 = vld [vmem:[%s11468_s4 + $0x310] sm:$0xff]  ;;  %vm4681_vm3 = vcmp.gt.f32.partialorder %v9885_v22, 0.7  ;;  %v4810_v32 = vld [vmem:[%s11470_s6 + $0x318] sm:$0xff] }
 0x350   : > { %v9855_v3 = vadd.f32 %v4553_v62, %v4552_v55  ;;  %v4660_v11 = vadd.f32 %v4656_v14, %v4652_v27  ;;  %v9889_v55 = vadd.f32 %v4666_v40, %v4650_v29  ;;  %v4693_v14 = vsel %vm4681_vm3, 0.0, %v9885_v22  ;;  %v3415_v27 = vld [vmem:[%s11468_s4 + $0x300] sm:$0xff]  ;;  %v4812_v22 = vld [vmem:[%s11470_s6 + $0x328] sm:$0xff] }
 0x351   : > { %2315 = vst.msk [vmem:[#allocation4 + $0x178] sm:$0xff] %vm98_vm1, %v2251_v28  ;;  %6545 = vmatmul.msk.f32.gmra.mxu1 %vm98_vm1, %v9113_v47  ;;  %6549 = vmatmul.msk.f32.gmra.mxu2 %vm98_vm1, %v9218_v38  ;;  %v3418_v47 = vld [vmem:[%s11468_s4 + $0x318] sm:$0xff]  ;;  %v4667_v38 = vmul.f32 0.1, %v4663_v2  ;;  %v4751_v28 = vld [vmem:[%s11470_s6 + $0x140] sm:$0xff]  ;;  %v4801_v2 = vld [vmem:[%s11470_s6 + $0x2d0] sm:$0xff] }
 0x352   : > { %v4664_v1 = vmul.f32 0.1, %v4660_v11  ;;  %6553 = vmatmul.msk.f32.gmra.mxu3 %vm98_vm1, %v9249_v10  ;;  %4427 = vmatpush.msra.mxu1 %v3418_v47  ;;  %v6723_v10 = vld [vmem:[#allocation4 + $0x188] sm:$0xff]  ;;  %vm4682_vm4 = vcmp.gt.f32.partialorder %v9889_v55, 0.7  ;;  %4697 = vst.msk [vmem:[#allocation5 + $0x8] sm:$0xff] %vm227_vm2, %v4693_v14 }
 0x353   : > { %v1805_v4 = vmul.f32 0.2, %v6723_v10  ;;  %v6725_v11 = vld [vmem:[#allocation4 + $0x190] sm:$0xff]  ;;  %v4793_v47 = vld [vmem:[%s11470_s6 + $0x290] sm:$0xff] }
 0x354   : > { %v9858_v18 = vpop.f32.mrf.mxu1  ;;  %v1324_v7 = vpop.f32.mrf.mxu0  ;;  %v9883_v6 = vadd.f32 %v4664_v1, %v4648_v53  ;;  %4428 = vmatpush.msra.mxu1 %v3417_v0  ;;  %v4833_v53 = vld [vmem:[%s11470_s6 + $0x3d0] sm:$0xff]  ;;  %v1806_v26 = vmul.f32 0.2, %v6725_v11  ;;  %v4794_v0 = vld [vmem:[%s11470_s6 + $0x298] sm:$0xff] }
 0x355   : > { %v1325_v44 = vadd.f32 %v9305_v30, %v1324_v7  ;;  %v9873_v60 = vpop.f32.mrf.mxu2  ;;  %6566 = vmatmul.msk.f32.vlgmr.msrb.gmra.mxu0 %vm98_vm1, %v9312_v45  ;;  %v4759_v30 = vld [vmem:[%s11470_s6 + $0x180] sm:$0xff]  ;;  %v9887_v23 = vpop.f32.mrf.mxu3  ;;  %v9891_v45 = vadd.f32 %v4667_v38, %v4651_v39  ;;  %v1869_v29 = vsub.f32 %v6723_v10, %v1805_v4  ;;  %v4817_v39 = vld [vmem:[%s11470_s6 + $0x350] sm:$0xff]  ;;  %v4802_v38 = vld [vmem:[%s11470_s6 + $0x2d8] sm:$0xff] }
 0x356   : > { %5013 = vmatpush.msrb.mxu0 %v4767_v43  ;;  %4429 = vmatpush.msra.mxu1 %v3416_v21  ;;  %vm4680_vm15 = vcmp.gt.f32.partialorder %v9883_v6, 0.7  ;;  %v1870_v1 = vsub.f32 %v6725_v11, %v1806_v26  ;;  %v6726_v4 = vld [vmem:[#allocation4 + $0x198] sm:$0xff]  ;;  %v4788_v26 = vld [vmem:[%s11470_s6 + $0x268] sm:$0xff] }
 0x357   : > { %v2252_v19 = vadd.f32 %v1868_v12, %v1325_v44  ;;  %vm4683_vm5 = vcmp.gt.f32.partialorder %v9891_v45, 0.7  ;;  %v4692_v63 = vsel %vm4680_vm15, 0.0, %v9883_v6  ;;  %v4727_v44 = vld [vmem:[%s11470_s6 + $0x80] sm:$0xff] }
 0x358   : > { %5014 = vmatpush.msrb.mxu0 %v4759_v30  ;;  %v4695_v62 = vsel %vm4683_vm5, 0.0, %v9891_v45  ;;  %4696 = vst.msk [vmem:[#allocation5] sm:$0xff] %vm227_vm2, %v4692_v63  ;;  %4430 = vmatpush.msra.mxu1 %v3415_v27  ;;  %v1807_v30 = vmul.f32 0.2, %v6726_v4  ;;  %v4711_v21 = vld [vmem:[%s11470_s6] sm:$0xff]  ;;  %v4786_v45 = vld [vmem:[%s11470_s6 + $0x258] sm:$0xff] }
 0x359   : > { %2316 = vst.msk [vmem:[#allocation4 + $0x180] sm:$0xff] %vm98_vm1, %v2252_v19  ;;  %6554 = vmatmul.msk.f32.vlgmr.msrb.gmra.mxu1 %vm98_vm1, %v9159_v36  ;;  %6558 = vmatmul.msk.f32.vlgmr.msrb.gmra.mxu2 %vm98_vm1, %v9264_v9  ;;  %v9930_v36 = vld [vmem:[%s11466_s2] ss:$0 sm:$0xff]  ;;  %v6727_v27 = vld [vmem:[#allocation4 + $0x1a0] sm:$0xff] }
 0x35a   : > { %6562 = vmatmul.msk.f32.vlgmr.msrb.gmra.mxu3 %vm98_vm1, %v9309_v25  ;;  %4891 = vmatpush.msrb.mxu2 %v4833_v53  ;;  %v4694_v25 = vsel %vm4682_vm4, 0.0, %v9889_v55  ;;  %4699 = vst.msk [vmem:[#allocation5 + $0x18] sm:$0xff] %vm227_vm2, %v4695_v62  ;;  %v1871_v55 = vsub.f32 %v6726_v4, %v1807_v30  ;;  %v4837_v30 = vld [vmem:[%s11470_s6 + $0x3f0] sm:$0xff] }
 0x35b   : > { %4911 = vmatpush.msrb.mxu3 %v4834_v61  ;;  %5015 = vmatpush.msrb.mxu0 %v4751_v28  ;;  %4698 = vst.msk [vmem:[#allocation5 + $0x10] sm:$0xff] %vm227_vm2, %v4694_v25  ;;  %v4777_v61 = vld [vmem:[%s11470_s6 + $0x210] sm:$0xff]  ;;  %v6577_v28 = vsel %vm4683_vm5, 1.0, %v11480_v57  ;;  %v4778_v25 = vld [vmem:[%s11470_s6 + $0x218] sm:$0xff] }
 0x35c   : > { %v9894_v34 = vpop.f32.mrf.mxu1  ;;  %v1327_v37 = vpop.f32.mrf.mxu0  ;;  %4892 = vmatpush.msrb.mxu2 %v4825_v33  ;;  %4951 = vmatpush.msrb.mxu1 %v4836_v17  ;;  %v6576_v33 = vsel %vm4682_vm4, 1.0, %v11480_v57 }
 0x35d   : > { %v1328_v9 = vadd.f32 %v9930_v36, %v1327_v37  ;;  %v9953_v20 = vpop.f32.mrf.mxu2  ;;  %6567 = vmatmul.msk.f32.gmra.mxu0 %vm98_vm1, %v9340_v51  ;;  %v9964_v12 = vpop.f32.mrf.mxu3  ;;  %4912 = vmatpush.msrb.mxu3 %v4826_v31  ;;  %v4809_v51 = vld [vmem:[%s11470_s6 + $0x310] sm:$0xff]  ;;  %v4820_v37 = vld [vmem:[%s11470_s6 + $0x368] sm:$0xff]  ;;  %v4709_v14 = vmax.f32 %v6576_v33, %v6577_v28  ;;  %v4830_v28 = vld [vmem:[%s11470_s6 + $0x3b8] sm:$0xff] }
 0x35e   : > { %5016 = vmatpush.msrb.mxu0 %v4743_v5  ;;  %4893 = vmatpush.msrb.mxu2 %v4817_v39  ;;  %v4804_v31 = vld [vmem:[%s11470_s6 + $0x2e8] sm:$0xff]  ;;  %v11502_v39 = vld [vmem:[#allocation19_spill] sm:$0xff] }
 0x35f   : > { %v2253_v54 = vadd.f32 %v1869_v29, %v1328_v9  ;;  %4913 = vmatpush.msrb.mxu3 %v4818_v52  ;;  %v6575_v29 = vsel %vm4681_vm3, 1.0, %v11480_v57 }
 0x360   : > { %5017 = vmatpush.msrb.mxu0 %v4735_v16  ;;  %4894 = vmatpush.msrb.mxu2 %v4809_v51  ;;  %v4780_v16 = vld [vmem:[%s11470_s6 + $0x228] sm:$0xff] }
 0x361   : > { %2317 = vst.msk [vmem:[#allocation4 + $0x188] sm:$0xff] %vm98_vm1, %v2253_v54  ;;  %6555 = vmatmul.msk.f32.gmra.mxu1 %vm98_vm1, %v9187_v15  ;;  %6559 = vmatmul.msk.f32.gmra.mxu2 %vm98_vm1, %v9315_v8  ;;  %v4719_v15 = vld [vmem:[%s11470_s6 + $0x40] sm:$0xff]  ;;  %v4785_v8 = vld [vmem:[%s11470_s6 + $0x250] sm:$0xff] }
 0x362   : > { %6563 = vmatmul.msk.f32.gmra.mxu3 %vm98_vm1, %v9337_v49  ;;  %4895 = vmatpush.msrb.mxu2 %v4801_v2  ;;  %v4828_v49 = vld [vmem:[%s11470_s6 + $0x3a8] sm:$0xff]  ;;  %v11503_v2 = vld [vmem:[#allocation25_spill] sm:$0xff] }
 0x363   : > { %4914 = vmatpush.msrb.mxu3 %v4810_v32  ;;  %5018 = vmatpush.msrb.mxu0 %v4727_v44  ;;  %v11505_v44 = vld [vmem:[#allocation18_spill] sm:$0xff] }
 0x364   : > { %v9974_v7 = vpop.f32.mrf.mxu1  ;;  %v1330_v43 = vpop.f32.mrf.mxu0  ;;  %4896 = vmatpush.msrb.mxu2 %v4793_v47  ;;  %4952 = vmatpush.msrb.mxu1 %v4828_v49  ;;  %v4771_v47 = vld [vmem:[%s11470_s6 + $0x1e0] sm:$0xff] }
 0x365   : > { %v1331_v40 = vadd.f32 %v9930_v36, %v1330_v43  ;;  %v10007_v19 = vpop.f32.mrf.mxu2  ;;  %6568 = vmatmul.msk.f32.gmra.mxu0 %vm98_vm1, %v9368_v13  ;;  %v10017_v53 = vpop.f32.mrf.mxu3  ;;  %4915 = vmatpush.msrb.mxu3 %v4802_v38  ;;  %v6574_v13 = vsel %vm4680_vm15, 1.0, %v11480_v57 }
 0x366   : > { %5019 = vmatpush.msrb.mxu0 %v4719_v15  ;;  %4897 = vmatpush.msrb.mxu2 %v4785_v8  ;;  %v4708_v63 = vmax.f32 %v6574_v13, %v6575_v29  ;;  %v4763_v15 = vld [vmem:[%s11470_s6 + $0x1a0] sm:$0xff]  ;;  %v6728_v8 = vld [vmem:[#allocation4 + $0x1a8] sm:$0xff] }
 0x367   : > { %v2254_v10 = vadd.f32 %v1870_v1, %v1331_v40  ;;  %4916 = vmatpush.msrb.mxu3 %v4794_v0  ;;  %4953 = vmatpush.msrb.mxu1 %v4820_v37  ;;  %v11504_v1 = vld [vmem:[#allocation26_spill] sm:$0xff]  ;;  %v1809_v49 = vmul.f32 0.2, %v6728_v8  ;;  %v4838_v0 = vld [vmem:[%s11470_s6 + $0x3f8] sm:$0xff]  ;;  %v11506_v13 = vld [vmem:[#allocation27_spill] sm:$0xff] }
 0x368   : > { %5020 = vmatpush.msrb.mxu0 %v4711_v21  ;;  %4898 = vmatpush.msrb.mxu2 %v4777_v61  ;;  %v10066_v54 = vmax.f32 %v4708_v63, %v4709_v14  ;;  %v4755_v21 = vld [vmem:[%s11470_s6 + $0x160] sm:$0xff]  ;;  %v4829_v29 = vld [vmem:[%s11470_s6 + $0x3b0] sm:$0xff]  ;;  %v4822_v14 = vld [vmem:[%s11470_s6 + $0x378] sm:$0xff] }
 0x369   : > { %2318 = vst.msk [vmem:[#allocation4 + $0x190] sm:$0xff] %vm98_vm1, %v2254_v10  ;;  %6556 = vmatmul.msk.f32.gmra.mxu1 %vm98_vm1, %v9215_v42  ;;  %6560 = vmatmul.msk.f32.gmra.mxu2 %vm98_vm1, %v9343_v59  ;;  %v4796_v42 = vld [vmem:[%s11470_s6 + $0x2a8] sm:$0xff]  ;;  %v1873_v61 = vsub.f32 %v6728_v8, %v1809_v49 }
 0x36a   : > { %6564 = vmatmul.msk.f32.gmra.mxu3 %vm98_vm1, %v9365_v56  ;;  %4954 = vmatpush.msrb.mxu1 %v4812_v22  ;;  %v1808_v56 = vmul.f32 0.2, %v6727_v27  ;;  %v10080_v17 = vrot.slane %v10066_v54, 2  ;;  %v4747_v22 = vld [vmem:[%s11470_s6 + $0x120] sm:$0xff] }
 0x36b   : > { %4917 = vmatpush.msrb.mxu3 %v4786_v45  ;;  %v4768_v45 = vld [vmem:[%s11470_s6 + $0x1c8] sm:$0xff] }
 0x36c   : > { %v10038_v6 = vpop.f32.mrf.mxu1  ;;  %v1333_v9 = vpop.f32.mrf.mxu0  ;;  %4955 = vmatpush.msrb.mxu1 %v4804_v31  ;;  %v1872_v51 = vsub.f32 %v6727_v27, %v1808_v56  ;;  %v4739_v31 = vld [vmem:[%s11470_s6 + $0xe0] sm:$0xff]  ;;  %v4814_v56 = vld [vmem:[%s11470_s6 + $0x338] sm:$0xff] }
 0x36d   : > { %v1334_v5 = vadd.f32 %v9930_v36, %v1333_v9  ;;  %v10062_v59 = vpop.f32.mrf.mxu2  ;;  %6569 = vmatmul.msk.f32.gmra.mxu0 %vm98_vm1, %v11502_v39  ;;  %v10068_v11 = vpop.f32.mrf.mxu3  ;;  %4918 = vmatpush.msrb.mxu3 %v4778_v25  ;;  %v4760_v39 = vld [vmem:[%s11470_s6 + $0x188] sm:$0xff] }
 0x36e   : > { %4956 = vmatpush.msrb.mxu1 %v4796_v42 }
 0x36f   : > { %v2255_v62 = vadd.f32 %v1871_v55, %v1334_v5  ;;  %v4821_v55 = vld [vmem:[%s11470_s6 + $0x370] sm:$0xff]  ;;  %v6729_v5 = vld [vmem:[#allocation4 + $0x1b0] sm:$0xff] }
 0x370   : > { %4957 = vmatpush.msrb.mxu1 %v4788_v26  ;;  %v1810_v25 = vmul.f32 0.2, %v6729_v5  ;;  %v4805_v26 = vld [vmem:[%s11470_s6 + $0x2f0] sm:$0xff] }
 0x371   : > { %2319 = vst.msk [vmem:[#allocation4 + $0x198] sm:$0xff] %vm98_vm1, %v2255_v62  ;;  %6557 = vmatmul.msk.f32.gmra.mxu1 %vm98_vm1, %v11503_v2  ;;  %6561 = vmatmul.msk.f32.gmra.mxu2 %vm98_vm1, %v11504_v1  ;;  %v4813_v62 = vld [vmem:[%s11470_s6 + $0x330] sm:$0xff]  ;;  %v4600_v1 = vsel %vm227_vm2, %v9858_v18, 0.0 }
 0x372   : > { %6565 = vmatmul.msk.f32.gmra.mxu3 %vm98_vm1, %v11505_v44  ;;  %4958 = vmatpush.msrb.mxu1 %v4780_v16  ;;  %v4731_v16 = vld [vmem:[%s11470_s6 + $0xa0] sm:$0xff]  ;;  %v1874_v2 = vsub.f32 %v6729_v5, %v1810_v25  ;;  %v4601_v8 = vadd.f32 %v4600_v1, %v9720_v35  ;;  %v4781_v35 = vld [vmem:[%s11470_s6 + $0x230] sm:$0xff]  ;;  %v4762_v25 = vld [vmem:[%s11470_s6 + $0x198] sm:$0xff] }
 0x373   : > { %v4723_v44 = vld [vmem:[%s11470_s6 + $0x60] sm:$0xff]  ;;  %v4745_v1 = vld [vmem:[%s11470_s6 + $0x110] sm:$0xff] }
 0x374   : > { %v10074_v52 = vpop.f32.mrf.mxu1  ;;  %v1336_v32 = vpop.f32.mrf.mxu0 }
 0x375   : > { %v1337_v43 = vadd.f32 %v9930_v36, %v1336_v32  ;;  %v10092_v40 = vpop.f32.mrf.mxu2  ;;  %6582 = vmatmul.msk.f32.vlgmr.msra.gmra.mxu0 %vm227_vm2, %v10080_v17  ;;  %v10099_v10 = vpop.f32.mrf.mxu3  ;;  %v4797_v32 = vld [vmem:[%s11470_s6 + $0x2b0] sm:$0xff]  ;;  %v4606_v5 = vsel %vm227_vm2, %v10074_v52, 0.0 }
 0x376   : > { %5093 = vmatpush.msra.mxu0 %v4771_v47  ;;  %v4798_v47 = vld [vmem:[%s11470_s6 + $0x2b8] sm:$0xff] }
 0x377   : > { %v2256_v38 = vadd.f32 %v1872_v51, %v1337_v43  ;;  %v4806_v51 = vld [vmem:[%s11470_s6 + $0x2f8] sm:$0xff] }
 0x378   : > { %5094 = vmatpush.msra.mxu0 %v4763_v15  ;;  %v4789_v15 = vld [vmem:[%s11470_s6 + $0x270] sm:$0xff] }
 0x379   : > { %2320 = vst.msk [vmem:[#allocation4 + $0x1a0] sm:$0xff] %vm98_vm1, %v2256_v38  ;;  %6570 = vmatmul.msk.f32.vlgmr.msra.gmra.mxu1 %vm98_vm1, %v11506_v13  ;;  %6578 = vmatmul.msk.f32.vlgmr.msra.gmra.mxu2 %vm227_vm2, %v10080_v17  ;;  %v4602_v38 = vsel %vm227_vm2, %v9873_v60, 0.0  ;;  %v4715_v60 = vld [vmem:[%s11470_s6 + $0x20] sm:$0xff] }
 0x37a   : > { %6579 = vmatmul.msk.f32.vlgmr.msra.gmra.mxu3 %vm227_vm2, %v10080_v17  ;;  %4971 = vmatpush.msra.mxu2 %v4837_v30  ;;  %v4790_v30 = vld [vmem:[%s11470_s6 + $0x278] sm:$0xff] }
 0x37b   : > { %4991 = vmatpush.msra.mxu3 %v4838_v0  ;;  %5095 = vmatpush.msra.mxu0 %v4755_v21  ;;  %v6730_v21 = vld [vmem:[#allocation4 + $0x1b8] sm:$0xff] }
 0x37c   : > { %v10102_v4 = vpop.f32.mrf.mxu1  ;;  %v1339_v33 = vpop.f32.mrf.mxu0  ;;  %4972 = vmatpush.msra.mxu2 %v4829_v29  ;;  %5033 = vmatpush.msra.mxu1 %v4768_v45  ;;  %v5221_v29 = vld [vmem:[%s11470_s6 + $0x5c0] sm:$0xff]  ;;  %v4761_v45 = vld [vmem:[%s11470_s6 + $0x190] sm:$0xff] }
 0x37d   : > { %v1340_v37 = vadd.f32 %v9930_v36, %v1339_v33  ;;  %v10135_v63 = vpop.f32.mrf.mxu2  ;;  %6586 = vmatmul.msk.f32.vlgmr.msrb.gmra.mxu0 %vm227_vm2, %v10066_v54  ;;  %4992 = vmatpush.msra.mxu3 %v4830_v28  ;;  %v10145_v42 = vpop.f32.mrf.mxu3  ;;  %v4603_v33 = vadd.f32 %v4602_v38, %v4601_v8  ;;  %v4510_v8 = vsel %vm227_vm2, %v10007_v19, 0.0  ;;  %v4610_v19 = vsel %vm227_vm2, %v10099_v10, 0.0  ;;  %v5181_v10 = vld [vmem:[%s11470_s6 + $0x480] sm:$0xff] }
 0x37e   : > { %5096 = vmatpush.msra.mxu0 %v4747_v22  ;;  %4973 = vmatpush.msra.mxu2 %v4821_v55  ;;  %v4769_v22 = vld [vmem:[%s11470_s6 + $0x1d0] sm:$0xff]  ;;  %v4770_v55 = vld [vmem:[%s11470_s6 + $0x1d8] sm:$0xff] }
 0x37f   : > { %v2257_v9 = vadd.f32 %v1873_v61, %v1340_v37  ;;  %4993 = vmatpush.msra.mxu3 %v4822_v14  ;;  %5034 = vmatpush.msra.mxu1 %v4760_v39  ;;  %v1811_v61 = vmul.f32 0.2, %v6730_v21  ;;  %v4782_v37 = vld [vmem:[%s11470_s6 + $0x238] sm:$0xff]  ;;  %v5213_v14 = vld [vmem:[%s11470_s6 + $0x580] sm:$0xff] }
 0x380   : > { %5097 = vmatpush.msra.mxu0 %v4739_v31  ;;  %4974 = vmatpush.msra.mxu2 %v4813_v62  ;;  %v4604_v31 = vsel %vm227_vm2, %v9887_v23, 0.0  ;;  %v5205_v23 = vld [vmem:[%s11470_s6 + $0x540] sm:$0xff] }
 0x381   : > { %2321 = vst.msk [vmem:[#allocation4 + $0x1a8] sm:$0xff] %vm98_vm1, %v2257_v9  ;;  %4994 = vmatpush.msra.mxu3 %v4814_v56  ;;  %6571 = vmatmul.msk.f32.gmra.mxu1 %vm98_vm1, %v9461_v50  ;;  %v4752_v50 = vld [vmem:[%s11470_s6 + $0x148] sm:$0xff]  ;;  %v1875_v9 = vsub.f32 %v6730_v21, %v1811_v61  ;;  %v4605_v39 = vadd.f32 %v4604_v31, %v4603_v33  ;;  %v4753_v56 = vld [vmem:[%s11470_s6 + $0x150] sm:$0xff] }
 0x382   : > { %4975 = vmatpush.msra.mxu2 %v4805_v26  ;;  %5098 = vmatpush.msra.mxu0 %v4731_v16  ;;  %v4608_v26 = vsel %vm227_vm2, %v10092_v40, 0.0  ;;  %v4754_v16 = vld [vmem:[%s11470_s6 + $0x158] sm:$0xff]  ;;  %v6731_v40 = vld [vmem:[#allocation4 + $0x1c0] sm:$0xff]  ;;  %v4729_v21 = vld [vmem:[%s11470_s6 + $0x90] sm:$0xff] }
 0x383   : > { %4995 = vmatpush.msra.mxu3 %v4806_v51  ;;  %6580 = vmatmul.msk.f32.vlgmr.msrb.gmra.mxu2 %vm227_vm2, %v10080_v17  ;;  %v4728_v31 = vld [vmem:[%s11470_s6 + $0x88] sm:$0xff] }
 0x384   : > { %v10154_v27 = vpop.f32.mrf.mxu1  ;;  %v1342_v43 = vpop.f32.mrf.mxu0  ;;  %4976 = vmatpush.msra.mxu2 %v4797_v32  ;;  %5099 = vmatpush.msra.mxu0 %v4723_v44  ;;  %v5197_v32 = vld [vmem:[%s11470_s6 + $0x500] sm:$0xff]  ;;  %v1812_v44 = vmul.f32 0.2, %v6731_v40 }
 0x385   : > { %v1343_v18 = vadd.f32 %v9930_v36, %v1342_v43  ;;  %v10193_v49 = vpop.f32.mrf.mxu2  ;;  %4996 = vmatpush.msra.mxu3 %v4798_v47  ;;  %v10201_v13 = vpop.f32.mrf.mxu3  ;;  %5035 = vmatpush.msra.mxu1 %v4752_v50  ;;  %v4508_v43 = vsel %vm227_vm2, %v9974_v7, 0.0  ;;  %v4744_v50 = vld [vmem:[%s11470_s6 + $0x108] sm:$0xff]  ;;  %v4737_v7 = vld [vmem:[%s11470_s6 + $0xd0] sm:$0xff] }
 0x386   : > { %4977 = vmatpush.msra.mxu2 %v4789_v15  ;;  %6581 = vmatmul.msk.f32.vlgmr.msrb.gmra.mxu3 %vm227_vm2, %v10080_v17  ;;  %v1876_v61 = vsub.f32 %v6731_v40, %v1812_v44  ;;  %v4559_v44 = vsel %vm227_vm2, %v10062_v59, 0.0  ;;  %v4774_v59 = vld [vmem:[%s11470_s6 + $0x1f8] sm:$0xff] }
 0x387   : > { %v2258_v0 = vadd.f32 %v1874_v2, %v1343_v18  ;;  %4997 = vmatpush.msra.mxu3 %v4790_v30  ;;  %5100 = vmatpush.msra.mxu0 %v4715_v60  ;;  %v4746_v18 = vld [vmem:[%s11470_s6 + $0x118] sm:$0xff]  ;;  %v4509_v60 = vadd.f32 %v4508_v43, %v9816_v58  ;;  %v4736_v58 = vld [vmem:[%s11470_s6 + $0xc8] sm:$0xff]  ;;  %v4516_v43 = vsel %vm227_vm2, %v10193_v49, 0.0 }
 0x388   : > { %4978 = vmatpush.msra.mxu2 %v4781_v35  ;;  %6590 = vmatmul.msk.f32.vlgmr.msra.gmra.mxu0 %vm227_vm2, %v10066_v54  ;;  %v4738_v30 = vld [vmem:[%s11470_s6 + $0xd8] sm:$0xff] }
 0x389   : > { %2322 = vst.msk [vmem:[#allocation4 + $0x1b0] sm:$0xff] %vm98_vm1, %v2258_v0  ;;  %5240 = vmatpush.msrb.mxu0 %v5221_v29  ;;  %4998 = vmatpush.msra.mxu3 %v4782_v37  ;;  %v5189_v0 = vld [vmem:[%s11470_s6 + $0x4c0] sm:$0xff]  ;;  %v4730_v29 = vld [vmem:[%s11470_s6 + $0x98] sm:$0xff]  ;;  %v4511_v37 = vadd.f32 %v4510_v8, %v4509_v60 }
 0x38a   : > { %5053 = vmatpush.msrb.mxu2 %v4769_v22  ;;  %6572 = vmatmul.msk.f32.gmra.mxu1 %vm98_vm1, %v9489_v48  ;;  %v4607_v48 = vadd.f32 %v4606_v5, %v4605_v39  ;;  %v4722_v5 = vld [vmem:[%s11470_s6 + $0x58] sm:$0xff]  ;;  %v4713_v39 = vld [vmem:[%s11470_s6 + $0x10] sm:$0xff]  ;;  %v5225_v8 = vld [vmem:[%s11470_s6 + $0x5e0] sm:$0xff] }
 0x38b   : > { %5073 = vmatpush.msrb.mxu3 %v4770_v55  ;;  %5241 = vmatpush.msrb.mxu0 %v5213_v14  ;;  %v4721_v55 = vld [vmem:[%s11470_s6 + $0x50] sm:$0xff]  ;;  %v4555_v14 = vsel %vm227_vm2, %v9853_v46, 0.0 }
 0x38c   : > { %v10210_v28 = vpop.f32.mrf.mxu1  ;;  %v1345_v62 = vpop.f32.mrf.mxu0  ;;  %5054 = vmatpush.msrb.mxu2 %v4761_v45  ;;  %v4609_v38 = vadd.f32 %v4608_v26, %v4607_v48  ;;  %5036 = vmatpush.msra.mxu1 %v4744_v50  ;;  %v4720_v48 = vld [vmem:[%s11470_s6 + $0x48] sm:$0xff]  ;;  %v4773_v50 = vld [vmem:[%s11470_s6 + $0x1f0] sm:$0xff] }
 0x38d   : > { %v1346_v52 = vadd.f32 %v9930_v36, %v1345_v62  ;;  %5074 = vmatpush.msrb.mxu3 %v4762_v25  ;;  %v10250_v51 = vpop.f32.mrf.mxu2  ;;  %6584 = vmatmul.msk.f32.vlgmr.msra.gmra.mxu2 %vm227_vm2, %v10080_v17  ;;  %v10262_v47 = vpop.f32.mrf.mxu3  ;;  %v4556_v25 = vadd.f32 %v4555_v14, %v9855_v3  ;;  %v4514_v3 = vsel %vm227_vm2, %v10154_v27, 0.0  ;;  %v5165_v27 = vld [vmem:[%s11470_s6 + $0x400] sm:$0xff]  ;;  %v4518_v14 = vsel %vm227_vm2, %v10201_v13, 0.0 }
 0x38e   : > { %5055 = vmatpush.msrb.mxu2 %v4753_v56  ;;  %5242 = vmatpush.msrb.mxu0 %v5205_v23  ;;  %v4611_v22 = vadd.f32 %v4610_v19, %v4609_v38  ;;  %v6732_v56 = vld [vmem:[#allocation4 + $0x1c8] sm:$0xff]  ;;  %v10351_v38 = vrot.slane %v10066_v54, 4  ;;  %v5209_v13 = vld [vmem:[%s11470_s6 + $0x560] sm:$0xff] }
 0x38f   : > { %v2259_v2 = vadd.f32 %v1875_v9, %v1346_v52  ;;  %5075 = vmatpush.msrb.mxu3 %v4754_v16  ;;  %v4557_v9 = vsel %vm227_vm2, %v10038_v6, 0.0  ;;  %5037 = vmatpush.msra.mxu1 %v4736_v58  ;;  %v5173_v6 = vld [vmem:[%s11470_s6 + $0x440] sm:$0xff]  ;;  %v1813_v23 = vmul.f32 0.2, %v6732_v56  ;;  %v4512_v52 = vsel %vm227_vm2, %v10017_v53, 0.0  ;;  %v4766_v58 = vld [vmem:[%s11470_s6 + $0x1b8] sm:$0xff] }
 0x390   : > { %5056 = vmatpush.msrb.mxu2 %v4745_v1  ;;  %5243 = vmatpush.msrb.mxu0 %v5197_v32  ;;  %v4513_v1 = vadd.f32 %v4512_v52, %v4511_v37  ;;  %v4558_v32 = vadd.f32 %v4557_v9, %v4556_v25  ;;  %v4563_v9 = vsel %vm227_vm2, %v10210_v28, 0.0  ;;  %v4741_v52 = vld [vmem:[%s11470_s6 + $0xf0] sm:$0xff] }
 0x391   : > { %2323 = vst.msk [vmem:[#allocation4 + $0x1b8] sm:$0xff] %vm98_vm1, %v2259_v2  ;;  %5076 = vmatpush.msrb.mxu3 %v4746_v18  ;;  %v4714_v2 = vld [vmem:[%s11470_s6 + $0x18] sm:$0xff]  ;;  %5038 = vmatpush.msra.mxu1 %v4728_v31  ;;  %v1877_v49 = vsub.f32 %v6732_v56, %v1813_v23  ;;  %v4764_v31 = vld [vmem:[%s11470_s6 + $0x1a8] sm:$0xff]  ;;  %v5201_v23 = vld [vmem:[%s11470_s6 + $0x520] sm:$0xff] }
 0x392   : > { %6585 = vmatmul.msk.f32.vlgmr.msra.gmra.mxu3 %vm227_vm2, %v10080_v17  ;;  %5057 = vmatpush.msrb.mxu2 %v4737_v7  ;;  %v4560_v60 = vadd.f32 %v4559_v44, %v4558_v32  ;;  %v4734_v44 = vld [vmem:[%s11470_s6 + $0xb8] sm:$0xff] }
 0x393   : > { %5077 = vmatpush.msrb.mxu3 %v4738_v30  ;;  %5244 = vmatpush.msrb.mxu0 %v5189_v0  ;;  %v4712_v30 = vld [vmem:[%s11470_s6 + $0x8] sm:$0xff] }
 0x394   : > { %v3908_v15 = vpop.f32.mrf.mxu1  ;;  %v1348_v33 = vpop.f32.mrf.mxu0  ;;  %6573 = vmatmul.msk.f32.gmra.mxu1 %vm98_vm1, %v9517_v41  ;;  %5058 = vmatpush.msrb.mxu2 %v4729_v21 }
 0x395   : > { %v4612_v35 = vsel %vm227_vm2, %v3908_v15, 0.0  ;;  %v1349_v45 = vadd.f32 %v9930_v36, %v1348_v33  ;;  %5078 = vmatpush.msrb.mxu3 %v4730_v29  ;;  %v3949_v46 = vpop.f32.mrf.mxu2  ;;  %5245 = vmatpush.msrb.mxu0 %v5181_v10  ;;  %v3990_v16 = vpop.f32.mrf.mxu3  ;;  %v4515_v15 = vadd.f32 %v4514_v3, %v4513_v1  ;;  %v5217_v29 = vld [vmem:[%s11470_s6 + $0x5a0] sm:$0xff]  ;;  %v4757_v33 = vld [vmem:[%s11470_s6 + $0x170] sm:$0xff]  ;;  %v6733_v10 = vld [vmem:[#allocation4 + $0x1d0] sm:$0xff] }
 0x396   : > { %v4613_v62 = vadd.f32 %v4612_v35, %v4611_v22  ;;  %v4614_v26 = vsel %vm227_vm2, %v3949_v46, 0.0  ;;  %5059 = vmatpush.msrb.mxu2 %v4721_v55  ;;  %v4616_v18 = vsel %vm227_vm2, %v3990_v16, 0.0  ;;  %5039 = vmatpush.msra.mxu1 %v4720_v48  ;;  %v4772_v35 = vld [vmem:[%s11470_s6 + $0x1e8] sm:$0xff]  ;;  %v1814_v55 = vmul.f32 0.2, %v6733_v10  ;;  %v4742_v16 = vld [vmem:[%s11470_s6 + $0xf8] sm:$0xff] }
 0x397   : > { %v2260_v41 = vadd.f32 %v1876_v61, %v1349_v45  ;;  %5079 = vmatpush.msrb.mxu3 %v4722_v5  ;;  %5246 = vmatpush.msrb.mxu0 %v5173_v6  ;;  %v4517_v21 = vadd.f32 %v4516_v43, %v4515_v15  ;;  %v4765_v61 = vld [vmem:[%s11470_s6 + $0x1b0] sm:$0xff]  ;;  %v4561_v45 = vsel %vm227_vm2, %v10068_v11, 0.0  ;;  %v4758_v5 = vld [vmem:[%s11470_s6 + $0x178] sm:$0xff]  ;;  %v4565_v46 = vsel %vm227_vm2, %v10250_v51, 0.0  ;;  %v4756_v6 = vld [vmem:[%s11470_s6 + $0x168] sm:$0xff] }
 0x398   : > { %v4615_v40 = vadd.f32 %v4614_v26, %v4613_v62  ;;  %5060 = vmatpush.msrb.mxu2 %v4713_v39  ;;  %5040 = vmatpush.msra.mxu1 %v4712_v30  ;;  %v4562_v11 = vadd.f32 %v4561_v45, %v4560_v60  ;;  %v1878_v3 = vsub.f32 %v6733_v10, %v1814_v55  ;;  %v4748_v26 = vld [vmem:[%s11470_s6 + $0x128] sm:$0xff]  ;;  %v5193_v1 = vld [vmem:[%s11470_s6 + $0x4e0] sm:$0xff]  ;;  %v4725_v30 = vld [vmem:[%s11470_s6 + $0x70] sm:$0xff] }
 0x399   : > { %2324 = vst.msk [vmem:[#allocation4 + $0x1c0] sm:$0xff] %vm98_vm1, %v2260_v41  ;;  %5080 = vmatpush.msrb.mxu3 %v4714_v2  ;;  %5247 = vmatpush.msrb.mxu0 %v5165_v27  ;;  %v4519_v62 = vadd.f32 %v4518_v14, %v4517_v21  ;;  %v4750_v41 = vld [vmem:[%s11470_s6 + $0x138] sm:$0xff]  ;;  %v4733_v27 = vld [vmem:[%s11470_s6 + $0xb0] sm:$0xff]  ;;  %v5185_v43 = vld [vmem:[%s11470_s6 + $0x4a0] sm:$0xff] }
 0x39a   : > { %v10353_v7 = vadd.f32 %v4616_v18, %v4615_v40  ;;  %6588 = vmatmul.msk.f32.vlgmr.msrb.gmra.mxu2 %vm227_vm2, %v10066_v54  ;;  %6589 = vmatmul.msk.f32.vlgmr.msrb.gmra.mxu3 %vm227_vm2, %v10066_v54  ;;  %v4564_v56 = vadd.f32 %v4563_v9, %v4562_v11  ;;  %v4740_v40 = vld [vmem:[%s11470_s6 + $0xe8] sm:$0xff]  ;;  %v6734_v15 = vld [vmem:[#allocation4 + $0x1d8] sm:$0xff]  ;;  %v5223_v45 = vld [vmem:[%s11470_s6 + $0x5d0] sm:$0xff] }
 0x39b   : > { %5133 = vmatpush.msra.mxu2 %v4773_v50  ;;  %5153 = vmatpush.msra.mxu3 %v4774_v59  ;;  %v1815_v59 = vmul.f32 0.2, %v6734_v15  ;;  %v5177_v21 = vld [vmem:[%s11470_s6 + $0x460] sm:$0xff]  ;;  %v5224_v14 = vld [vmem:[%s11470_s6 + $0x5d8] sm:$0xff]  ;;  %v5222_v11 = vld [vmem:[%s11470_s6 + $0x5c8] sm:$0xff] }
 0x39c   : > { %v10337_v53 = vpop.f32.mrf.mxu1  ;;  %v1351_v0 = vpop.f32.mrf.mxu0  ;;  %6594 = vmatmul.msk.f32.vlgmr.msrb.gmra.mxu0 %vm227_vm2, %v10351_v38  ;;  %6583 = vmatmul.msk.f32.vlgmr.msrb.gmra.mxu1 %vm227_vm2, %v10080_v17  ;;  %v4749_v17 = vld [vmem:[%s11470_s6 + $0x130] sm:$0xff]  ;;  %v4566_v2 = vadd.f32 %v4565_v46, %v4564_v56 }
 0x39d   : > { %v1352_v19 = vadd.f32 %v9930_v36, %v1351_v0  ;;  %5320 = vmatpush.msra.mxu0 %v5225_v8  ;;  %v10386_v37 = vpop.f32.mrf.mxu2  ;;  %5134 = vmatpush.msra.mxu2 %v4765_v61  ;;  %v10402_v25 = vpop.f32.mrf.mxu3  ;;  %v4732_v8 = vld [vmem:[%s11470_s6 + $0xa8] sm:$0xff]  ;;  %v1879_v10 = vsub.f32 %v6734_v15, %v1815_v59  ;;  %v5215_v46 = vld [vmem:[%s11470_s6 + $0x590] sm:$0xff]  ;;  %v5192_v15 = vld [vmem:[%s11470_s6 + $0x4d8] sm:$0xff] }
 0x39e   : > { %5113 = vmatpush.msrb.mxu1 %v4772_v35  ;;  %5154 = vmatpush.msra.mxu3 %v4766_v58  ;;  %v4717_v35 = vld [vmem:[%s11470_s6 + $0x30] sm:$0xff]  ;;  %v5424_v59 = vld [vmem:[%s11470_s6 + $0x6c0] sm:$0xff] }
 0x39f   : > { %v2261_v22 = vadd.f32 %v1877_v49, %v1352_v19  ;;  %5321 = vmatpush.msra.mxu0 %v5217_v29  ;;  %5135 = vmatpush.msra.mxu2 %v4757_v33  ;;  %v4567_v49 = vsel %vm227_vm2, %v10262_v47, 0.0  ;;  %v4726_v47 = vld [vmem:[%s11470_s6 + $0x78] sm:$0xff]  ;;  %v4724_v19 = vld [vmem:[%s11470_s6 + $0x68] sm:$0xff]  ;;  %v5169_v33 = vld [vmem:[%s11470_s6 + $0x420] sm:$0xff] }
 0x3a0   : > { %5114 = vmatpush.msrb.mxu1 %v4764_v31  ;;  %5155 = vmatpush.msra.mxu3 %v4758_v5  ;;  %v4568_v60 = vadd.f32 %v4567_v49, %v4566_v2  ;;  %v4718_v29 = vld [vmem:[%s11470_s6 + $0x38] sm:$0xff]  ;;  %v4716_v31 = vld [vmem:[%s11470_s6 + $0x28] sm:$0xff]  ;;  %v5456_v5 = vld [vmem:[%s11470_s6 + $0x7c0] sm:$0xff] }
 0x3a1   : > { %2325 = vst.msk [vmem:[#allocation4 + $0x1c8] sm:$0xff] %vm98_vm1, %v2261_v22  ;;  %5322 = vmatpush.msra.mxu0 %v5209_v13  ;;  %5136 = vmatpush.msra.mxu2 %v4749_v17  ;;  %v6735_v17 = vld [vmem:[#allocation4 + $0x1e0] sm:$0xff] }
 0x3a2   : > { %5115 = vmatpush.msrb.mxu1 %v4756_v6  ;;  %5156 = vmatpush.msra.mxu3 %v4750_v41  ;;  %v5216_v6 = vld [vmem:[%s11470_s6 + $0x598] sm:$0xff]  ;;  %v5448_v41 = vld [vmem:[%s11470_s6 + $0x780] sm:$0xff] }
 0x3a3   : > { %5323 = vmatpush.msra.mxu0 %v5201_v23  ;;  %5137 = vmatpush.msra.mxu2 %v4741_v52  ;;  %v5214_v23 = vld [vmem:[%s11470_s6 + $0x588] sm:$0xff]  ;;  %v5207_v52 = vld [vmem:[%s11470_s6 + $0x550] sm:$0xff] }
 0x3a4   : > { %v4025_v28 = vpop.f32.mrf.mxu1  ;;  %v1354_v48 = vpop.f32.mrf.mxu0  ;;  %5116 = vmatpush.msrb.mxu1 %v4748_v26  ;;  %5157 = vmatpush.msra.mxu3 %v4742_v16  ;;  %v5208_v26 = vld [vmem:[%s11470_s6 + $0x558] sm:$0xff]  ;;  %v5440_v16 = vld [vmem:[%s11470_s6 + $0x740] sm:$0xff] }
 0x3a5   : > { %v4520_v39 = vsel %vm227_vm2, %v4025_v28, 0.0  ;;  %v1355_v32 = vadd.f32 %v9930_v36, %v1354_v48  ;;  %v10450_v18 = vpop.f32.mrf.mxu2  ;;  %5324 = vmatpush.msra.mxu0 %v5193_v1  ;;  %6587 = vmatmul.msk.f32.vlgmr.msra.gmra.mxu1 %vm227_vm2, %v10066_v54  ;;  %v10462_v0 = vpop.f32.mrf.mxu3  ;;  %v1816_v28 = vmul.f32 0.2, %v6735_v17  ;;  %v5206_v1 = vld [vmem:[%s11470_s6 + $0x548] sm:$0xff] }
 0x3a6   : > { %v10423_v51 = vadd.f32 %v4520_v39, %v4519_v62  ;;  %5117 = vmatpush.msrb.mxu1 %v4740_v40  ;;  %5138 = vmatpush.msra.mxu2 %v4733_v27  ;;  %v5432_v27 = vld [vmem:[%s11470_s6 + $0x700] sm:$0xff] }
 0x3a7   : > { %v2262_v50 = vadd.f32 %v1878_v3, %v1355_v32  ;;  %5158 = vmatpush.msra.mxu3 %v4734_v44  ;;  %5325 = vmatpush.msra.mxu0 %v5185_v43  ;;  %v1880_v2 = vsub.f32 %v6735_v17, %v1816_v28  ;;  %v5199_v32 = vld [vmem:[%s11470_s6 + $0x510] sm:$0xff]  ;;  %v5198_v43 = vld [vmem:[%s11470_s6 + $0x508] sm:$0xff]  ;;  %v5228_v28 = vld [vmem:[%s11470_s6 + $0x5f8] sm:$0xff] }
 0x3a8   : > { %5118 = vmatpush.msrb.mxu1 %v4732_v8  ;;  %5139 = vmatpush.msra.mxu2 %v4725_v30  ;;  %v6736_v30 = vld [vmem:[#allocation4 + $0x1e8] sm:$0xff] }
 0x3a9   : > { %2326 = vst.msk [vmem:[#allocation4 + $0x1d0] sm:$0xff] %vm98_vm1, %v2262_v50  ;;  %5159 = vmatpush.msra.mxu3 %v4726_v47  ;;  %5326 = vmatpush.msra.mxu0 %v5177_v21  ;;  %v5191_v50 = vld [vmem:[%s11470_s6 + $0x4d0] sm:$0xff]  ;;  %v5190_v47 = vld [vmem:[%s11470_s6 + $0x4c8] sm:$0xff] }
 0x3aa   : > { %5119 = vmatpush.msrb.mxu1 %v4724_v19  ;;  %5140 = vmatpush.msra.mxu2 %v4717_v35  ;;  %v5183_v21 = vld [vmem:[%s11470_s6 + $0x490] sm:$0xff]  ;;  %v5416_v19 = vld [vmem:[%s11470_s6 + $0x680] sm:$0xff] }
 0x3ab   : > { %5160 = vmatpush.msra.mxu3 %v4718_v29  ;;  %5327 = vmatpush.msra.mxu0 %v5169_v33  ;;  %v5175_v29 = vld [vmem:[%s11470_s6 + $0x450] sm:$0xff]  ;;  %v5176_v33 = vld [vmem:[%s11470_s6 + $0x458] sm:$0xff] }
 0x3ac   : > { %v4028_v61 = vpop.f32.mrf.mxu1  ;;  %v1357_v55 = vpop.f32.mrf.mxu0  ;;  %6592 = vmatmul.msk.f32.vlgmr.msra.gmra.mxu2 %vm227_vm2, %v10066_v54  ;;  %6593 = vmatmul.msk.f32.vlgmr.msra.gmra.mxu3 %vm227_vm2, %v10066_v54  ;;  %v5227_v17 = vld [vmem:[%s11470_s6 + $0x5f0] sm:$0xff] }
 0x3ad   : > { %v4569_v58 = vsel %vm227_vm2, %v4028_v61, 0.0  ;;  %v1358_v9 = vadd.f32 %v9930_v36, %v1357_v55  ;;  %v10506_v62 = vpop.f32.mrf.mxu2  ;;  %5280 = vmatpush.msrb.mxu2 %v5223_v45  ;;  %5300 = vmatpush.msrb.mxu3 %v5224_v14  ;;  %v10519_v39 = vpop.f32.mrf.mxu3  ;;  %v5184_v61 = vld [vmem:[%s11470_s6 + $0x498] sm:$0xff]  ;;  %v5174_v14 = vld [vmem:[%s11470_s6 + $0x448] sm:$0xff] }
 0x3ae   : > { %v10484_v22 = vadd.f32 %v4569_v58, %v4568_v60  ;;  %6598 = vmatmul.msk.f32.vlgmr.msra.gmra.mxu0 %vm227_vm2, %v10351_v38  ;;  %5120 = vmatpush.msrb.mxu1 %v4716_v31  ;;  %v1817_v60 = vmul.f32 0.2, %v6736_v30  ;;  %v5182_v58 = vld [vmem:[%s11470_s6 + $0x488] sm:$0xff] }
 0x3af   : > { %v2263_v13 = vadd.f32 %v1879_v10, %v1358_v9  ;;  %5475 = vmatpush.msrb.mxu0 %v5456_v5  ;;  %5281 = vmatpush.msrb.mxu2 %v5215_v46  ;;  %v5408_v10 = vld [vmem:[%s11470_s6 + $0x640] sm:$0xff]  ;;  %v5167_v9 = vld [vmem:[%s11470_s6 + $0x410] sm:$0xff]  ;;  %v5168_v5 = vld [vmem:[%s11470_s6 + $0x418] sm:$0xff]  ;;  %v10616_v46 = vrot.slane %v10066_v54, 6 }
 0x3b0   : > { %5260 = vmatpush.msra.mxu1 %v5222_v11  ;;  %5301 = vmatpush.msrb.mxu3 %v5216_v6  ;;  %v1881_v45 = vsub.f32 %v6736_v30, %v1817_v60  ;;  %v5400_v11 = vld [vmem:[%s11470_s6 + $0x600] sm:$0xff]  ;;  %v5204_v30 = vld [vmem:[%s11470_s6 + $0x538] sm:$0xff] }
 0x3b1   : > { %2327 = vst.msk [vmem:[#allocation4 + $0x1d8] sm:$0xff] %vm98_vm1, %v2263_v13  ;;  %5476 = vmatpush.msrb.mxu0 %v5448_v41  ;;  %6591 = vmatmul.msk.f32.vlgmr.msrb.gmra.mxu1 %vm227_vm2, %v10066_v54  ;;  %v5460_v54 = vld [vmem:[%s11470_s6 + $0x7e0] sm:$0xff] }
 0x3b2   : > { %5261 = vmatpush.msra.mxu1 %v5214_v23  ;;  %5282 = vmatpush.msrb.mxu2 %v5207_v52  ;;  %v5166_v23 = vld [vmem:[%s11470_s6 + $0x408] sm:$0xff]  ;;  %v5436_v60 = vld [vmem:[%s11470_s6 + $0x720] sm:$0xff] }
 0x3b3   : > { %5302 = vmatpush.msrb.mxu3 %v5208_v26  ;;  %5477 = vmatpush.msrb.mxu0 %v5440_v16  ;;  %v5219_v26 = vld [vmem:[%s11470_s6 + $0x5b0] sm:$0xff]  ;;  %v5220_v16 = vld [vmem:[%s11470_s6 + $0x5b8] sm:$0xff] }
 0x3b4   : > { %v4031_v56 = vpop.f32.mrf.mxu1  ;;  %v1360_v40 = vpop.f32.mrf.mxu0  ;;  %5262 = vmatpush.msra.mxu1 %v5206_v1  ;;  %5283 = vmatpush.msrb.mxu2 %v5199_v32  ;;  %v5218_v32 = vld [vmem:[%s11470_s6 + $0x5a8] sm:$0xff] }
 0x3b5   : > { %v4618_v3 = vsel %vm227_vm2, %v4031_v56, 0.0  ;;  %v1361_v44 = vadd.f32 %v9930_v36, %v1360_v40  ;;  %v10565_v49 = vpop.f32.mrf.mxu2  ;;  %5478 = vmatpush.msrb.mxu0 %v5432_v27  ;;  %v10594_v55 = vpop.f32.mrf.mxu3  ;;  %v6737_v56 = vld [vmem:[#allocation4 + $0x1f0] sm:$0xff]  ;;  %v5211_v40 = vld [vmem:[%s11470_s6 + $0x570] sm:$0xff] }
 0x3b6   : > { %v10536_v48 = vadd.f32 %v4618_v3, %v10353_v7  ;;  %v5200_v7 = vld [vmem:[%s11470_s6 + $0x518] sm:$0xff]  ;;  %5263 = vmatpush.msra.mxu1 %v5198_v43  ;;  %5284 = vmatpush.msrb.mxu2 %v5191_v50  ;;  %v5226_v3 = vld [vmem:[%s11470_s6 + $0x5e8] sm:$0xff]  ;;  %v6738_v50 = vld [vmem:[%s11466_s2] ss:$0 sm:$0xff] }
 0x3b7   : > { %v2264_v8 = vadd.f32 %v1880_v2, %v1361_v44  ;;  %5303 = vmatpush.msrb.mxu3 %v5200_v7  ;;  %5479 = vmatpush.msrb.mxu0 %v5424_v59  ;;  %v5452_v2 = vld [vmem:[%s11470_s6 + $0x7a0] sm:$0xff]  ;;  %v5212_v27 = vld [vmem:[%s11470_s6 + $0x578] sm:$0xff]  ;;  %v5210_v59 = vld [vmem:[%s11470_s6 + $0x568] sm:$0xff] }
 0x3b8   : > { %5264 = vmatpush.msra.mxu1 %v5190_v47  ;;  %5285 = vmatpush.msrb.mxu2 %v5183_v21  ;;  %v5444_v44 = vld [vmem:[%s11470_s6 + $0x760] sm:$0xff] }
 0x3b9   : > { %2328 = vst.msk [vmem:[#allocation4 + $0x1e0] sm:$0xff] %vm98_vm1, %v2264_v8  ;;  %5304 = vmatpush.msrb.mxu3 %v5192_v15  ;;  %5480 = vmatpush.msrb.mxu0 %v5416_v19  ;;  %v5203_v8 = vld [vmem:[%s11470_s6 + $0x530] sm:$0xff]  ;;  %v6739_v21 = vld [vmem:[#allocation4 + $0x1f8] sm:$0xff]  ;;  %v5202_v19 = vld [vmem:[%s11470_s6 + $0x528] sm:$0xff] }
 0x3ba   : > { %5265 = vmatpush.msra.mxu1 %v5182_v58  ;;  %5286 = vmatpush.msrb.mxu2 %v5175_v29  ;;  %v5195_v58 = vld [vmem:[%s11470_s6 + $0x4f0] sm:$0xff]  ;;  %v5196_v29 = vld [vmem:[%s11470_s6 + $0x4f8] sm:$0xff] }
 0x3bb   : > { %5305 = vmatpush.msrb.mxu3 %v5184_v61  ;;  %5481 = vmatpush.msrb.mxu0 %v5408_v10  ;;  %v1819_v61 = vmul.f32 0.2, %v6739_v21 }
 0x3bc   : > { %v10580_v35 = vpop.f32.mrf.mxu1  ;;  %v1363_v31 = vpop.f32.mrf.mxu0  ;;  %5266 = vmatpush.msra.mxu1 %v5174_v14  ;;  %5287 = vmatpush.msrb.mxu2 %v5167_v9  ;;  %v5194_v14 = vld [vmem:[%s11470_s6 + $0x4e8] sm:$0xff]  ;;  %v5187_v9 = vld [vmem:[%s11470_s6 + $0x4b0] sm:$0xff] }
 0x3bd   : > { %v1364_v13 = vadd.f32 %v9930_v36, %v1363_v31  ;;  %5306 = vmatpush.msrb.mxu3 %v5176_v33  ;;  %v10618_v6 = vpop.f32.mrf.mxu2  ;;  %v1818_v36 = vmul.f32 0.2, %v6737_v56  ;;  %5482 = vmatpush.msrb.mxu0 %v5400_v11  ;;  %v10661_v43 = vpop.f32.mrf.mxu3  ;;  %v5428_v33 = vld [vmem:[%s11470_s6 + $0x6e0] sm:$0xff]  ;;  %v5188_v31 = vld [vmem:[%s11470_s6 + $0x4b8] sm:$0xff]  ;;  %v1883_v11 = vsub.f32 %v6739_v21, %v1819_v61  ;;  %v5449_v21 = vld [vmem:[%s11470_s6 + $0x788] sm:$0xff] }
 0x3be   : > { %6596 = vmatmul.msk.f32.vlgmr.msrb.gmra.mxu2 %vm227_vm2, %v10351_v38  ;;  %6602 = vmatmul.msk.f32.vlgmr.msrb.gmra.mxu0 %vm227_vm2, %v10616_v46  ;;  %v5443_v61 = vld [vmem:[%s11470_s6 + $0x758] sm:$0xff] }
 0x3bf   : > { %v2265_v41 = vadd.f32 %v1881_v45, %v1364_v13  ;;  %5307 = vmatpush.msrb.mxu3 %v5168_v5  ;;  %5360 = vmatpush.msra.mxu2 %v5227_v17  ;;  %v1882_v1 = vsub.f32 %v6737_v56, %v1818_v36  ;;  %v5420_v5 = vld [vmem:[%s11470_s6 + $0x6a0] sm:$0xff]  ;;  %v4459_v13 = vsel %vm227_vm2, %v9894_v34, 0.0  ;;  %v5186_v17 = vld [vmem:[%s11470_s6 + $0x4a8] sm:$0xff]  ;;  %v5180_v56 = vld [vmem:[%s11470_s6 + $0x478] sm:$0xff] }
 0x3c0   : > { %6597 = vmatmul.msk.f32.vlgmr.msrb.gmra.mxu3 %vm227_vm2, %v10351_v38  ;;  %5267 = vmatpush.msra.mxu1 %v5166_v23  ;;  %v5412_v34 = vld [vmem:[%s11470_s6 + $0x660] sm:$0xff]  ;;  %v4461_v23 = vsel %vm227_vm2, %v9953_v20, 0.0 }
 0x3c1   : > { %2329 = vst.msk [vmem:[#allocation4 + $0x1e8] sm:$0xff] %vm98_vm1, %v2265_v41  ;;  %5380 = vmatpush.msra.mxu3 %v5228_v28  ;;  %5555 = vmatpush.msra.mxu0 %v5460_v54  ;;  %v5179_v28 = vld [vmem:[%s11470_s6 + $0x470] sm:$0xff]  ;;  %v5178_v54 = vld [vmem:[%s11470_s6 + $0x468] sm:$0xff]  ;;  %v5404_v20 = vld [vmem:[%s11470_s6 + $0x620] sm:$0xff] }
 0x3c2   : > { %6595 = vmatmul.msk.f32.vlgmr.msra.gmra.mxu1 %vm227_vm2, %v10351_v38  ;;  %5361 = vmatpush.msra.mxu2 %v5219_v26  ;;  %v4460_v26 = vadd.f32 %v4459_v13, %v9771_v24  ;;  %v5458_v24 = vld [vmem:[%s11470_s6 + $0x7d0] sm:$0xff]  ;;  %v5427_v13 = vld [vmem:[%s11470_s6 + $0x6d8] sm:$0xff] }
 0x3c3   : > { %5340 = vmatpush.msrb.mxu1 %v5226_v3  ;;  %5381 = vmatpush.msra.mxu3 %v5220_v16  ;;  %v5171_v3 = vld [vmem:[%s11470_s6 + $0x430] sm:$0xff]  ;;  %v5172_v16 = vld [vmem:[%s11470_s6 + $0x438] sm:$0xff] }
 0x3c4   : > { %v10631_v52 = vpop.f32.mrf.mxu1  ;;  %v1366_v7 = vpop.f32.mrf.mxu0  ;;  %5556 = vmatpush.msra.mxu0 %v5452_v2  ;;  %5362 = vmatpush.msra.mxu2 %v5211_v40  ;;  %v5459_v40 = vld [vmem:[%s11470_s6 + $0x7d8] sm:$0xff] }
 0x3c5   : > { %v1367_v15 = vadd.f32 %v6738_v50, %v1366_v7  ;;  %5341 = vmatpush.msrb.mxu1 %v5218_v32  ;;  %5382 = vmatpush.msra.mxu3 %v5212_v27  ;;  %v10690_v10 = vpop.f32.mrf.mxu2  ;;  %v10736_v2 = vpop.f32.mrf.mxu3  ;;  %v4462_v32 = vadd.f32 %v4461_v23, %v4460_v26  ;;  %v5170_v27 = vld [vmem:[%s11470_s6 + $0x428] sm:$0xff] }
 0x3c6   : > { %5557 = vmatpush.msra.mxu0 %v5444_v44  ;;  %5363 = vmatpush.msra.mxu2 %v5203_v8  ;;  %v5450_v44 = vld [vmem:[%s11470_s6 + $0x790] sm:$0xff]  ;;  %v5457_v8 = vld [vmem:[%s11470_s6 + $0x7c8] sm:$0xff] }
 0x3c7   : > { %v2266_v47 = vadd.f32 %v1882_v1, %v1367_v15  ;;  %5342 = vmatpush.msrb.mxu1 %v5210_v59  ;;  %5383 = vmatpush.msra.mxu3 %v5204_v30  ;;  %v4463_v15 = vsel %vm227_vm2, %v9964_v12, 0.0  ;;  %v4465_v59 = vsel %vm227_vm2, %v10102_v4, 0.0  ;;  %v5451_v30 = vld [vmem:[%s11470_s6 + $0x798] sm:$0xff]  ;;  %v5442_v12 = vld [vmem:[%s11470_s6 + $0x750] sm:$0xff]  ;;  %v5417_v26 = vld [vmem:[%s11470_s6 + $0x688] sm:$0xff] }
 0x3c8   : > { %5558 = vmatpush.msra.mxu0 %v5436_v60  ;;  %5364 = vmatpush.msra.mxu2 %v5195_v58  ;;  %v4464_v60 = vadd.f32 %v4463_v15, %v4462_v32  ;;  %v5734_v4 = vld [vmem:[%s11472_s8 + $0x78] sm:$0xff]  ;;  %v5434_v58 = vld [vmem:[%s11470_s6 + $0x710] sm:$0xff]  ;;  %v5409_v32 = vld [vmem:[%s11470_s6 + $0x648] sm:$0xff] }
 0x3c9   : > { %2330 = vst.msk [vmem:[#allocation4 + $0x1f0] sm:$0xff] %vm98_vm1, %v2266_v47  ;;  %5343 = vmatpush.msrb.mxu1 %v5202_v19  ;;  %5384 = vmatpush.msra.mxu3 %v5196_v29  ;;  %v4467_v47 = vsel %vm227_vm2, %v10135_v63, 0.0  ;;  %v5733_v63 = vld [vmem:[%s11472_s8 + $0x70] sm:$0xff]  ;;  %v5435_v29 = vld [vmem:[%s11470_s6 + $0x718] sm:$0xff] }
 0x3ca   : > { %5559 = vmatpush.msra.mxu0 %v5428_v33  ;;  %5365 = vmatpush.msra.mxu2 %v5187_v9  ;;  %v4466_v19 = vadd.f32 %v4465_v59, %v4464_v60  ;;  %v5426_v9 = vld [vmem:[%s11470_s6 + $0x6d0] sm:$0xff]  ;;  %v5463_v15 = vld [vmem:[%s11470_s6 + $0x7f8] sm:$0xff]  ;;  %v4475_v60 = vsel %vm227_vm2, %v10402_v25, 0.0  ;;  %v5461_v25 = vld [vmem:[%s11470_s6 + $0x7e8] sm:$0xff] }
 0x3cb   : > { %5344 = vmatpush.msrb.mxu1 %v5194_v14  ;;  %5385 = vmatpush.msra.mxu3 %v5188_v31 }
 0x3cc   : > { %v10693_v45 = vpop.f32.mrf.mxu1  ;;  %v1369_v41 = vpop.f32.mrf.mxu0  ;;  %5560 = vmatpush.msra.mxu0 %v5420_v5  ;;  %5366 = vmatpush.msra.mxu2 %v5179_v28  ;;  %v4468_v33 = vadd.f32 %v4467_v47, %v4466_v19  ;;  %v5732_v5 = vld [vmem:[%s11472_s8 + $0x68] sm:$0xff]  ;;  %v5731_v28 = vld [vmem:[%s11472_s8 + $0x60] sm:$0xff]  ;;  %v5446_v19 = vld [vmem:[%s11470_s6 + $0x770] sm:$0xff] }
 0x3cd   : > { %v1370_v36 = vadd.f32 %v6738_v50, %v1369_v41  ;;  %5345 = vmatpush.msrb.mxu1 %v5186_v17  ;;  %5386 = vmatpush.msra.mxu3 %v5180_v56  ;;  %v10757_v50 = vpop.f32.mrf.mxu2  ;;  %v10799_v14 = vpop.f32.mrf.mxu3  ;;  %v5418_v17 = vld [vmem:[%s11470_s6 + $0x690] sm:$0xff]  ;;  %v4469_v41 = vsel %vm227_vm2, %v10145_v42, 0.0  ;;  %v4471_v56 = vsel %vm227_vm2, %v10337_v53, 0.0  ;;  %v5730_v53 = vld [vmem:[%s11472_s8 + $0x58] sm:$0xff] }
 0x3ce   : > { %5561 = vmatpush.msra.mxu0 %v5412_v34  ;;  %5367 = vmatpush.msra.mxu2 %v5171_v3  ;;  %v5425_v34 = vld [vmem:[%s11470_s6 + $0x6c8] sm:$0xff]  ;;  %v4470_v23 = vadd.f32 %v4469_v41, %v4468_v33  ;;  %v5410_v42 = vld [vmem:[%s11470_s6 + $0x650] sm:$0xff]  ;;  %v4473_v3 = vsel %vm227_vm2, %v10386_v37, 0.0  ;;  %v5726_v33 = vld [vmem:[%s11472_s8 + $0x38] sm:$0xff] }
 0x3cf   : > { %v2267_v1 = vadd.f32 %v1883_v11, %v1370_v36  ;;  %5346 = vmatpush.msrb.mxu1 %v5178_v54  ;;  %5387 = vmatpush.msra.mxu3 %v5172_v16  ;;  %v5433_v11 = vld [vmem:[%s11470_s6 + $0x708] sm:$0xff]  ;;  %v5419_v36 = vld [vmem:[%s11470_s6 + $0x698] sm:$0xff]  ;;  %v5729_v37 = vld [vmem:[%s11472_s8 + $0x50] sm:$0xff] }
 0x3d0   : > { %5562 = vmatpush.msra.mxu0 %v5404_v20  ;;  %6600 = vmatmul.msk.f32.vlgmr.msra.gmra.mxu2 %vm227_vm2, %v10351_v38  ;;  %v5411_v16 = vld [vmem:[%s11470_s6 + $0x658] sm:$0xff]  ;;  %v4472_v20 = vadd.f32 %v4471_v56, %v4470_v23  ;;  %v5437_v41 = vld [vmem:[%s11470_s6 + $0x728] sm:$0xff]  ;;  %v4526_v23 = vsel %vm227_vm2, %v10631_v52, 0.0 }
 0x3d1   : > { %2331 = vst.msk [vmem:[#allocation4 + $0x1f8] sm:$0xff] %vm98_vm1, %v2267_v1  ;;  %6601 = vmatmul.msk.f32.vlgmr.msra.gmra.mxu3 %vm227_vm2, %v10351_v38  ;;  %5515 = vmatpush.msrb.mxu2 %v5458_v24  ;;  %v5402_v1 = vld [vmem:[%s11470_s6 + $0x610] sm:$0xff]  ;;  %v5403_v24 = vld [vmem:[%s11470_s6 + $0x618] sm:$0xff]  ;;  %v5429_v52 = vld [vmem:[%s11470_s6 + $0x6e8] sm:$0xff] }
 0x3d2   : > { %5535 = vmatpush.msrb.mxu3 %v5459_v40  ;;  %6606 = vmatmul.msk.f32.vlgmr.msra.gmra.mxu0 %vm227_vm2, %v10616_v46  ;;  %v4474_v40 = vadd.f32 %v4473_v3, %v4472_v20  ;;  %v5431_v56 = vld [vmem:[%s11470_s6 + $0x6f8] sm:$0xff]  ;;  %v5724_v3 = vld [vmem:[%s11472_s8 + $0x28] sm:$0xff] }
 0x3d3   : > { %5347 = vmatpush.msrb.mxu1 %v5170_v27  ;;  %5516 = vmatpush.msrb.mxu2 %v5450_v44  ;;  %v5462_v44 = vld [vmem:[%s11470_s6 + $0x7f0] sm:$0xff] }
 0x3d4   : > { %v10745_v7 = vpop.f32.mrf.mxu1  ;;  %6599 = vmatmul.msk.f32.vlgmr.msrb.gmra.mxu1 %vm227_vm2, %v10351_v38  ;;  %5536 = vmatpush.msrb.mxu3 %v5451_v30  ;;  %v5441_v38 = vld [vmem:[%s11470_s6 + $0x748] sm:$0xff]  ;;  %v4476_v47 = vadd.f32 %v4475_v60, %v4474_v40 }
 0x3d5   : > { %5495 = vmatpush.msra.mxu1 %v5457_v8  ;;  %5517 = vmatpush.msrb.mxu2 %v5442_v12  ;;  %v10834_v54 = vpop.f32.mrf.mxu2  ;;  %v10867_v59 = vpop.f32.mrf.mxu3  ;;  %v5401_v8 = vld [vmem:[%s11470_s6 + $0x608] sm:$0xff]  ;;  %v4477_v12 = vsel %vm227_vm2, %v10580_v35, 0.0  ;;  %v5455_v35 = vld [vmem:[%s11470_s6 + $0x7b8] sm:$0xff] }
 0x3d6   : > { %5868 = vmatpush.msrb.mxu0 %v5734_v4  ;;  %5537 = vmatpush.msrb.mxu3 %v5443_v61  ;;  %v5728_v30 = vld [vmem:[%s11472_s8 + $0x48] sm:$0xff]  ;;  %v5454_v4 = vld [vmem:[%s11470_s6 + $0x7b0] sm:$0xff]  ;;  %v4479_v61 = vsel %vm227_vm2, %v10618_v6, 0.0  ;;  %v5447_v6 = vld [vmem:[%s11470_s6 + $0x778] sm:$0xff] }
 0x3d7   : > { %5496 = vmatpush.msra.mxu1 %v5449_v21  ;;  %5518 = vmatpush.msrb.mxu2 %v5434_v58  ;;  %v4522_v21 = vsel %vm227_vm2, %v10450_v18, 0.0  ;;  %v5727_v58 = vld [vmem:[%s11472_s8 + $0x40] sm:$0xff]  ;;  %v5453_v18 = vld [vmem:[%s11470_s6 + $0x7a8] sm:$0xff] }
 0x3d8   : > { %5869 = vmatpush.msrb.mxu0 %v5733_v63  ;;  %5538 = vmatpush.msrb.mxu3 %v5435_v29  ;;  %v4478_v63 = vadd.f32 %v4477_v12, %v4476_v47  ;;  %v5438_v29 = vld [vmem:[%s11470_s6 + $0x730] sm:$0xff]  ;;  %v5413_v12 = vld [vmem:[%s11470_s6 + $0x668] sm:$0xff] }
 0x3d9   : > { %5497 = vmatpush.msra.mxu1 %v5441_v38  ;;  %5519 = vmatpush.msrb.mxu2 %v5426_v9  ;;  %v4523_v9 = vadd.f32 %v4522_v21, %v10423_v51  ;;  %v5725_v51 = vld [vmem:[%s11472_s8 + $0x30] sm:$0xff]  ;;  %v5766_v21 = vld [vmem:[%s11472_s8 + $0x178] sm:$0xff] }
 0x3da   : > { %5870 = vmatpush.msrb.mxu0 %v5732_v5  ;;  %5539 = vmatpush.msrb.mxu3 %v5427_v13  ;;  %v4480_v5 = vadd.f32 %v4479_v61, %v4478_v63  ;;  %v5439_v13 = vld [vmem:[%s11470_s6 + $0x738] sm:$0xff]  ;;  %v5405_v61 = vld [vmem:[%s11470_s6 + $0x628] sm:$0xff] }
 0x3db   : > { %5498 = vmatpush.msra.mxu1 %v5433_v11  ;;  %5520 = vmatpush.msrb.mxu2 %v5418_v17  ;;  %v5445_v11 = vld [vmem:[%s11470_s6 + $0x768] sm:$0xff]  ;;  %v5782_v63 = vld [vmem:[%s11472_s8 + $0x1f8] sm:$0xff] }
 0x3dc   : > { %v10804_v31 = vpop.f32.mrf.mxu1  ;;  %5871 = vmatpush.msrb.mxu0 %v5731_v28  ;;  %5540 = vmatpush.msrb.mxu3 %v5419_v36  ;;  %v5430_v28 = vld [vmem:[%s11470_s6 + $0x6f0] sm:$0xff]  ;;  %v4481_v36 = vsel %vm227_vm2, %v10661_v43, 0.0 }
 0x3dd   : > { %5499 = vmatpush.msra.mxu1 %v5425_v34  ;;  %5521 = vmatpush.msrb.mxu2 %v5410_v42  ;;  %v4309_v38 = vpop.f32.mrf.mxu2  ;;  %v4524_v34 = vsel %vm227_vm2, %v10462_v0, 0.0  ;;  %v4483_v42 = vsel %vm227_vm2, %v10804_v31, 0.0  ;;  %v4350_v43 = vpop.f32.mrf.mxu3  ;;  %v5423_v31 = vld [vmem:[%s11470_s6 + $0x6b8] sm:$0xff] }
 0x3de   : > { %5872 = vmatpush.msrb.mxu0 %v5730_v53  ;;  %5541 = vmatpush.msrb.mxu3 %v5411_v16  ;;  %v5422_v53 = vld [vmem:[%s11470_s6 + $0x6b0] sm:$0xff]  ;;  %v4525_v0 = vadd.f32 %v4524_v34, %v4523_v9  ;;  %v4528_v16 = vsel %vm227_vm2, %v10690_v10, 0.0  ;;  %v4485_v20 = vsel %vm227_vm2, %v4309_v38, 0.0  ;;  %v5421_v10 = vld [vmem:[%s11470_s6 + $0x6a8] sm:$0xff]  ;;  %v4575_v38 = vsel %vm227_vm2, %v10693_v45, 0.0 }
 0x3df   : > { %5500 = vmatpush.msra.mxu1 %v5417_v26  ;;  %5522 = vmatpush.msrb.mxu2 %v5402_v1  ;;  %v4482_v26 = vadd.f32 %v4481_v36, %v4480_v5  ;;  %v5414_v1 = vld [vmem:[%s11470_s6 + $0x670] sm:$0xff]  ;;  %v5764_v34 = vld [vmem:[%s11472_s8 + $0x168] sm:$0xff] }
 0x3e0   : > { %5873 = vmatpush.msrb.mxu0 %v5729_v37  ;;  %5542 = vmatpush.msrb.mxu3 %v5403_v24  ;;  %v5723_v37 = vld [vmem:[%s11472_s8 + $0x20] sm:$0xff]  ;;  %v4527_v24 = vadd.f32 %v4526_v23, %v4525_v0  ;;  %v5781_v9 = vld [vmem:[%s11472_s8 + $0x1f0] sm:$0xff]  ;;  %v6740_v36 = vld [vmem:[#allocation6] sm:$0xff] }
 0x3e1   : > { %5501 = vmatpush.msra.mxu1 %v5409_v32  ;;  %6604 = vmatmul.msk.f32.vlgmr.msrb.gmra.mxu2 %vm227_vm2, %v10616_v46  ;;  %v4571_v32 = vsel %vm227_vm2, %v10506_v62, 0.0  ;;  %v4484_v40 = vadd.f32 %v4483_v42, %v4482_v26  ;;  %v5722_v62 = vld [vmem:[%s11472_s8 + $0x18] sm:$0xff]  ;;  %v5721_v5 = vld [vmem:[%s11472_s8 + $0x10] sm:$0xff]  ;;  %v4672_v23 = vmul.f32 0.2, %v6740_v36  ;;  %v5748_v0 = vld [vmem:[%s11472_s8 + $0xe8] sm:$0xff] }
 0x3e2   : > { %6605 = vmatmul.msk.f32.vlgmr.msrb.gmra.mxu3 %vm227_vm2, %v10616_v46  ;;  %5595 = vmatpush.msra.mxu2 %v5462_v44  ;;  %v5415_v44 = vld [vmem:[%s11470_s6 + $0x678] sm:$0xff]  ;;  %v5763_v26 = vld [vmem:[%s11472_s8 + $0x160] sm:$0xff] }
 0x3e3   : > { %5615 = vmatpush.msra.mxu3 %v5463_v15  ;;  %5502 = vmatpush.msra.mxu1 %v5401_v8  ;;  %v4391_v15 = vpop.f32.mrf.mxu0  ;;  %v5406_v8 = vld [vmem:[%s11470_s6 + $0x630] sm:$0xff]  ;;  %v4486_v60 = vadd.f32 %v4485_v20, %v4484_v40 }
 0x3e4   : > { %v10859_v27 = vpop.f32.mrf.mxu1  ;;  %5874 = vmatpush.msrb.mxu0 %v5728_v30  ;;  %6603 = vmatmul.msk.f32.vlgmr.msra.gmra.mxu1 %vm227_vm2, %v10616_v46  ;;  %v4529_v30 = vadd.f32 %v4528_v16, %v4527_v24  ;;  %v4489_v42 = vsel %vm227_vm2, %v4391_v15, 0.0  ;;  %v5719_v24 = vld [vmem:[%s11472_s8] sm:$0xff] }
 0x3e5   : > { %5596 = vmatpush.msra.mxu2 %v5454_v4  ;;  %5575 = vmatpush.msrb.mxu1 %v5461_v25  ;;  %v5407_v4 = vld [vmem:[%s11470_s6 + $0x638] sm:$0xff]  ;;  %v4312_v47 = vpop.f32.mrf.mxu2 }
 0x3e6   : > { %5616 = vmatpush.msra.mxu3 %v5455_v35  ;;  %5875 = vmatpush.msrb.mxu0 %v5727_v58  ;;  %v4572_v35 = vadd.f32 %v4571_v32, %v10484_v22  ;;  %v4487_v58 = vsel %vm227_vm2, %v4350_v43, 0.0  ;;  %v4532_v22 = vsel %vm227_vm2, %v10859_v27, 0.0  ;;  %v5765_v27 = vld [vmem:[%s11472_s8 + $0x170] sm:$0xff]  ;;  %v4534_v45 = vsel %vm227_vm2, %v4312_v47, 0.0  ;;  %v5798_v47 = vld [vmem:[%s11472_s8 + $0x278] sm:$0xff] }
 0x3e7   : > { %5597 = vmatpush.msra.mxu2 %v5446_v19  ;;  %5576 = vmatpush.msrb.mxu1 %v5453_v18  ;;  %v4530_v19 = vsel %vm227_vm2, %v10736_v2, 0.0  ;;  %v4573_v18 = vsel %vm227_vm2, %v10519_v39, 0.0  ;;  %v5750_v2 = vld [vmem:[%s11472_s8 + $0xf8] sm:$0xff]  ;;  %v11017_v39 = vld [vmem:[#allocation7] sm:$0xff] }
 0x3e8   : > { %5617 = vmatpush.msra.mxu3 %v5447_v6  ;;  %5876 = vmatpush.msrb.mxu0 %v5726_v33  ;;  %v4531_v6 = vadd.f32 %v4530_v19, %v4529_v30  ;;  %v4574_v33 = vadd.f32 %v4573_v18, %v4572_v35  ;;  %v4622_v30 = vsel %vm227_vm2, %v10594_v55, 0.0  ;;  %v5746_v55 = vld [vmem:[%s11472_s8 + $0xd8] sm:$0xff]  ;;  %v5797_v18 = vld [vmem:[%s11472_s8 + $0x270] sm:$0xff] }
 0x3e9   : > { %5598 = vmatpush.msra.mxu2 %v5438_v29  ;;  %5577 = vmatpush.msrb.mxu1 %v5445_v11  ;;  %v4488_v29 = vadd.f32 %v4487_v58, %v4486_v60  ;;  %v5665_v11 = vsub.f32 0.0, %v11017_v39  ;;  %v4579_v60 = vsel %vm227_vm2, %v10799_v14, 0.0  ;;  %v5761_v14 = vld [vmem:[%s11472_s8 + $0x150] sm:$0xff] }
 0x3ea   : > { %5618 = vmatpush.msra.mxu3 %v5439_v13  ;;  %5877 = vmatpush.msrb.mxu0 %v5725_v51  ;;  %v4620_v13 = vsel %vm227_vm2, %v10565_v49, 0.0  ;;  %v4533_v51 = vadd.f32 %v4532_v22, %v4531_v6  ;;  %v4576_v49 = vadd.f32 %v4575_v38, %v4574_v33  ;;  %v5745_v38 = vld [vmem:[%s11472_s8 + $0xd0] sm:$0xff] }
 0x3eb   : > { %5599 = vmatpush.msra.mxu2 %v5430_v28  ;;  %5578 = vmatpush.msrb.mxu1 %v5437_v41  ;;  %v4577_v28 = vsel %vm227_vm2, %v10757_v50, 0.0  ;;  %v4353_v41 = vpop.f32.mrf.mxu3  ;;  %v5720_v50 = vld [vmem:[%s11472_s8 + $0x8] sm:$0xff]  ;;  %v4621_v20 = vadd.f32 %v4620_v13, %v10536_v48  ;;  %v4394_v40 = vpop.f32.mrf.mxu0  ;;  %v5762_v48 = vld [vmem:[%s11472_s8 + $0x158] sm:$0xff]  ;;  %v5662_v13 = vld [vmem:[#allocation7 + $0x8] sm:$0xff] }
 0x3ec   : > { %v10923_v17 = vpop.f32.mrf.mxu1  ;;  %5619 = vmatpush.msra.mxu3 %v5431_v56  ;;  %5878 = vmatpush.msrb.mxu0 %v5724_v3  ;;  %v5749_v56 = vld [vmem:[%s11472_s8 + $0xf0] sm:$0xff]  ;;  %v4535_v3 = vadd.f32 %v4534_v45, %v4533_v51  ;;  %v4538_v33 = vsel %vm227_vm2, %v4394_v40, 0.0  ;;  %v5744_v51 = vld [vmem:[%s11472_s8 + $0xc8] sm:$0xff] }
 0x3ed   : > { %5600 = vmatpush.msra.mxu2 %v5422_v53  ;;  %5579 = vmatpush.msrb.mxu1 %v5429_v52  ;;  %v11046_v53 = vld [vmem:[#allocation8 + $0x8] sm:$0xff]  ;;  %v4490_v52 = vadd.f32 %v4489_v42, %v4488_v29  ;;  %v4623_v58 = vadd.f32 %v4622_v30, %v4621_v20  ;;  %v5774_v20 = vld [vmem:[%s11472_s8 + $0x1b8] sm:$0xff]  ;;  %v5773_v30 = vld [vmem:[%s11472_s8 + $0x1b0] sm:$0xff] }
 0x3ee   : > { %5620 = vmatpush.msra.mxu3 %v5423_v31  ;;  %5879 = vmatpush.msrb.mxu0 %v5723_v37  ;;  %v11057_v31 = vld [vmem:[%s11469_s5] ss:$0 sm:$0xff]  ;;  %v5667_v16 = vadd.f32 %v5665_v11, %v11046_v53 }
 0x3ef   : > { %5601 = vmatpush.msra.mxu2 %v5414_v1  ;;  %5580 = vmatpush.msrb.mxu1 %v5421_v10  ;;  %v4578_v1 = vadd.f32 %v4577_v28, %v4576_v49  ;;  %v5779_v37 = vld [vmem:[%s11472_s8 + $0x1e0] sm:$0xff] }
 0x3f0   : > { %5621 = vmatpush.msra.mxu3 %v5415_v44  ;;  %5880 = vmatpush.msrb.mxu0 %v5722_v62  ;;  %v5747_v10 = vld [vmem:[%s11472_s8 + $0xe0] sm:$0xff]  ;;  %v4315_v44 = vpop.f32.mrf.mxu2  ;;  %v5669_v62 = vmul.f32 0.1, %v5667_v16 }
 0x3f1   : > { %5602 = vmatpush.msra.mxu2 %v5406_v8  ;;  %5581 = vmatpush.msrb.mxu1 %v5413_v12  ;;  %v4676_v8 = vsub.f32 %v6740_v36, %v4672_v23  ;;  %v4536_v12 = vsel %vm227_vm2, %v4353_v41, 0.0  ;;  %v4580_v22 = vadd.f32 %v4579_v60, %v4578_v1  ;;  %v4583_v6 = vsel %vm227_vm2, %v4315_v44, 0.0  ;;  %v5759_v41 = vld [vmem:[%s11472_s8 + $0x140] sm:$0xff]  ;;  %v5794_v1 = vld [vmem:[%s11472_s8 + $0x258] sm:$0xff]  ;;  %v5793_v60 = vld [vmem:[%s11472_s8 + $0x250] sm:$0xff] }
 0x3f2   : > { %5622 = vmatpush.msra.mxu3 %v5407_v4  ;;  %6608 = vmatmul.msk.f32.vlgmr.msra.gmra.mxu2 %vm227_vm2, %v10616_v46  ;;  %v5778_v4 = vld [vmem:[%s11472_s8 + $0x1d8] sm:$0xff]  ;;  %v4537_v35 = vadd.f32 %v4536_v12, %v4535_v3  ;;  %v11095_v19 = vadd.f32 %v5669_v62, %v11017_v39  ;;  %v4626_v39 = vsel %vm227_vm2, %v10834_v54, 0.0  ;;  %v5775_v49 = vld [vmem:[%s11472_s8 + $0x1c0] sm:$0xff]  ;;  %v5666_v3 = vsub.f32 0.0, %v5662_v13 }
 0x3f3   : > { %6609 = vmatmul.msk.f32.vlgmr.msra.gmra.mxu3 %vm227_vm2, %v10616_v46  ;;  %5908 = vmatpush.msrb.mxu2 %v5766_v21  ;;  %v4581_v21 = vsel %vm227_vm2, %v10923_v17, 0.0  ;;  %v4624_v17 = vsel %vm227_vm2, %v10745_v7, 0.0  ;;  %v5760_v7 = vld [vmem:[%s11472_s8 + $0x148] sm:$0xff]  ;;  %v4356_v54 = vpop.f32.mrf.mxu3 }
 0x3f4   : > { %v10986_v25 = vpop.f32.mrf.mxu1  ;;  %5582 = vmatpush.msrb.mxu1 %v5405_v61  ;;  %5928 = vmatpush.msrb.mxu3 %v5782_v63  ;;  %v5777_v63 = vld [vmem:[%s11472_s8 + $0x1d0] sm:$0xff]  ;;  %vm5677_vm6 = vcmp.gt.f32.partialorder %v11095_v19, 1.0  ;;  %v4582_v45 = vadd.f32 %v4581_v21, %v4580_v22  ;;  %v4625_v28 = vadd.f32 %v4624_v17, %v4623_v58  ;;  %v5772_v21 = vld [vmem:[%s11472_s8 + $0x1a8] sm:$0xff] }
 0x3f5   : > { %6607 = vmatmul.msk.f32.vlgmr.msrb.gmra.mxu1 %vm227_vm2, %v10616_v46  ;;  %5909 = vmatpush.msrb.mxu2 %v5765_v27  ;;  %v5780_v46 = vld [vmem:[%s11472_s8 + $0x1e8] sm:$0xff]  ;;  %v6610_v11 = vsel %vm5677_vm6, 1.0, %v11480_v57  ;;  %v4630_v62 = vsel %vm227_vm2, %v10986_v25, 0.0 }
 0x3f6   : > { %5888 = vmatpush.msra.mxu1 %v5750_v2  ;;  %5929 = vmatpush.msrb.mxu3 %v5781_v9  ;;  %v11112_v2 = vld [vmem:[#allocation6 + $0x8] sm:$0xff]  ;;  %v5776_v9 = vld [vmem:[%s11472_s8 + $0x1c8] sm:$0xff]  ;;  %v5716_v36 = vmax.f32 %v6610_v11, 0.0  ;;  %v4584_v23 = vadd.f32 %v4583_v6, %v4582_v45  ;;  %v5683_v6 = vsel %vm5677_vm6, 0.0, %v11095_v19  ;;  %v5739_v19 = vld [vmem:[%s11472_s8 + $0xa0] sm:$0xff] }
 0x3f7   : > { %5881 = vmatpush.msrb.mxu0 %v5721_v5  ;;  %5910 = vmatpush.msrb.mxu2 %v5764_v34  ;;  %v11115_v27 = vmul.f32 0.2, %v11112_v2  ;;  %v5796_v5 = vld [vmem:[%s11472_s8 + $0x268] sm:$0xff]  ;;  %v4539_v34 = vadd.f32 %v4538_v33, %v4537_v35  ;;  %5685 = vst [vmem:[#allocation7] sm:$0xff] %v5683_v6  ;;  %v5754_v33 = vld [vmem:[%s11472_s8 + $0x118] sm:$0xff] }
 0x3f8   : > { %5889 = vmatpush.msra.mxu1 %v5749_v56  ;;  %5930 = vmatpush.msrb.mxu3 %v5780_v46  ;;  %v5795_v46 = vld [vmem:[%s11472_s8 + $0x260] sm:$0xff]  ;;  %5849 = vst [vmem:[#allocation1] ss:$4 sm:$0xff] %v5716_v36  ;;  %v4318_v40 = vpop.f32.mrf.mxu2  ;;  %v5756_v25 = vld [vmem:[%s11472_s8 + $0x128] sm:$0xff]  ;;  %v5789_v36 = vld [vmem:[%s11472_s8 + $0x230] sm:$0xff] }
 0x3f9   : > { %5882 = vmatpush.msrb.mxu0 %v5720_v50  ;;  %5911 = vmatpush.msrb.mxu2 %v5763_v26  ;;  %v11144_v50 = vld [vmem:[#allocation8] sm:$0xff]  ;;  %v5743_v26 = vld [vmem:[%s11472_s8 + $0xc0] sm:$0xff]  ;;  %v4677_v16 = vsub.f32 %v11112_v2, %v11115_v27  ;;  %v4632_v35 = vsel %vm227_vm2, %v4318_v40, 0.0 }
 0x3fa   : > { %5890 = vmatpush.msra.mxu1 %v5748_v0  ;;  %5931 = vmatpush.msrb.mxu3 %v5779_v37  ;;  %v4627_v0 = vadd.f32 %v4626_v39, %v4625_v28  ;;  %v5668_v37 = vadd.f32 %v5666_v3, %v11144_v50  ;;  %v5791_v2 = vld [vmem:[%s11472_s8 + $0x240] sm:$0xff]  ;;  %v5768_v3 = vld [vmem:[%s11472_s8 + $0x188] sm:$0xff]  ;;  %v5846_v40 = vld [vmem:[%s11472_s8 + $0x3f8] sm:$0xff] }
 0x3fb   : > { %5883 = vmatpush.msrb.mxu0 %v5719_v24  ;;  %5912 = vmatpush.msrb.mxu2 %v5762_v48  ;;  %v4585_v24 = vsel %vm227_vm2, %v4356_v54, 0.0  ;;  %v5757_v48 = vld [vmem:[%s11472_s8 + $0x130] sm:$0xff]  ;;  %v4359_v39 = vpop.f32.mrf.mxu3  ;;  %v5738_v54 = vld [vmem:[%s11472_s8 + $0x98] sm:$0xff] }
 0x3fc   : > { %v4432_v43 = vpop.f32.mrf.mxu1  ;;  %5891 = vmatpush.msra.mxu1 %v5747_v10  ;;  %5932 = vmatpush.msrb.mxu3 %v5778_v4  ;;  %v5742_v10 = vld [vmem:[%s11472_s8 + $0xb8] sm:$0xff]  ;;  %v5670_v12 = vmul.f32 0.1, %v5668_v37 }
 0x3fd   : > { %v4491_v32 = vsel %vm227_vm2, %v4432_v43, 0.0  ;;  %5948 = vmatpush.msra.mxu0 %v5798_v47  ;;  %5913 = vmatpush.msrb.mxu2 %v5761_v14  ;;  %v5758_v43 = vld [vmem:[%s11472_s8 + $0x138] sm:$0xff] }
 0x3fe   : > { %v4492_v15 = vadd.f32 %v4491_v32, %v4490_v52  ;;  %5892 = vmatpush.msra.mxu1 %v5746_v55  ;;  %5933 = vmatpush.msrb.mxu3 %v5777_v63  ;;  %v4397_v32 = vpop.f32.mrf.mxu0  ;;  %v6742_v55 = vld [vmem:[#allocation6 + $0x10] sm:$0xff]  ;;  %v11192_v58 = vadd.f32 %v5670_v12, %v5662_v13  ;;  %v5740_v63 = vld [vmem:[%s11472_s8 + $0xa8] sm:$0xff] }
 0x3ff   : > { %5949 = vmatpush.msra.mxu0 %v5797_v18  ;;  %5914 = vmatpush.msrb.mxu2 %v5760_v7  ;;  %v4674_v14 = vmul.f32 0.2, %v6742_v55  ;;  %v4587_v22 = vsel %vm227_vm2, %v4397_v32, 0.0  ;;  %v5755_v18 = vld [vmem:[%s11472_s8 + $0x120] sm:$0xff]  ;;  %v5790_v13 = vld [vmem:[%s11472_s8 + $0x238] sm:$0xff] }
 0x400   : > { %v4644_v61 = vadd.f32 %v11057_v31, %v4492_v15  ;;  %5893 = vmatpush.msra.mxu1 %v5745_v38  ;;  %5934 = vmatpush.msrb.mxu3 %v5776_v9  ;;  %v4628_v15 = vsel %vm227_vm2, %v10867_v59, 0.0  ;;  %v5741_v59 = vld [vmem:[%s11472_s8 + $0xb0] sm:$0xff]  ;;  %v5771_v38 = vld [vmem:[%s11472_s8 + $0x1a0] sm:$0xff]  ;;  %vm5678_vm7 = vcmp.gt.f32.partialorder %v11192_v58, 1.0  ;;  %v5770_v9 = vld [vmem:[%s11472_s8 + $0x198] sm:$0xff] }
 0x401   : > { %5950 = vmatpush.msra.mxu0 %v5796_v5  ;;  %5915 = vmatpush.msrb.mxu2 %v5759_v41  ;;  %v4629_v4 = vadd.f32 %v4628_v15, %v4627_v0  ;;  %v4678_v11 = vsub.f32 %v6742_v55, %v4674_v14  ;;  %v6611_v28 = vsel %vm5678_vm7, 1.0, %v11480_v57  ;;  %v5830_v37 = vld [vmem:[%s11472_s8 + $0x378] sm:$0xff]  ;;  %v5767_v32 = vld [vmem:[%s11472_s8 + $0x180] sm:$0xff]  ;;  %v5829_v15 = vld [vmem:[%s11472_s8 + $0x370] sm:$0xff] }
 0x402   : > { %v4700_v29 = vadd.f32 %v4676_v8, %v4644_v61  ;;  %5894 = vmatpush.msra.mxu1 %v5744_v51  ;;  %5935 = vmatpush.msrb.mxu3 %v5775_v49  ;;  %v4586_v8 = vadd.f32 %v4585_v24, %v4584_v23  ;;  %v5792_v61 = vld [vmem:[%s11472_s8 + $0x248] sm:$0xff]  ;;  %v5753_v51 = vld [vmem:[%s11472_s8 + $0x110] sm:$0xff]  ;;  %v5717_v41 = vmax.f32 %v6611_v28, 0.0  ;;  %v5735_v24 = vld [vmem:[%s11472_s8 + $0x80] sm:$0xff] }
 0x403   : > { %5951 = vmatpush.msra.mxu0 %v5795_v46  ;;  %5916 = vmatpush.msrb.mxu2 %v5758_v43  ;;  %v4631_v17 = vadd.f32 %v4630_v62, %v4629_v4  ;;  %v5752_v46 = vld [vmem:[%s11472_s8 + $0x108] sm:$0xff]  ;;  %v5684_v62 = vsel %vm5678_vm7, 0.0, %v11192_v58  ;;  %v5854_v4 = vld.sshfl [vmem:[#allocation1 + $0x10] sm:$0xff pattern:$0x73625140]  ;;  %v5827_v14 = vld [vmem:[%s11472_s8 + $0x360] sm:$0xff] }
 0x404   : > { %4704 = vst.msk [vmem:[#allocation6] sm:$0xff] %vm227_vm2, %v4700_v29  ;;  %v4435_v56 = vpop.f32.mrf.mxu1  ;;  %5895 = vmatpush.msra.mxu1 %v5743_v26  ;;  %5936 = vmatpush.msrb.mxu3 %v5774_v20  ;;  %v4588_v29 = vadd.f32 %v4587_v22, %v4586_v8  ;;  %v5788_v26 = vld [vmem:[%s11472_s8 + $0x228] sm:$0xff]  ;;  %v5852_v58 = vld.sshfl [vmem:[#allocation1] sm:$0xff pattern:$0x73625140]  ;;  %v5810_v6 = vld [vmem:[%s11472_s8 + $0x2d8] sm:$0xff] }
 0x405   : > { %v4540_v42 = vsel %vm227_vm2, %v4435_v56, 0.0  ;;  %5952 = vmatpush.msra.mxu0 %v5794_v1  ;;  %5917 = vmatpush.msrb.mxu2 %v5757_v48  ;;  %v4633_v27 = vadd.f32 %v4632_v35, %v4631_v17  ;;  %v4634_v56 = vsel %vm227_vm2, %v4359_v39, 0.0  ;;  %5851 = vst [vmem:[#allocation1 + $0x20] ss:$4 sm:$0xff] %v5717_v41  ;;  %v5736_v43 = vld [vmem:[%s11472_s8 + $0x88] sm:$0xff]  ;;  %v5811_v22 = vld [vmem:[%s11472_s8 + $0x2e0] sm:$0xff] }
 0x406   : > { %v4541_v52 = vadd.f32 %v4540_v42, %v4539_v34  ;;  %5896 = vmatpush.msra.mxu1 %v5742_v10  ;;  %5937 = vmatpush.msrb.mxu3 %v5773_v30  ;;  %v5769_v34 = vld [vmem:[%s11472_s8 + $0x190] sm:$0xff]  ;;  %v4400_v23 = vpop.f32.mrf.mxu0  ;;  %5686 = vst [vmem:[#allocation7 + $0x8] sm:$0xff] %v5684_v62  ;;  %v5812_v55 = vld [vmem:[%s11472_s8 + $0x2e8] sm:$0xff]  ;;  %v5826_v17 = vld [vmem:[%s11472_s8 + $0x358] sm:$0xff] }
 0x407   : > { %5953 = vmatpush.msra.mxu0 %v5793_v60  ;;  %5918 = vmatpush.msrb.mxu2 %v5756_v25  ;;  %v4635_v49 = vadd.f32 %v4634_v56, %v4633_v27  ;;  %v5737_v42 = vld [vmem:[%s11472_s8 + $0x90] sm:$0xff]  ;;  %v4636_v1 = vsel %vm227_vm2, %v4400_v23, 0.0  ;;  %v5828_v25 = vld [vmem:[%s11472_s8 + $0x368] sm:$0xff]  ;;  %v5838_v28 = vld [vmem:[%s11472_s8 + $0x3b8] sm:$0xff] }
 0x408   : > { %v4645_v44 = vadd.f32 %v11057_v31, %v4541_v52  ;;  %5897 = vmatpush.msra.mxu1 %v5741_v59  ;;  %5938 = vmatpush.msrb.mxu3 %v5772_v21  ;;  %v5751_v52 = vld [vmem:[%s11472_s8 + $0x100] sm:$0xff]  ;;  %v5845_v30 = vld [vmem:[%s11472_s8 + $0x3f0] sm:$0xff]  ;;  %v5824_v27 = vld [vmem:[%s11472_s8 + $0x348] sm:$0xff] }
 0x409   : > { %5954 = vmatpush.msra.mxu0 %v5792_v61  ;;  %5919 = vmatpush.msrb.mxu2 %v5755_v18  ;;  %v4637_v48 = vadd.f32 %v4636_v1, %v4635_v49  ;;  %v5813_v59 = vld [vmem:[%s11472_s8 + $0x2f0] sm:$0xff]  ;;  %v5787_v21 = vld [vmem:[%s11472_s8 + $0x220] sm:$0xff]  ;;  %v5786_v18 = vld [vmem:[%s11472_s8 + $0x218] sm:$0xff] }
 0x40a   : > { %v4701_v47 = vadd.f32 %v4677_v16, %v4645_v44  ;;  %5898 = vmatpush.msra.mxu1 %v5740_v63  ;;  %5939 = vmatpush.msrb.mxu3 %v5771_v38  ;;  %v6743_v16 = vld [vmem:[#allocation6 + $0x18] sm:$0xff]  ;;  %v5814_v44 = vld [vmem:[%s11472_s8 + $0x2f8] sm:$0xff]  ;;  %v5825_v38 = vld [vmem:[%s11472_s8 + $0x350] sm:$0xff] }
 0x40b   : > { %5955 = vmatpush.msra.mxu0 %v5791_v2  ;;  %5920 = vmatpush.msrb.mxu2 %v5754_v33  ;;  %v4675_v20 = vmul.f32 0.2, %v6743_v16  ;;  %v5842_v63 = vld [vmem:[%s11472_s8 + $0x3d8] sm:$0xff]  ;;  %v5809_v2 = vld [vmem:[%s11472_s8 + $0x2d0] sm:$0xff]  ;;  %v5840_v39 = vld [vmem:[%s11472_s8 + $0x3c8] sm:$0xff] }
 0x40c   : > { %4705 = vst.msk [vmem:[#allocation6 + $0x8] sm:$0xff] %vm227_vm2, %v4701_v47  ;;  %v4438_v7 = vpop.f32.mrf.mxu1  ;;  %5899 = vmatpush.msra.mxu1 %v5739_v19  ;;  %5940 = vmatpush.msrb.mxu3 %v5770_v9  ;;  %v5844_v47 = vld [vmem:[%s11472_s8 + $0x3e8] sm:$0xff]  ;;  %v5785_v19 = vld [vmem:[%s11472_s8 + $0x210] sm:$0xff]  ;;  %v5839_v9 = vld [vmem:[%s11472_s8 + $0x3c0] sm:$0xff] }
 0x40d   : > { %v4589_v45 = vsel %vm227_vm2, %v4438_v7, 0.0  ;;  %5956 = vmatpush.msra.mxu0 %v5790_v13  ;;  %5921 = vmatpush.msrb.mxu2 %v5753_v51  ;;  %v4679_v12 = vsub.f32 %v6743_v16, %v4675_v20  ;;  %v5841_v7 = vld [vmem:[%s11472_s8 + $0x3d0] sm:$0xff]  ;;  %v5808_v33 = vld [vmem:[%s11472_s8 + $0x2c8] sm:$0xff]  ;;  %v5822_v13 = vld [vmem:[%s11472_s8 + $0x338] sm:$0xff] }
 0x40e   : > { %v4590_v5 = vadd.f32 %v4589_v45, %v4588_v29  ;;  %5900 = vmatpush.msra.mxu1 %v5738_v54  ;;  %5941 = vmatpush.msrb.mxu3 %v5769_v34  ;;  %v5853_v29 = vld.sshfl [vmem:[#allocation1 + $0x8] sm:$0xff pattern:$0x73625140]  ;;  %v5823_v45 = vld [vmem:[%s11472_s8 + $0x340] sm:$0xff]  ;;  %v5806_v51 = vld [vmem:[%s11472_s8 + $0x2b8] sm:$0xff] }
 0x40f   : > { %5957 = vmatpush.msra.mxu0 %v5789_v36  ;;  %5922 = vmatpush.msrb.mxu2 %v5752_v46  ;;  %v5783_v54 = vld [vmem:[%s11472_s8 + $0x200] sm:$0xff]  ;;  %v5821_v41 = vld [vmem:[%s11472_s8 + $0x330] sm:$0xff]  ;;  %v5820_v36 = vld [vmem:[%s11472_s8 + $0x328] sm:$0xff] }
 0x410   : > { %v4646_v57 = vadd.f32 %v11057_v31, %v4590_v5  ;;  %5901 = vmatpush.msra.mxu1 %v5737_v42  ;;  %5942 = vmatpush.msrb.mxu3 %v5768_v3  ;;  %v5784_v5 = vld [vmem:[%s11472_s8 + $0x208] sm:$0xff]  ;;  %v5837_v56 = vld [vmem:[%s11472_s8 + $0x3b0] sm:$0xff]  ;;  %v5856_v34 = vld.sshfl [vmem:[#allocation1 + $0x20] sm:$0xff pattern:$0x73625140] }
 0x411   : > { %5958 = vmatpush.msra.mxu0 %v5788_v26  ;;  %5923 = vmatpush.msrb.mxu2 %v5751_v52  ;;  %v5836_v23 = vld [vmem:[%s11472_s8 + $0x3a8] sm:$0xff]  ;;  %v5819_v42 = vld [vmem:[%s11472_s8 + $0x320] sm:$0xff]  ;;  %v5855_v46 = vld.sshfl [vmem:[#allocation1 + $0x18] sm:$0xff pattern:$0x73625140]  ;;  %v4860_v26 = vpop.f32.mrf.mxu2 }
 0x412   : > { %v4702_v0 = vadd.f32 %v4678_v11, %v4646_v57  ;;  %5902 = vmatpush.msra.mxu1 %v5736_v43  ;;  %5943 = vmatpush.msrb.mxu3 %v5767_v32  ;;  %v5807_v11 = vld [vmem:[%s11472_s8 + $0x2c0] sm:$0xff]  ;;  %v5805_v57 = vld [vmem:[%s11472_s8 + $0x2b0] sm:$0xff]  ;;  %v5804_v49 = vld [vmem:[%s11472_s8 + $0x2a8] sm:$0xff]  ;;  %v4880_v43 = vpop.f32.mrf.mxu3 }
 0x413   : > { %5988 = vmatpush.msra.mxu2 %v5830_v37  ;;  %5959 = vmatpush.msra.mxu0 %v5787_v21  ;;  %v5803_v3 = vld [vmem:[%s11472_s8 + $0x2a0] sm:$0xff]  ;;  %v5802_v16 = vld [vmem:[%s11472_s8 + $0x298] sm:$0xff]  ;;  %v5817_v20 = vld [vmem:[%s11472_s8 + $0x310] sm:$0xff] }
 0x414   : > { %4706 = vst.msk [vmem:[#allocation6 + $0x10] sm:$0xff] %vm227_vm2, %v4702_v0  ;;  %v4441_v10 = vpop.f32.mrf.mxu1  ;;  %5903 = vmatpush.msra.mxu1 %v5735_v24  ;;  %6008 = vmatpush.msra.mxu3 %v5846_v40  ;;  %v5818_v0 = vld [vmem:[%s11472_s8 + $0x318] sm:$0xff]  ;;  %v5835_v52 = vld [vmem:[%s11472_s8 + $0x3a0] sm:$0xff]  ;;  %v5801_v37 = vld [vmem:[%s11472_s8 + $0x290] sm:$0xff] }
 0x415   : > { %v4638_v8 = vsel %vm227_vm2, %v4441_v10, 0.0  ;;  %5989 = vmatpush.msra.mxu2 %v5829_v15  ;;  %5884 = vmatmul.f32.vlgmr.msrb.gmra.mxu0 %v5852_v58  ;;  %v5834_v1 = vld [vmem:[%s11472_s8 + $0x398] sm:$0xff]  ;;  %v5816_v32 = vld [vmem:[%s11472_s8 + $0x308] sm:$0xff]  ;;  %v5833_v24 = vld [vmem:[%s11472_s8 + $0x390] sm:$0xff] }
 0x416   : > { %v4639_v60 = vadd.f32 %v4638_v8, %v4637_v48  ;;  %5968 = vmatpush.msrb.mxu1 %v5814_v44  ;;  %6009 = vmatpush.msra.mxu3 %v5845_v30  ;;  %v5800_v40 = vld [vmem:[%s11472_s8 + $0x288] sm:$0xff]  ;;  %v5815_v10 = vld [vmem:[%s11472_s8 + $0x300] sm:$0xff]  ;;  %v5858_v44 = vld.sshfl [vmem:[#allocation1 + $0x30] sm:$0xff pattern:$0x73625140] }
 0x417   : > { %5924 = vmatmul.f32.vlgmr.msrb.gmra.mxu2 %v5854_v4  ;;  %5960 = vmatpush.msra.mxu0 %v5786_v18  ;;  %v5832_v48 = vld [vmem:[%s11472_s8 + $0x388] sm:$0xff]  ;;  %v5799_v15 = vld [vmem:[%s11472_s8 + $0x280] sm:$0xff]  ;;  %v4940_v4 = vpop.f32.mrf.mxu0 }
 0x418   : > { %v4647_v35 = vadd.f32 %v11057_v31, %v4639_v60  ;;  %5969 = vmatpush.msrb.mxu1 %v5813_v59  ;;  %5990 = vmatpush.msra.mxu2 %v5828_v25  ;;  %v5843_v31 = vld [vmem:[%s11472_s8 + $0x3e0] sm:$0xff]  ;;  %v5857_v60 = vld.sshfl [vmem:[#allocation1 + $0x28] sm:$0xff pattern:$0x73625140] }
 0x419   : > { %6010 = vmatpush.msra.mxu3 %v5844_v47  ;;  %5904 = vmatmul.f32.vlgmr.msra.gmra.mxu1 %v5853_v29  ;;  %v4900_v8 = vpop.f32.mrf.mxu2  ;;  %v5831_v30 = vld [vmem:[%s11472_s8 + $0x380] sm:$0xff] }
 0x41a   : > { %v4703_v61 = vadd.f32 %v4679_v12, %v4647_v35  ;;  %5970 = vmatpush.msrb.mxu1 %v5812_v55  ;;  %5991 = vmatpush.msra.mxu2 %v5827_v14  ;;  %v4920_v62 = vpop.f32.mrf.mxu3  ;;  %v5859_v12 = vld.sshfl [vmem:[#allocation1 + $0x38] sm:$0xff pattern:$0x73625140] }
 0x41b   : > { %6011 = vmatpush.msra.mxu3 %v5843_v31  ;;  %5961 = vmatpush.msra.mxu0 %v5785_v19 }
 0x41c   : > { %4707 = vst.msk [vmem:[#allocation6 + $0x18] sm:$0xff] %vm227_vm2, %v4703_v61  ;;  %5971 = vmatpush.msrb.mxu1 %v5811_v22  ;;  %5992 = vmatpush.msra.mxu2 %v5826_v17  ;;  %v4960_v59 = vpop.f32.mrf.mxu1 }
 0x41d   : > { %6012 = vmatpush.msra.mxu3 %v5842_v63  ;;  %5962 = vmatpush.msra.mxu0 %v5784_v5 }
 0x41e   : > { %5972 = vmatpush.msrb.mxu1 %v5810_v6  ;;  %5993 = vmatpush.msra.mxu2 %v5825_v38 }
 0x41f   : > { %6013 = vmatpush.msra.mxu3 %v5841_v7  ;;  %5963 = vmatpush.msra.mxu0 %v5783_v54  ;;  %v5022_v35 = vpop.f32.mrf.mxu0 }
 0x420   : > { %5973 = vmatpush.msrb.mxu1 %v5809_v2  ;;  %5994 = vmatpush.msra.mxu2 %v5824_v27  ;;  %v5023_v19 = vadd.f32 %v5022_v35, %v4860_v26 }
 0x421   : > { %6014 = vmatpush.msra.mxu3 %v5840_v39  ;;  %5964 = vmatmul.f32.vlgmr.msra.gmra.mxu0 %v5856_v34  ;;  %v4980_v25 = vpop.f32.mrf.mxu2  ;;  %v11436_v39 = vld [vmem:[%s11471_s7] sm:$0xff] }
 0x422   : > { %5974 = vmatpush.msrb.mxu1 %v5808_v33  ;;  %5995 = vmatpush.msra.mxu2 %v5823_v45  ;;  %v5000_v47 = vpop.f32.mrf.mxu3  ;;  %v5638_v45 = vperm.slane %v11436_v39, 1  ;;  %v5640_v34 = vperm.slane %v11436_v39, 3 }
 0x423   : > { %6015 = vmatpush.msra.mxu3 %v5839_v9 }
 0x424   : > { %5975 = vmatpush.msrb.mxu1 %v5807_v11  ;;  %5996 = vmatpush.msra.mxu2 %v5822_v13  ;;  %v5042_v21 = vpop.f32.mrf.mxu1 }
 0x425   : > { %6016 = vmatpush.msra.mxu3 %v5838_v28  ;;  %v5043_v27 = vadd.f32 %v5042_v21, %v4880_v43 }
 0x426   : > { %5976 = vmatpush.msrb.mxu1 %v5806_v51  ;;  %5997 = vmatpush.msra.mxu2 %v5821_v41 }
 0x427   : > { %6017 = vmatpush.msra.mxu3 %v5837_v56  ;;  %v5102_v31 = vpop.f32.mrf.mxu0  ;;  %v5639_v56 = vperm.slane %v11436_v39, 2 }
 0x428   : > { %5977 = vmatpush.msrb.mxu1 %v5805_v57  ;;  %5998 = vmatpush.msra.mxu2 %v5820_v36  ;;  %v5637_v36 = vperm.slane %v11436_v39, 0 }
 0x429   : > { %6018 = vmatpush.msra.mxu3 %v5836_v23  ;;  %v5062_v55 = vpop.f32.mrf.mxu2 }
 0x42a   : > { %5978 = vmatpush.msrb.mxu1 %v5804_v49  ;;  %5999 = vmatpush.msra.mxu2 %v5819_v42  ;;  %v5082_v14 = vpop.f32.mrf.mxu3  ;;  %v5063_v9 = vadd.f32 %v5062_v55, %v4900_v8  ;;  %v5103_v8 = vadd.f32 %v5102_v31, %v4940_v4 }
 0x42b   : > { %5944 = vmatmul.f32.vlgmr.msrb.gmra.mxu3 %v5855_v46  ;;  %v5083_v5 = vadd.f32 %v5082_v14, %v4920_v62 }
 0x42c   : > { %5979 = vmatpush.msrb.mxu1 %v5803_v3  ;;  %6000 = vmatpush.msra.mxu2 %v5818_v0  ;;  %v5673_v0 = vmul.f32 0.2, %v11046_v53 }
 0x42d   : > { %6019 = vmatpush.msra.mxu3 %v5835_v52 }
 0x42e   : > { %5980 = vmatpush.msrb.mxu1 %v5802_v16  ;;  %6001 = vmatpush.msra.mxu2 %v5817_v20  ;;  %v5122_v61 = vpop.f32.mrf.mxu1 }
 0x42f   : > { %6020 = vmatpush.msra.mxu3 %v5834_v1  ;;  %v5249_v17 = vpop.f32.mrf.mxu0  ;;  %v5675_v1 = vsub.f32 %v11046_v53, %v5673_v0 }
 0x430   : > { %5981 = vmatpush.msrb.mxu1 %v5801_v37  ;;  %6002 = vmatpush.msra.mxu2 %v5816_v32  ;;  %v5392_v28 = vadd.f32 %v5249_v17, %v5023_v19  ;;  %v5643_v17 = vperm.slane %v11436_v39, 6 }
 0x431   : > { %6021 = vmatpush.msra.mxu3 %v5833_v24  ;;  %v5142_v58 = vpop.f32.mrf.mxu2 }
 0x432   : > { %5982 = vmatpush.msrb.mxu1 %v5800_v40  ;;  %6003 = vmatpush.msra.mxu2 %v5815_v10  ;;  %v5162_v22 = vpop.f32.mrf.mxu3  ;;  %v5143_v62 = vadd.f32 %v5142_v58, %v4980_v25  ;;  %v5674_v25 = vmul.f32 0.2, %v11144_v50 }
 0x433   : > { %6022 = vmatpush.msra.mxu3 %v5832_v48  ;;  %6004 = vmatmul.f32.vlgmr.msra.gmra.mxu2 %v5858_v44  ;;  %v5123_v48 = vadd.f32 %v5122_v61, %v4960_v59  ;;  %v5641_v59 = vperm.slane %v11436_v39, 4 }
 0x434   : > { %5983 = vmatpush.msrb.mxu1 %v5799_v15  ;;  %v5642_v15 = vperm.slane %v11436_v39, 5 }
 0x435   : > { %6023 = vmatpush.msra.mxu3 %v5831_v30  ;;  %5984 = vmatmul.f32.vlgmr.msrb.gmra.mxu1 %v5857_v60  ;;  %v5163_v60 = vadd.f32 %v5162_v22, %v5000_v47 }
 0x436   : > { %6024 = vmatmul.f32.vlgmr.msra.gmra.mxu3 %v5859_v12 }
 0x437   : > { %v5329_v38 = vpop.f32.mrf.mxu0 }
 0x438   : > { %v5396_v53 = vadd.f32 %v5329_v38, %v5103_v8 }
 0x43f   : > { %v5269_v63 = vpop.f32.mrf.mxu1  ;;  %v5484_v11 = vpop.f32.mrf.mxu0 }
 0x440   : > { %v5393_v33 = vadd.f32 %v5269_v63, %v5043_v27  ;;  %v5627_v57 = vadd.f32 %v5484_v11, %v5392_v28  ;;  %v5644_v63 = vperm.slane %v11436_v39, 7 }
 0x441   : > { %v5289_v18 = vpop.f32.mrf.mxu2 }
 0x442   : > { %v5394_v51 = vadd.f32 %v5289_v18, %v5063_v9  ;;  %v5653_v16 = vadd.f32 %v5637_v36, %v5627_v57  ;;  %v6029_v36 = vld [vmem:[#allocation9] sm:$0x3] }
 0x443   : > { %v5309_v6 = vpop.f32.mrf.mxu3 }
 0x444   : > { %v5395_v41 = vadd.f32 %v5309_v6, %v5083_v5 }
 0x44f   : > { %v5564_v35 = vpop.f32.mrf.mxu0 }
 0x450   : > { %v5631_v6 = vadd.f32 %v5564_v35, %v5396_v53 }
 0x451   : > { %v5349_v7 = vpop.f32.mrf.mxu1 }
 0x452   : > { %v5397_v44 = vadd.f32 %v5349_v7, %v5123_v48  ;;  %v5657_v22 = vadd.f32 %v5641_v59, %v5631_v6 }
 0x453   : > { %v5369_v29 = vpop.f32.mrf.mxu2 }
 0x454   : > { %v5389_v2 = vpop.f32.mrf.mxu3  ;;  %v5398_v21 = vadd.f32 %v5369_v29, %v5143_v62  ;;  %v5676_v29 = vsub.f32 %v11144_v50, %v5674_v25 }
 0x455   : > { %v5399_v55 = vadd.f32 %v5389_v2, %v5163_v60 }
 0x461   : > { %v5504_v13 = vpop.f32.mrf.mxu1 }
 0x462   : > { %v5628_v54 = vadd.f32 %v5504_v13, %v5393_v33 }
 0x464   : > { %v5654_v23 = vadd.f32 %v5638_v45, %v5628_v54  ;;  %v5524_v49 = vpop.f32.mrf.mxu2 }
 0x465   : > { %v5544_v42 = vpop.f32.mrf.mxu3  ;;  %v5629_v46 = vadd.f32 %v5524_v49, %v5394_v51 }
 0x466   : > { %v5630_v3 = vadd.f32 %v5544_v42, %v5395_v41  ;;  %v5695_v26 = vrot.slane %v5654_v23, 6  ;;  %v5718_v23 = vld [vmem:[#allocation10] sm:$0x3] }
 0x467   : > { %v5655_v43 = vadd.f32 %v5639_v56, %v5629_v46  ;;  %v6030_v46 = vsub.f32 0.0, %v6029_v36 }
 0x468   : > { %v5656_v52 = vadd.f32 %v5640_v34, %v5630_v3  ;;  %v5702_v32 = vsel %vm5701_vm8, %v5653_v16, %v5695_v26  ;;  %v6038_v16 = vld [vmem:[#allocation11] sm:$0x3] }
 0x469   : > { %v5696_v20 = vrot.slane %v5655_v43, 4 }
 0x46a   : > { %v5697_v37 = vrot.slane %v5656_v52, 2 }
 0x46c   : > { %v5704_v24 = vsel %vm5703_vm9, %v5696_v20, %v5697_v37  ;;  %v6042_v37 = vlaneseq (%p245_p0) }
 0x46d   : > { %v5706_v40 = vsel %vm5705_vm10, %v5702_v32, %v5704_v24 }
 0x46e   : > { %v5712_v10 = vadd.f32 %v5706_v40, %v5675_v1  ;;  %v6043_v24 = vand.u32 (%p245_p0), 127, %v6042_v37 }
 0x470   : > { %5714 = vst [vmem:[#allocation8 + $0x8] sm:$0xff] %v5712_v10  ;;  %vm6044_vm11 = vcmp.lt.s32.totalorder (%p245_p0), %v6043_v24, 35 }
 0x472   : > { %v5584_v30 = vpop.f32.mrf.mxu1 }
 0x473   : > { %v5632_v12 = vadd.f32 %v5584_v30, %v5397_v44 }
 0x475   : > { %v5658_v14 = vadd.f32 %v5642_v15, %v5632_v12  ;;  %v5604_v61 = vpop.f32.mrf.mxu2 }
 0x476   : > { %v5624_v18 = vpop.f32.mrf.mxu3  ;;  %v5633_v7 = vadd.f32 %v5604_v61, %v5398_v21 }
 0x477   : > { %v5634_v4 = vadd.f32 %v5624_v18, %v5399_v55  ;;  %v5698_v47 = vrot.slane %v5658_v14, 6 }
 0x478   : > { %v5659_v31 = vadd.f32 %v5643_v17, %v5633_v7 }
 0x479   : > { %v5660_v58 = vadd.f32 %v5644_v63, %v5634_v4  ;;  %v5707_v27 = vsel %vm5701_vm8, %v5657_v22, %v5698_v47 }
 0x47a   : > { %v5699_v38 = vrot.slane %v5659_v31, 4 }
 0x47b   : > { %v5700_v2 = vrot.slane %v5660_v58, 2 }
 0x47d   : > { %v5708_v19 = vsel %vm5703_vm9, %v5699_v38, %v5700_v2 }
 0x47e   : > { %v5709_v39 = vsel %vm5705_vm10, %v5707_v27, %v5708_v19 }
 0x47f   : > { %v5713_v33 = vadd.f32 %v5709_v39, %v5676_v29 }
 0x481   : > { %5715 = vst [vmem:[#allocation8] sm:$0xff] %v5713_v33 }
 0x492   : > { %v5885_v45 = vpop.f32.mrf.mxu0 }
 0x496   : > { %v5905_v9 = vpop.f32.mrf.mxu1 }
 0x497   : > { %v5906_v5 = vadd.f32 %v5905_v9, %v5885_v45 }
 0x49a   : > { %v5925_v11 = vpop.f32.mrf.mxu2 }
 0x49b   : > { %v5926_v13 = vadd.f32 %v5925_v11, %v5906_v5 }
 0x49e   : > { %v5965_v54 = vpop.f32.mrf.mxu0 }
 0x4ae   : > { %v5945_v28 = vpop.f32.mrf.mxu3 }
 0x4af   : > { %v5946_v51 = vadd.f32 %v5945_v28, %v5926_v13 }
 0x4b1   : > { %v5966_v41 = vadd.f32 %v5965_v54, %v5946_v51 }
 0x4b2   : > { %v5985_v56 = vpop.f32.mrf.mxu1 }
 0x4b3   : > { %v5986_v50 = vadd.f32 %v5985_v56, %v5966_v41 }
 0x4b6   : > { %v6005_v34 = vpop.f32.mrf.mxu2 }
 0x4b7   : > { %v6006_v57 = vadd.f32 %v6005_v34, %v5986_v50 }
 0x4b9   : > { %v6025_v49 = vpop.f32.mrf.mxu3 }
 0x4ba   : > { %v6026_v42 = vadd.f32 %v6025_v49, %v6006_v57 }
 0x4bc   : > { %v6028_v3 = vadd.f32 %v6026_v42, %v5718_v23 }
 0x4be   : > { %v6031_v0 = vadd.f32 %v6030_v46, %v6028_v3  ;;  %v6034_v26 = vmul.f32 0.2, %v6028_v3 }
 0x4c0   : > { %v6032_v43 = vmul.f32 0.1, %v6031_v0  ;;  %v6035_v52 = vsub.f32 %v6028_v3, %v6034_v26 }
 0x4c2   : > { %v6033_v20 = vadd.f32 %v6032_v43, %v6029_v36  ;;  %6036 = vst [vmem:[#allocation10] sm:$0x3] %v6035_v52  ;;  %247 = sbr.rel (!%p245_p0) target bundleno = 208 (0xd0), region = 64 }
 0x4c4   : > { %6037 = vst [vmem:[#allocation9] sm:$0x3] %v6033_v20  ;;  %v6039_v1 = vmax.f32 %v6038_v16, %v6033_v20 }
 0x4c6   : > { %6040 = vst [vmem:[#allocation11] sm:$0x3] %v6039_v1 }
 0x4cd   :  { %v6041_v32 = vld [vmem:[#allocation11] sm:$0x3] }
 0x4ce   :  { %v6045_v40 = vsel %vm6044_vm11, %v6041_v32, -inf }
 0x4cf   :  { %v6047_v10 = vsel %vm5701_vm8, %v6045_v40, -inf }
 0x4d0   :  { %6048 = vmax.xlane.f32.xlu0 %v6047_v10 }
 0x543   :  { %v6049_v48 = vpop.xlane.xlu0 %6048 }
 0x544   :  { %v6050_v44 = vsub.f32 %v6045_v40, %v6049_v48 }
 0x546   :  { %v6051_v15 = vmul.f32 1.442695, %v6050_v44 }
 0x548   :  { %6744 = vpow2.f32 %v6051_v15 }
 0x54e   :  { %v6745_v8 = vpop.eup %6744 }
 0x54f   :  { %v6053_v62 = vsel %vm5701_vm8, %v6745_v8, 0.0 }
 0x550   :  { %6054 = vadd.xlane.f32.xlu0 %v6053_v62 }
 0x5c3   :  { %v6055_v30 = vpop.xlane.xlu0 %6054 }
 0x5c4   :  { %6746 = vlog2.f32 %v6055_v30 }
 0x5ca   :  { %v6747_v60 = vpop.eup %6746 }
 0x5cb   :  { %v6057_v12 = vmul.f32 0.6931472, %v6747_v60 }
 0x5cd   :  { %v6058_v53 = vsub.f32 %v6050_v44, %v6057_v12 }
 0x5cf   :  { %6059 = vst [vmem:[#allocation12] sm:$0x3] %v6058_v53 }
 0x5d0   :  { %6070 = dma.vmem_to_hbm [thread:$0]  %s6066_s0, 32, %s6068_s3, [#allocation13]  }
 0x5d1   :  { %6776 = dma.done.wait [#allocation13], 32  }
 0x5d2   :  { %6777 = vsyncadd [#allocation13], 4294967264 }
 0x5d3   :  { %6075 = vsyncpa [#allocation13], 1 }

</bundles_post_ra>
